<compile_context>
chip_gen: v7x
topology: tpu7x:2x2x1
jax: 0.10.0
libtpu: 0.0.40
codegen_flags: <defaults>
</compile_context>

<pallas_src>
import functools

import jax
import jax.numpy as jnp
import numpy as np
from jax import lax
from jax.experimental import pallas as pl
from jax.experimental.pallas import tpu as pltpu


# ----------------------------------------------------------------------------
# Fused mini-Unet kernel (one batch element per grid step)
# ----------------------------------------------------------------------------
def _fused_unet_kernel(
    x_ref, up1_ref, up2_ref,
    we1_ref, be1_ref, we2_ref, be2_ref, wbt_ref, bbt_ref,
    wd2a_ref, wd2b_ref, bd2_ref, wd1a_ref, wd1b_ref, bd1_ref,
    whd_ref, bhd_ref,
    out_ref,
    s_x, s_e1, s_p1, s_e2, s_p2, s_u2, s_u1, s_d1,
    *, H, W):
  H2, W2 = H // 2, W // 2
  H4, W4 = H // 4, W // 4

  # Zero the padded scratch buffers: the borders implement SAME padding in VMEM.
  for ref in (s_x, s_e1, s_p1, s_e2, s_p2, s_u2, s_u1, s_d1):
    ref[...] = jnp.zeros_like(ref)

  def im2col(buf, h, w):
    # buf: zero-padded (h+2, w+2, c) VMEM scratch -> (h*w, 9*c) bf16 patch matrix.
    cols = [buf[dy:dy + h, dx:dx + w, :] for dy in range(3) for dx in range(3)]
    patch = jnp.concatenate(cols, axis=-1)                  # (h, w, 9c)
    return patch.reshape(h * w, patch.shape[-1]).astype(jnp.bfloat16)

  def conv(patch, w_ref, b_ref, relu=True):
    acc = jnp.dot(patch, w_ref[...], preferred_element_type=jnp.float32)
    acc = acc + b_ref[...]                                  # (1, Cout) broadcast
    if relu:
      acc = jnp.maximum(acc, 0.0)
    return acc                                              # (h*w, Cout) f32

  def maxpool_into(src, dst, h, w):
    # src: padded (h+2, w+2, c); write the 2x2/stride-2 pooled map into dst interior.
    ho, wo = h // 2, w // 2
    a = src[pl.ds(1, ho, 2), pl.ds(1, wo, 2), :]
    b = src[pl.ds(1, ho, 2), pl.ds(2, wo, 2), :]
    c = src[pl.ds(2, ho, 2), pl.ds(1, wo, 2), :]
    d = src[pl.ds(2, ho, 2), pl.ds(2, wo, 2), :]
    dst[1:1 + ho, 1:1 + wo, :] = jnp.maximum(jnp.maximum(a, b), jnp.maximum(c, d))

  # ---------------- encoder ----------------
  s_x[1:1 + H, 1:1 + W, :] = x_ref[...]
  e1 = conv(im2col(s_x, H, W), we1_ref, be1_ref)            # (H*W, C1)
  s_e1[1:1 + H, 1:1 + W, :] = e1.reshape(H, W, e1.shape[-1])
  maxpool_into(s_e1, s_p1, H, W)

  e2 = conv(im2col(s_p1, H2, W2), we2_ref, be2_ref)         # (H2*W2, C2)
  s_e2[1:1 + H2, 1:1 + W2, :] = e2.reshape(H2, W2, e2.shape[-1])
  maxpool_into(s_e2, s_p2, H2, W2)

  # ---------------- bottleneck ----------------
  bt = conv(im2col(s_p2, H4, W4), wbt_ref, bbt_ref)         # (H4*W4, C3)

  # ---------------- decoder level 2: up(bt) ++ e2 -> dec2 (split weights, no concat) ----
  u2 = jnp.dot(up2_ref[...], bt.astype(jnp.bfloat16),
               preferred_element_type=jnp.float32)          # (H2*W2, C3) exact copy
  s_u2[1:1 + H2, 1:1 + W2, :] = u2.reshape(H2, W2, u2.shape[-1])
  acc = (jnp.dot(im2col(s_u2, H2, W2), wd2a_ref[...],
                 preferred_element_type=jnp.float32) +
         jnp.dot(im2col(s_e2, H2, W2), wd2b_ref[...],
                 preferred_element_type=jnp.float32))
  d2 = jnp.maximum(acc + bd2_ref[...], 0.0)                 # (H2*W2, C2)

  # ---------------- decoder level 1: up(d2) ++ e1 -> dec1 ----
  u1 = jnp.dot(up1_ref[...], d2.astype(jnp.bfloat16),
               preferred_element_type=jnp.float32)          # (H*W, C2)
  s_u1[1:1 + H, 1:1 + W, :] = u1.reshape(H, W, u1.shape[-1])
  acc = (jnp.dot(im2col(s_u1, H, W), wd1a_ref[...],
                 preferred_element_type=jnp.float32) +
         jnp.dot(im2col(s_e1, H, W), wd1b_ref[...],
                 preferred_element_type=jnp.float32))
  d1 = jnp.maximum(acc + bd1_ref[...], 0.0)                 # (H*W, C1)
  s_d1[1:1 + H, 1:1 + W, :] = d1.reshape(H, W, d1.shape[-1])

  # ---------------- segmentation head: lane-dense (num_classes, H*W) = NCHW-flat ----------
  p_h = im2col(s_d1, H, W)                                  # (H*W, 9*C1)
  logits = lax.dot_general(whd_ref[...], p_h,               # (NC, 9*C1) x (H*W, 9*C1)^T
                           (((1,), (1,)), ((), ())),
                           preferred_element_type=jnp.float32)   # (NC, H*W)
  out_ref[...] = logits + bhd_ref[...]                      # bias (NC, 1), no activation


# ----------------------------------------------------------------------------
# Wrapper
# ----------------------------------------------------------------------------
def _upsample_matrix(h, w):
  # 0/1 selection matrix implementing nearest-neighbour 2x upsample on flattened maps.
  rows = np.arange(4 * h * w)
  y, x = rows // (2 * w), rows % (2 * w)
  cols = (y // 2) * w + (x // 2)
  u = np.zeros((4 * h * w, h * w), np.float32)
  u[rows, cols] = 1.0
  return jnp.asarray(u, dtype=jnp.bfloat16)


def forward_pallas(x_nchw, params):
  N, Cin, H, W = x_nchw.shape
  num_classes = params["head"][0].shape[-1]
  C1 = params["enc1"][0].shape[-1]
  C2 = params["enc2"][0].shape[-1]
  C3 = params["bott"][0].shape[-1]
  H2, W2, H4, W4 = H // 2, W // 2, H // 4, W // 4

  x = jnp.transpose(x_nchw, (0, 2, 3, 1)).astype(jnp.float32)     # NCHW -> NHWC

  def rw(w):   # (3,3,cin,cout) -> (9*cin, cout) bf16, tap-major / channel-minor
    return w.reshape(9 * w.shape[2], w.shape[3]).astype(jnp.bfloat16)

  def rb(b):   # (cout,) -> (1, cout) f32
    return b.reshape(1, -1).astype(jnp.float32)

  we1, be1 = rw(params["enc1"][0]), rb(params["enc1"][1])
  we2, be2 = rw(params["enc2"][0]), rb(params["enc2"][1])
  wbt, bbt = rw(params["bott"][0]), rb(params["bott"][1])
  wd2, bd2v = params["dec2"]                                       # cin = C3 + C2
  wd2a, wd2b, bd2 = rw(wd2[:, :, :C3, :]), rw(wd2[:, :, C3:, :]), rb(bd2v)
  wd1, bd1v = params["dec1"]                                       # cin = C2 + C1
  wd1a, wd1b, bd1 = rw(wd1[:, :, :C2, :]), rw(wd1[:, :, C2:, :]), rb(bd1v)
  whd = jnp.transpose(rw(params["head"][0]))                       # (NC, 9*C1) bf16
  bhd = params["head"][1].reshape(num_classes, 1).astype(jnp.float32)

  up1 = _upsample_matrix(H2, W2)                                   # (H*W,   H2*W2)
  up2 = _upsample_matrix(H4, W4)                                   # (H2*W2, H4*W4)

  operands = (x, up1, up2, we1, be1, we2, be2, wbt, bbt,
              wd2a, wd2b, bd2, wd1a, wd1b, bd1, whd, bhd)

  def const_spec(a):
    nd = a.ndim
    return pl.BlockSpec(a.shape, lambda n, _nd=nd: (0,) * _nd)

  in_specs = [pl.BlockSpec((None, H, W, Cin), lambda n: (n, 0, 0, 0))]
  in_specs += [const_spec(a) for a in operands[1:]]

  scratch_shapes = [
      pltpu.VMEM((H + 2, W + 2, Cin), jnp.float32),      # s_x  : padded input
      pltpu.VMEM((H + 2, W + 2, C1), jnp.float32),       # s_e1 : padded enc1 (skip)
      pltpu.VMEM((H2 + 2, W2 + 2, C1), jnp.float32),     # s_p1 : padded pool1
      pltpu.VMEM((H2 + 2, W2 + 2, C2), jnp.float32),     # s_e2 : padded enc2 (skip)
      pltpu.VMEM((H4 + 2, W4 + 2, C2), jnp.float32),     # s_p2 : padded pool2
      pltpu.VMEM((H2 + 2, W2 + 2, C3), jnp.float32),     # s_u2 : padded up(bott)
      pltpu.VMEM((H + 2, W + 2, C2), jnp.float32),       # s_u1 : padded up(dec2)
      pltpu.VMEM((H + 2, W + 2, C1), jnp.float32),       # s_d1 : padded dec1
  ]

  macs = (H * W * 9 * Cin * C1 + H2 * W2 * 9 * C1 * C2 + H4 * W4 * 9 * C2 * C3 +
          H2 * W2 * 9 * (C3 + C2) * C2 + H * W * 9 * (C2 + C1) * C1 +
          H * W * 9 * C1 * num_classes +
          H2 * W2 * H4 * W4 * C3 + H * W * H2 * W2 * C2)
  bytes_accessed = sum(int(np.prod(a.shape)) * a.dtype.itemsize for a in operands)
  bytes_accessed += N * num_classes * H * W * 4

  out = pl.pallas_call(
      functools.partial(_fused_unet_kernel, H=H, W=W),
      out_shape=jax.ShapeDtypeStruct((N, num_classes, H * W), jnp.float32),
      grid=(N,),
      in_specs=in_specs,
      out_specs=pl.BlockSpec((None, num_classes, H * W), lambda n: (n, 0, 0)),
      scratch_shapes=scratch_shapes,
      compiler_params=pltpu.CompilerParams(dimension_semantics=("parallel",)),
      cost_estimate=pl.CostEstimate(flops=2 * N * macs, transcendentals=0,
                                    bytes_accessed=int(bytes_accessed)),
  )(*operands)
  return out.reshape(N, num_classes, H, W)                         # NCHW logits


# ----------------------------------------------------------------------------
# Pure-JAX reference (same bf16-in / f32-accumulate numerics)
# ----------------------------------------------------------------------------
def conv3x3_ref(x, w, b, *, relu):
  y = lax.conv_general_dilated(
      x.astype(jnp.bfloat16), w.astype(jnp.bfloat16),
      window_strides=(1, 1), padding="SAME",
      dimension_numbers=("NHWC", "HWIO", "NHWC"),
      preferred_element_type=jnp.float32) + b
  return jnp.maximum(y, 0.0) if relu else y


def maxpool2_ref(x):
  return lax.reduce_window(x, -jnp.inf, lax.max, (1, 2, 2, 1), (1, 2, 2, 1), "VALID")


def upsample2_ref(x):
  return jnp.repeat(jnp.repeat(x, 2, axis=1), 2, axis=2)


def forward_ref(x_nchw, params):
  x = jnp.transpose(x_nchw, (0, 2, 3, 1))
  e1 = conv3x3_ref(x, *params["enc1"], relu=True)
  p1 = maxpool2_ref(e1)
  e2 = conv3x3_ref(p1, *params["enc2"], relu=True)
  p2 = maxpool2_ref(e2)
  bt = conv3x3_ref(p2, *params["bott"], relu=True)
  u2 = jnp.concatenate([upsample2_ref(bt), e2], axis=-1)
  d2 = conv3x3_ref(u2, *params["dec2"], relu=True)
  u1 = jnp.concatenate([upsample2_ref(d2), e1], axis=-1)
  d1 = conv3x3_ref(u1, *params["dec1"], relu=True)
  out = conv3x3_ref(d1, *params["head"], relu=False)
  return jnp.transpose(out, (0, 3, 1, 2))


# ----------------------------------------------------------------------------
# Deterministic parameter init
# ----------------------------------------------------------------------------
def init_params(key, in_channels, num_classes):
  layers = {
      "enc1": (in_channels, 8),
      "enc2": (8, 16),
      "bott": (16, 32),
      "dec2": (32 + 16, 16),
      "dec1": (16 + 8, 8),
      "head": (8, num_classes),
  }
  params = {}
  for i, (name, (cin, cout)) in enumerate(layers.items()):
    kw, kb = jax.random.split(jax.random.fold_in(key, i))
    scale = 1.0 / np.sqrt(9.0 * cin)
    w = jax.random.normal(kw, (3, 3, cin, cout), jnp.float32) * scale
    b = jax.random.normal(kb, (cout,), jnp.float32) * 0.01
    params[name] = (w, b)
  return params


if __name__ == "__main__":
  key = jax.random.PRNGKey(0)
  in_channels, num_classes = 4, 3
  N, H, W = 2, 16, 16

  x = jax.random.normal(jax.random.fold_in(key, 100),
                        (N, in_channels, H, W), jnp.float32)
  params = init_params(key, in_channels, num_classes)

  out = jax.jit(forward_pallas)(x, params)
  out = jax.block_until_ready(out)

  ref = forward_ref(x, params)
  ref = jax.block_until_ready(ref)

  assert out.shape == (N, num_classes, H, W), out.shape
  np.testing.assert_allclose(np.asarray(out), np.asarray(ref), rtol=2e-2, atol=2e-2)
  print("KERNEL_OK")
</pallas_src>

<mosaic_0001>
module attributes {stable_mosaic.version = 11 : i64} {
  func.func @_fused_unet_kernel(%arg0: i32, %arg1: memref<1x16x16x4xf32, #tpu.memory_space<vmem>>, %arg2: memref<256x64xbf16, #tpu.memory_space<vmem>>, %arg3: memref<64x16xbf16, #tpu.memory_space<vmem>>, %arg4: memref<36x8xbf16, #tpu.memory_space<vmem>>, %arg5: memref<1x8xf32, #tpu.memory_space<vmem>>, %arg6: memref<72x16xbf16, #tpu.memory_space<vmem>>, %arg7: memref<1x16xf32, #tpu.memory_space<vmem>>, %arg8: memref<144x32xbf16, #tpu.memory_space<vmem>>, %arg9: memref<1x32xf32, #tpu.memory_space<vmem>>, %arg10: memref<288x16xbf16, #tpu.memory_space<vmem>>, %arg11: memref<144x16xbf16, #tpu.memory_space<vmem>>, %arg12: memref<1x16xf32, #tpu.memory_space<vmem>>, %arg13: memref<144x8xbf16, #tpu.memory_space<vmem>>, %arg14: memref<72x8xbf16, #tpu.memory_space<vmem>>, %arg15: memref<1x8xf32, #tpu.memory_space<vmem>>, %arg16: memref<3x72xbf16, #tpu.memory_space<vmem>>, %arg17: memref<3x1xf32, #tpu.memory_space<vmem>>, %arg18: memref<1x3x256xf32, #tpu.memory_space<vmem>>, %arg19: memref<18x18x4xf32, #tpu.memory_space<vmem>>, %arg20: memref<18x18x8xf32, #tpu.memory_space<vmem>>, %arg21: memref<10x10x8xf32, #tpu.memory_space<vmem>>, %arg22: memref<10x10x16xf32, #tpu.memory_space<vmem>>, %arg23: memref<6x6x16xf32, #tpu.memory_space<vmem>>, %arg24: memref<10x10x32xf32, #tpu.memory_space<vmem>>, %arg25: memref<18x18x16xf32, #tpu.memory_space<vmem>>, %arg26: memref<18x18x8xf32, #tpu.memory_space<vmem>>) attributes {dimension_semantics = [#tpu.dimension_semantics<parallel>], iteration_bounds = array<i64: 2>, scalar_prefetch = 0 : i64, scratch_operands = 8 : i64, tpu.core_type = #tpu.core_type<tc>, window_params = [{transform_indices = @transform_0, window_bounds = array<i64: 1, 16, 16, 4>}, {pipeline_mode = #tpu.pipeline_mode<synchronous>, transform_indices = @transform_1, window_bounds = array<i64: 256, 64>}, {pipeline_mode = #tpu.pipeline_mode<synchronous>, transform_indices = @transform_2, window_bounds = array<i64: 64, 16>}, {pipeline_mode = #tpu.pipeline_mode<synchronous>, transform_indices = @transform_3, window_bounds = array<i64: 36, 8>}, {pipeline_mode = #tpu.pipeline_mode<synchronous>, transform_indices = @transform_4, window_bounds = array<i64: 1, 8>}, {pipeline_mode = #tpu.pipeline_mode<synchronous>, transform_indices = @transform_5, window_bounds = array<i64: 72, 16>}, {pipeline_mode = #tpu.pipeline_mode<synchronous>, transform_indices = @transform_6, window_bounds = array<i64: 1, 16>}, {pipeline_mode = #tpu.pipeline_mode<synchronous>, transform_indices = @transform_7, window_bounds = array<i64: 144, 32>}, {pipeline_mode = #tpu.pipeline_mode<synchronous>, transform_indices = @transform_8, window_bounds = array<i64: 1, 32>}, {pipeline_mode = #tpu.pipeline_mode<synchronous>, transform_indices = @transform_9, window_bounds = array<i64: 288, 16>}, {pipeline_mode = #tpu.pipeline_mode<synchronous>, transform_indices = @transform_10, window_bounds = array<i64: 144, 16>}, {pipeline_mode = #tpu.pipeline_mode<synchronous>, transform_indices = @transform_11, window_bounds = array<i64: 1, 16>}, {pipeline_mode = #tpu.pipeline_mode<synchronous>, transform_indices = @transform_12, window_bounds = array<i64: 144, 8>}, {pipeline_mode = #tpu.pipeline_mode<synchronous>, transform_indices = @transform_13, window_bounds = array<i64: 72, 8>}, {pipeline_mode = #tpu.pipeline_mode<synchronous>, transform_indices = @transform_14, window_bounds = array<i64: 1, 8>}, {pipeline_mode = #tpu.pipeline_mode<synchronous>, transform_indices = @transform_15, window_bounds = array<i64: 3, 72>}, {pipeline_mode = #tpu.pipeline_mode<synchronous>, transform_indices = @transform_16, window_bounds = array<i64: 3, 1>}, {transform_indices = @transform_17, window_bounds = array<i64: 1, 3, 256>}]} {
    %cst = arith.constant 0.000000e+00 : f32
    %0 = vector.broadcast %cst : f32 to vector<18x18x4xf32>
    %c0 = arith.constant 0 : index
    %c0_0 = arith.constant 0 : index
    %c0_1 = arith.constant 0 : index
    %1 = vector.load %arg19[%c0, %c0_0, %c0_1] : memref<18x18x4xf32, #tpu.memory_space<vmem>>, vector<18x18x4xf32>
    tpu.vector_store %arg19[%c0, %c0_0, %c0_1], %0 {strides = array<i32>} : memref<18x18x4xf32, #tpu.memory_space<vmem>>, vector<18x18x4xf32>,
    %cst_2 = arith.constant 0.000000e+00 : f32
    %2 = vector.broadcast %cst_2 : f32 to vector<18x18x8xf32>
    %c0_3 = arith.constant 0 : index
    %c0_4 = arith.constant 0 : index
    %c0_5 = arith.constant 0 : index
    %3 = vector.load %arg20[%c0_3, %c0_4, %c0_5] : memref<18x18x8xf32, #tpu.memory_space<vmem>>, vector<18x18x8xf32>
    tpu.vector_store %arg20[%c0_3, %c0_4, %c0_5], %2 {strides = array<i32>} : memref<18x18x8xf32, #tpu.memory_space<vmem>>, vector<18x18x8xf32>,
    %cst_6 = arith.constant 0.000000e+00 : f32
    %4 = vector.broadcast %cst_6 : f32 to vector<10x10x8xf32>
    %c0_7 = arith.constant 0 : index
    %c0_8 = arith.constant 0 : index
    %c0_9 = arith.constant 0 : index
    %5 = vector.load %arg21[%c0_7, %c0_8, %c0_9] : memref<10x10x8xf32, #tpu.memory_space<vmem>>, vector<10x10x8xf32>
    tpu.vector_store %arg21[%c0_7, %c0_8, %c0_9], %4 {strides = array<i32>} : memref<10x10x8xf32, #tpu.memory_space<vmem>>, vector<10x10x8xf32>,
    %cst_10 = arith.constant 0.000000e+00 : f32
    %6 = vector.broadcast %cst_10 : f32 to vector<10x10x16xf32>
    %c0_11 = arith.constant 0 : index
    %c0_12 = arith.constant 0 : index
    %c0_13 = arith.constant 0 : index
    %7 = vector.load %arg22[%c0_11, %c0_12, %c0_13] : memref<10x10x16xf32, #tpu.memory_space<vmem>>, vector<10x10x16xf32>
    tpu.vector_store %arg22[%c0_11, %c0_12, %c0_13], %6 {strides = array<i32>} : memref<10x10x16xf32, #tpu.memory_space<vmem>>, vector<10x10x16xf32>,
    %cst_14 = arith.constant 0.000000e+00 : f32
    %8 = vector.broadcast %cst_14 : f32 to vector<6x6x16xf32>
    %c0_15 = arith.constant 0 : index
    %c0_16 = arith.constant 0 : index
    %c0_17 = arith.constant 0 : index
    %9 = vector.load %arg23[%c0_15, %c0_16, %c0_17] : memref<6x6x16xf32, #tpu.memory_space<vmem>>, vector<6x6x16xf32>
    tpu.vector_store %arg23[%c0_15, %c0_16, %c0_17], %8 {strides = array<i32>} : memref<6x6x16xf32, #tpu.memory_space<vmem>>, vector<6x6x16xf32>,
    %cst_18 = arith.constant 0.000000e+00 : f32
    %10 = vector.broadcast %cst_18 : f32 to vector<10x10x32xf32>
    %c0_19 = arith.constant 0 : index
    %c0_20 = arith.constant 0 : index
    %c0_21 = arith.constant 0 : index
    %11 = vector.load %arg24[%c0_19, %c0_20, %c0_21] : memref<10x10x32xf32, #tpu.memory_space<vmem>>, vector<10x10x32xf32>
    tpu.vector_store %arg24[%c0_19, %c0_20, %c0_21], %10 {strides = array<i32>} : memref<10x10x32xf32, #tpu.memory_space<vmem>>, vector<10x10x32xf32>,
    %cst_22 = arith.constant 0.000000e+00 : f32
    %12 = vector.broadcast %cst_22 : f32 to vector<18x18x16xf32>
    %c0_23 = arith.constant 0 : index
    %c0_24 = arith.constant 0 : index
    %c0_25 = arith.constant 0 : index
    %13 = vector.load %arg25[%c0_23, %c0_24, %c0_25] : memref<18x18x16xf32, #tpu.memory_space<vmem>>, vector<18x18x16xf32>
    tpu.vector_store %arg25[%c0_23, %c0_24, %c0_25], %12 {strides = array<i32>} : memref<18x18x16xf32, #tpu.memory_space<vmem>>, vector<18x18x16xf32>,
    %cst_26 = arith.constant 0.000000e+00 : f32
    %14 = vector.broadcast %cst_26 : f32 to vector<18x18x8xf32>
    %c0_27 = arith.constant 0 : index
    %c0_28 = arith.constant 0 : index
    %c0_29 = arith.constant 0 : index
    %15 = vector.load %arg26[%c0_27, %c0_28, %c0_29] : memref<18x18x8xf32, #tpu.memory_space<vmem>>, vector<18x18x8xf32>
    tpu.vector_store %arg26[%c0_27, %c0_28, %c0_29], %14 {strides = array<i32>} : memref<18x18x8xf32, #tpu.memory_space<vmem>>, vector<18x18x8xf32>,
    %c0_30 = arith.constant 0 : index
    %c0_31 = arith.constant 0 : index
    %c0_32 = arith.constant 0 : index
    %c0_33 = arith.constant 0 : index
    %16 = vector.load %arg1[%c0_30, %c0_31, %c0_32, %c0_33] : memref<1x16x16x4xf32, #tpu.memory_space<vmem>>, vector<1x16x16x4xf32>
    %17 = vector.shape_cast %16 : vector<1x16x16x4xf32> to vector<16x16x4xf32>
    %c1 = arith.constant 1 : index
    %c1_34 = arith.constant 1 : index
    %c0_35 = arith.constant 0 : index
    %18 = vector.load %arg19[%c1, %c1_34, %c0_35] : memref<18x18x4xf32, #tpu.memory_space<vmem>>, vector<16x16x4xf32>
    tpu.vector_store %arg19[%c1, %c1_34, %c0_35], %17 {strides = array<i32>} : memref<18x18x4xf32, #tpu.memory_space<vmem>>, vector<16x16x4xf32>,
    %c0_36 = arith.constant 0 : index
    %c0_37 = arith.constant 0 : index
    %c0_38 = arith.constant 0 : index
    %19 = vector.load %arg19[%c0_36, %c0_37, %c0_38] : memref<18x18x4xf32, #tpu.memory_space<vmem>>, vector<16x16x4xf32>
    %c0_39 = arith.constant 0 : index
    %c1_40 = arith.constant 1 : index
    %c0_41 = arith.constant 0 : index
    %20 = vector.load %arg19[%c0_39, %c1_40, %c0_41] : memref<18x18x4xf32, #tpu.memory_space<vmem>>, vector<16x16x4xf32>
    %c0_42 = arith.constant 0 : index
    %c2 = arith.constant 2 : index
    %c0_43 = arith.constant 0 : index
    %21 = vector.load %arg19[%c0_42, %c2, %c0_43] : memref<18x18x4xf32, #tpu.memory_space<vmem>>, vector<16x16x4xf32>
    %c1_44 = arith.constant 1 : index
    %c0_45 = arith.constant 0 : index
    %c0_46 = arith.constant 0 : index
    %22 = vector.load %arg19[%c1_44, %c0_45, %c0_46] : memref<18x18x4xf32, #tpu.memory_space<vmem>>, vector<16x16x4xf32>
    %c1_47 = arith.constant 1 : index
    %c1_48 = arith.constant 1 : index
    %c0_49 = arith.constant 0 : index
    %23 = vector.load %arg19[%c1_47, %c1_48, %c0_49] : memref<18x18x4xf32, #tpu.memory_space<vmem>>, vector<16x16x4xf32>
    %c1_50 = arith.constant 1 : index
    %c2_51 = arith.constant 2 : index
    %c0_52 = arith.constant 0 : index
    %24 = vector.load %arg19[%c1_50, %c2_51, %c0_52] : memref<18x18x4xf32, #tpu.memory_space<vmem>>, vector<16x16x4xf32>
    %c2_53 = arith.constant 2 : index
    %c0_54 = arith.constant 0 : index
    %c0_55 = arith.constant 0 : index
    %25 = vector.load %arg19[%c2_53, %c0_54, %c0_55] : memref<18x18x4xf32, #tpu.memory_space<vmem>>, vector<16x16x4xf32>
    %c2_56 = arith.constant 2 : index
    %c1_57 = arith.constant 1 : index
    %c0_58 = arith.constant 0 : index
    %26 = vector.load %arg19[%c2_56, %c1_57, %c0_58] : memref<18x18x4xf32, #tpu.memory_space<vmem>>, vector<16x16x4xf32>
    %c2_59 = arith.constant 2 : index
    %c2_60 = arith.constant 2 : index
    %c0_61 = arith.constant 0 : index
    %27 = vector.load %arg19[%c2_59, %c2_60, %c0_61] : memref<18x18x4xf32, #tpu.memory_space<vmem>>, vector<16x16x4xf32>
    %28 = tpu.concatenate %19, %20, %21, %22, %23, %24, %25, %26, %27 in 2 : vector<16x16x4xf32>, vector<16x16x4xf32>, vector<16x16x4xf32>, vector<16x16x4xf32>, vector<16x16x4xf32>, vector<16x16x4xf32>, vector<16x16x4xf32>, vector<16x16x4xf32>, vector<16x16x4xf32> -> vector<16x16x36xf32>
    %29 = vector.shape_cast %28 : vector<16x16x36xf32> to vector<256x36xf32>
    %30 = arith.truncf %29 : vector<256x36xf32> to vector<256x36xbf16>
    %c0_62 = arith.constant 0 : index
    %c0_63 = arith.constant 0 : index
    %31 = vector.load %arg4[%c0_62, %c0_63] : memref<36x8xbf16, #tpu.memory_space<vmem>>, vector<36x8xbf16>
    %cst_64 = arith.constant dense<0.000000e+00> : vector<256x8xf32>
    %32 = tpu.matmul %30, %31, %cst_64 {dimension_numbers = #tpu.dot_dimension_numbers<[1], [0], [0], [1], [0, 0, 1, 1], [], []>} : vector<256x36xbf16>, vector<36x8xbf16>, vector<256x8xf32> -> vector<256x8xf32>
    %c0_65 = arith.constant 0 : index
    %c0_66 = arith.constant 0 : index
    %33 = vector.load %arg5[%c0_65, %c0_66] : memref<1x8xf32, #tpu.memory_space<vmem>>, vector<1x8xf32>
    %34 = vector.broadcast %33 : vector<1x8xf32> to vector<256x8xf32>
    %35 = arith.addf %32, %34 : vector<256x8xf32>
    %cst_67 = arith.constant 0.000000e+00 : f32
    %36 = vector.broadcast %cst_67 : f32 to vector<256x8xf32>
    %37 = arith.maximumf %35, %36 : vector<256x8xf32>
    %38 = vector.shape_cast %37 : vector<256x8xf32> to vector<16x16x8xf32>
    %c1_68 = arith.constant 1 : index
    %c1_69 = arith.constant 1 : index
    %c0_70 = arith.constant 0 : index
    %39 = vector.load %arg20[%c1_68, %c1_69, %c0_70] : memref<18x18x8xf32, #tpu.memory_space<vmem>>, vector<16x16x8xf32>
    tpu.vector_store %arg20[%c1_68, %c1_69, %c0_70], %38 {strides = array<i32>} : memref<18x18x8xf32, #tpu.memory_space<vmem>>, vector<16x16x8xf32>,
    %c1_71 = arith.constant 1 : index
    %c1_72 = arith.constant 1 : index
    %c0_73 = arith.constant 0 : index
    %40 = tpu.strided_load %arg20[%c1_71, %c1_72, %c0_73] {strides = array<i32: 2, 2, 1>} : memref<18x18x8xf32, #tpu.memory_space<vmem>>, vector<8x8x8xf32>
    %c1_74 = arith.constant 1 : index
    %c2_75 = arith.constant 2 : index
    %c0_76 = arith.constant 0 : index
    %41 = tpu.strided_load %arg20[%c1_74, %c2_75, %c0_76] {strides = array<i32: 2, 2, 1>} : memref<18x18x8xf32, #tpu.memory_space<vmem>>, vector<8x8x8xf32>
    %c2_77 = arith.constant 2 : index
    %c1_78 = arith.constant 1 : index
    %c0_79 = arith.constant 0 : index
    %42 = tpu.strided_load %arg20[%c2_77, %c1_78, %c0_79] {strides = array<i32: 2, 2, 1>} : memref<18x18x8xf32, #tpu.memory_space<vmem>>, vector<8x8x8xf32>
    %c2_80 = arith.constant 2 : index
    %c2_81 = arith.constant 2 : index
    %c0_82 = arith.constant 0 : index
    %43 = tpu.strided_load %arg20[%c2_80, %c2_81, %c0_82] {strides = array<i32: 2, 2, 1>} : memref<18x18x8xf32, #tpu.memory_space<vmem>>, vector<8x8x8xf32>
    %44 = arith.maximumf %40, %41 : vector<8x8x8xf32>
    %45 = arith.maximumf %42, %43 : vector<8x8x8xf32>
    %46 = arith.maximumf %44, %45 : vector<8x8x8xf32>
    %c1_83 = arith.constant 1 : index
    %c1_84 = arith.constant 1 : index
    %c0_85 = arith.constant 0 : index
    %47 = vector.load %arg21[%c1_83, %c1_84, %c0_85] : memref<10x10x8xf32, #tpu.memory_space<vmem>>, vector<8x8x8xf32>
    tpu.vector_store %arg21[%c1_83, %c1_84, %c0_85], %46 {strides = array<i32>} : memref<10x10x8xf32, #tpu.memory_space<vmem>>, vector<8x8x8xf32>,
    %c0_86 = arith.constant 0 : index
    %c0_87 = arith.constant 0 : index
    %c0_88 = arith.constant 0 : index
    %48 = vector.load %arg21[%c0_86, %c0_87, %c0_88] : memref<10x10x8xf32, #tpu.memory_space<vmem>>, vector<8x8x8xf32>
    %c0_89 = arith.constant 0 : index
    %c1_90 = arith.constant 1 : index
    %c0_91 = arith.constant 0 : index
    %49 = vector.load %arg21[%c0_89, %c1_90, %c0_91] : memref<10x10x8xf32, #tpu.memory_space<vmem>>, vector<8x8x8xf32>
    %c0_92 = arith.constant 0 : index
    %c2_93 = arith.constant 2 : index
    %c0_94 = arith.constant 0 : index
    %50 = vector.load %arg21[%c0_92, %c2_93, %c0_94] : memref<10x10x8xf32, #tpu.memory_space<vmem>>, vector<8x8x8xf32>
    %c1_95 = arith.constant 1 : index
    %c0_96 = arith.constant 0 : index
    %c0_97 = arith.constant 0 : index
    %51 = vector.load %arg21[%c1_95, %c0_96, %c0_97] : memref<10x10x8xf32, #tpu.memory_space<vmem>>, vector<8x8x8xf32>
    %c1_98 = arith.constant 1 : index
    %c1_99 = arith.constant 1 : index
    %c0_100 = arith.constant 0 : index
    %52 = vector.load %arg21[%c1_98, %c1_99, %c0_100] : memref<10x10x8xf32, #tpu.memory_space<vmem>>, vector<8x8x8xf32>
    %c1_101 = arith.constant 1 : index
    %c2_102 = arith.constant 2 : index
    %c0_103 = arith.constant 0 : index
    %53 = vector.load %arg21[%c1_101, %c2_102, %c0_103] : memref<10x10x8xf32, #tpu.memory_space<vmem>>, vector<8x8x8xf32>
    %c2_104 = arith.constant 2 : index
    %c0_105 = arith.constant 0 : index
    %c0_106 = arith.constant 0 : index
    %54 = vector.load %arg21[%c2_104, %c0_105, %c0_106] : memref<10x10x8xf32, #tpu.memory_space<vmem>>, vector<8x8x8xf32>
    %c2_107 = arith.constant 2 : index
    %c1_108 = arith.constant 1 : index
    %c0_109 = arith.constant 0 : index
    %55 = vector.load %arg21[%c2_107, %c1_108, %c0_109] : memref<10x10x8xf32, #tpu.memory_space<vmem>>, vector<8x8x8xf32>
    %c2_110 = arith.constant 2 : index
    %c2_111 = arith.constant 2 : index
    %c0_112 = arith.constant 0 : index
    %56 = vector.load %arg21[%c2_110, %c2_111, %c0_112] : memref<10x10x8xf32, #tpu.memory_space<vmem>>, vector<8x8x8xf32>
    %57 = tpu.concatenate %48, %49, %50, %51, %52, %53, %54, %55, %56 in 2 : vector<8x8x8xf32>, vector<8x8x8xf32>, vector<8x8x8xf32>, vector<8x8x8xf32>, vector<8x8x8xf32>, vector<8x8x8xf32>, vector<8x8x8xf32>, vector<8x8x8xf32>, vector<8x8x8xf32> -> vector<8x8x72xf32>
    %58 = vector.shape_cast %57 : vector<8x8x72xf32> to vector<64x72xf32>
    %59 = arith.truncf %58 : vector<64x72xf32> to vector<64x72xbf16>
    %c0_113 = arith.constant 0 : index
    %c0_114 = arith.constant 0 : index
    %60 = vector.load %arg6[%c0_113, %c0_114] : memref<72x16xbf16, #tpu.memory_space<vmem>>, vector<72x16xbf16>
    %cst_115 = arith.constant dense<0.000000e+00> : vector<64x16xf32>
    %61 = tpu.matmul %59, %60, %cst_115 {dimension_numbers = #tpu.dot_dimension_numbers<[1], [0], [0], [1], [0, 0, 1, 1], [], []>} : vector<64x72xbf16>, vector<72x16xbf16>, vector<64x16xf32> -> vector<64x16xf32>
    %c0_116 = arith.constant 0 : index
    %c0_117 = arith.constant 0 : index
    %62 = vector.load %arg7[%c0_116, %c0_117] : memref<1x16xf32, #tpu.memory_space<vmem>>, vector<1x16xf32>
    %63 = vector.broadcast %62 : vector<1x16xf32> to vector<64x16xf32>
    %64 = arith.addf %61, %63 : vector<64x16xf32>
    %cst_118 = arith.constant 0.000000e+00 : f32
    %65 = vector.broadcast %cst_118 : f32 to vector<64x16xf32>
    %66 = arith.maximumf %64, %65 : vector<64x16xf32>
    %67 = vector.shape_cast %66 : vector<64x16xf32> to vector<8x8x16xf32>
    %c1_119 = arith.constant 1 : index
    %c1_120 = arith.constant 1 : index
    %c0_121 = arith.constant 0 : index
    %68 = vector.load %arg22[%c1_119, %c1_120, %c0_121] : memref<10x10x16xf32, #tpu.memory_space<vmem>>, vector<8x8x16xf32>
    tpu.vector_store %arg22[%c1_119, %c1_120, %c0_121], %67 {strides = array<i32>} : memref<10x10x16xf32, #tpu.memory_space<vmem>>, vector<8x8x16xf32>,
    %c1_122 = arith.constant 1 : index
    %c1_123 = arith.constant 1 : index
    %c0_124 = arith.constant 0 : index
    %69 = tpu.strided_load %arg22[%c1_122, %c1_123, %c0_124] {strides = array<i32: 2, 2, 1>} : memref<10x10x16xf32, #tpu.memory_space<vmem>>, vector<4x4x16xf32>
    %c1_125 = arith.constant 1 : index
    %c2_126 = arith.constant 2 : index
    %c0_127 = arith.constant 0 : index
    %70 = tpu.strided_load %arg22[%c1_125, %c2_126, %c0_127] {strides = array<i32: 2, 2, 1>} : memref<10x10x16xf32, #tpu.memory_space<vmem>>, vector<4x4x16xf32>
    %c2_128 = arith.constant 2 : index
    %c1_129 = arith.constant 1 : index
    %c0_130 = arith.constant 0 : index
    %71 = tpu.strided_load %arg22[%c2_128, %c1_129, %c0_130] {strides = array<i32: 2, 2, 1>} : memref<10x10x16xf32, #tpu.memory_space<vmem>>, vector<4x4x16xf32>
    %c2_131 = arith.constant 2 : index
    %c2_132 = arith.constant 2 : index
    %c0_133 = arith.constant 0 : index
    %72 = tpu.strided_load %arg22[%c2_131, %c2_132, %c0_133] {strides = array<i32: 2, 2, 1>} : memref<10x10x16xf32, #tpu.memory_space<vmem>>, vector<4x4x16xf32>
    %73 = arith.maximumf %69, %70 : vector<4x4x16xf32>
    %74 = arith.maximumf %71, %72 : vector<4x4x16xf32>
    %75 = arith.maximumf %73, %74 : vector<4x4x16xf32>
    %c1_134 = arith.constant 1 : index
    %c1_135 = arith.constant 1 : index
    %c0_136 = arith.constant 0 : index
    %76 = vector.load %arg23[%c1_134, %c1_135, %c0_136] : memref<6x6x16xf32, #tpu.memory_space<vmem>>, vector<4x4x16xf32>
    tpu.vector_store %arg23[%c1_134, %c1_135, %c0_136], %75 {strides = array<i32>} : memref<6x6x16xf32, #tpu.memory_space<vmem>>, vector<4x4x16xf32>,
    %c0_137 = arith.constant 0 : index
    %c0_138 = arith.constant 0 : index
    %c0_139 = arith.constant 0 : index
    %77 = vector.load %arg23[%c0_137, %c0_138, %c0_139] : memref<6x6x16xf32, #tpu.memory_space<vmem>>, vector<4x4x16xf32>
    %c0_140 = arith.constant 0 : index
    %c1_141 = arith.constant 1 : index
    %c0_142 = arith.constant 0 : index
    %78 = vector.load %arg23[%c0_140, %c1_141, %c0_142] : memref<6x6x16xf32, #tpu.memory_space<vmem>>, vector<4x4x16xf32>
    %c0_143 = arith.constant 0 : index
    %c2_144 = arith.constant 2 : index
    %c0_145 = arith.constant 0 : index
    %79 = vector.load %arg23[%c0_143, %c2_144, %c0_145] : memref<6x6x16xf32, #tpu.memory_space<vmem>>, vector<4x4x16xf32>
    %c1_146 = arith.constant 1 : index
    %c0_147 = arith.constant 0 : index
    %c0_148 = arith.constant 0 : index
    %80 = vector.load %arg23[%c1_146, %c0_147, %c0_148] : memref<6x6x16xf32, #tpu.memory_space<vmem>>, vector<4x4x16xf32>
    %c1_149 = arith.constant 1 : index
    %c1_150 = arith.constant 1 : index
    %c0_151 = arith.constant 0 : index
    %81 = vector.load %arg23[%c1_149, %c1_150, %c0_151] : memref<6x6x16xf32, #tpu.memory_space<vmem>>, vector<4x4x16xf32>
    %c1_152 = arith.constant 1 : index
    %c2_153 = arith.constant 2 : index
    %c0_154 = arith.constant 0 : index
    %82 = vector.load %arg23[%c1_152, %c2_153, %c0_154] : memref<6x6x16xf32, #tpu.memory_space<vmem>>, vector<4x4x16xf32>
    %c2_155 = arith.constant 2 : index
    %c0_156 = arith.constant 0 : index
    %c0_157 = arith.constant 0 : index
    %83 = vector.load %arg23[%c2_155, %c0_156, %c0_157] : memref<6x6x16xf32, #tpu.memory_space<vmem>>, vector<4x4x16xf32>
    %c2_158 = arith.constant 2 : index
    %c1_159 = arith.constant 1 : index
    %c0_160 = arith.constant 0 : index
    %84 = vector.load %arg23[%c2_158, %c1_159, %c0_160] : memref<6x6x16xf32, #tpu.memory_space<vmem>>, vector<4x4x16xf32>
    %c2_161 = arith.constant 2 : index
    %c2_162 = arith.constant 2 : index
    %c0_163 = arith.constant 0 : index
    %85 = vector.load %arg23[%c2_161, %c2_162, %c0_163] : memref<6x6x16xf32, #tpu.memory_space<vmem>>, vector<4x4x16xf32>
    %86 = tpu.concatenate %77, %78, %79, %80, %81, %82, %83, %84, %85 in 2 : vector<4x4x16xf32>, vector<4x4x16xf32>, vector<4x4x16xf32>, vector<4x4x16xf32>, vector<4x4x16xf32>, vector<4x4x16xf32>, vector<4x4x16xf32>, vector<4x4x16xf32>, vector<4x4x16xf32> -> vector<4x4x144xf32>
    %87 = vector.shape_cast %86 : vector<4x4x144xf32> to vector<16x144xf32>
    %88 = arith.truncf %87 : vector<16x144xf32> to vector<16x144xbf16>
    %c0_164 = arith.constant 0 : index
    %c0_165 = arith.constant 0 : index
    %89 = vector.load %arg8[%c0_164, %c0_165] : memref<144x32xbf16, #tpu.memory_space<vmem>>, vector<144x32xbf16>
    %cst_166 = arith.constant dense<0.000000e+00> : vector<16x32xf32>
    %90 = tpu.matmul %88, %89, %cst_166 {dimension_numbers = #tpu.dot_dimension_numbers<[1], [0], [0], [1], [0, 0, 1, 1], [], []>} : vector<16x144xbf16>, vector<144x32xbf16>, vector<16x32xf32> -> vector<16x32xf32>
    %c0_167 = arith.constant 0 : index
    %c0_168 = arith.constant 0 : index
    %91 = vector.load %arg9[%c0_167, %c0_168] : memref<1x32xf32, #tpu.memory_space<vmem>>, vector<1x32xf32>
    %92 = vector.broadcast %91 : vector<1x32xf32> to vector<16x32xf32>
    %93 = arith.addf %90, %92 : vector<16x32xf32>
    %cst_169 = arith.constant 0.000000e+00 : f32
    %94 = vector.broadcast %cst_169 : f32 to vector<16x32xf32>
    %95 = arith.maximumf %93, %94 : vector<16x32xf32>
    %c0_170 = arith.constant 0 : index
    %c0_171 = arith.constant 0 : index
    %96 = vector.load %arg3[%c0_170, %c0_171] : memref<64x16xbf16, #tpu.memory_space<vmem>>, vector<64x16xbf16>
    %97 = arith.truncf %95 : vector<16x32xf32> to vector<16x32xbf16>
    %cst_172 = arith.constant dense<0.000000e+00> : vector<64x32xf32>
    %98 = tpu.matmul %96, %97, %cst_172 {dimension_numbers = #tpu.dot_dimension_numbers<[1], [0], [0], [1], [0, 0, 1, 1], [], []>} : vector<64x16xbf16>, vector<16x32xbf16>, vector<64x32xf32> -> vector<64x32xf32>
    %99 = vector.shape_cast %98 : vector<64x32xf32> to vector<8x8x32xf32>
    %c1_173 = arith.constant 1 : index
    %c1_174 = arith.constant 1 : index
    %c0_175 = arith.constant 0 : index
    %100 = vector.load %arg24[%c1_173, %c1_174, %c0_175] : memref<10x10x32xf32, #tpu.memory_space<vmem>>, vector<8x8x32xf32>
    tpu.vector_store %arg24[%c1_173, %c1_174, %c0_175], %99 {strides = array<i32>} : memref<10x10x32xf32, #tpu.memory_space<vmem>>, vector<8x8x32xf32>,
    %c0_176 = arith.constant 0 : index
    %c0_177 = arith.constant 0 : index
    %c0_178 = arith.constant 0 : index
    %101 = vector.load %arg24[%c0_176, %c0_177, %c0_178] : memref<10x10x32xf32, #tpu.memory_space<vmem>>, vector<8x8x32xf32>
    %c0_179 = arith.constant 0 : index
    %c1_180 = arith.constant 1 : index
    %c0_181 = arith.constant 0 : index
    %102 = vector.load %arg24[%c0_179, %c1_180, %c0_181] : memref<10x10x32xf32, #tpu.memory_space<vmem>>, vector<8x8x32xf32>
    %c0_182 = arith.constant 0 : index
    %c2_183 = arith.constant 2 : index
    %c0_184 = arith.constant 0 : index
    %103 = vector.load %arg24[%c0_182, %c2_183, %c0_184] : memref<10x10x32xf32, #tpu.memory_space<vmem>>, vector<8x8x32xf32>
    %c1_185 = arith.constant 1 : index
    %c0_186 = arith.constant 0 : index
    %c0_187 = arith.constant 0 : index
    %104 = vector.load %arg24[%c1_185, %c0_186, %c0_187] : memref<10x10x32xf32, #tpu.memory_space<vmem>>, vector<8x8x32xf32>
    %c1_188 = arith.constant 1 : index
    %c1_189 = arith.constant 1 : index
    %c0_190 = arith.constant 0 : index
    %105 = vector.load %arg24[%c1_188, %c1_189, %c0_190] : memref<10x10x32xf32, #tpu.memory_space<vmem>>, vector<8x8x32xf32>
    %c1_191 = arith.constant 1 : index
    %c2_192 = arith.constant 2 : index
    %c0_193 = arith.constant 0 : index
    %106 = vector.load %arg24[%c1_191, %c2_192, %c0_193] : memref<10x10x32xf32, #tpu.memory_space<vmem>>, vector<8x8x32xf32>
    %c2_194 = arith.constant 2 : index
    %c0_195 = arith.constant 0 : index
    %c0_196 = arith.constant 0 : index
    %107 = vector.load %arg24[%c2_194, %c0_195, %c0_196] : memref<10x10x32xf32, #tpu.memory_space<vmem>>, vector<8x8x32xf32>
    %c2_197 = arith.constant 2 : index
    %c1_198 = arith.constant 1 : index
    %c0_199 = arith.constant 0 : index
    %108 = vector.load %arg24[%c2_197, %c1_198, %c0_199] : memref<10x10x32xf32, #tpu.memory_space<vmem>>, vector<8x8x32xf32>
    %c2_200 = arith.constant 2 : index
    %c2_201 = arith.constant 2 : index
    %c0_202 = arith.constant 0 : index
    %109 = vector.load %arg24[%c2_200, %c2_201, %c0_202] : memref<10x10x32xf32, #tpu.memory_space<vmem>>, vector<8x8x32xf32>
    %110 = tpu.concatenate %101, %102, %103, %104, %105, %106, %107, %108, %109 in 2 : vector<8x8x32xf32>, vector<8x8x32xf32>, vector<8x8x32xf32>, vector<8x8x32xf32>, vector<8x8x32xf32>, vector<8x8x32xf32>, vector<8x8x32xf32>, vector<8x8x32xf32>, vector<8x8x32xf32> -> vector<8x8x288xf32>
    %111 = vector.shape_cast %110 : vector<8x8x288xf32> to vector<64x288xf32>
    %112 = arith.truncf %111 : vector<64x288xf32> to vector<64x288xbf16>
    %c0_203 = arith.constant 0 : index
    %c0_204 = arith.constant 0 : index
    %113 = vector.load %arg10[%c0_203, %c0_204] : memref<288x16xbf16, #tpu.memory_space<vmem>>, vector<288x16xbf16>
    %cst_205 = arith.constant dense<0.000000e+00> : vector<64x16xf32>
    %114 = tpu.matmul %112, %113, %cst_205 {dimension_numbers = #tpu.dot_dimension_numbers<[1], [0], [0], [1], [0, 0, 1, 1], [], []>} : vector<64x288xbf16>, vector<288x16xbf16>, vector<64x16xf32> -> vector<64x16xf32>
    %c0_206 = arith.constant 0 : index
    %c0_207 = arith.constant 0 : index
    %c0_208 = arith.constant 0 : index
    %115 = vector.load %arg22[%c0_206, %c0_207, %c0_208] : memref<10x10x16xf32, #tpu.memory_space<vmem>>, vector<8x8x16xf32>
    %c0_209 = arith.constant 0 : index
    %c1_210 = arith.constant 1 : index
    %c0_211 = arith.constant 0 : index
    %116 = vector.load %arg22[%c0_209, %c1_210, %c0_211] : memref<10x10x16xf32, #tpu.memory_space<vmem>>, vector<8x8x16xf32>
    %c0_212 = arith.constant 0 : index
    %c2_213 = arith.constant 2 : index
    %c0_214 = arith.constant 0 : index
    %117 = vector.load %arg22[%c0_212, %c2_213, %c0_214] : memref<10x10x16xf32, #tpu.memory_space<vmem>>, vector<8x8x16xf32>
    %c1_215 = arith.constant 1 : index
    %c0_216 = arith.constant 0 : index
    %c0_217 = arith.constant 0 : index
    %118 = vector.load %arg22[%c1_215, %c0_216, %c0_217] : memref<10x10x16xf32, #tpu.memory_space<vmem>>, vector<8x8x16xf32>
    %c1_218 = arith.constant 1 : index
    %c1_219 = arith.constant 1 : index
    %c0_220 = arith.constant 0 : index
    %119 = vector.load %arg22[%c1_218, %c1_219, %c0_220] : memref<10x10x16xf32, #tpu.memory_space<vmem>>, vector<8x8x16xf32>
    %c1_221 = arith.constant 1 : index
    %c2_222 = arith.constant 2 : index
    %c0_223 = arith.constant 0 : index
    %120 = vector.load %arg22[%c1_221, %c2_222, %c0_223] : memref<10x10x16xf32, #tpu.memory_space<vmem>>, vector<8x8x16xf32>
    %c2_224 = arith.constant 2 : index
    %c0_225 = arith.constant 0 : index
    %c0_226 = arith.constant 0 : index
    %121 = vector.load %arg22[%c2_224, %c0_225, %c0_226] : memref<10x10x16xf32, #tpu.memory_space<vmem>>, vector<8x8x16xf32>
    %c2_227 = arith.constant 2 : index
    %c1_228 = arith.constant 1 : index
    %c0_229 = arith.constant 0 : index
    %122 = vector.load %arg22[%c2_227, %c1_228, %c0_229] : memref<10x10x16xf32, #tpu.memory_space<vmem>>, vector<8x8x16xf32>
    %c2_230 = arith.constant 2 : index
    %c2_231 = arith.constant 2 : index
    %c0_232 = arith.constant 0 : index
    %123 = vector.load %arg22[%c2_230, %c2_231, %c0_232] : memref<10x10x16xf32, #tpu.memory_space<vmem>>, vector<8x8x16xf32>
    %124 = tpu.concatenate %115, %116, %117, %118, %119, %120, %121, %122, %123 in 2 : vector<8x8x16xf32>, vector<8x8x16xf32>, vector<8x8x16xf32>, vector<8x8x16xf32>, vector<8x8x16xf32>, vector<8x8x16xf32>, vector<8x8x16xf32>, vector<8x8x16xf32>, vector<8x8x16xf32> -> vector<8x8x144xf32>
    %125 = vector.shape_cast %124 : vector<8x8x144xf32> to vector<64x144xf32>
    %126 = arith.truncf %125 : vector<64x144xf32> to vector<64x144xbf16>
    %c0_233 = arith.constant 0 : index
    %c0_234 = arith.constant 0 : index
    %127 = vector.load %arg11[%c0_233, %c0_234] : memref<144x16xbf16, #tpu.memory_space<vmem>>, vector<144x16xbf16>
    %cst_235 = arith.constant dense<0.000000e+00> : vector<64x16xf32>
    %128 = tpu.matmul %126, %127, %cst_235 {dimension_numbers = #tpu.dot_dimension_numbers<[1], [0], [0], [1], [0, 0, 1, 1], [], []>} : vector<64x144xbf16>, vector<144x16xbf16>, vector<64x16xf32> -> vector<64x16xf32>
    %129 = arith.addf %114, %128 : vector<64x16xf32>
    %c0_236 = arith.constant 0 : index
    %c0_237 = arith.constant 0 : index
    %130 = vector.load %arg12[%c0_236, %c0_237] : memref<1x16xf32, #tpu.memory_space<vmem>>, vector<1x16xf32>
    %131 = vector.broadcast %130 : vector<1x16xf32> to vector<64x16xf32>
    %132 = arith.addf %129, %131 : vector<64x16xf32>
    %cst_238 = arith.constant 0.000000e+00 : f32
    %133 = vector.broadcast %cst_238 : f32 to vector<64x16xf32>
    %134 = arith.maximumf %132, %133 : vector<64x16xf32>
    %c0_239 = arith.constant 0 : index
    %c0_240 = arith.constant 0 : index
    %135 = vector.load %arg2[%c0_239, %c0_240] : memref<256x64xbf16, #tpu.memory_space<vmem>>, vector<256x64xbf16>
    %136 = arith.truncf %134 : vector<64x16xf32> to vector<64x16xbf16>
    %cst_241 = arith.constant dense<0.000000e+00> : vector<256x16xf32>
    %137 = tpu.matmul %135, %136, %cst_241 {dimension_numbers = #tpu.dot_dimension_numbers<[1], [0], [0], [1], [0, 0, 1, 1], [], []>} : vector<256x64xbf16>, vector<64x16xbf16>, vector<256x16xf32> -> vector<256x16xf32>
    %138 = vector.shape_cast %137 : vector<256x16xf32> to vector<16x16x16xf32>
    %c1_242 = arith.constant 1 : index
    %c1_243 = arith.constant 1 : index
    %c0_244 = arith.constant 0 : index
    %139 = vector.load %arg25[%c1_242, %c1_243, %c0_244] : memref<18x18x16xf32, #tpu.memory_space<vmem>>, vector<16x16x16xf32>
    tpu.vector_store %arg25[%c1_242, %c1_243, %c0_244], %138 {strides = array<i32>} : memref<18x18x16xf32, #tpu.memory_space<vmem>>, vector<16x16x16xf32>,
    %c0_245 = arith.constant 0 : index
    %c0_246 = arith.constant 0 : index
    %c0_247 = arith.constant 0 : index
    %140 = vector.load %arg25[%c0_245, %c0_246, %c0_247] : memref<18x18x16xf32, #tpu.memory_space<vmem>>, vector<16x16x16xf32>
    %c0_248 = arith.constant 0 : index
    %c1_249 = arith.constant 1 : index
    %c0_250 = arith.constant 0 : index
    %141 = vector.load %arg25[%c0_248, %c1_249, %c0_250] : memref<18x18x16xf32, #tpu.memory_space<vmem>>, vector<16x16x16xf32>
    %c0_251 = arith.constant 0 : index
    %c2_252 = arith.constant 2 : index
    %c0_253 = arith.constant 0 : index
    %142 = vector.load %arg25[%c0_251, %c2_252, %c0_253] : memref<18x18x16xf32, #tpu.memory_space<vmem>>, vector<16x16x16xf32>
    %c1_254 = arith.constant 1 : index
    %c0_255 = arith.constant 0 : index
    %c0_256 = arith.constant 0 : index
    %143 = vector.load %arg25[%c1_254, %c0_255, %c0_256] : memref<18x18x16xf32, #tpu.memory_space<vmem>>, vector<16x16x16xf32>
    %c1_257 = arith.constant 1 : index
    %c1_258 = arith.constant 1 : index
    %c0_259 = arith.constant 0 : index
    %144 = vector.load %arg25[%c1_257, %c1_258, %c0_259] : memref<18x18x16xf32, #tpu.memory_space<vmem>>, vector<16x16x16xf32>
    %c1_260 = arith.constant 1 : index
    %c2_261 = arith.constant 2 : index
    %c0_262 = arith.constant 0 : index
    %145 = vector.load %arg25[%c1_260, %c2_261, %c0_262] : memref<18x18x16xf32, #tpu.memory_space<vmem>>, vector<16x16x16xf32>
    %c2_263 = arith.constant 2 : index
    %c0_264 = arith.constant 0 : index
    %c0_265 = arith.constant 0 : index
    %146 = vector.load %arg25[%c2_263, %c0_264, %c0_265] : memref<18x18x16xf32, #tpu.memory_space<vmem>>, vector<16x16x16xf32>
    %c2_266 = arith.constant 2 : index
    %c1_267 = arith.constant 1 : index
    %c0_268 = arith.constant 0 : index
    %147 = vector.load %arg25[%c2_266, %c1_267, %c0_268] : memref<18x18x16xf32, #tpu.memory_space<vmem>>, vector<16x16x16xf32>
    %c2_269 = arith.constant 2 : index
    %c2_270 = arith.constant 2 : index
    %c0_271 = arith.constant 0 : index
    %148 = vector.load %arg25[%c2_269, %c2_270, %c0_271] : memref<18x18x16xf32, #tpu.memory_space<vmem>>, vector<16x16x16xf32>
    %149 = tpu.concatenate %140, %141, %142, %143, %144, %145, %146, %147, %148 in 2 : vector<16x16x16xf32>, vector<16x16x16xf32>, vector<16x16x16xf32>, vector<16x16x16xf32>, vector<16x16x16xf32>, vector<16x16x16xf32>, vector<16x16x16xf32>, vector<16x16x16xf32>, vector<16x16x16xf32> -> vector<16x16x144xf32>
    %150 = vector.shape_cast %149 : vector<16x16x144xf32> to vector<256x144xf32>
    %151 = arith.truncf %150 : vector<256x144xf32> to vector<256x144xbf16>
    %c0_272 = arith.constant 0 : index
    %c0_273 = arith.constant 0 : index
    %152 = vector.load %arg13[%c0_272, %c0_273] : memref<144x8xbf16, #tpu.memory_space<vmem>>, vector<144x8xbf16>
    %cst_274 = arith.constant dense<0.000000e+00> : vector<256x8xf32>
    %153 = tpu.matmul %151, %152, %cst_274 {dimension_numbers = #tpu.dot_dimension_numbers<[1], [0], [0], [1], [0, 0, 1, 1], [], []>} : vector<256x144xbf16>, vector<144x8xbf16>, vector<256x8xf32> -> vector<256x8xf32>
    %c0_275 = arith.constant 0 : index
    %c0_276 = arith.constant 0 : index
    %c0_277 = arith.constant 0 : index
    %154 = vector.load %arg20[%c0_275, %c0_276, %c0_277] : memref<18x18x8xf32, #tpu.memory_space<vmem>>, vector<16x16x8xf32>
    %c0_278 = arith.constant 0 : index
    %c1_279 = arith.constant 1 : index
    %c0_280 = arith.constant 0 : index
    %155 = vector.load %arg20[%c0_278, %c1_279, %c0_280] : memref<18x18x8xf32, #tpu.memory_space<vmem>>, vector<16x16x8xf32>
    %c0_281 = arith.constant 0 : index
    %c2_282 = arith.constant 2 : index
    %c0_283 = arith.constant 0 : index
    %156 = vector.load %arg20[%c0_281, %c2_282, %c0_283] : memref<18x18x8xf32, #tpu.memory_space<vmem>>, vector<16x16x8xf32>
    %c1_284 = arith.constant 1 : index
    %c0_285 = arith.constant 0 : index
    %c0_286 = arith.constant 0 : index
    %157 = vector.load %arg20[%c1_284, %c0_285, %c0_286] : memref<18x18x8xf32, #tpu.memory_space<vmem>>, vector<16x16x8xf32>
    %c1_287 = arith.constant 1 : index
    %c1_288 = arith.constant 1 : index
    %c0_289 = arith.constant 0 : index
    %158 = vector.load %arg20[%c1_287, %c1_288, %c0_289] : memref<18x18x8xf32, #tpu.memory_space<vmem>>, vector<16x16x8xf32>
    %c1_290 = arith.constant 1 : index
    %c2_291 = arith.constant 2 : index
    %c0_292 = arith.constant 0 : index
    %159 = vector.load %arg20[%c1_290, %c2_291, %c0_292] : memref<18x18x8xf32, #tpu.memory_space<vmem>>, vector<16x16x8xf32>
    %c2_293 = arith.constant 2 : index
    %c0_294 = arith.constant 0 : index
    %c0_295 = arith.constant 0 : index
    %160 = vector.load %arg20[%c2_293, %c0_294, %c0_295] : memref<18x18x8xf32, #tpu.memory_space<vmem>>, vector<16x16x8xf32>
    %c2_296 = arith.constant 2 : index
    %c1_297 = arith.constant 1 : index
    %c0_298 = arith.constant 0 : index
    %161 = vector.load %arg20[%c2_296, %c1_297, %c0_298] : memref<18x18x8xf32, #tpu.memory_space<vmem>>, vector<16x16x8xf32>
    %c2_299 = arith.constant 2 : index
    %c2_300 = arith.constant 2 : index
    %c0_301 = arith.constant 0 : index
    %162 = vector.load %arg20[%c2_299, %c2_300, %c0_301] : memref<18x18x8xf32, #tpu.memory_space<vmem>>, vector<16x16x8xf32>
    %163 = tpu.concatenate %154, %155, %156, %157, %158, %159, %160, %161, %162 in 2 : vector<16x16x8xf32>, vector<16x16x8xf32>, vector<16x16x8xf32>, vector<16x16x8xf32>, vector<16x16x8xf32>, vector<16x16x8xf32>, vector<16x16x8xf32>, vector<16x16x8xf32>, vector<16x16x8xf32> -> vector<16x16x72xf32>
    %164 = vector.shape_cast %163 : vector<16x16x72xf32> to vector<256x72xf32>
    %165 = arith.truncf %164 : vector<256x72xf32> to vector<256x72xbf16>
    %c0_302 = arith.constant 0 : index
    %c0_303 = arith.constant 0 : index
    %166 = vector.load %arg14[%c0_302, %c0_303] : memref<72x8xbf16, #tpu.memory_space<vmem>>, vector<72x8xbf16>
    %cst_304 = arith.constant dense<0.000000e+00> : vector<256x8xf32>
    %167 = tpu.matmul %165, %166, %cst_304 {dimension_numbers = #tpu.dot_dimension_numbers<[1], [0], [0], [1], [0, 0, 1, 1], [], []>} : vector<256x72xbf16>, vector<72x8xbf16>, vector<256x8xf32> -> vector<256x8xf32>
    %168 = arith.addf %153, %167 : vector<256x8xf32>
    %c0_305 = arith.constant 0 : index
    %c0_306 = arith.constant 0 : index
    %169 = vector.load %arg15[%c0_305, %c0_306] : memref<1x8xf32, #tpu.memory_space<vmem>>, vector<1x8xf32>
    %170 = vector.broadcast %169 : vector<1x8xf32> to vector<256x8xf32>
    %171 = arith.addf %168, %170 : vector<256x8xf32>
    %cst_307 = arith.constant 0.000000e+00 : f32
    %172 = vector.broadcast %cst_307 : f32 to vector<256x8xf32>
    %173 = arith.maximumf %171, %172 : vector<256x8xf32>
    %174 = vector.shape_cast %173 : vector<256x8xf32> to vector<16x16x8xf32>
    %c1_308 = arith.constant 1 : index
    %c1_309 = arith.constant 1 : index
    %c0_310 = arith.constant 0 : index
    %175 = vector.load %arg26[%c1_308, %c1_309, %c0_310] : memref<18x18x8xf32, #tpu.memory_space<vmem>>, vector<16x16x8xf32>
    tpu.vector_store %arg26[%c1_308, %c1_309, %c0_310], %174 {strides = array<i32>} : memref<18x18x8xf32, #tpu.memory_space<vmem>>, vector<16x16x8xf32>,
    %c0_311 = arith.constant 0 : index
    %c0_312 = arith.constant 0 : index
    %c0_313 = arith.constant 0 : index
    %176 = vector.load %arg26[%c0_311, %c0_312, %c0_313] : memref<18x18x8xf32, #tpu.memory_space<vmem>>, vector<16x16x8xf32>
    %c0_314 = arith.constant 0 : index
    %c1_315 = arith.constant 1 : index
    %c0_316 = arith.constant 0 : index
    %177 = vector.load %arg26[%c0_314, %c1_315, %c0_316] : memref<18x18x8xf32, #tpu.memory_space<vmem>>, vector<16x16x8xf32>
    %c0_317 = arith.constant 0 : index
    %c2_318 = arith.constant 2 : index
    %c0_319 = arith.constant 0 : index
    %178 = vector.load %arg26[%c0_317, %c2_318, %c0_319] : memref<18x18x8xf32, #tpu.memory_space<vmem>>, vector<16x16x8xf32>
    %c1_320 = arith.constant 1 : index
    %c0_321 = arith.constant 0 : index
    %c0_322 = arith.constant 0 : index
    %179 = vector.load %arg26[%c1_320, %c0_321, %c0_322] : memref<18x18x8xf32, #tpu.memory_space<vmem>>, vector<16x16x8xf32>
    %c1_323 = arith.constant 1 : index
    %c1_324 = arith.constant 1 : index
    %c0_325 = arith.constant 0 : index
    %180 = vector.load %arg26[%c1_323, %c1_324, %c0_325] : memref<18x18x8xf32, #tpu.memory_space<vmem>>, vector<16x16x8xf32>
    %c1_326 = arith.constant 1 : index
    %c2_327 = arith.constant 2 : index
    %c0_328 = arith.constant 0 : index
    %181 = vector.load %arg26[%c1_326, %c2_327, %c0_328] : memref<18x18x8xf32, #tpu.memory_space<vmem>>, vector<16x16x8xf32>
    %c2_329 = arith.constant 2 : index
    %c0_330 = arith.constant 0 : index
    %c0_331 = arith.constant 0 : index
    %182 = vector.load %arg26[%c2_329, %c0_330, %c0_331] : memref<18x18x8xf32, #tpu.memory_space<vmem>>, vector<16x16x8xf32>
    %c2_332 = arith.constant 2 : index
    %c1_333 = arith.constant 1 : index
    %c0_334 = arith.constant 0 : index
    %183 = vector.load %arg26[%c2_332, %c1_333, %c0_334] : memref<18x18x8xf32, #tpu.memory_space<vmem>>, vector<16x16x8xf32>
    %c2_335 = arith.constant 2 : index
    %c2_336 = arith.constant 2 : index
    %c0_337 = arith.constant 0 : index
    %184 = vector.load %arg26[%c2_335, %c2_336, %c0_337] : memref<18x18x8xf32, #tpu.memory_space<vmem>>, vector<16x16x8xf32>
    %185 = tpu.concatenate %176, %177, %178, %179, %180, %181, %182, %183, %184 in 2 : vector<16x16x8xf32>, vector<16x16x8xf32>, vector<16x16x8xf32>, vector<16x16x8xf32>, vector<16x16x8xf32>, vector<16x16x8xf32>, vector<16x16x8xf32>, vector<16x16x8xf32>, vector<16x16x8xf32> -> vector<16x16x72xf32>
    %186 = vector.shape_cast %185 : vector<16x16x72xf32> to vector<256x72xf32>
    %187 = arith.truncf %186 : vector<256x72xf32> to vector<256x72xbf16>
    %c0_338 = arith.constant 0 : index
    %c0_339 = arith.constant 0 : index
    %188 = vector.load %arg16[%c0_338, %c0_339] : memref<3x72xbf16, #tpu.memory_space<vmem>>, vector<3x72xbf16>
    %cst_340 = arith.constant dense<0.000000e+00> : vector<3x256xf32>
    %189 = tpu.matmul %188, %187, %cst_340 {dimension_numbers = #tpu.dot_dimension_numbers<[1], [1], [0], [0], [0, 0, 1, 0], [], []>} : vector<3x72xbf16>, vector<256x72xbf16>, vector<3x256xf32> -> vector<3x256xf32>
    %c0_341 = arith.constant 0 : index
    %c0_342 = arith.constant 0 : index
    %190 = vector.load %arg17[%c0_341, %c0_342] : memref<3x1xf32, #tpu.memory_space<vmem>>, vector<3x1xf32>
    %191 = vector.broadcast %190 : vector<3x1xf32> to vector<3x256xf32>
    %192 = arith.addf %189, %191 : vector<3x256xf32>
    %c0_343 = arith.constant 0 : index
    %c0_344 = arith.constant 0 : index
    %c0_345 = arith.constant 0 : index
    %193 = vector.load %arg18[%c0_343, %c0_344, %c0_345] : memref<1x3x256xf32, #tpu.memory_space<vmem>>, vector<1x3x256xf32>
    %194 = vector.shape_cast %193 : vector<1x3x256xf32> to vector<3x256xf32>
    %195 = vector.shape_cast %192 : vector<3x256xf32> to vector<1x3x256xf32>
    tpu.vector_store %arg18[%c0_343, %c0_344, %c0_345], %195 {strides = array<i32>} : memref<1x3x256xf32, #tpu.memory_space<vmem>>, vector<1x3x256xf32>,
    return
  }
  func.func @transform_0(%arg0: i32) -> (i32, i32, i32, i32) {
    %c0_i32 = arith.constant 0 : i32
    %c0_i32_0 = arith.constant 0 : i32
    %c0_i32_1 = arith.constant 0 : i32
    %c0_i32_2 = arith.constant 0 : i32
    return %arg0, %c0_i32, %c0_i32_0, %c0_i32_1 : i32, i32, i32, i32
  }
  func.func @transform_1(%arg0: i32) -> (i32, i32) {
    %c0_i32 = arith.constant 0 : i32
    %c0_i32_0 = arith.constant 0 : i32
    %c0_i32_1 = arith.constant 0 : i32
    return %c0_i32, %c0_i32_0 : i32, i32
  }
  func.func @transform_2(%arg0: i32) -> (i32, i32) {
    %c0_i32 = arith.constant 0 : i32
    %c0_i32_0 = arith.constant 0 : i32
    %c0_i32_1 = arith.constant 0 : i32
    return %c0_i32, %c0_i32_0 : i32, i32
  }
  func.func @transform_3(%arg0: i32) -> (i32, i32) {
    %c0_i32 = arith.constant 0 : i32
    %c0_i32_0 = arith.constant 0 : i32
    %c0_i32_1 = arith.constant 0 : i32
    return %c0_i32, %c0_i32_0 : i32, i32
  }
  func.func @transform_4(%arg0: i32) -> (i32, i32) {
    %c0_i32 = arith.constant 0 : i32
    %c0_i32_0 = arith.constant 0 : i32
    %c0_i32_1 = arith.constant 0 : i32
    return %c0_i32, %c0_i32_0 : i32, i32
  }
  func.func @transform_5(%arg0: i32) -> (i32, i32) {
    %c0_i32 = arith.constant 0 : i32
    %c0_i32_0 = arith.constant 0 : i32
    %c0_i32_1 = arith.constant 0 : i32
    return %c0_i32, %c0_i32_0 : i32, i32
  }
  func.func @transform_6(%arg0: i32) -> (i32, i32) {
    %c0_i32 = arith.constant 0 : i32
    %c0_i32_0 = arith.constant 0 : i32
    %c0_i32_1 = arith.constant 0 : i32
    return %c0_i32, %c0_i32_0 : i32, i32
  }
  func.func @transform_7(%arg0: i32) -> (i32, i32) {
    %c0_i32 = arith.constant 0 : i32
    %c0_i32_0 = arith.constant 0 : i32
    %c0_i32_1 = arith.constant 0 : i32
    return %c0_i32, %c0_i32_0 : i32, i32
  }
  func.func @transform_8(%arg0: i32) -> (i32, i32) {
    %c0_i32 = arith.constant 0 : i32
    %c0_i32_0 = arith.constant 0 : i32
    %c0_i32_1 = arith.constant 0 : i32
    return %c0_i32, %c0_i32_0 : i32, i32
  }
  func.func @transform_9(%arg0: i32) -> (i32, i32) {
    %c0_i32 = arith.constant 0 : i32
    %c0_i32_0 = arith.constant 0 : i32
    %c0_i32_1 = arith.constant 0 : i32
    return %c0_i32, %c0_i32_0 : i32, i32
  }
  func.func @transform_10(%arg0: i32) -> (i32, i32) {
    %c0_i32 = arith.constant 0 : i32
    %c0_i32_0 = arith.constant 0 : i32
    %c0_i32_1 = arith.constant 0 : i32
    return %c0_i32, %c0_i32_0 : i32, i32
  }
  func.func @transform_11(%arg0: i32) -> (i32, i32) {
    %c0_i32 = arith.constant 0 : i32
    %c0_i32_0 = arith.constant 0 : i32
    %c0_i32_1 = arith.constant 0 : i32
    return %c0_i32, %c0_i32_0 : i32, i32
  }
  func.func @transform_12(%arg0: i32) -> (i32, i32) {
    %c0_i32 = arith.constant 0 : i32
    %c0_i32_0 = arith.constant 0 : i32
    %c0_i32_1 = arith.constant 0 : i32
    return %c0_i32, %c0_i32_0 : i32, i32
  }
  func.func @transform_13(%arg0: i32) -> (i32, i32) {
    %c0_i32 = arith.constant 0 : i32
    %c0_i32_0 = arith.constant 0 : i32
    %c0_i32_1 = arith.constant 0 : i32
    return %c0_i32, %c0_i32_0 : i32, i32
  }
  func.func @transform_14(%arg0: i32) -> (i32, i32) {
    %c0_i32 = arith.constant 0 : i32
    %c0_i32_0 = arith.constant 0 : i32
    %c0_i32_1 = arith.constant 0 : i32
    return %c0_i32, %c0_i32_0 : i32, i32
  }
  func.func @transform_15(%arg0: i32) -> (i32, i32) {
    %c0_i32 = arith.constant 0 : i32
    %c0_i32_0 = arith.constant 0 : i32
    %c0_i32_1 = arith.constant 0 : i32
    return %c0_i32, %c0_i32_0 : i32, i32
  }
  func.func @transform_16(%arg0: i32) -> (i32, i32) {
    %c0_i32 = arith.constant 0 : i32
    %c0_i32_0 = arith.constant 0 : i32
    %c0_i32_1 = arith.constant 0 : i32
    return %c0_i32, %c0_i32_0 : i32, i32
  }
  func.func @transform_17(%arg0: i32) -> (i32, i32, i32) {
    %c0_i32 = arith.constant 0 : i32
    %c0_i32_0 = arith.constant 0 : i32
    %c0_i32_1 = arith.constant 0 : i32
    return %arg0, %c0_i32, %c0_i32_0 : i32, i32, i32
  }
}

</mosaic_0001>

<bundles_post_ra>
// kernel: forward_pallas.1
= control target key start
LH: loop header
LB: loop body
LE: loop exit
PB: predicated region body
PF: predicated region fallthrough
CT: control target
= control target key end

     0   :  { %s14550_s24 = smov 0   ;;  %s20272_s0 = inlined_call_operand.vmem [shape: f32[2,16,16,4], index: 0, kind: input, shape index: {}]   ;;  %s20273_s1 = inlined_call_operand.vmem [shape: bf16[256,64], index: 1, kind: input, shape index: {}]   ;;  %s20274_s2 = inlined_call_operand.vmem [shape: bf16[64,16], index: 2, kind: input, shape index: {}]   ;;  %s20275_s3 = inlined_call_operand.vmem [shape: bf16[36,8], index: 3, kind: input, shape index: {}]   ;;  %s20276_s4 = inlined_call_operand.vmem [shape: f32[1,8], index: 4, kind: input, shape index: {}]   ;;  %s20277_s5 = inlined_call_operand.vmem [shape: bf16[72,16], index: 5, kind: input, shape index: {}]   ;;  %s20278_s6 = inlined_call_operand.vmem [shape: f32[1,16], index: 6, kind: input, shape index: {}]   ;;  %s20279_s7 = inlined_call_operand.vmem [shape: bf16[144,32], index: 7, kind: input, shape index: {}]   ;;  %s20280_s8 = inlined_call_operand.vmem [shape: f32[1,32], index: 8, kind: input, shape index: {}]   ;;  %s20281_s9 = inlined_call_operand.vmem [shape: bf16[288,16], index: 9, kind: input, shape index: {}]   ;;  %s20282_s10 = inlined_call_operand.vmem [shape: bf16[144,16], index: 10, kind: input, shape index: {}]   ;;  %s20283_s11 = inlined_call_operand.vmem [shape: f32[1,16], index: 11, kind: input, shape index: {}]   ;;  %s20284_s12 = inlined_call_operand.vmem [shape: bf16[144,8], index: 12, kind: input, shape index: {}]   ;;  %s20285_s13 = inlined_call_operand.vmem [shape: bf16[72,8], index: 13, kind: input, shape index: {}]   ;;  %s20286_s14 = inlined_call_operand.vmem [shape: f32[1,8], index: 14, kind: input, shape index: {}]   ;;  %s20287_s15 = inlined_call_operand.vmem [shape: bf16[3,72], index: 15, kind: input, shape index: {}]   ;;  %s20288_s16 = inlined_call_operand.vmem [shape: f32[3,1], index: 16, kind: input, shape index: {}]   ;;  %s20289_s17 = inlined_call_operand.vmem [shape: f32[2,3,256], index: 17, kind: output, shape index: {}]  }
   0x1   :  { %20395 = sst [smem:[#allocation74_spill]] %s20272_s0 }
   0x2   :  { %20396 = sst [smem:[#allocation75_spill]] %s20273_s1 }
   0x3   :  { %20397 = sst [smem:[#allocation76_spill]] %s20274_s2 }
   0x4   :  { %20398 = sst [smem:[#allocation77_spill]] %s20275_s3 }
   0x5   :  { %20399 = sst [smem:[#allocation78_spill]] %s20276_s4 }
   0x6 LB: > { %s10886_s25 = sadd.s32 4294967295, %s14441_s24   ;;  %p10890_p0 = scmp.ge.s32.totalorder %s14441_s24, 1  ;;  %s14441_s24 = sphi %s14550_s24, %s27_s24  }
   0x7   : > { %p487_p1 = scmp.lt.s32.totalorder %s14441_s24, 3 }
   0x9   : > { %p488_p2 = pnand %p10890_p0, %p487_p1 }
   0xb   : > { %491 = sbr.rel (%p488_p2) target bundleno = 3325 (0xcfd), region = 88 }
  0x12   : > { %vm550_vm0 = vcmask 31744   ;;  %vm553_vm1 = vcmask 25600   ;;  %v14443_v0 = vmov 0.0   ;;  %p539_p3 = scmp.lt.s32.totalorder %s10886_s25, 1  ;;  %vm606_vm2 = vcmask 64512   ;;  %s20400_s29 = sld [smem:[#allocation74_spill]] }
  0x13   : > { %551 = vst.msk [vmem:[#allocation2] sm:$0xff] %vm550_vm0, %v14443_v0  ;;  %552 = vst.msk [vmem:[#allocation2 + $0x8] sm:$0xff] %vm550_vm0, %v14443_v0  ;;  %s20297_s30 = smov 8   ;;  %s14445_s18 = smov 4   ;;  %vm682_vm3 = vcmask 130048   ;;  %vm711_vm4 = vcmask 261120  }
  0x14   : > { %554 = vst.msk [vmem:[#allocation2 + $0x10] sm:$0x3] %vm553_vm1, %v14443_v0  ;;  %557 = vst.msk [vmem:[#allocation2 + $0x28] sm:$0x3] %vm553_vm1, %v14443_v0  ;;  %s20656_s25 = smov (!%p539_p3, %s10886_s25), 1  ;;  %s14446_s19 = smov 12  }
  0x15   : > { %555 = vst.msk [vmem:[#allocation2 + $0x18] sm:$0xff] %vm550_vm0, %v14443_v0  ;;  %556 = vst.msk [vmem:[#allocation2 + $0x20] sm:$0xff] %vm550_vm0, %v14443_v0  ;;  %s11066_s26 = sshll.u32 %s20656_s25, 8  ;;  %s20388_s1 = smov 16   ;;  %vm2571_vm5 = vcmask 1041408   ;;  %vm2283_vm6 = vcmask 97280  }
  0x16   : > { %558 = vst.msk [vmem:[#allocation2 + $0x30] sm:$0xff] %vm550_vm0, %v14443_v0  ;;  %559 = vst.msk [vmem:[#allocation2 + $0x38] sm:$0xff] %vm550_vm0, %v14443_v0  ;;  %s14448_s20 = smov 20   ;;  %s20401_s3 = sld [smem:[#allocation77_spill]]  ;;  %vm2348_vm7 = vcmask 162816   ;;  %vm2381_vm8 = vcmask 195584  }
  0x17   : > { %560 = vst.msk [vmem:[#allocation2 + $0x40] sm:$0x3] %vm553_vm1, %v14443_v0  ;;  %563 = vst.msk [vmem:[#allocation2 + $0x58] sm:$0x3] %vm553_vm1, %v14443_v0  ;;  %s20295_s23 = smov 24   ;;  %s14450_s21 = smov 28  }
  0x18   : > { %561 = vst.msk [vmem:[#allocation2 + $0x48] sm:$0xff] %vm550_vm0, %v14443_v0  ;;  %562 = vst.msk [vmem:[#allocation2 + $0x50] sm:$0xff] %vm550_vm0, %v14443_v0  ;;  %s14842_s0 = scalar_lea.vmem %s20400_s29, %s11066_s26  ;;  %s20384_s22 = smov 32   ;;  %vm2414_vm9 = vcmask 228352   ;;  %vm2522_vm10 = vcmask 293888   ;;  %vm609_vm11 = vcmask 58368  }
  0x19   : > { %564 = vst.msk [vmem:[#allocation2 + $0x60] sm:$0xff] %vm550_vm0, %v14443_v0  ;;  %565 = vst.msk [vmem:[#allocation2 + $0x68] sm:$0xff] %vm550_vm0, %v14443_v0  ;;  %v841_v1 = vld [vmem:[%s14842_s0] sm:$0xff]  ;;  %v842_v2 = vld [vmem:[%s14842_s0 + $0x8] sm:$0xff]  ;;  %s20402_s4 = sld [smem:[#allocation78_spill]]  ;;  %s20291_s26 = smov 56  }
  0x1a   : > { %566 = vst.msk [vmem:[#allocation2 + $0x70] sm:$0x3] %vm553_vm1, %v14443_v0  ;;  %569 = vst.msk [vmem:[#allocation2 + $0x88] sm:$0x3] %vm553_vm1, %v14443_v0  ;;  %v843_v3 = vld [vmem:[%s14842_s0 + $0x10] sm:$0xff]  ;;  %v970_v4 = vld [vmem:[#allocation2 + $0x2] sm:$0xff] }
  0x1b   : > { %567 = vst.msk [vmem:[#allocation2 + $0x78] sm:$0xff] %vm550_vm0, %v14443_v0  ;;  %568 = vst.msk [vmem:[#allocation2 + $0x80] sm:$0xff] %vm550_vm0, %v14443_v0  ;;  %v971_v5 = vld [vmem:[#allocation2 + $0xa] sm:$0xff]  ;;  %v938_v6 = vld [vmem:[#allocation2 + $0x1] sm:$0xff]  ;;  %s20386_s27 = smov 64   ;;  %vm3356_vm12 = vcmask 1043456  }
  0x1c   : > { %570 = vst.msk [vmem:[#allocation2 + $0x90] sm:$0xff] %vm550_vm0, %v14443_v0  ;;  %571 = vst.msk [vmem:[#allocation2 + $0x98] sm:$0xff] %vm550_vm0, %v14443_v0  ;;  %v11407_v7 = vpack.i.bf16 %v971_v5, %v970_v4  ;;  %v939_v8 = vld [vmem:[#allocation2 + $0x9] sm:$0xff]  ;;  %v844_v9 = vld [vmem:[%s14842_s0 + $0x18] sm:$0xff]  ;;  %vm3260_vm13 = vcmask 326656   ;;  %vm3269_vm14 = vcmask 392192  }
  0x1d   : > { %572 = vst.msk [vmem:[#allocation2 + $0xa0] sm:$0x3] %vm553_vm1, %v14443_v0  ;;  %575 = vst.msk [vmem:[#allocation2 + $0xb8] sm:$0x3] %vm553_vm1, %v14443_v0  ;;  %v845_v10 = vld [vmem:[%s14842_s0 + $0x20] sm:$0xff]  ;;  %v11402_v11 = vpack.i.bf16 %v939_v8, %v938_v6  ;;  %v846_v12 = vld [vmem:[%s14842_s0 + $0x28] sm:$0xff] }
  0x1e   : > { %573 = vst.msk [vmem:[#allocation2 + $0xa8] sm:$0xff] %vm550_vm0, %v14443_v0  ;;  %574 = vst.msk [vmem:[#allocation2 + $0xb0] sm:$0xff] %vm550_vm0, %v14443_v0  ;;  %v847_v13 = vld [vmem:[%s14842_s0 + $0x30] sm:$0xff]  ;;  %v848_v14 = vld [vmem:[%s14842_s0 + $0x38] sm:$0xff]  ;;  %11408 = vrot.lane.b32.xlu1 %v11407_v7, %s20297_s30  ;;  %vm3278_vm15 = vcmask 457728   ;;  %s20369_s28 = smov 96  }
  0x1f   : > { %576 = vst.msk [vmem:[#allocation2 + $0xc0] sm:$0xff] %vm550_vm0, %v14443_v0  ;;  %577 = vst.msk [vmem:[#allocation2 + $0xc8] sm:$0xff] %vm550_vm0, %v14443_v0  ;;  %v849_v15 = vld [vmem:[%s14842_s0 + $0x40] sm:$0xff]  ;;  %v850_v16 = vld [vmem:[%s14842_s0 + $0x48] sm:$0xff]  ;;  %11403 = vrot.lane.b32.xlu0 %v11402_v11, %s14445_s18  ;;  %s20404_s2 = sld [smem:[#allocation76_spill]]  ;;  %s20564_s29 = smov 32  }
  0x20   : > { %578 = vst.msk [vmem:[#allocation2 + $0xd0] sm:$0x3] %vm553_vm1, %v14443_v0  ;;  %581 = vst.msk [vmem:[#allocation2 + $0xe8] sm:$0x3] %vm553_vm1, %v14443_v0  ;;  %v851_v17 = vld [vmem:[%s14842_s0 + $0x50] sm:$0xff]  ;;  %v852_v18 = vld [vmem:[%s14842_s0 + $0x58] sm:$0xff] }
  0x21   : > { %579 = vst.msk [vmem:[#allocation2 + $0xd8] sm:$0xff] %vm550_vm0, %v14443_v0  ;;  %580 = vst.msk [vmem:[#allocation2 + $0xe0] sm:$0xff] %vm550_vm0, %v14443_v0  ;;  %v853_v19 = vld [vmem:[%s14842_s0 + $0x60] sm:$0xff]  ;;  %v854_v20 = vld [vmem:[%s14842_s0 + $0x68] sm:$0xff] }
  0x22   : > { %582 = vst.msk [vmem:[#allocation2 + $0xf0] sm:$0xff] %vm550_vm0, %v14443_v0  ;;  %583 = vst.msk [vmem:[#allocation2 + $0xf8] sm:$0xff] %vm550_vm0, %v14443_v0  ;;  %v855_v21 = vld [vmem:[%s14842_s0 + $0x70] sm:$0xff]  ;;  %v856_v22 = vld [vmem:[%s14842_s0 + $0x78] sm:$0xff] }
  0x23   : > { %584 = vst.msk [vmem:[#allocation2 + $0x100] sm:$0x3] %vm553_vm1, %v14443_v0  ;;  %587 = vst.msk [vmem:[#allocation2 + $0x118] sm:$0x3] %vm553_vm1, %v14443_v0  ;;  %v857_v23 = vld [vmem:[%s14842_s0 + $0x80] sm:$0xff]  ;;  %v858_v24 = vld [vmem:[%s14842_s0 + $0x88] sm:$0xff] }
  0x24   : > { %585 = vst.msk [vmem:[#allocation2 + $0x108] sm:$0xff] %vm550_vm0, %v14443_v0  ;;  %586 = vst.msk [vmem:[#allocation2 + $0x110] sm:$0xff] %vm550_vm0, %v14443_v0  ;;  %v859_v48 = vld [vmem:[%s14842_s0 + $0x90] sm:$0xff]  ;;  %v860_v49 = vld [vmem:[%s14842_s0 + $0x98] sm:$0xff] }
  0x25   : > { %588 = vst.msk [vmem:[#allocation2 + $0x120] sm:$0xff] %vm550_vm0, %v14443_v0  ;;  %589 = vst.msk [vmem:[#allocation2 + $0x128] sm:$0xff] %vm550_vm0, %v14443_v0  ;;  %v14303_v50 = vld [vmem:[%s20401_s3] sm:$0xff]   ;;  %v14304_v52 = vld [vmem:[%s20401_s3 + $0x8] sm:$0xff]  }
  0x26   : > { %590 = vst.msk [vmem:[#allocation2 + $0x130] sm:$0x3] %vm553_vm1, %v14443_v0  ;;  %593 = vst.msk [vmem:[#allocation2 + $0x148] sm:$0x3] %vm553_vm1, %v14443_v0  ;;  %11206 = vmatprep.subr.bf16.mxu0 %v14303_v50  ;;  %v861_v54 = vld [vmem:[%s14842_s0 + $0xa0] sm:$0xff]  ;;  %v862_v55 = vld [vmem:[%s14842_s0 + $0xa8] sm:$0xff] }
  0x27   : > { %591 = vst.msk [vmem:[#allocation2 + $0x138] sm:$0xff] %vm550_vm0, %v14443_v0  ;;  %592 = vst.msk [vmem:[#allocation2 + $0x140] sm:$0xff] %vm550_vm0, %v14443_v0  ;;  %v14305_v53 = vld [vmem:[%s20401_s3 + $0x10] ss:$0 sps:$4 sm:$0x33]   ;;  %11207 = vmatpush3.bf16.msra.mxu0 %v14303_v50  ;;  %v864_v63 = vld [vmem:[%s14842_s0 + $0xb8] sm:$0xff] }
  0x28   : > { %594 = vst.msk [vmem:[#allocation2 + $0x150] sm:$0xff] %vm550_vm0, %v14443_v0  ;;  %595 = vst.msk [vmem:[#allocation2 + $0x158] sm:$0xff] %vm550_vm0, %v14443_v0  ;;  %11208 = vmatprep.subr.bf16.mxu0 %v14304_v52  ;;  %v2573_v58 = vsel %vm2571_vm5, %v14305_v53, 0  ;;  %v863_v62 = vld [vmem:[%s14842_s0 + $0xb0] sm:$0xff]  ;;  %v865_v7 = vld [vmem:[%s14842_s0 + $0xc0] sm:$0xff] }
  0x29   : > { %596 = vst.msk [vmem:[#allocation2 + $0x160] sm:$0x3] %vm553_vm1, %v14443_v0  ;;  %599 = vst.msk [vmem:[#allocation2 + $0x178] sm:$0x3] %vm553_vm1, %v14443_v0 }
  0x2a   : > { %597 = vst.msk [vmem:[#allocation2 + $0x168] sm:$0xff] %vm550_vm0, %v14443_v0  ;;  %598 = vst.msk [vmem:[#allocation2 + $0x170] sm:$0xff] %vm550_vm0, %v14443_v0 }
  0x2b   : > { %600 = vst.msk [vmem:[#allocation2 + $0x180] sm:$0xff] %vm550_vm0, %v14443_v0  ;;  %601 = vst.msk [vmem:[#allocation2 + $0x188] sm:$0xff] %vm550_vm0, %v14443_v0  ;;  %11209 = vmatpush3.bf16.msra.mxu0 %v14304_v52 }
  0x2c   : > { %602 = vst.msk [vmem:[#allocation2 + $0x190] sm:$0x3] %vm553_vm1, %v14443_v0  ;;  %605 = vst.msk [vmem:[#allocation2 + $0x1a8] sm:$0x3] %vm553_vm1, %v14443_v0  ;;  %11366 = vmatprep.subr.msk.bf16.mxu0 %vm2571_vm5, %v14305_v53  ;;  %vm3343_vm1 = vcmask 588800   ;;  %vm684_vm5 = vcmask 123904  }
  0x2d   : > { %603 = vst.msk [vmem:[#allocation2 + $0x198] sm:$0xff] %vm550_vm0, %v14443_v0  ;;  %604 = vst.msk [vmem:[#allocation2 + $0x1a0] sm:$0xff] %vm550_vm0, %v14443_v0 }
  0x2e   : > { %607 = vst.msk [vmem:[#allocation3] sm:$0xff] %vm606_vm2, %v14443_v0  ;;  %608 = vst.msk [vmem:[#allocation3 + $0x8] sm:$0xff] %vm606_vm2, %v14443_v0 }
  0x2f   : > { %611 = vst.msk [vmem:[#allocation3 + $0x18] sm:$0xff] %vm606_vm2, %v14443_v0  ;;  %612 = vst.msk [vmem:[#allocation3 + $0x20] sm:$0xff] %vm606_vm2, %v14443_v0  ;;  %11211 = vmatpush3.bf16.msra.mxu0 %v2573_v58 }
  0x30   : > { %614 = vst.msk [vmem:[#allocation3 + $0x30] sm:$0xff] %vm606_vm2, %v14443_v0  ;;  %615 = vst.msk [vmem:[#allocation3 + $0x38] sm:$0xff] %vm606_vm2, %v14443_v0 }
  0x31   : > { %617 = vst.msk [vmem:[#allocation3 + $0x48] sm:$0xff] %vm606_vm2, %v14443_v0  ;;  %618 = vst.msk [vmem:[#allocation3 + $0x50] sm:$0xff] %vm606_vm2, %v14443_v0 }
  0x32   : > { %620 = vst.msk [vmem:[#allocation3 + $0x60] sm:$0xff] %vm606_vm2, %v14443_v0  ;;  %621 = vst.msk [vmem:[#allocation3 + $0x68] sm:$0xff] %vm606_vm2, %v14443_v0 }
  0x33   : > { %623 = vst.msk [vmem:[#allocation3 + $0x78] sm:$0xff] %vm606_vm2, %v14443_v0  ;;  %624 = vst.msk [vmem:[#allocation3 + $0x80] sm:$0xff] %vm606_vm2, %v14443_v0 }
  0x34   : > { %626 = vst.msk [vmem:[#allocation3 + $0x90] sm:$0xff] %vm606_vm2, %v14443_v0  ;;  %627 = vst.msk [vmem:[#allocation3 + $0x98] sm:$0xff] %vm606_vm2, %v14443_v0 }
  0x35   : > { %629 = vst.msk [vmem:[#allocation3 + $0xa8] sm:$0xff] %vm606_vm2, %v14443_v0  ;;  %630 = vst.msk [vmem:[#allocation3 + $0xb0] sm:$0xff] %vm606_vm2, %v14443_v0 }
  0x36   : > { %632 = vst.msk [vmem:[#allocation3 + $0xc0] sm:$0xff] %vm606_vm2, %v14443_v0  ;;  %633 = vst.msk [vmem:[#allocation3 + $0xc8] sm:$0xff] %vm606_vm2, %v14443_v0 }
  0x37   : > { %635 = vst.msk [vmem:[#allocation3 + $0xd8] sm:$0xff] %vm606_vm2, %v14443_v0  ;;  %636 = vst.msk [vmem:[#allocation3 + $0xe0] sm:$0xff] %vm606_vm2, %v14443_v0 }
  0x38   : > { %638 = vst.msk [vmem:[#allocation3 + $0xf0] sm:$0xff] %vm606_vm2, %v14443_v0  ;;  %639 = vst.msk [vmem:[#allocation3 + $0xf8] sm:$0xff] %vm606_vm2, %v14443_v0 }
  0x39   : > { %641 = vst.msk [vmem:[#allocation3 + $0x108] sm:$0xff] %vm606_vm2, %v14443_v0  ;;  %642 = vst.msk [vmem:[#allocation3 + $0x110] sm:$0xff] %vm606_vm2, %v14443_v0 }
  0x3a   : > { %644 = vst.msk [vmem:[#allocation3 + $0x120] sm:$0xff] %vm606_vm2, %v14443_v0  ;;  %645 = vst.msk [vmem:[#allocation3 + $0x128] sm:$0xff] %vm606_vm2, %v14443_v0 }
  0x3b   : > { %647 = vst.msk [vmem:[#allocation3 + $0x138] sm:$0xff] %vm606_vm2, %v14443_v0  ;;  %648 = vst.msk [vmem:[#allocation3 + $0x140] sm:$0xff] %vm606_vm2, %v14443_v0 }
  0x3c   : > { %650 = vst.msk [vmem:[#allocation3 + $0x150] sm:$0xff] %vm606_vm2, %v14443_v0  ;;  %651 = vst.msk [vmem:[#allocation3 + $0x158] sm:$0xff] %vm606_vm2, %v14443_v0 }
  0x3d   : > { %653 = vst.msk [vmem:[#allocation3 + $0x168] sm:$0xff] %vm606_vm2, %v14443_v0  ;;  %654 = vst.msk [vmem:[#allocation3 + $0x170] sm:$0xff] %vm606_vm2, %v14443_v0 }
  0x3e   : > { %656 = vst.msk [vmem:[#allocation3 + $0x180] sm:$0xff] %vm606_vm2, %v14443_v0  ;;  %657 = vst.msk [vmem:[#allocation3 + $0x188] sm:$0xff] %vm606_vm2, %v14443_v0 }
  0x3f   : > { %659 = vst.msk [vmem:[#allocation3 + $0x198] sm:$0xff] %vm606_vm2, %v14443_v0  ;;  %660 = vst.msk [vmem:[#allocation3 + $0x1a0] sm:$0xff] %vm606_vm2, %v14443_v0 }
  0x40   : > { %662 = vst.msk [vmem:[#allocation4] sm:$0xff] %vm606_vm2, %v14443_v0  ;;  %664 = vst.msk [vmem:[#allocation4 + $0x10] sm:$0xff] %vm606_vm2, %v14443_v0 }
  0x41   : > { %666 = vst.msk [vmem:[#allocation4 + $0x20] sm:$0xff] %vm606_vm2, %v14443_v0  ;;  %668 = vst.msk [vmem:[#allocation4 + $0x30] sm:$0xff] %vm606_vm2, %v14443_v0 }
  0x42   : > { %670 = vst.msk [vmem:[#allocation4 + $0x40] sm:$0xff] %vm606_vm2, %v14443_v0  ;;  %672 = vst.msk [vmem:[#allocation4 + $0x50] sm:$0xff] %vm606_vm2, %v14443_v0 }
  0x43   : > { %674 = vst.msk [vmem:[#allocation4 + $0x60] sm:$0xff] %vm606_vm2, %v14443_v0  ;;  %676 = vst.msk [vmem:[#allocation4 + $0x70] sm:$0xff] %vm606_vm2, %v14443_v0 }
  0x44   : > { %678 = vst.msk [vmem:[#allocation4 + $0x80] sm:$0xff] %vm606_vm2, %v14443_v0  ;;  %680 = vst.msk [vmem:[#allocation4 + $0x90] sm:$0xff] %vm606_vm2, %v14443_v0 }
  0x45   : > { %787 = vst.msk [vmem:[#allocation9] sm:$0xff] %vm606_vm2, %v14443_v0  ;;  %788 = vst.msk [vmem:[#allocation9 + $0x8] sm:$0xff] %vm606_vm2, %v14443_v0 }
  0x46   : > { %790 = vst.msk [vmem:[#allocation9 + $0x18] sm:$0xff] %vm606_vm2, %v14443_v0  ;;  %791 = vst.msk [vmem:[#allocation9 + $0x20] sm:$0xff] %vm606_vm2, %v14443_v0 }
  0x47   : > { %793 = vst.msk [vmem:[#allocation9 + $0x30] sm:$0xff] %vm606_vm2, %v14443_v0  ;;  %794 = vst.msk [vmem:[#allocation9 + $0x38] sm:$0xff] %vm606_vm2, %v14443_v0 }
  0x48   : > { %796 = vst.msk [vmem:[#allocation9 + $0x48] sm:$0xff] %vm606_vm2, %v14443_v0  ;;  %797 = vst.msk [vmem:[#allocation9 + $0x50] sm:$0xff] %vm606_vm2, %v14443_v0 }
  0x49   : > { %799 = vst.msk [vmem:[#allocation9 + $0x60] sm:$0xff] %vm606_vm2, %v14443_v0  ;;  %800 = vst.msk [vmem:[#allocation9 + $0x68] sm:$0xff] %vm606_vm2, %v14443_v0 }
  0x4a   : > { %802 = vst.msk [vmem:[#allocation9 + $0x78] sm:$0xff] %vm606_vm2, %v14443_v0  ;;  %803 = vst.msk [vmem:[#allocation9 + $0x80] sm:$0xff] %vm606_vm2, %v14443_v0 }
  0x4b   : > { %805 = vst.msk [vmem:[#allocation9 + $0x90] sm:$0xff] %vm606_vm2, %v14443_v0  ;;  %806 = vst.msk [vmem:[#allocation9 + $0x98] sm:$0xff] %vm606_vm2, %v14443_v0 }
  0x4c   : > { %808 = vst.msk [vmem:[#allocation9 + $0xa8] sm:$0xff] %vm606_vm2, %v14443_v0  ;;  %809 = vst.msk [vmem:[#allocation9 + $0xb0] sm:$0xff] %vm606_vm2, %v14443_v0 }
  0x4d   : > { %811 = vst.msk [vmem:[#allocation9 + $0xc0] sm:$0xff] %vm606_vm2, %v14443_v0  ;;  %812 = vst.msk [vmem:[#allocation9 + $0xc8] sm:$0xff] %vm606_vm2, %v14443_v0 }
  0x4e   : > { %814 = vst.msk [vmem:[#allocation9 + $0xd8] sm:$0xff] %vm606_vm2, %v14443_v0  ;;  %815 = vst.msk [vmem:[#allocation9 + $0xe0] sm:$0xff] %vm606_vm2, %v14443_v0 }
  0x4f   : > { %817 = vst.msk [vmem:[#allocation9 + $0xf0] sm:$0xff] %vm606_vm2, %v14443_v0  ;;  %818 = vst.msk [vmem:[#allocation9 + $0xf8] sm:$0xff] %vm606_vm2, %v14443_v0 }
  0x50   : > { %820 = vst.msk [vmem:[#allocation9 + $0x108] sm:$0xff] %vm606_vm2, %v14443_v0  ;;  %821 = vst.msk [vmem:[#allocation9 + $0x110] sm:$0xff] %vm606_vm2, %v14443_v0 }
  0x51   : > { %823 = vst.msk [vmem:[#allocation9 + $0x120] sm:$0xff] %vm606_vm2, %v14443_v0  ;;  %824 = vst.msk [vmem:[#allocation9 + $0x128] sm:$0xff] %vm606_vm2, %v14443_v0 }
  0x52   : > { %826 = vst.msk [vmem:[#allocation9 + $0x138] sm:$0xff] %vm606_vm2, %v14443_v0  ;;  %827 = vst.msk [vmem:[#allocation9 + $0x140] sm:$0xff] %vm606_vm2, %v14443_v0 }
  0x53   : > { %829 = vst.msk [vmem:[#allocation9 + $0x150] sm:$0xff] %vm606_vm2, %v14443_v0  ;;  %830 = vst.msk [vmem:[#allocation9 + $0x158] sm:$0xff] %vm606_vm2, %v14443_v0 }
  0x54   : > { %832 = vst.msk [vmem:[#allocation9 + $0x168] sm:$0xff] %vm606_vm2, %v14443_v0  ;;  %833 = vst.msk [vmem:[#allocation9 + $0x170] sm:$0xff] %vm606_vm2, %v14443_v0 }
  0x55   : > { %835 = vst.msk [vmem:[#allocation9 + $0x180] sm:$0xff] %vm606_vm2, %v14443_v0  ;;  %836 = vst.msk [vmem:[#allocation9 + $0x188] sm:$0xff] %vm606_vm2, %v14443_v0 }
  0x56   : > { %838 = vst.msk [vmem:[#allocation9 + $0x198] sm:$0xff] %vm606_vm2, %v14443_v0  ;;  %839 = vst.msk [vmem:[#allocation9 + $0x1a0] sm:$0xff] %vm606_vm2, %v14443_v0 }
  0x57   : > { %874 = vst.msk [vmem:[#allocation2 + $0x19] sm:$0xff] %vm550_vm0, %v841_v1  ;;  %875 = vst.msk [vmem:[#allocation2 + $0x21] sm:$0xff] %vm550_vm0, %v842_v2 }
  0x58   : > { %876 = vst.msk [vmem:[#allocation2 + $0x31] sm:$0xff] %vm550_vm0, %v843_v3  ;;  %877 = vst.msk [vmem:[#allocation2 + $0x39] sm:$0xff] %vm550_vm0, %v844_v9 }
  0x59   : > { %878 = vst.msk [vmem:[#allocation2 + $0x49] sm:$0xff] %vm550_vm0, %v845_v10  ;;  %879 = vst.msk [vmem:[#allocation2 + $0x51] sm:$0xff] %vm550_vm0, %v846_v12  ;;  %v866_v10 = vld [vmem:[%s14842_s0 + $0xc8] sm:$0xff] }
  0x5a   : > { %880 = vst.msk [vmem:[#allocation2 + $0x61] sm:$0xff] %vm550_vm0, %v847_v13  ;;  %881 = vst.msk [vmem:[#allocation2 + $0x69] sm:$0xff] %vm550_vm0, %v848_v14 }
  0x5b   : > { %882 = vst.msk [vmem:[#allocation2 + $0x79] sm:$0xff] %vm550_vm0, %v849_v15  ;;  %883 = vst.msk [vmem:[#allocation2 + $0x81] sm:$0xff] %vm550_vm0, %v850_v16 }
  0x5c   : > { %884 = vst.msk [vmem:[#allocation2 + $0x91] sm:$0xff] %vm550_vm0, %v851_v17  ;;  %885 = vst.msk [vmem:[#allocation2 + $0x99] sm:$0xff] %vm550_vm0, %v852_v18 }
  0x5d   : > { %886 = vst.msk [vmem:[#allocation2 + $0xa9] sm:$0xff] %vm550_vm0, %v853_v19  ;;  %887 = vst.msk [vmem:[#allocation2 + $0xb1] sm:$0xff] %vm550_vm0, %v854_v20  ;;  %v867_v19 = vld [vmem:[%s14842_s0 + $0xd0] sm:$0xff] }
  0x5e   : > { %683 = vst.msk [vmem:[#allocation5] sm:$0xff] %vm682_vm3, %v14443_v0  ;;  %686 = vst.msk [vmem:[#allocation5 + $0x10] sm:$0xff] %vm682_vm3, %v14443_v0  ;;  %v972_v25 = vld [vmem:[#allocation2 + $0x1a] sm:$0xff]  ;;  %v973_v26 = vld [vmem:[#allocation2 + $0x22] sm:$0xff] }
  0x5f   : > { %688 = vst.msk [vmem:[#allocation5 + $0x20] sm:$0xff] %vm682_vm3, %v14443_v0  ;;  %690 = vst.msk [vmem:[#allocation5 + $0x30] sm:$0xff] %vm682_vm3, %v14443_v0  ;;  %v940_v27 = vld [vmem:[#allocation2 + $0x19] sm:$0xff]  ;;  %v11417_v28 = vpack.i.bf16 %v973_v26, %v972_v25  ;;  %v941_v29 = vld [vmem:[#allocation2 + $0x21] sm:$0xff] }
  0x60   : > { %692 = vst.msk [vmem:[#allocation5 + $0x40] sm:$0xff] %vm682_vm3, %v14443_v0  ;;  %694 = vst.msk [vmem:[#allocation5 + $0x50] sm:$0xff] %vm682_vm3, %v14443_v0  ;;  %v1004_v30 = vld [vmem:[#allocation2 + $0x30] sm:$0xff]  ;;  %v14974_v31 = vld [vmem:[#allocation2 + $0x18] sm:$0xff]  ;;  %v11412_v32 = vpack.i.bf16 %v941_v29, %v940_v27 }
  0x61   : > { %696 = vst.msk [vmem:[#allocation5 + $0x60] sm:$0xff] %vm682_vm3, %v14443_v0  ;;  %698 = vst.msk [vmem:[#allocation5 + $0x70] sm:$0xff] %vm682_vm3, %v14443_v0  ;;  %v1005_v33 = vld [vmem:[#allocation2 + $0x38] sm:$0xff]  ;;  %v14976_v34 = vld [vmem:[#allocation2 + $0x20] sm:$0xff]  ;;  %11418 = vrot.lane.b32.xlu1 %v11417_v28, %s20297_s30 }
  0x62   : > { %700 = vst.msk [vmem:[#allocation5 + $0x80] sm:$0xff] %vm682_vm3, %v14443_v0  ;;  %702 = vst.msk [vmem:[#allocation5 + $0x90] sm:$0xff] %vm682_vm3, %v14443_v0  ;;  %v11427_v35 = vpack.i.bf16 %v1005_v33, %v1004_v30  ;;  %11413 = vrot.lane.b32.xlu0 %v11412_v32, %s14445_s18  ;;  %v11422_v36 = vpack.i.bf16 %v14976_v34, %v14974_v31  ;;  %v1036_v37 = vld [vmem:[#allocation2 + $0x31] sm:$0xff]  ;;  %v1037_v38 = vld [vmem:[#allocation2 + $0x39] sm:$0xff] }
  0x63   : > { %733 = vst.msk [vmem:[#allocation8] sm:$0xff] %vm682_vm3, %v14443_v0  ;;  %734 = vst.msk [vmem:[#allocation8 + $0x8] sm:$0xff] %vm682_vm3, %v14443_v0  ;;  %v11437_v39 = vpack.i.bf16 %v1037_v38, %v1036_v37  ;;  %v1068_v40 = vld [vmem:[#allocation2 + $0x32] sm:$0xff]  ;;  %v1069_v41 = vld [vmem:[#allocation2 + $0x3a] sm:$0xff] }
  0x64   : > { %736 = vst.msk [vmem:[#allocation8 + $0x18] sm:$0xff] %vm682_vm3, %v14443_v0  ;;  %737 = vst.msk [vmem:[#allocation8 + $0x20] sm:$0xff] %vm682_vm3, %v14443_v0  ;;  %v14985_v42 = vpack.i.bf16 %v1069_v41, %v1068_v40  ;;  %v14988_v43 = vld [vmem:[#allocation2 + $0x48] sm:$0xff]  ;;  %v14990_v44 = vld [vmem:[#allocation2 + $0x50] sm:$0xff] }
  0x65   : > { %739 = vst.msk [vmem:[#allocation8 + $0x30] sm:$0xff] %vm682_vm3, %v14443_v0  ;;  %740 = vst.msk [vmem:[#allocation8 + $0x38] sm:$0xff] %vm682_vm3, %v14443_v0  ;;  %11428 = vrot.lane.b32.xlu1 %v11427_v35, %s14446_s19  ;;  %v14996_v45 = vpack.i.bf16 %v14990_v44, %v14988_v43  ;;  %v1133_v46 = vld [vmem:[#allocation2 + $0x49] sm:$0xff]  ;;  %v1134_v47 = vld [vmem:[#allocation2 + $0x51] sm:$0xff] }
  0x66   : > { %742 = vst.msk [vmem:[#allocation8 + $0x48] sm:$0xff] %vm682_vm3, %v14443_v0  ;;  %743 = vst.msk [vmem:[#allocation8 + $0x50] sm:$0xff] %vm682_vm3, %v14443_v0  ;;  %11423 = vrot.lane.b32.xlu0 %v11422_v36, %s14446_s19  ;;  %v11467_v51 = vpack.i.bf16 %v1134_v47, %v1133_v46  ;;  %v1165_v56 = vld [vmem:[#allocation2 + $0x4a] sm:$0xff]  ;;  %v1166_v57 = vld [vmem:[#allocation2 + $0x52] sm:$0xff] }
  0x67   : > { %745 = vst.msk [vmem:[#allocation8 + $0x60] sm:$0xff] %vm682_vm3, %v14443_v0  ;;  %746 = vst.msk [vmem:[#allocation8 + $0x68] sm:$0xff] %vm682_vm3, %v14443_v0  ;;  %v11482_v59 = vpack.i.bf16 %v1166_v57, %v1165_v56  ;;  %v1008_v60 = vld [vmem:[#allocation2 + $0x60] sm:$0xff]  ;;  %v1009_v61 = vld [vmem:[#allocation2 + $0x68] sm:$0xff] }
  0x68   : > { %748 = vst.msk [vmem:[#allocation8 + $0x78] sm:$0xff] %vm682_vm3, %v14443_v0  ;;  %749 = vst.msk [vmem:[#allocation8 + $0x80] sm:$0xff] %vm682_vm3, %v14443_v0  ;;  %v1040_v1 = vld [vmem:[#allocation2 + $0x61] sm:$0xff]  ;;  %v1041_v2 = vld [vmem:[#allocation2 + $0x69] sm:$0xff]  ;;  %v11507_v3 = vpack.i.bf16 %v1009_v61, %v1008_v60 }
  0x69   : > { %751 = vst.msk [vmem:[#allocation8 + $0x90] sm:$0xff] %vm682_vm3, %v14443_v0  ;;  %752 = vst.msk [vmem:[#allocation8 + $0x98] sm:$0xff] %vm682_vm3, %v14443_v0  ;;  %11438 = vrot.lane.b32.xlu1 %v11437_v39, %s20388_s1  ;;  %v1072_v4 = vld [vmem:[#allocation2 + $0x62] sm:$0xff]  ;;  %v1073_v5 = vld [vmem:[#allocation2 + $0x6a] sm:$0xff]  ;;  %v11517_v6 = vpack.i.bf16 %v1041_v2, %v1040_v1 }
  0x6a   : > { %754 = vst.msk [vmem:[#allocation8 + $0xa8] sm:$0xff] %vm682_vm3, %v14443_v0  ;;  %755 = vst.msk [vmem:[#allocation8 + $0xb0] sm:$0xff] %vm682_vm3, %v14443_v0  ;;  %11433 = vrot.lane.b32.xlu0 %v11412_v32, %s20388_s1  ;;  %v1105_v8 = vld [vmem:[#allocation2 + $0x78] sm:$0xff]  ;;  %v1106_v9 = vld [vmem:[#allocation2 + $0x80] sm:$0xff]  ;;  %v11527_v11 = vpack.i.bf16 %v1073_v5, %v1072_v4 }
  0x6b   : > { %757 = vst.msk [vmem:[#allocation8 + $0xc0] sm:$0xff] %vm682_vm3, %v14443_v0  ;;  %758 = vst.msk [vmem:[#allocation8 + $0xc8] sm:$0xff] %vm682_vm3, %v14443_v0  ;;  %v1137_v12 = vld [vmem:[#allocation2 + $0x79] sm:$0xff]  ;;  %v1138_v13 = vld [vmem:[#allocation2 + $0x81] sm:$0xff]  ;;  %v11537_v14 = vpack.i.bf16 %v1106_v9, %v1105_v8 }
  0x6c   : > { %760 = vst.msk [vmem:[#allocation8 + $0xd8] sm:$0xff] %vm682_vm3, %v14443_v0  ;;  %761 = vst.msk [vmem:[#allocation8 + $0xe0] sm:$0xff] %vm682_vm3, %v14443_v0  ;;  %v11547_v15 = vpack.i.bf16 %v1138_v13, %v1137_v12  ;;  %v1169_v16 = vld [vmem:[#allocation2 + $0x7a] sm:$0xff]  ;;  %v1170_v17 = vld [vmem:[#allocation2 + $0x82] sm:$0xff] }
  0x6d   : > { %763 = vst.msk [vmem:[#allocation8 + $0xf0] sm:$0xff] %vm682_vm3, %v14443_v0  ;;  %764 = vst.msk [vmem:[#allocation8 + $0xf8] sm:$0xff] %vm682_vm3, %v14443_v0  ;;  %11448 = vrot.lane.b32.xlu1 %v14985_v42, %s14448_s20  ;;  %v11562_v18 = vpack.i.bf16 %v1170_v17, %v1169_v16  ;;  %v1012_v20 = vld [vmem:[#allocation2 + $0x90] sm:$0xff]  ;;  %v1077_v27 = vld [vmem:[#allocation2 + $0x9a] sm:$0xff] }
  0x6e   : > { %766 = vst.msk [vmem:[#allocation8 + $0x108] sm:$0xff] %vm682_vm3, %v14443_v0  ;;  %767 = vst.msk [vmem:[#allocation8 + $0x110] sm:$0xff] %vm682_vm3, %v14443_v0  ;;  %11443 = vrot.lane.b32.xlu0 %v11417_v28, %s14448_s20  ;;  %v1076_v26 = vld [vmem:[#allocation2 + $0x92] sm:$0xff]  ;;  %v869_v29 = vld [vmem:[%s14842_s0 + $0xe0] sm:$0xff] }
  0x6f   : > { %769 = vst.msk [vmem:[#allocation8 + $0x120] sm:$0xff] %vm682_vm3, %v14443_v0  ;;  %770 = vst.msk [vmem:[#allocation8 + $0x128] sm:$0xff] %vm682_vm3, %v14443_v0  ;;  %v1109_v30 = vld [vmem:[#allocation2 + $0xa8] sm:$0xff]  ;;  %v1110_v32 = vld [vmem:[#allocation2 + $0xb0] sm:$0xff] }
  0x70   : > { %772 = vst.msk [vmem:[#allocation8 + $0x138] sm:$0xff] %vm682_vm3, %v14443_v0  ;;  %773 = vst.msk [vmem:[#allocation8 + $0x140] sm:$0xff] %vm682_vm3, %v14443_v0  ;;  %v870_v33 = vld [vmem:[%s14842_s0 + $0xe8] sm:$0xff]  ;;  %v1142_v37 = vld [vmem:[#allocation2 + $0xb1] sm:$0xff]  ;;  %v11617_v38 = vpack.i.bf16 %v1110_v32, %v1109_v30 }
  0x71   : > { %775 = vst.msk [vmem:[#allocation8 + $0x150] sm:$0xff] %vm682_vm3, %v14443_v0  ;;  %776 = vst.msk [vmem:[#allocation8 + $0x158] sm:$0xff] %vm682_vm3, %v14443_v0  ;;  %11458 = vrot.lane.b32.xlu1 %v14996_v45, %s20295_s23  ;;  %v1141_v36 = vld [vmem:[#allocation2 + $0xa9] sm:$0xff]  ;;  %v1174_v41 = vld [vmem:[#allocation2 + $0xb2] sm:$0xff] }
  0x72   : > { %778 = vst.msk [vmem:[#allocation8 + $0x168] sm:$0xff] %vm682_vm3, %v14443_v0  ;;  %779 = vst.msk [vmem:[#allocation8 + $0x170] sm:$0xff] %vm682_vm3, %v14443_v0  ;;  %11453 = vrot.lane.b32.xlu0 %v11427_v35, %s20295_s23  ;;  %v11607_v35 = vpack.i.bf16 %v1077_v27, %v1076_v26  ;;  %v1173_v40 = vld [vmem:[#allocation2 + $0xaa] sm:$0xff]  ;;  %v872_v46 = vld [vmem:[%s14842_s0 + $0xf8] sm:$0xff] }
  0x73   : > { %781 = vst.msk [vmem:[#allocation8 + $0x180] sm:$0xff] %vm682_vm3, %v14443_v0  ;;  %782 = vst.msk [vmem:[#allocation8 + $0x188] sm:$0xff] %vm682_vm3, %v14443_v0  ;;  %v906_v16 = vld [vmem:[#allocation2] sm:$0xff] }
  0x74   : > { %784 = vst.msk [vmem:[#allocation8 + $0x198] sm:$0xff] %vm682_vm3, %v14443_v0  ;;  %785 = vst.msk [vmem:[#allocation8 + $0x1a0] sm:$0xff] %vm682_vm3, %v14443_v0 }
  0x75   : > { %888 = vst.msk [vmem:[#allocation2 + $0xc1] sm:$0xff] %vm550_vm0, %v855_v21  ;;  %889 = vst.msk [vmem:[#allocation2 + $0xc9] sm:$0xff] %vm550_vm0, %v856_v22  ;;  %11468 = vrot.lane.b32.xlu1 %v11467_v51, %s14450_s21  ;;  %v1013_v21 = vld [vmem:[#allocation2 + $0x98] sm:$0xff] }
  0x76   : > { %890 = vst.msk [vmem:[#allocation2 + $0xd9] sm:$0xff] %vm550_vm0, %v857_v23  ;;  %891 = vst.msk [vmem:[#allocation2 + $0xe1] sm:$0xff] %vm550_vm0, %v858_v24  ;;  %11463 = vrot.lane.b32.xlu0 %v11437_v39, %s14450_s21  ;;  %v868_v22 = vld [vmem:[%s14842_s0 + $0xd8] sm:$0xff]  ;;  %v11587_v25 = vpack.i.bf16 %v1013_v21, %v1012_v20 }
  0x77   : > { %712 = vst.msk [vmem:[#allocation7] sm:$0xff] %vm711_vm4, %v14443_v0  ;;  %715 = vst.msk [vmem:[#allocation7 + $0x10] sm:$0xff] %vm711_vm4, %v14443_v0  ;;  %v1044_v23 = vld [vmem:[#allocation2 + $0x91] sm:$0xff]  ;;  %v1045_v24 = vld [vmem:[#allocation2 + $0x99] sm:$0xff] }
  0x78   : > { %717 = vst.msk [vmem:[#allocation7 + $0x20] sm:$0xff] %vm711_vm4, %v14443_v0  ;;  %719 = vst.msk [vmem:[#allocation7 + $0x30] sm:$0xff] %vm711_vm4, %v14443_v0  ;;  %v11597_v28 = vpack.i.bf16 %v1045_v24, %v1044_v23 }
  0x79   : > { %721 = vst.msk [vmem:[#allocation7 + $0x40] sm:$0xff] %vm711_vm4, %v14443_v0  ;;  %723 = vst.msk [vmem:[#allocation7 + $0x50] sm:$0xff] %vm711_vm4, %v14443_v0  ;;  %11478 = vrot.lane.b32.xlu1 %v11437_v39, %s14445_s18  ;;  %v11627_v39 = vpack.i.bf16 %v1142_v37, %v1141_v36 }
  0x7a   : > { %725 = vst.msk [vmem:[#allocation7 + $0x60] sm:$0xff] %vm711_vm4, %v14443_v0  ;;  %727 = vst.msk [vmem:[#allocation7 + $0x70] sm:$0xff] %vm711_vm4, %v14443_v0  ;;  %11473 = vrot.lane.b32.xlu0 %v14985_v42, %s20384_s22 }
  0x7b   : > { %729 = vst.msk [vmem:[#allocation7 + $0x80] sm:$0xff] %vm711_vm4, %v14443_v0  ;;  %731 = vst.msk [vmem:[#allocation7 + $0x90] sm:$0xff] %vm711_vm4, %v14443_v0 }
  0x7c   : > { %892 = vst.msk [vmem:[#allocation2 + $0xf1] sm:$0xff] %vm550_vm0, %v859_v48  ;;  %893 = vst.msk [vmem:[#allocation2 + $0xf9] sm:$0xff] %vm550_vm0, %v860_v49  ;;  %v1016_v47 = vld [vmem:[#allocation2 + $0xc0] sm:$0xff]  ;;  %v1017_v48 = vld [vmem:[#allocation2 + $0xc8] sm:$0xff] }
  0x7d   : > { %894 = vst.msk [vmem:[#allocation2 + $0x109] sm:$0xff] %vm550_vm0, %v861_v54  ;;  %895 = vst.msk [vmem:[#allocation2 + $0x111] sm:$0xff] %vm550_vm0, %v862_v55  ;;  %11488 = vrot.lane.b32.xlu1 %v11467_v51, %s14445_s18  ;;  %v11667_v49 = vpack.i.bf16 %v1017_v48, %v1016_v47  ;;  %v1048_v50 = vld [vmem:[#allocation2 + $0xc1] sm:$0xff]  ;;  %v1081_v54 = vld [vmem:[#allocation2 + $0xca] sm:$0xff] }
  0x7e   : > { %896 = vst.msk [vmem:[#allocation2 + $0x121] sm:$0xff] %vm550_vm0, %v863_v62  ;;  %897 = vst.msk [vmem:[#allocation2 + $0x129] sm:$0xff] %vm550_vm0, %v864_v63  ;;  %11483 = vrot.lane.b32.xlu0 %v11482_v59, %s20384_s22  ;;  %v1080_v53 = vld [vmem:[#allocation2 + $0xc2] sm:$0xff]  ;;  %v1113_v56 = vld [vmem:[#allocation2 + $0xd8] sm:$0xff] }
  0x7f   : > { %898 = vst.msk [vmem:[#allocation2 + $0x139] sm:$0xff] %vm550_vm0, %v865_v7  ;;  %899 = vst.msk [vmem:[#allocation2 + $0x141] sm:$0xff] %vm550_vm0, %v866_v10  ;;  %v11687_v55 = vpack.i.bf16 %v1081_v54, %v1080_v53  ;;  %v1114_v57 = vld [vmem:[#allocation2 + $0xe0] sm:$0xff] }
  0x80   : > { %900 = vst.msk [vmem:[#allocation2 + $0x151] sm:$0xff] %vm550_vm0, %v867_v19  ;;  %901 = vst.msk [vmem:[#allocation2 + $0x159] sm:$0xff] %vm550_vm0, %v868_v22  ;;  %v1145_v61 = vld [vmem:[#allocation2 + $0xd9] sm:$0xff]  ;;  %v1146_v62 = vld [vmem:[#allocation2 + $0xe1] sm:$0xff] }
  0x81   : > { %11498 = vrot.lane.b32.xlu1 %v11482_v59, %s20297_s30  ;;  %902 = vst.msk [vmem:[#allocation2 + $0x169] sm:$0xff] %vm550_vm0, %v869_v29  ;;  %903 = vst.msk [vmem:[#allocation2 + $0x171] sm:$0xff] %vm550_vm0, %v870_v33  ;;  %v15114_v63 = vpack.i.bf16 %v1146_v62, %v1145_v61  ;;  %v1177_v4 = vld [vmem:[#allocation2 + $0xda] sm:$0xff]  ;;  %v1178_v5 = vld [vmem:[#allocation2 + $0xe2] sm:$0xff] }
  0x82   : > { %11493 = vrot.lane.b32.xlu0 %v14985_v42, %s20297_s30  ;;  %v11642_v42 = vpack.i.bf16 %v1174_v41, %v1173_v40  ;;  %905 = vst.msk [vmem:[#allocation2 + $0x189] sm:$0xff] %vm550_vm0, %v872_v46  ;;  %v15126_v7 = vpack.i.bf16 %v1178_v5, %v1177_v4 }
  0x83   : > { %v1020_v10 = vld [vmem:[#allocation2 + $0xf0] sm:$0xff]  ;;  %v1053_v24 = vld [vmem:[#allocation2 + $0xf9] sm:$0xff]  ;;  %616 = vst.msk [vmem:[#allocation3 + $0x40] sm:$0x3] %vm609_vm11, %v14443_v0  ;;  %610 = vst.msk [vmem:[#allocation3 + $0x10] sm:$0x3] %vm609_vm11, %v14443_v0 }
  0x84   : > { %v1052_v23 = vld [vmem:[#allocation2 + $0xf1] sm:$0xff]  ;;  %v1085_v32 = vld [vmem:[#allocation2 + $0xfa] sm:$0xff]  ;;  %v1117_v33 = vld [vmem:[#allocation2 + $0x108] sm:$0xff]  ;;  %613 = vst.msk [vmem:[#allocation3 + $0x28] sm:$0x3] %vm609_vm11, %v14443_v0 }
  0x85   : > { %11508 = vrot.lane.b32.xlu1 %v11507_v3, %s14446_s19  ;;  %619 = vst.msk [vmem:[#allocation3 + $0x58] sm:$0x3] %vm609_vm11, %v14443_v0  ;;  %622 = vst.msk [vmem:[#allocation3 + $0x70] sm:$0x3] %vm609_vm11, %v14443_v0 }
  0x86   : > { %11503 = vrot.lane.b32.xlu0 %v14996_v45, %s14446_s19  ;;  %v871_v45 = vld [vmem:[%s14842_s0 + $0xf0] sm:$0xff]  ;;  %625 = vst.msk [vmem:[#allocation3 + $0x88] sm:$0x3] %vm609_vm11, %v14443_v0  ;;  %628 = vst.msk [vmem:[#allocation3 + $0xa0] sm:$0x3] %vm609_vm11, %v14443_v0  ;;  %s20299_s0 = smov 80  }
  0x87   : > { %904 = vst.msk [vmem:[#allocation2 + $0x181] sm:$0xff] %vm550_vm0, %v871_v45  ;;  %v15161_v45 = vpack.i.bf16 %v1053_v24, %v1052_v23 }
  0x88   : > { %631 = vst.msk [vmem:[#allocation3 + $0xb8] sm:$0x3] %vm609_vm11, %v14443_v0  ;;  %634 = vst.msk [vmem:[#allocation3 + $0xd0] sm:$0x3] %vm609_vm11, %v14443_v0 }
  0x89   : > { %11518 = vrot.lane.b32.xlu1 %v11517_v6, %s20388_s1  ;;  %637 = vst.msk [vmem:[#allocation3 + $0xe8] sm:$0x3] %vm609_vm11, %v14443_v0  ;;  %640 = vst.msk [vmem:[#allocation3 + $0x100] sm:$0x3] %vm609_vm11, %v14443_v0 }
  0x8a   : > { %11513 = vrot.lane.b32.xlu0 %v11467_v51, %s20388_s1  ;;  %v1049_v51 = vld [vmem:[#allocation2 + $0xc9] sm:$0xff]  ;;  %643 = vst.msk [vmem:[#allocation3 + $0x118] sm:$0x3] %vm609_vm11, %v14443_v0  ;;  %646 = vst.msk [vmem:[#allocation3 + $0x130] sm:$0x3] %vm609_vm11, %v14443_v0 }
  0x8b   : > { %v11677_v52 = vpack.i.bf16 %v1049_v51, %v1048_v50  ;;  %649 = vst.msk [vmem:[#allocation3 + $0x148] sm:$0x3] %vm609_vm11, %v14443_v0  ;;  %652 = vst.msk [vmem:[#allocation3 + $0x160] sm:$0x3] %vm609_vm11, %v14443_v0 }
  0x8c   : > { %655 = vst.msk [vmem:[#allocation3 + $0x178] sm:$0x3] %vm609_vm11, %v14443_v0  ;;  %658 = vst.msk [vmem:[#allocation3 + $0x190] sm:$0x3] %vm609_vm11, %v14443_v0 }
  0x8d   : > { %11528 = vrot.lane.b32.xlu1 %v11527_v11, %s14448_s20  ;;  %661 = vst.msk [vmem:[#allocation3 + $0x1a8] sm:$0x3] %vm609_vm11, %v14443_v0  ;;  %663 = vst.msk [vmem:[#allocation4 + $0x8] sm:$0x3] %vm609_vm11, %v14443_v0 }
  0x8e   : > { %11523 = vrot.lane.b32.xlu0 %v11482_v59, %s14448_s20  ;;  %v15109_v59 = vpack.i.bf16 %v1114_v57, %v1113_v56  ;;  %665 = vst.msk [vmem:[#allocation4 + $0x18] sm:$0x3] %vm609_vm11, %v14443_v0  ;;  %667 = vst.msk [vmem:[#allocation4 + $0x28] sm:$0x3] %vm609_vm11, %v14443_v0 }
  0x8f   : > { %669 = vst.msk [vmem:[#allocation4 + $0x38] sm:$0x3] %vm609_vm11, %v14443_v0  ;;  %671 = vst.msk [vmem:[#allocation4 + $0x48] sm:$0x3] %vm609_vm11, %v14443_v0 }
  0x90   : > { %v15107_v58 = vpop.permute.xlu1 %11408  ;;  %673 = vst.msk [vmem:[#allocation4 + $0x58] sm:$0x3] %vm609_vm11, %v14443_v0  ;;  %675 = vst.msk [vmem:[#allocation4 + $0x68] sm:$0x3] %vm609_vm11, %v14443_v0 }
  0x91   : > { %11538 = vrot.lane.b32.xlu1 %v11537_v14, %s20295_s23  ;;  %v11404_v60 = vpop.permute.xlu0 %11403  ;;  %v11411_v21 = vunpack.i.h.bf16 %v15107_v58  ;;  %v11410_v22 = vunpack.i.l.bf16 %v15107_v58  ;;  %677 = vst.msk [vmem:[#allocation4 + $0x78] sm:$0x3] %vm609_vm11, %v14443_v0  ;;  %679 = vst.msk [vmem:[#allocation4 + $0x88] sm:$0x3] %vm609_vm11, %v14443_v0 }
  0x92   : > { %11533 = vrot.lane.b32.xlu0 %v11507_v3, %s20295_s23  ;;  %v11406_v12 = vunpack.i.h.bf16 %v11404_v60  ;;  %v11405_v13 = vunpack.i.l.bf16 %v11404_v60  ;;  %681 = vst.msk [vmem:[#allocation4 + $0x98] sm:$0x3] %vm609_vm11, %v14443_v0  ;;  %789 = vst.msk [vmem:[#allocation9 + $0x10] sm:$0x3] %vm609_vm11, %v14443_v0 }
  0x93   : > { %792 = vst.msk [vmem:[#allocation9 + $0x28] sm:$0x3] %vm609_vm11, %v14443_v0  ;;  %795 = vst.msk [vmem:[#allocation9 + $0x40] sm:$0x3] %vm609_vm11, %v14443_v0 }
  0x94   : > { %v2219_v27 = vsel %vm550_vm0, %v906_v16, %v11405_v13  ;;  %798 = vst.msk [vmem:[#allocation9 + $0x58] sm:$0x3] %vm609_vm11, %v14443_v0  ;;  %801 = vst.msk [vmem:[#allocation9 + $0x70] sm:$0x3] %vm609_vm11, %v14443_v0 }
  0x95   : > { %11548 = vrot.lane.b32.xlu1 %v11547_v15, %s14450_s21  ;;  %804 = vst.msk [vmem:[#allocation9 + $0x88] sm:$0x3] %vm609_vm11, %v14443_v0  ;;  %807 = vst.msk [vmem:[#allocation9 + $0xa0] sm:$0x3] %vm609_vm11, %v14443_v0 }
  0x96   : > { %11543 = vrot.lane.b32.xlu0 %v11517_v6, %s14450_s21  ;;  %810 = vst.msk [vmem:[#allocation9 + $0xb8] sm:$0x3] %vm609_vm11, %v14443_v0  ;;  %813 = vst.msk [vmem:[#allocation9 + $0xd0] sm:$0x3] %vm609_vm11, %v14443_v0 }
  0x97   : > { %816 = vst.msk [vmem:[#allocation9 + $0xe8] sm:$0x3] %vm609_vm11, %v14443_v0  ;;  %819 = vst.msk [vmem:[#allocation9 + $0x100] sm:$0x3] %vm609_vm11, %v14443_v0 }
  0x98   : > { %822 = vst.msk [vmem:[#allocation9 + $0x118] sm:$0x3] %vm609_vm11, %v14443_v0  ;;  %825 = vst.msk [vmem:[#allocation9 + $0x130] sm:$0x3] %vm609_vm11, %v14443_v0 }
  0x99   : > { %11558 = vrot.lane.b32.xlu1 %v11517_v6, %s14445_s18  ;;  %828 = vst.msk [vmem:[#allocation9 + $0x148] sm:$0x3] %vm609_vm11, %v14443_v0  ;;  %831 = vst.msk [vmem:[#allocation9 + $0x160] sm:$0x3] %vm609_vm11, %v14443_v0 }
  0x9a   : > { %11553 = vrot.lane.b32.xlu0 %v11527_v11, %s20384_s22  ;;  %834 = vst.msk [vmem:[#allocation9 + $0x178] sm:$0x3] %vm609_vm11, %v14443_v0  ;;  %837 = vst.msk [vmem:[#allocation9 + $0x190] sm:$0x3] %vm609_vm11, %v14443_v0 }
  0x9b   : > { %840 = vst.msk [vmem:[#allocation9 + $0x1a8] sm:$0x3] %vm609_vm11, %v14443_v0  ;;  %vm3668_vm11 = vcmask 916480  }
  0x9c   : > { %691 = vst.msk [vmem:[#allocation5 + $0x38] sm:$0x3] %vm684_vm5, %v14443_v0  ;;  %685 = vst.msk [vmem:[#allocation5 + $0x8] sm:$0x3] %vm684_vm5, %v14443_v0 }
  0x9d   : > { %11568 = vrot.lane.b32.xlu1 %v11547_v15, %s14445_s18  ;;  %687 = vst.msk [vmem:[#allocation5 + $0x18] sm:$0x3] %vm684_vm5, %v14443_v0  ;;  %689 = vst.msk [vmem:[#allocation5 + $0x28] sm:$0x3] %vm684_vm5, %v14443_v0 }
  0x9e   : > { %11563 = vrot.lane.b32.xlu0 %v11562_v18, %s20384_s22  ;;  %693 = vst.msk [vmem:[#allocation5 + $0x48] sm:$0x3] %vm684_vm5, %v14443_v0  ;;  %695 = vst.msk [vmem:[#allocation5 + $0x58] sm:$0x3] %vm684_vm5, %v14443_v0 }
  0x9f   : > { %697 = vst.msk [vmem:[#allocation5 + $0x68] sm:$0x3] %vm684_vm5, %v14443_v0  ;;  %699 = vst.msk [vmem:[#allocation5 + $0x78] sm:$0x3] %vm684_vm5, %v14443_v0 }
  0xa0   : > { %701 = vst.msk [vmem:[#allocation5 + $0x88] sm:$0x3] %vm684_vm5, %v14443_v0  ;;  %703 = vst.msk [vmem:[#allocation5 + $0x98] sm:$0x3] %vm684_vm5, %v14443_v0 }
  0xa1   : > { %11578 = vrot.lane.b32.xlu1 %v11562_v18, %s20297_s30  ;;  %735 = vst.msk [vmem:[#allocation8 + $0x10] sm:$0x3] %vm684_vm5, %v14443_v0  ;;  %738 = vst.msk [vmem:[#allocation8 + $0x28] sm:$0x3] %vm684_vm5, %v14443_v0 }
  0xa2   : > { %11573 = vrot.lane.b32.xlu0 %v11527_v11, %s20297_s30  ;;  %v1021_v11 = vld [vmem:[#allocation2 + $0xf8] sm:$0xff]  ;;  %741 = vst.msk [vmem:[#allocation8 + $0x40] sm:$0x3] %vm684_vm5, %v14443_v0  ;;  %744 = vst.msk [vmem:[#allocation8 + $0x58] sm:$0x3] %vm684_vm5, %v14443_v0 }
  0xa3   : > { %v15142_v20 = vpack.i.bf16 %v1021_v11, %v1020_v10  ;;  %747 = vst.msk [vmem:[#allocation8 + $0x70] sm:$0x3] %vm684_vm5, %v14443_v0  ;;  %750 = vst.msk [vmem:[#allocation8 + $0x88] sm:$0x3] %vm684_vm5, %v14443_v0 }
  0xa4   : > { %753 = vst.msk [vmem:[#allocation8 + $0xa0] sm:$0x3] %vm684_vm5, %v14443_v0  ;;  %756 = vst.msk [vmem:[#allocation8 + $0xb8] sm:$0x3] %vm684_vm5, %v14443_v0 }
  0xa5   : > { %11588 = vrot.lane.b32.xlu1 %v11587_v25, %s14446_s19  ;;  %759 = vst.msk [vmem:[#allocation8 + $0xd0] sm:$0x3] %vm684_vm5, %v14443_v0  ;;  %762 = vst.msk [vmem:[#allocation8 + $0xe8] sm:$0x3] %vm684_vm5, %v14443_v0 }
  0xa6   : > { %11583 = vrot.lane.b32.xlu0 %v11537_v14, %s14446_s19  ;;  %765 = vst.msk [vmem:[#allocation8 + $0x100] sm:$0x3] %vm684_vm5, %v14443_v0  ;;  %768 = vst.msk [vmem:[#allocation8 + $0x118] sm:$0x3] %vm684_vm5, %v14443_v0 }
  0xa7   : > { %771 = vst.msk [vmem:[#allocation8 + $0x130] sm:$0x3] %vm684_vm5, %v14443_v0  ;;  %774 = vst.msk [vmem:[#allocation8 + $0x148] sm:$0x3] %vm684_vm5, %v14443_v0 }
  0xa8   : > { %777 = vst.msk [vmem:[#allocation8 + $0x160] sm:$0x3] %vm684_vm5, %v14443_v0  ;;  %780 = vst.msk [vmem:[#allocation8 + $0x178] sm:$0x3] %vm684_vm5, %v14443_v0 }
  0xa9   : > { %11598 = vrot.lane.b32.xlu1 %v11597_v28, %s20388_s1  ;;  %783 = vst.msk [vmem:[#allocation8 + $0x190] sm:$0x3] %vm684_vm5, %v14443_v0  ;;  %786 = vst.msk [vmem:[#allocation8 + $0x1a8] sm:$0x3] %vm684_vm5, %v14443_v0  ;;  %vm713_vm5 = vcmask 254976  }
  0xaa   : > { %11593 = vrot.lane.b32.xlu0 %v11547_v15, %s20388_s1  ;;  %v907_v15 = vld [vmem:[#allocation2 + $0x8] sm:$0xff]  ;;  %720 = vst.msk [vmem:[#allocation7 + $0x38] sm:$0x3] %vm713_vm5, %v14443_v0  ;;  %714 = vst.msk [vmem:[#allocation7 + $0x8] sm:$0x3] %vm713_vm5, %v14443_v0 }
  0xab   : > { %v2220_v26 = vsel %vm550_vm0, %v907_v15, %v11406_v12  ;;  %716 = vst.msk [vmem:[#allocation7 + $0x18] sm:$0x3] %vm713_vm5, %v14443_v0  ;;  %718 = vst.msk [vmem:[#allocation7 + $0x28] sm:$0x3] %vm713_vm5, %v14443_v0 }
  0xac   : > { %v2252_v46 = vsel %vm606_vm2, %v2220_v26, %v11411_v21  ;;  %722 = vst.msk [vmem:[#allocation7 + $0x48] sm:$0x3] %vm713_vm5, %v14443_v0  ;;  %724 = vst.msk [vmem:[#allocation7 + $0x58] sm:$0x3] %vm713_vm5, %v14443_v0 }
  0xad   : > { %11608 = vrot.lane.b32.xlu1 %v11607_v35, %s14448_s20  ;;  %726 = vst.msk [vmem:[#allocation7 + $0x68] sm:$0x3] %vm713_vm5, %v14443_v0  ;;  %728 = vst.msk [vmem:[#allocation7 + $0x78] sm:$0x3] %vm713_vm5, %v14443_v0 }
  0xae   : > { %11603 = vrot.lane.b32.xlu0 %v11562_v18, %s14448_s20  ;;  %730 = vst.msk [vmem:[#allocation7 + $0x88] sm:$0x3] %vm713_vm5, %v14443_v0  ;;  %732 = vst.msk [vmem:[#allocation7 + $0x98] sm:$0x3] %vm713_vm5, %v14443_v0 }
  0xb1   : > { %11618 = vrot.lane.b32.xlu1 %v11617_v38, %s20295_s23 }
  0xb2   : > { %11613 = vrot.lane.b32.xlu0 %v11587_v25, %s20295_s23  ;;  %v1084_v25 = vld [vmem:[#allocation2 + $0xf2] sm:$0xff] }
  0xb5   : > { %11628 = vrot.lane.b32.xlu1 %v11627_v39, %s14450_s21 }
  0xb6   : > { %11623 = vrot.lane.b32.xlu0 %v11597_v28, %s14450_s21 }
  0xb9   : > { %11638 = vrot.lane.b32.xlu1 %v11597_v28, %s14445_s18 }
  0xba   : > { %11633 = vrot.lane.b32.xlu0 %v11607_v35, %s20384_s22 }
  0xbd   : > { %11648 = vrot.lane.b32.xlu1 %v11627_v39, %s14445_s18 }
  0xbe   : > { %11643 = vrot.lane.b32.xlu0 %v11642_v42, %s20384_s22 }
  0xc1   : > { %11658 = vrot.lane.b32.xlu1 %v11642_v42, %s20297_s30 }
  0xc2   : > { %11653 = vrot.lane.b32.xlu0 %v11607_v35, %s20297_s30  ;;  %v1118_v35 = vld [vmem:[#allocation2 + $0x110] sm:$0xff] }
  0xc3   : > { %v15169_v47 = vpack.i.bf16 %v1118_v35, %v1117_v33 }
  0xc5   : > { %11668 = vrot.lane.b32.xlu1 %v11667_v49, %s14446_s19 }
  0xc6   : > { %11663 = vrot.lane.b32.xlu0 %v11617_v38, %s14446_s19 }
  0xc9   : > { %11678 = vrot.lane.b32.xlu1 %v11677_v52, %s20388_s1 }
  0xca   : > { %11673 = vrot.lane.b32.xlu0 %v11627_v39, %s20388_s1 }
  0xcd   : > { %11688 = vrot.lane.b32.xlu1 %v11687_v55, %s14448_s20 }
  0xce   : > { %11683 = vrot.lane.b32.xlu0 %v11642_v42, %s14448_s20 }
  0xd1   : > { %11698 = vrot.lane.b32.xlu1 %v15109_v59, %s20295_s23 }
  0xd2   : > { %11693 = vrot.lane.b32.xlu0 %v11667_v49, %s20295_s23 }
  0xd3   : > { %v11419_v1 = vpop.permute.xlu1 %11418 }
  0xd4   : > { %v11414_v2 = vpop.permute.xlu0 %11413  ;;  %v11421_v28 = vunpack.i.h.bf16 %v11419_v1  ;;  %v11420_v29 = vunpack.i.l.bf16 %v11419_v1 }
  0xd5   : > { %11708 = vrot.lane.b32.xlu1 %v15114_v63, %s14450_s21  ;;  %v11416_v17 = vunpack.i.h.bf16 %v11414_v2  ;;  %v11415_v18 = vunpack.i.l.bf16 %v11414_v2 }
  0xd6   : > { %11703 = vrot.lane.b32.xlu0 %v11677_v52, %s14450_s21 }
  0xd7   : > { %v15120_v3 = vpop.permute.xlu1 %11428  ;;  %v2221_v36 = vsel %vm550_vm0, %v14974_v31, %v11415_v18  ;;  %v2222_v37 = vsel %vm550_vm0, %v14976_v34, %v11416_v17  ;;  %v2251_v31 = vsel %vm606_vm2, %v2219_v27, %v11410_v22  ;;  %v15167_v34 = vpack.i.bf16 %v1085_v32, %v1084_v25  ;;  %v1149_v18 = vld [vmem:[#allocation2 + $0x109] sm:$0xff] }
  0xd8   : > { %v15122_v6 = vpop.permute.xlu0 %11423  ;;  %v11431_v38 = vunpack.i.h.bf16 %v15120_v3  ;;  %v11430_v39 = vunpack.i.l.bf16 %v15120_v3  ;;  %v2253_v48 = vsel %vm606_vm2, %v2221_v36, %v11420_v29  ;;  %v2254_v49 = vsel %vm606_vm2, %v2222_v37, %v11421_v28 }
  0xd9   : > { %11718 = vrot.lane.b32.xlu1 %v11677_v52, %s14445_s18  ;;  %v11426_v41 = vunpack.i.h.bf16 %v15122_v6  ;;  %v11425_v42 = vunpack.i.l.bf16 %v15122_v6 }
  0xda   : > { %11713 = vrot.lane.b32.xlu0 %v11687_v55, %s20384_s22  ;;  %v2286_v53 = vsel %vm2283_vm6, %v2253_v48, %v11430_v39  ;;  %v2287_v54 = vsel %vm2283_vm6, %v2254_v49, %v11431_v38 }
  0xdb   : > { %v15128_v8 = vpop.permute.xlu1 %11438  ;;  %v2285_v58 = vsel %vm2283_vm6, %v2252_v46, %v11426_v41 }
  0xdc   : > { %v15130_v9 = vpop.permute.xlu0 %11433  ;;  %v11441_v62 = vunpack.i.h.bf16 %v15128_v8  ;;  %v11440_v1 = vunpack.i.l.bf16 %v15128_v8 }
  0xdd   : > { %11728 = vrot.lane.b32.xlu1 %v15114_v63, %s14445_s18  ;;  %v11436_v50 = vunpack.i.h.bf16 %v15130_v9  ;;  %v11435_v51 = vunpack.i.l.bf16 %v15130_v9 }
  0xde   : > { %11723 = vrot.lane.b32.xlu0 %v15126_v7, %s20384_s22  ;;  %v2318_v25 = vsel %vm682_vm3, %v2286_v53, %v11440_v1  ;;  %v2319_v26 = vsel %vm682_vm3, %v2287_v54, %v11441_v62 }
  0xdf   : > { %v15136_v14 = vpop.permute.xlu1 %11448  ;;  %v2317_v5 = vsel %vm682_vm3, %v2285_v58, %v11436_v50 }
  0xe0   : > { %v15138_v19 = vpop.permute.xlu0 %11443  ;;  %v11451_v6 = vunpack.i.h.bf16 %v15136_v14  ;;  %v11450_v9 = vunpack.i.l.bf16 %v15136_v14 }
  0xe1   : > { %11738 = vrot.lane.b32.xlu1 %v15126_v7, %s20297_s30  ;;  %v11445_v56 = vunpack.i.l.bf16 %v15138_v19 }
  0xe2   : > { %11733 = vrot.lane.b32.xlu0 %v11687_v55, %s20297_s30  ;;  %v11446_v55 = vunpack.i.h.bf16 %v15138_v19  ;;  %v1150_v19 = vld [vmem:[#allocation2 + $0x111] sm:$0xff]  ;;  %v2352_v32 = vsel %vm2348_vm7, %v2319_v26, %v11451_v6 }
  0xe3   : > { %v15149_v30 = vpop.permute.xlu1 %11458  ;;  %v15213_v35 = vpack.i.bf16 %v1150_v19, %v1149_v18 }
  0xe4   : > { %v11454_v40 = vpop.permute.xlu0 %11453  ;;  %v2350_v12 = vsel %vm2348_vm7, %v2317_v5, %v11446_v55  ;;  %v11461_v8 = vunpack.i.h.bf16 %v15149_v30  ;;  %v11460_v13 = vunpack.i.l.bf16 %v15149_v30  ;;  %v2351_v30 = vsel %vm2348_vm7, %v2318_v25, %v11450_v9  ;;  %v1122_v5 = vld [vmem:[#allocation2 + $0x140] sm:$0xff] }
  0xe5   : > { %11748 = vrot.lane.b32.xlu1 %v15142_v20, %s14446_s19  ;;  %v11456_v60 = vunpack.i.h.bf16 %v11454_v40  ;;  %v11455_v61 = vunpack.i.l.bf16 %v11454_v40 }
  0xe6   : > { %11743 = vrot.lane.b32.xlu0 %v15109_v59, %s14446_s19  ;;  %v2284_v59 = vsel %vm2283_vm6, %v2251_v31, %v11425_v42  ;;  %v2384_v36 = vsel %vm2381_vm8, %v2351_v30, %v11460_v13  ;;  %v2385_v37 = vsel %vm2381_vm8, %v2352_v32, %v11461_v8  ;;  %v910_v8 = vld [vmem:[#allocation2 + $0x30] sm:$0xff]  ;;  %v911_v13 = vld [vmem:[#allocation2 + $0x38] sm:$0xff] }
  0xe7   : > { %v11469_v52 = vpop.permute.xlu1 %11468  ;;  %v2316_v4 = vsel %vm682_vm3, %v2284_v59, %v11435_v51  ;;  %v2383_v14 = vsel %vm2381_vm8, %v2350_v12, %v11456_v60  ;;  %v1181_v51 = vld [vmem:[#allocation2 + $0x10a] sm:$0xff]  ;;  %v1056_v59 = vld [vmem:[#allocation2 + $0x121] sm:$0xff] }
  0xe8   : > { %v11464_v57 = vpop.permute.xlu0 %11463  ;;  %v2349_v11 = vsel %vm2348_vm7, %v2316_v4, %v11445_v56  ;;  %v11471_v21 = vunpack.i.h.bf16 %v11469_v52  ;;  %v11470_v22 = vunpack.i.l.bf16 %v11469_v52  ;;  %v1024_v56 = vld [vmem:[#allocation2 + $0x120] sm:$0xff]  ;;  %v1057_v60 = vld [vmem:[#allocation2 + $0x129] sm:$0xff]  ;;  %v1121_v4 = vld [vmem:[#allocation2 + $0x138] sm:$0xff] }
  0xe9   : > { %11758 = vrot.lane.b32.xlu1 %v15161_v45, %s20388_s1  ;;  %v11466_v2 = vunpack.i.h.bf16 %v11464_v57  ;;  %v11465_v3 = vunpack.i.l.bf16 %v11464_v57  ;;  %v2382_v17 = vsel %vm2381_vm8, %v2349_v11, %v11455_v61  ;;  %v1025_v57 = vld [vmem:[#allocation2 + $0x128] sm:$0xff] }
  0xea   : > { %11753 = vrot.lane.b32.xlu0 %v15114_v63, %s20388_s1  ;;  %v2417_v40 = vsel %vm2414_vm9, %v2384_v36, %v11470_v22  ;;  %v2418_v41 = vsel %vm2414_vm9, %v2385_v37, %v11471_v21  ;;  %v1088_v61 = vld [vmem:[#allocation2 + $0x122] sm:$0xff]  ;;  %v15265_v22 = vpack.i.bf16 %v1122_v5, %v1121_v4 }
  0xeb   : > { %v15191_v10 = vpop.permute.xlu1 %11478  ;;  %v2415_v23 = vsel %vm2414_vm9, %v2382_v17, %v11465_v3  ;;  %v2416_v24 = vsel %vm2414_vm9, %v2383_v14, %v11466_v2  ;;  %v15253_v2 = vpack.i.bf16 %v1025_v57, %v1024_v56  ;;  %v1089_v3 = vld [vmem:[#allocation2 + $0x12a] sm:$0xff]  ;;  %v15261_v17 = vpack.i.bf16 %v1057_v60, %v1056_v59 }
  0xec   : > { %v11474_v15 = vpop.permute.xlu0 %11473  ;;  %v11481_v6 = vunpack.i.h.bf16 %v15191_v10  ;;  %v11480_v9 = vunpack.i.l.bf16 %v15191_v10  ;;  %v15263_v21 = vpack.i.bf16 %v1089_v3, %v1088_v61 }
  0xed   : > { %v11476_v63 = vunpack.i.h.bf16 %v11474_v15  ;;  %v11475_v16 = vunpack.i.l.bf16 %v11474_v15  ;;  %11768 = vrot.lane.b32.xlu1 %v15167_v34, %s14448_s20 }
  0xee   : > { %11763 = vrot.lane.b32.xlu0 %v15126_v7, %s14448_s20  ;;  %v2224_v25 = vsel %vm550_vm0, %v911_v13, %v11481_v6  ;;  %v2223_v26 = vsel %vm550_vm0, %v910_v8, %v11480_v9 }
  0xef   : > { %v15207_v27 = vpop.permute.xlu1 %11488  ;;  %v2447_v28 = vsel %vm711_vm4, %v2415_v23, %v11475_v16  ;;  %v2448_v29 = vsel %vm711_vm4, %v2416_v24, %v11476_v63 }
  0xf0   : > { %v11484_v33 = vpop.permute.xlu0 %11483  ;;  %v2479_v7 = vpack.c.bf16 %v2448_v29, %v2447_v28  ;;  %v11491_v62 = vunpack.i.h.bf16 %v15207_v27  ;;  %v11490_v1 = vunpack.i.l.bf16 %v15207_v27 }
  0xf1   : > { %v11486_v38 = vunpack.i.h.bf16 %v11484_v33  ;;  %v11485_v39 = vunpack.i.l.bf16 %v11484_v33  ;;  %11778 = vrot.lane.b32.xlu1 %v15169_v47, %s20295_s23 }
  0xf2   : > { %11773 = vrot.lane.b32.xlu0 %v15142_v20, %s20295_s23  ;;  %11212 = vmatprep.mubr.msk.bf16.mxu0 %vm2522_vm10, %v2479_v7  ;;  %v1182_v20 = vld [vmem:[#allocation2 + $0x112] sm:$0xff]  ;;  %v2226_v10 = vsel %vm550_vm0, %v14990_v44, %v11491_v62  ;;  %v1154_v62 = vld [vmem:[#allocation2 + $0x141] sm:$0xff] }
  0xf3   : > { %v2449_v42 = vsel %vm711_vm4, %v2417_v40, %v11485_v39  ;;  %v2450_v31 = vsel %vm711_vm4, %v2418_v41, %v11486_v38  ;;  %v11499_v46 = vpop.permute.xlu1 %11498  ;;  %v15235_v53 = vpack.i.bf16 %v1182_v20, %v1181_v51 }
  0xf4   : > { %v11494_v48 = vpop.permute.xlu0 %11493  ;;  %v2480_v49 = vpack.c.bf16 %v2450_v31, %v2449_v42  ;;  %v11501_v11 = vunpack.i.h.bf16 %v11499_v46  ;;  %v11500_v12 = vunpack.i.l.bf16 %v11499_v46 }
  0xf5   : > { %11788 = vrot.lane.b32.xlu1 %v15213_v35, %s14450_s21  ;;  %v11496_v15 = vunpack.i.h.bf16 %v11494_v48  ;;  %v11495_v63 = vunpack.i.l.bf16 %v11494_v48 }
  0xf6   : > { %11783 = vrot.lane.b32.xlu0 %v15161_v45, %s14450_s21  ;;  %11213 = vmatmul.mubr.msk.bf16.vlgmr.msra.gmra.mrb[0].mxu0 %vm2522_vm10, %v2480_v49  ;;  %v2258_v28 = vsel %vm606_vm2, %v2226_v10, %v11501_v11 }
  0xf7   : > { %v11509_v50 = vpop.permute.xlu1 %11508  ;;  %v2256_v44 = vsel %vm606_vm2, %v2224_v25, %v11496_v15 }
  0xf8   : > { %v11504_v52 = vpop.permute.xlu0 %11503  ;;  %v11511_v14 = vunpack.i.h.bf16 %v11509_v50  ;;  %v11510_v18 = vunpack.i.l.bf16 %v11509_v50 }
  0xf9   : > { %11798 = vrot.lane.b32.xlu1 %v15161_v45, %s14445_s18  ;;  %v11506_v23 = vunpack.i.h.bf16 %v11504_v52  ;;  %v11505_v24 = vunpack.i.l.bf16 %v11504_v52 }
  0xfa   : > { %11793 = vrot.lane.b32.xlu0 %v15167_v34, %s20384_s22  ;;  %v2291_v7 = vsel %vm2283_vm6, %v2258_v28, %v11511_v14 }
  0xfb   : > { %v15237_v54 = vpop.permute.xlu1 %11518  ;;  %v2289_v39 = vsel %vm2283_vm6, %v2256_v44, %v11506_v23 }
  0xfc   : > { %v15239_v55 = vpop.permute.xlu0 %11513  ;;  %v11521_v42 = vunpack.i.h.bf16 %v15237_v54  ;;  %v11520_v31 = vunpack.i.l.bf16 %v15237_v54 }
  0xfd   : > { %11808 = vrot.lane.b32.xlu1 %v15213_v35, %s14445_s18  ;;  %v11516_v29 = vunpack.i.h.bf16 %v15239_v55  ;;  %v11515_v30 = vunpack.i.l.bf16 %v15239_v55 }
  0xfe   : > { %11803 = vrot.lane.b32.xlu0 %v15235_v53, %s20384_s22  ;;  %v2323_v9 = vsel %vm682_vm3, %v2291_v7, %v11521_v42  ;;  %v1028_v7 = vld [vmem:[#allocation2 + $0x150] sm:$0xff] }
  0xff   : > { %v15245_v58 = vpop.permute.xlu1 %11528  ;;  %v2321_v50 = vsel %vm682_vm3, %v2289_v39, %v11516_v29  ;;  %v1092_v39 = vld [vmem:[#allocation2 + $0x152] sm:$0xff] }
 0x100   : > { %v15247_v45 = vpop.permute.xlu0 %11523  ;;  %v11531_v51 = vunpack.i.h.bf16 %v15245_v58  ;;  %v11530_v20 = vunpack.i.l.bf16 %v15245_v58  ;;  %v1153_v58 = vld [vmem:[#allocation2 + $0x139] sm:$0xff] }
 0x101   : > { %11818 = vrot.lane.b32.xlu1 %v15235_v53, %s20297_s30  ;;  %v11526_v36 = vunpack.i.h.bf16 %v15247_v45  ;;  %v11525_v37 = vunpack.i.l.bf16 %v15247_v45  ;;  %v15321_v14 = vpack.i.bf16 %v1154_v62, %v1153_v58 }
 0x102   : > { %11813 = vrot.lane.b32.xlu0 %v15167_v34, %s20297_s30  ;;  %v2225_v34 = vsel %vm550_vm0, %v14988_v43, %v11490_v1  ;;  %v2255_v43 = vsel %vm606_vm2, %v2223_v26, %v11495_v63  ;;  %v2356_v15 = vsel %vm2348_vm7, %v2323_v9, %v11531_v51  ;;  %v916_v51 = vld [vmem:[#allocation2 + $0x78] sm:$0xff] }
 0x103   : > { %v15259_v16 = vpop.permute.xlu1 %11538  ;;  %v2257_v27 = vsel %vm606_vm2, %v2225_v34, %v11500_v12  ;;  %v2354_v56 = vsel %vm2348_vm7, %v2321_v50, %v11526_v36  ;;  %v1029_v36 = vld [vmem:[#allocation2 + $0x158] sm:$0xff] }
 0x104   : > { %v11534_v19 = vpop.permute.xlu0 %11533  ;;  %v2290_v33 = vsel %vm2283_vm6, %v2257_v27, %v11510_v18  ;;  %v11541_v54 = vunpack.i.h.bf16 %v15259_v16  ;;  %v11540_v57 = vunpack.i.l.bf16 %v15259_v16  ;;  %v15363_v42 = vpack.i.bf16 %v1029_v36, %v1028_v7 }
 0x105   : > { %11828 = vrot.lane.b32.xlu1 %v15253_v2, %s14446_s19  ;;  %v11536_v40 = vunpack.i.h.bf16 %v11534_v19  ;;  %v11535_v41 = vunpack.i.l.bf16 %v11534_v19  ;;  %v2322_v6 = vsel %vm682_vm3, %v2290_v33, %v11520_v31  ;;  %v1093_v31 = vld [vmem:[#allocation2 + $0x15a] sm:$0xff] }
 0x106   : > { %11823 = vrot.lane.b32.xlu0 %v15169_v47, %s14446_s19  ;;  %v2288_v47 = vsel %vm2283_vm6, %v2255_v43, %v11505_v24  ;;  %v2355_v13 = vsel %vm2348_vm7, %v2322_v6, %v11530_v20  ;;  %v2389_v18 = vsel %vm2381_vm8, %v2356_v15, %v11541_v54  ;;  %v1185_v43 = vld [vmem:[#allocation2 + $0x13a] sm:$0xff] }
 0x107   : > { %v11549_v32 = vpop.permute.xlu1 %11548  ;;  %v2320_v49 = vsel %vm682_vm3, %v2288_v47, %v11515_v30  ;;  %v2387_v59 = vsel %vm2381_vm8, %v2354_v56, %v11536_v40  ;;  %v1061_v47 = vld [vmem:[#allocation2 + $0x159] sm:$0xff] }
 0x108   : > { %v11544_v38 = vpop.permute.xlu0 %11543  ;;  %v2353_v55 = vsel %vm2348_vm7, %v2320_v49, %v11525_v37  ;;  %v11551_v1 = vunpack.i.h.bf16 %v11549_v32  ;;  %v11550_v3 = vunpack.i.l.bf16 %v11549_v32  ;;  %v917_v20 = vld [vmem:[#allocation2 + $0x80] sm:$0xff] }
 0x109   : > { %11838 = vrot.lane.b32.xlu1 %v15261_v17, %s20388_s1  ;;  %v11546_v46 = vunpack.i.h.bf16 %v11544_v38  ;;  %v11545_v48 = vunpack.i.l.bf16 %v11544_v38  ;;  %v1060_v38 = vld [vmem:[#allocation2 + $0x151] sm:$0xff]  ;;  %v914_v54 = vld [vmem:[#allocation2 + $0x60] sm:$0xff] }
 0x10a   : > { %11833 = vrot.lane.b32.xlu0 %v15213_v35, %s20388_s1  ;;  %v2386_v35 = vsel %vm2381_vm8, %v2353_v55, %v11535_v41  ;;  %v2422_v23 = vsel %vm2414_vm9, %v2389_v18, %v11551_v1  ;;  %v15373_v1 = vpack.i.bf16 %v1093_v31, %v1092_v39  ;;  %v1158_v31 = vld [vmem:[#allocation2 + $0x171] sm:$0xff] }
 0x10b   : > { %v15299_v52 = vpop.permute.xlu1 %11558  ;;  %v2419_v4 = vsel %vm2414_vm9, %v2386_v35, %v11545_v48  ;;  %v2420_v5 = vsel %vm2414_vm9, %v2387_v59, %v11546_v46  ;;  %v1125_v46 = vld [vmem:[#allocation2 + $0x168] sm:$0xff]  ;;  %v1126_v48 = vld [vmem:[#allocation2 + $0x170] sm:$0xff] }
 0x10c   : > { %v11554_v45 = vpop.permute.xlu0 %11553  ;;  %v11561_v49 = vunpack.i.h.bf16 %v15299_v52  ;;  %v11560_v50 = vunpack.i.l.bf16 %v15299_v52  ;;  %v15375_v52 = vpack.i.bf16 %v1126_v48, %v1125_v46 }
 0x10d   : > { %v11556_v60 = vunpack.i.h.bf16 %v11554_v45  ;;  %v11555_v61 = vunpack.i.l.bf16 %v11554_v45  ;;  %11848 = vrot.lane.b32.xlu1 %v15263_v21, %s14448_s20 }
 0x10e   : > { %11843 = vrot.lane.b32.xlu0 %v15235_v53, %s14448_s20  ;;  %v2388_v53 = vsel %vm2381_vm8, %v2355_v13, %v11540_v57  ;;  %v915_v57 = vld [vmem:[#allocation2 + $0x68] sm:$0xff]  ;;  %v2227_v9 = vsel %vm550_vm0, %v914_v54, %v11560_v50 }
 0x10f   : > { %v2451_v11 = vsel %vm711_vm4, %v2419_v4, %v11555_v61  ;;  %v2452_v12 = vsel %vm711_vm4, %v2420_v5, %v11556_v60  ;;  %v15317_v8 = vpop.permute.xlu1 %11568  ;;  %v2421_v34 = vsel %vm2414_vm9, %v2388_v53, %v11550_v3  ;;  %v15371_v60 = vpack.i.bf16 %v1061_v47, %v1060_v38 }
 0x110   : > { %v11564_v63 = vpop.permute.xlu0 %11563  ;;  %v2481_v16 = vpack.c.bf16 %v2452_v12, %v2451_v11  ;;  %v11571_v40 = vunpack.i.h.bf16 %v15317_v8  ;;  %v11570_v41 = vunpack.i.l.bf16 %v15317_v8  ;;  %v2228_v6 = vsel %vm550_vm0, %v915_v57, %v11561_v49 }
 0x111   : > { %v11566_v19 = vunpack.i.h.bf16 %v11564_v63  ;;  %v11565_v10 = vunpack.i.l.bf16 %v11564_v63  ;;  %11858 = vrot.lane.b32.xlu1 %v15265_v22, %s20295_s23 }
 0x112   : > { %11853 = vrot.lane.b32.xlu0 %v15253_v2, %s20295_s23  ;;  %11216 = vmatprep.mubr.msk.bf16.mxu0 %vm2522_vm10, %v2481_v16  ;;  %v1186_v2 = vld [vmem:[#allocation2 + $0x142] sm:$0xff]  ;;  %v2230_v3 = vsel %vm550_vm0, %v917_v20, %v11571_v40  ;;  %v2229_v4 = vsel %vm550_vm0, %v916_v51, %v11570_v41 }
 0x113   : > { %v2454_v24 = vsel %vm711_vm4, %v2422_v23, %v11566_v19  ;;  %v2453_v25 = vsel %vm711_vm4, %v2421_v34, %v11565_v10  ;;  %v11579_v26 = vpop.permute.xlu1 %11578  ;;  %v15345_v30 = vpack.i.bf16 %v1186_v2, %v1185_v43 }
 0x114   : > { %v11574_v27 = vpop.permute.xlu0 %11573  ;;  %v2482_v28 = vpack.c.bf16 %v2454_v24, %v2453_v25  ;;  %v11581_v55 = vunpack.i.h.bf16 %v11579_v26  ;;  %v11580_v56 = vunpack.i.l.bf16 %v11579_v26 }
 0x115   : > { %11868 = vrot.lane.b32.xlu1 %v15321_v14, %s14450_s21  ;;  %v11576_v45 = vunpack.i.h.bf16 %v11574_v27  ;;  %v11575_v35 = vunpack.i.l.bf16 %v11574_v27 }
 0x116   : > { %11863 = vrot.lane.b32.xlu0 %v15261_v17, %s14450_s21  ;;  %11217 = vmatmul.mubr.msk.bf16.gmra.mrb[4].mxu0 %vm2522_vm10, %v2482_v28  ;;  %v2261_v11 = vsel %vm606_vm2, %v2229_v4, %v11580_v56  ;;  %v2262_v12 = vsel %vm606_vm2, %v2230_v3, %v11581_v55 }
 0x117   : > { %v11589_v44 = vpop.permute.xlu1 %11588  ;;  %v2260_v8 = vsel %vm606_vm2, %v2228_v6, %v11576_v45  ;;  %v2259_v13 = vsel %vm606_vm2, %v2227_v9, %v11575_v35 }
 0x118   : > { %v15339_v29 = vpop.permute.xlu0 %11583  ;;  %v11591_v61 = vunpack.i.h.bf16 %v11589_v44  ;;  %v11590_v58 = vunpack.i.l.bf16 %v11589_v44 }
 0x119   : > { %11878 = vrot.lane.b32.xlu1 %v15261_v17, %s14445_s18  ;;  %v11585_v5 = vunpack.i.l.bf16 %v15339_v29 }
 0x11a   : > { %11873 = vrot.lane.b32.xlu0 %v15263_v21, %s20384_s22  ;;  %v2294_v53 = vsel %vm2283_vm6, %v2261_v11, %v11590_v58  ;;  %v2295_v18 = vsel %vm2283_vm6, %v2262_v12, %v11591_v61 }
 0x11b   : > { %v15347_v32 = vpop.permute.xlu1 %11598 }
 0x11c   : > { %v15349_v33 = vpop.permute.xlu0 %11593  ;;  %v11601_v26 = vunpack.i.h.bf16 %v15347_v32  ;;  %v11600_v27 = vunpack.i.l.bf16 %v15347_v32 }
 0x11d   : > { %11888 = vrot.lane.b32.xlu1 %v15321_v14, %s14445_s18  ;;  %v11596_v15 = vunpack.i.h.bf16 %v15349_v33  ;;  %v11595_v63 = vunpack.i.l.bf16 %v15349_v33 }
 0x11e   : > { %11883 = vrot.lane.b32.xlu0 %v15345_v30, %s20384_s22  ;;  %v2326_v51 = vsel %vm682_vm3, %v2294_v53, %v11600_v27  ;;  %v2327_v20 = vsel %vm682_vm3, %v2295_v18, %v11601_v26  ;;  %v1032_v18 = vld [vmem:[#allocation2 + $0x180] sm:$0xff]  ;;  %v919_v26 = vld [vmem:[#allocation2 + $0x98] sm:$0xff] }
 0x11f   : > { %v15355_v37 = vpop.permute.xlu1 %11608 }
 0x120   : > { %v15357_v17 = vpop.permute.xlu0 %11603  ;;  %v11610_v33 = vunpack.i.l.bf16 %v15355_v37 }
 0x121   : > { %11898 = vrot.lane.b32.xlu1 %v15345_v30, %s20297_s30  ;;  %v11606_v19 = vunpack.i.h.bf16 %v15357_v17  ;;  %v11605_v10 = vunpack.i.l.bf16 %v15357_v17 }
 0x122   : > { %11893 = vrot.lane.b32.xlu0 %v15263_v21, %s20297_s30  ;;  %v11586_v21 = vunpack.i.h.bf16 %v15339_v29  ;;  %v11611_v29 = vunpack.i.h.bf16 %v15355_v37  ;;  %v1157_v37 = vld [vmem:[#allocation2 + $0x169] sm:$0xff]  ;;  %v2359_v57 = vsel %vm2348_vm7, %v2326_v51, %v11610_v33 }
 0x123   : > { %v15369_v59 = vpop.permute.xlu1 %11618  ;;  %v15431_v61 = vpack.i.bf16 %v1158_v31, %v1157_v37  ;;  %v920_v33 = vld [vmem:[#allocation2 + $0xa8] sm:$0xff] }
 0x124   : > { %v11614_v62 = vpop.permute.xlu0 %11613  ;;  %v2293_v23 = vsel %vm2283_vm6, %v2260_v8, %v11586_v21  ;;  %v11621_v32 = vunpack.i.h.bf16 %v15369_v59  ;;  %v11620_v38 = vunpack.i.l.bf16 %v15369_v59  ;;  %v2360_v45 = vsel %vm2348_vm7, %v2327_v20, %v11611_v29 }
 0x125   : > { %11908 = vrot.lane.b32.xlu1 %v15363_v42, %s14446_s19  ;;  %v11616_v24 = vunpack.i.h.bf16 %v11614_v62  ;;  %v11615_v25 = vunpack.i.l.bf16 %v11614_v62  ;;  %v2325_v2 = vsel %vm682_vm3, %v2293_v23, %v11596_v15  ;;  %v1065_v23 = vld [vmem:[#allocation2 + $0x189] sm:$0xff] }
 0x126   : > { %11903 = vrot.lane.b32.xlu0 %v15265_v22, %s14446_s19  ;;  %v2292_v22 = vsel %vm2283_vm6, %v2259_v13, %v11585_v5  ;;  %v2358_v17 = vsel %vm2348_vm7, %v2325_v2, %v11606_v19  ;;  %v2393_v58 = vsel %vm2381_vm8, %v2360_v45, %v11621_v32  ;;  %v1189_v13 = vld [vmem:[#allocation2 + $0x16a] sm:$0xff]  ;;  %v15478_v2 = vld [vmem:[#allocation2 + $0x1a0] sm:$0xff] }
 0x127   : > { %v11629_v16 = vpop.permute.xlu1 %11628  ;;  %v2324_v43 = vsel %vm682_vm3, %v2292_v22, %v11595_v63  ;;  %v2391_v39 = vsel %vm2381_vm8, %v2358_v17, %v11616_v24  ;;  %v1033_v19 = vld [vmem:[#allocation2 + $0x188] sm:$0xff] }
 0x128   : > { %v11624_v34 = vpop.permute.xlu0 %11623  ;;  %v2357_v36 = vsel %vm2348_vm7, %v2324_v43, %v11605_v10  ;;  %v11631_v46 = vunpack.i.h.bf16 %v11629_v16  ;;  %v11630_v48 = vunpack.i.l.bf16 %v11629_v16  ;;  %v1096_v24 = vld [vmem:[#allocation2 + $0x182] sm:$0xff]  ;;  %v15476_v43 = vld [vmem:[#allocation2 + $0x198] sm:$0xff] }
 0x129   : > { %11918 = vrot.lane.b32.xlu1 %v15371_v60, %s20388_s1  ;;  %v11626_v28 = vunpack.i.h.bf16 %v11624_v34  ;;  %v11625_v44 = vunpack.i.l.bf16 %v11624_v34 }
 0x12a   : > { %11913 = vrot.lane.b32.xlu0 %v15321_v14, %s20388_s1  ;;  %v2390_v14 = vsel %vm2381_vm8, %v2357_v36, %v11615_v25  ;;  %v2426_v21 = vsel %vm2414_vm9, %v2393_v58, %v11631_v46  ;;  %v1097_v25 = vld [vmem:[#allocation2 + $0x18a] sm:$0xff] }
 0x12b   : > { %v15409_v7 = vpop.permute.xlu1 %11638  ;;  %v2423_v49 = vsel %vm2414_vm9, %v2390_v14, %v11625_v44  ;;  %v2424_v50 = vsel %vm2414_vm9, %v2391_v39, %v11626_v28  ;;  %v15474_v44 = vpack.i.bf16 %v1033_v19, %v1032_v18  ;;  %v921_v36 = vld [vmem:[#allocation2 + $0xb0] sm:$0xff] }
 0x12c   : > { %v11634_v47 = vpop.permute.xlu0 %11633  ;;  %v11641_v34 = vunpack.i.h.bf16 %v15409_v7  ;;  %v11640_v29 = vunpack.i.l.bf16 %v15409_v7 }
 0x12d   : > { %v11636_v40 = vunpack.i.h.bf16 %v11634_v47  ;;  %v11635_v41 = vunpack.i.l.bf16 %v11634_v47  ;;  %11928 = vrot.lane.b32.xlu1 %v15373_v1, %s14448_s20 }
 0x12e   : > { %11923 = vrot.lane.b32.xlu0 %v15345_v30, %s14448_s20  ;;  %v2392_v30 = vsel %vm2381_vm8, %v2359_v57, %v11620_v38  ;;  %v918_v38 = vld [vmem:[#allocation2 + $0x90] sm:$0xff]  ;;  %v2232_v37 = vsel %vm550_vm0, %v919_v26, %v11641_v34 }
 0x12f   : > { %v2455_v55 = vsel %vm711_vm4, %v2423_v49, %v11635_v41  ;;  %v2456_v56 = vsel %vm711_vm4, %v2424_v50, %v11636_v40  ;;  %v15427_v54 = vpop.permute.xlu1 %11648  ;;  %v2425_v4 = vsel %vm2414_vm9, %v2392_v30, %v11630_v48  ;;  %v15487_v41 = vpack.i.bf16 %v1097_v25, %v1096_v24 }
 0x130   : > { %v11644_v35 = vpop.permute.xlu0 %11643  ;;  %v2483_v59 = vpack.c.bf16 %v2456_v56, %v2455_v55  ;;  %v11651_v27 = vunpack.i.h.bf16 %v15427_v54  ;;  %v11650_v28 = vunpack.i.l.bf16 %v15427_v54  ;;  %v12017_v48 = vpack.i.bf16 %v15478_v2, %v15476_v43 }
 0x131   : > { %v11646_v62 = vunpack.i.h.bf16 %v11644_v35  ;;  %v11645_v3 = vunpack.i.l.bf16 %v11644_v35  ;;  %11938 = vrot.lane.b32.xlu1 %v15375_v52, %s20295_s23  ;;  %v2231_v20 = vsel %vm550_vm0, %v918_v38, %v11640_v29 }
 0x132   : > { %11933 = vrot.lane.b32.xlu0 %v15363_v42, %s20295_s23  ;;  %11220 = vmatprep.mubr.msk.bf16.mxu0 %vm2522_vm10, %v2483_v59  ;;  %v1190_v42 = vld [vmem:[#allocation2 + $0x172] sm:$0xff]  ;;  %v2234_v49 = vsel %vm550_vm0, %v921_v36, %v11651_v27 }
 0x133   : > { %v2458_v5 = vsel %vm711_vm4, %v2426_v21, %v11646_v62  ;;  %v2457_v6 = vsel %vm711_vm4, %v2425_v4, %v11645_v3  ;;  %v11659_v9 = vpop.permute.xlu1 %11658  ;;  %v15455_v63 = vpack.i.bf16 %v1190_v42, %v1189_v13  ;;  %v15536_v27 = vld [vmem:[#allocation2 + $0x199] sm:$0xff] }
 0x134   : > { %v11654_v11 = vpop.permute.xlu0 %11653  ;;  %v2484_v12 = vpack.c.bf16 %v2458_v5, %v2457_v6  ;;  %v11661_v17 = vunpack.i.h.bf16 %v11659_v9  ;;  %v11660_v32 = vunpack.i.l.bf16 %v11659_v9 }
 0x135   : > { %11948 = vrot.lane.b32.xlu1 %v15431_v61, %s14450_s21  ;;  %v11656_v47 = vunpack.i.h.bf16 %v11654_v11  ;;  %v11655_v14 = vunpack.i.l.bf16 %v11654_v11 }
 0x136   : > { %11943 = vrot.lane.b32.xlu0 %v15371_v60, %s14450_s21  ;;  %11221 = vmatmul.mubr.msk.bf16.gmra.mrb[8].mxu0 %vm2522_vm10, %v2484_v12  ;;  %v2266_v56 = vsel %vm606_vm2, %v2234_v49, %v11661_v17 }
 0x137   : > { %v11669_v8 = vpop.permute.xlu1 %11668  ;;  %v2264_v57 = vsel %vm606_vm2, %v2232_v37, %v11656_v47  ;;  %v2263_v45 = vsel %vm606_vm2, %v2231_v20, %v11655_v14 }
 0x138   : > { %v15449_v15 = vpop.permute.xlu0 %11663  ;;  %v11671_v31 = vunpack.i.h.bf16 %v11669_v8  ;;  %v11670_v7 = vunpack.i.l.bf16 %v11669_v8 }
 0x139   : > { %11958 = vrot.lane.b32.xlu1 %v15371_v60, %s14445_s18  ;;  %v1064_v60 = vld [vmem:[#allocation2 + $0x181] sm:$0xff]  ;;  %v11666_v50 = vunpack.i.h.bf16 %v15449_v15  ;;  %v11665_v51 = vunpack.i.l.bf16 %v15449_v15 }
 0x13a   : > { %11953 = vrot.lane.b32.xlu0 %v15373_v1, %s20384_s22  ;;  %v15485_v40 = vpack.i.bf16 %v1065_v23, %v1064_v60  ;;  %v2299_v62 = vsel %vm2283_vm6, %v2266_v56, %v11671_v31 }
 0x13b   : > { %v15457_v16 = vpop.permute.xlu1 %11678  ;;  %v2297_v5 = vsel %vm2283_vm6, %v2264_v57, %v11666_v50 }
 0x13c   : > { %v15459_v53 = vpop.permute.xlu0 %11673  ;;  %v11681_v6 = vunpack.i.h.bf16 %v15457_v16  ;;  %v11680_v11 = vunpack.i.l.bf16 %v15457_v16 }
 0x13d   : > { %11968 = vrot.lane.b32.xlu1 %v15431_v61, %s14445_s18  ;;  %v11675_v54 = vunpack.i.l.bf16 %v15459_v53  ;;  %v11676_v35 = vunpack.i.h.bf16 %v15459_v53  ;;  %s20367_s18 = smov 112  }
 0x13e   : > { %11963 = vrot.lane.b32.xlu0 %v15455_v63, %s20384_s22 }
 0x13f   : > { %v15465_v10 = vpop.permute.xlu1 %11688  ;;  %v2329_v42 = vsel %vm682_vm3, %v2297_v5, %v11676_v35 }
 0x140   : > { %v15468_v22 = vpop.permute.xlu0 %11683  ;;  %v11691_v15 = vunpack.i.h.bf16 %v15465_v10  ;;  %v11690_v53 = vunpack.i.l.bf16 %v15465_v10 }
 0x141   : > { %11978 = vrot.lane.b32.xlu1 %v15455_v63, %s20297_s30  ;;  %v11685_v59 = vunpack.i.l.bf16 %v15468_v22  ;;  %v11686_v3 = vunpack.i.h.bf16 %v15468_v22 }
 0x142   : > { %11973 = vrot.lane.b32.xlu0 %v15373_v1, %s20297_s30  ;;  %v2233_v1 = vsel %vm550_vm0, %v920_v33, %v11650_v28  ;;  %v15538_v28 = vld [vmem:[#allocation2 + $0x1a1] sm:$0xff] }
 0x143   : > { %v15483_v39 = vpop.permute.xlu1 %11698  ;;  %v2265_v55 = vsel %vm606_vm2, %v2233_v1, %v11660_v32  ;;  %v2362_v60 = vsel %vm2348_vm7, %v2329_v42, %v11686_v3  ;;  %v2331_v32 = vsel %vm682_vm3, %v2299_v62, %v11681_v6 }
 0x144   : > { %v11694_v46 = vpop.permute.xlu0 %11693  ;;  %v2298_v58 = vsel %vm2283_vm6, %v2265_v55, %v11670_v7  ;;  %v11701_v16 = vunpack.i.h.bf16 %v15483_v39  ;;  %v11700_v34 = vunpack.i.l.bf16 %v15483_v39  ;;  %v2364_v37 = vsel %vm2348_vm7, %v2331_v32, %v11691_v15  ;;  %v1193_v39 = vld [vmem:[#allocation2 + $0x19a] sm:$0xff]  ;;  %v1194_v55 = vld [vmem:[#allocation2 + $0x1a2] sm:$0xff] }
 0x145   : > { %11988 = vrot.lane.b32.xlu1 %v15474_v44, %s14446_s19  ;;  %v11695_v4 = vunpack.i.l.bf16 %v11694_v46  ;;  %v11696_v9 = vunpack.i.h.bf16 %v11694_v46  ;;  %v2330_v17 = vsel %vm682_vm3, %v2298_v58, %v11680_v11  ;;  %v12027_v46 = vpack.i.bf16 %v15538_v28, %v15536_v27 }
 0x146   : > { %11983 = vrot.lane.b32.xlu0 %v15375_v52, %s14446_s19  ;;  %v2296_v52 = vsel %vm2283_vm6, %v2263_v45, %v11665_v51  ;;  %v2397_v1 = vsel %vm2381_vm8, %v2364_v37, %v11701_v16  ;;  %v12037_v57 = vpack.i.bf16 %v1194_v55, %v1193_v39  ;;  %s20293_s19 = smov 40  }
 0x147   : > { %v15508_v30 = vpop.permute.xlu1 %11708  ;;  %v2328_v12 = vsel %vm682_vm3, %v2296_v52, %v11675_v54  ;;  %v925_v52 = vld [vmem:[#allocation2 + $0xe0] sm:$0xff] }
 0x148   : > { %v11704_v21 = vpop.permute.xlu0 %11703  ;;  %v2361_v18 = vsel %vm2348_vm7, %v2328_v12, %v11685_v59  ;;  %v11711_v24 = vunpack.i.h.bf16 %v15508_v30  ;;  %v11710_v29 = vunpack.i.l.bf16 %v15508_v30 }
 0x149   : > { %11998 = vrot.lane.b32.xlu1 %v15485_v40, %s20388_s1  ;;  %v11706_v8 = vunpack.i.h.bf16 %v11704_v21  ;;  %v11705_v13 = vunpack.i.l.bf16 %v11704_v21  ;;  %v2394_v22 = vsel %vm2381_vm8, %v2361_v18, %v11695_v4  ;;  %v924_v21 = vld [vmem:[#allocation2 + $0xd8] sm:$0xff] }
 0x14a   : > { %11993 = vrot.lane.b32.xlu0 %v15431_v61, %s20388_s1  ;;  %v2395_v61 = vsel %vm2381_vm8, %v2362_v60, %v11696_v9  ;;  %v2430_v20 = vsel %vm2414_vm9, %v2397_v1, %v11711_v24  ;;  %v922_v9 = vld [vmem:[#allocation2 + $0xc0] sm:$0xff] }
 0x14b   : > { %v15526_v19 = vpop.permute.xlu1 %11718  ;;  %v2427_v33 = vsel %vm2414_vm9, %v2394_v22, %v11705_v13  ;;  %v2428_v36 = vsel %vm2414_vm9, %v2395_v61, %v11706_v8 }
 0x14c   : > { %v11714_v23 = vpop.permute.xlu0 %11713  ;;  %v11720_v4 = vunpack.i.l.bf16 %v15526_v19 }
 0x14d   : > { %v11716_v25 = vunpack.i.h.bf16 %v11714_v23  ;;  %v11715_v26 = vunpack.i.l.bf16 %v11714_v23  ;;  %12008 = vrot.lane.b32.xlu1 %v15487_v41, %s14448_s20 }
 0x14e   : > { %12003 = vrot.lane.b32.xlu0 %v15455_v63, %s14448_s20  ;;  %v2363_v63 = vsel %vm2348_vm7, %v2330_v17, %v11690_v53  ;;  %s20301_s20 = smov 48  }
 0x14f   : > { %v15548_v38 = vsel %vm711_vm4, %v2427_v33, %v11715_v26  ;;  %v2460_v47 = vsel %vm711_vm4, %v2428_v36, %v11716_v25  ;;  %v15551_v14 = vpop.permute.xlu1 %11728  ;;  %v2396_v49 = vsel %vm2381_vm8, %v2363_v63, %v11700_v34  ;;  %v2235_v34 = vsel %vm550_vm0, %v922_v9, %v11720_v4 }
 0x150   : > { %v11724_v31 = vpop.permute.xlu0 %11723  ;;  %v2485_v7 = vpack.c.bf16 %v2460_v47, %v15548_v38  ;;  %v2429_v10 = vsel %vm2414_vm9, %v2396_v49, %v11710_v29  ;;  %v11731_v62 = vunpack.i.h.bf16 %v15551_v14  ;;  %v11730_v3 = vunpack.i.l.bf16 %v15551_v14 }
 0x151   : > { %v11726_v50 = vunpack.i.h.bf16 %v11724_v31  ;;  %v11725_v51 = vunpack.i.l.bf16 %v11724_v31  ;;  %12018 = vrot.lane.b32.xlu1 %v12017_v48, %s20295_s23 }
 0x152   : > { %12013 = vrot.lane.b32.xlu0 %v15474_v44, %s20295_s23  ;;  %11224 = vmatprep.mubr.msk.bf16.mxu0 %vm2522_vm10, %v2485_v7  ;;  %v2238_v53 = vsel %vm550_vm0, %v925_v52, %v11731_v62  ;;  %v2237_v18 = vsel %vm550_vm0, %v924_v21, %v11730_v3 }
 0x153   : > { %v2462_v56 = vsel %vm711_vm4, %v2430_v20, %v11726_v50  ;;  %v2461_v43 = vsel %vm711_vm4, %v2429_v10, %v11725_v51  ;;  %v11739_v2 = vpop.permute.xlu1 %11738 }
 0x154   : > { %v11734_v48 = vpop.permute.xlu0 %11733  ;;  %v2486_v54 = vpack.c.bf16 %v2462_v56, %v2461_v43  ;;  %v11741_v5 = vunpack.i.h.bf16 %v11739_v2  ;;  %v11740_v6 = vunpack.i.l.bf16 %v11739_v2 }
 0x155   : > { %12028 = vrot.lane.b32.xlu1 %v12027_v46, %s14450_s21  ;;  %v11736_v11 = vunpack.i.h.bf16 %v11734_v48  ;;  %v11735_v12 = vunpack.i.l.bf16 %v11734_v48 }
 0x156   : > { %12023 = vrot.lane.b32.xlu0 %v15485_v40, %s14450_s21  ;;  %11225 = vmatmul.mubr.msk.bf16.gmra.mrb[12].mxu0 %vm2522_vm10, %v2486_v54  ;;  %v11721_v40 = vunpack.i.h.bf16 %v15526_v19  ;;  %v2269_v22 = vsel %vm606_vm2, %v2237_v18, %v11740_v6  ;;  %v2270_v23 = vsel %vm606_vm2, %v2238_v53, %v11741_v5  ;;  %s20456_s21 = sld [smem:[#allocation75_spill]] }
 0x157   : > { %v11749_v44 = vpop.permute.xlu1 %11748  ;;  %v2267_v24 = vsel %vm606_vm2, %v2235_v34, %v11735_v12 }
 0x158   : > { %v11744_v45 = vpop.permute.xlu0 %11743  ;;  %v11751_v13 = vunpack.i.h.bf16 %v11749_v44  ;;  %v11750_v42 = vunpack.i.l.bf16 %v11749_v44 }
 0x159   : > { %12038 = vrot.lane.b32.xlu1 %v12037_v57, %s20384_s22  ;;  %v11746_v60 = vunpack.i.h.bf16 %v11744_v45  ;;  %v11745_v16 = vunpack.i.l.bf16 %v11744_v45 }
 0x15a   : > { %12033 = vrot.lane.b32.xlu0 %v15487_v41, %s20384_s22  ;;  %v923_v41 = vld [vmem:[#allocation2 + $0xc8] sm:$0xff]  ;;  %v2302_v28 = vsel %vm2283_vm6, %v2269_v22, %v11750_v42  ;;  %v2303_v29 = vsel %vm2283_vm6, %v2270_v23, %v11751_v13 }
 0x15b   : > { %v15682_v35 = vpop.permute.xlu1 %11758  ;;  %v2236_v19 = vsel %vm550_vm0, %v923_v41, %v11721_v40  ;;  %v2300_v32 = vsel %vm2283_vm6, %v2267_v24, %v11745_v16 }
 0x15c   : > { %v11754_v59 = vpop.permute.xlu0 %11753  ;;  %v2268_v61 = vsel %vm606_vm2, %v2236_v19, %v11736_v11  ;;  %v11761_v63 = vunpack.i.h.bf16 %v15682_v35  ;;  %v11760_v37 = vunpack.i.l.bf16 %v15682_v35 }
 0x15d   : > { %v11756_v25 = vunpack.i.h.bf16 %v11754_v59  ;;  %v11755_v26 = vunpack.i.l.bf16 %v11754_v59  ;;  %v2301_v38 = vsel %vm2283_vm6, %v2268_v61, %v11746_v60 }
 0x15e   : > { %v2334_v59 = vsel %vm682_vm3, %v2302_v28, %v11760_v37 }
 0x15f   : > { %v15684_v30 = vpop.permute.xlu1 %11768  ;;  %v2332_v46 = vsel %vm682_vm3, %v2300_v32, %v11755_v26  ;;  %v2333_v49 = vsel %vm682_vm3, %v2301_v38, %v11756_v25  ;;  %v928_v26 = vld [vmem:[#allocation2 + $0x108] sm:$0xff] }
 0x160   : > { %v11764_v58 = vpop.permute.xlu0 %11763  ;;  %v11771_v1 = vunpack.i.h.bf16 %v15684_v30  ;;  %v11770_v50 = vunpack.i.l.bf16 %v15684_v30  ;;  %v2335_v30 = vsel %vm682_vm3, %v2303_v29, %v11761_v63 }
 0x161   : > { %v11766_v33 = vunpack.i.h.bf16 %v11764_v58  ;;  %v11765_v36 = vunpack.i.l.bf16 %v11764_v58 }
 0x162   : > { %v2367_v40 = vsel %vm2348_vm7, %v2334_v59, %v11770_v50  ;;  %v2368_v4 = vsel %vm2348_vm7, %v2335_v30, %v11771_v1 }
 0x163   : > { %v11779_v8 = vpop.permute.xlu1 %11778  ;;  %v2365_v10 = vsel %vm2348_vm7, %v2332_v46, %v11765_v36  ;;  %v2366_v20 = vsel %vm2348_vm7, %v2333_v49, %v11766_v33  ;;  %v926_v33 = vld [vmem:[#allocation2 + $0xf0] sm:$0xff]  ;;  %v927_v36 = vld [vmem:[#allocation2 + $0xf8] sm:$0xff] }
 0x164   : > { %v11774_v15 = vpop.permute.xlu0 %11773  ;;  %v11781_v39 = vunpack.i.h.bf16 %v11779_v8  ;;  %v11780_v55 = vunpack.i.l.bf16 %v11779_v8 }
 0x165   : > { %v11776_v47 = vunpack.i.h.bf16 %v11774_v15  ;;  %v11775_v14 = vunpack.i.l.bf16 %v11774_v15 }
 0x166   : > { %v2400_v5 = vsel %vm2381_vm8, %v2367_v40, %v11780_v55  ;;  %v2401_v6 = vsel %vm2381_vm8, %v2368_v4, %v11781_v39 }
 0x167   : > { %v11789_v27 = vpop.permute.xlu1 %11788  ;;  %v2398_v43 = vsel %vm2381_vm8, %v2365_v10, %v11775_v14  ;;  %v2399_v2 = vsel %vm2381_vm8, %v2366_v20, %v11776_v47 }
 0x168   : > { %v11784_v17 = vpop.permute.xlu0 %11783  ;;  %v11791_v57 = vunpack.i.h.bf16 %v11789_v27  ;;  %v11790_v44 = vunpack.i.l.bf16 %v11789_v27  ;;  %v929_v27 = vld [vmem:[#allocation2 + $0x110] sm:$0xff] }
 0x169   : > { %v11786_v31 = vunpack.i.h.bf16 %v11784_v17  ;;  %v11785_v7 = vunpack.i.l.bf16 %v11784_v17 }
 0x16a   : > { %v2433_v11 = vsel %vm2414_vm9, %v2400_v5, %v11790_v44  ;;  %v2434_v12 = vsel %vm2414_vm9, %v2401_v6, %v11791_v57 }
 0x16b   : > { %v15708_v51 = vpop.permute.xlu1 %11798  ;;  %v2431_v45 = vsel %vm2414_vm9, %v2398_v43, %v11785_v7  ;;  %v2432_v35 = vsel %vm2414_vm9, %v2399_v2, %v11786_v31 }
 0x16c   : > { %v11794_v56 = vpop.permute.xlu0 %11793  ;;  %v11801_v24 = vunpack.i.h.bf16 %v15708_v51  ;;  %v11800_v25 = vunpack.i.l.bf16 %v15708_v51 }
 0x16d   : > { %v11796_v48 = vunpack.i.h.bf16 %v11794_v56  ;;  %v11795_v54 = vunpack.i.l.bf16 %v11794_v56 }
 0x16e   : > { %v2240_v49 = vsel %vm550_vm0, %v927_v36, %v11801_v24  ;;  %v2239_v1 = vsel %vm550_vm0, %v926_v33, %v11800_v25 }
 0x16f   : > { %v2463_v58 = vsel %vm711_vm4, %v2431_v45, %v11795_v54  ;;  %v2464_v62 = vsel %vm711_vm4, %v2432_v35, %v11796_v48  ;;  %v11809_v3 = vpop.permute.xlu1 %11808 }
 0x170   : > { %v11804_v21 = vpop.permute.xlu0 %11803  ;;  %v2487_v52 = vpack.c.bf16 %v2464_v62, %v2463_v58  ;;  %v11811_v23 = vunpack.i.h.bf16 %v11809_v3  ;;  %v11810_v61 = vunpack.i.l.bf16 %v11809_v3 }
 0x171   : > { %v11806_v9 = vunpack.i.h.bf16 %v11804_v21  ;;  %v11805_v41 = vunpack.i.l.bf16 %v11804_v21 }
 0x172   : > { %11228 = vmatprep.mubr.msk.bf16.mxu0 %vm2522_vm10, %v2487_v52  ;;  %v2242_v37 = vsel %vm550_vm0, %v929_v27, %v11811_v23  ;;  %v2241_v31 = vsel %vm550_vm0, %v928_v26, %v11810_v61 }
 0x173   : > { %v2466_v8 = vsel %vm711_vm4, %v2434_v12, %v11806_v9  ;;  %v2465_v13 = vsel %vm711_vm4, %v2433_v11, %v11805_v41  ;;  %v11819_v42 = vpop.permute.xlu1 %11818 }
 0x174   : > { %v11814_v15 = vpop.permute.xlu0 %11813  ;;  %v2488_v53 = vpack.c.bf16 %v2466_v8, %v2465_v13  ;;  %v11821_v28 = vunpack.i.h.bf16 %v11819_v42  ;;  %v11820_v29 = vunpack.i.l.bf16 %v11819_v42 }
 0x175   : > { %v11816_v17 = vunpack.i.h.bf16 %v11814_v15  ;;  %v11815_v32 = vunpack.i.l.bf16 %v11814_v15 }
 0x176   : > { %11229 = vmatmul.mubr.msk.bf16.gmra.mrb[16].mxu0 %vm2522_vm10, %v2488_v53  ;;  %v2273_v50 = vsel %vm606_vm2, %v2241_v31, %v11820_v29  ;;  %v2274_v51 = vsel %vm606_vm2, %v2242_v37, %v11821_v28 }
 0x177   : > { %v11829_v18 = vpop.permute.xlu1 %11828  ;;  %v2272_v10 = vsel %vm606_vm2, %v2240_v49, %v11816_v17  ;;  %v2271_v20 = vsel %vm606_vm2, %v2239_v1, %v11815_v32 }
 0x178   : > { %v11824_v60 = vpop.permute.xlu0 %11823  ;;  %v11831_v47 = vunpack.i.h.bf16 %v11829_v18  ;;  %v11830_v14 = vunpack.i.l.bf16 %v11829_v18 }
 0x179   : > { %v11826_v7 = vunpack.i.h.bf16 %v11824_v60  ;;  %v11825_v46 = vunpack.i.l.bf16 %v11824_v60 }
 0x17a   : > { %v2306_v43 = vsel %vm2283_vm6, %v2273_v50, %v11830_v14  ;;  %v2307_v2 = vsel %vm2283_vm6, %v2274_v51, %v11831_v47 }
 0x17b   : > { %v15730_v16 = vpop.permute.xlu1 %11838  ;;  %v2304_v44 = vsel %vm2283_vm6, %v2271_v20, %v11825_v46  ;;  %v2305_v45 = vsel %vm2283_vm6, %v2272_v10, %v11826_v7 }
 0x17c   : > { %v11834_v19 = vpop.permute.xlu0 %11833  ;;  %v11841_v30 = vunpack.i.h.bf16 %v15730_v16  ;;  %v11840_v58 = vunpack.i.l.bf16 %v15730_v16 }
 0x17d   : > { %v11836_v39 = vunpack.i.h.bf16 %v11834_v19  ;;  %v11835_v55 = vunpack.i.l.bf16 %v11834_v19 }
 0x17e   : > { %v2338_v19 = vsel %vm682_vm3, %v2306_v43, %v11840_v58  ;;  %v930_v43 = vld [vmem:[#allocation2 + $0x120] sm:$0xff]  ;;  %v14384_v58 = vld [vmem:[#allocation2 + $0x138] sm:$0xff] }
 0x17f   : > { %v15732_v34 = vpop.permute.xlu1 %11848  ;;  %v2336_v40 = vsel %vm682_vm3, %v2304_v44, %v11835_v55  ;;  %v2337_v4 = vsel %vm682_vm3, %v2305_v45, %v11836_v39 }
 0x180   : > { %v11844_v22 = vpop.permute.xlu0 %11843  ;;  %v11851_v21 = vunpack.i.h.bf16 %v15732_v34  ;;  %v11850_v52 = vunpack.i.l.bf16 %v15732_v34  ;;  %v2339_v34 = vsel %vm682_vm3, %v2307_v2, %v11841_v30  ;;  %v931_v2 = vld [vmem:[#allocation2 + $0x128] sm:$0xff] }
 0x181   : > { %v11846_v48 = vunpack.i.h.bf16 %v11844_v22  ;;  %v11845_v54 = vunpack.i.l.bf16 %v11844_v22 }
 0x182   : > { %v2371_v24 = vsel %vm2348_vm7, %v2338_v19, %v11850_v52  ;;  %v2372_v25 = vsel %vm2348_vm7, %v2339_v34, %v11851_v21 }
 0x183   : > { %v11859_v38 = vpop.permute.xlu1 %11858  ;;  %v2369_v6 = vsel %vm2348_vm7, %v2336_v40, %v11845_v54  ;;  %v2370_v9 = vsel %vm2348_vm7, %v2337_v4, %v11846_v48 }
 0x184   : > { %v11854_v63 = vpop.permute.xlu0 %11853  ;;  %v11861_v41 = vunpack.i.h.bf16 %v11859_v38  ;;  %v11860_v11 = vunpack.i.l.bf16 %v11859_v38 }
 0x185   : > { %v11856_v35 = vunpack.i.h.bf16 %v11854_v63  ;;  %v11855_v59 = vunpack.i.l.bf16 %v11854_v63 }
 0x186   : > { %v2404_v28 = vsel %vm2381_vm8, %v2371_v24, %v11860_v11  ;;  %v2405_v29 = vsel %vm2381_vm8, %v2372_v25, %v11861_v41 }
 0x187   : > { %v11869_v56 = vpop.permute.xlu1 %11868  ;;  %v2402_v8 = vsel %vm2381_vm8, %v2369_v6, %v11855_v59  ;;  %v2403_v13 = vsel %vm2381_vm8, %v2370_v9, %v11856_v35  ;;  %v14383_v59 = vld [vmem:[#allocation2 + $0x140] sm:$0xff] }
 0x188   : > { %v11864_v57 = vpop.permute.xlu0 %11863  ;;  %v11871_v53 = vunpack.i.h.bf16 %v11869_v56  ;;  %v11870_v18 = vunpack.i.l.bf16 %v11869_v56 }
 0x189   : > { %v11866_v62 = vunpack.i.h.bf16 %v11864_v57  ;;  %v11865_v3 = vunpack.i.l.bf16 %v11864_v57 }
 0x18a   : > { %v2437_v17 = vsel %vm2414_vm9, %v2404_v28, %v11870_v18  ;;  %v2438_v32 = vsel %vm2414_vm9, %v2405_v29, %v11871_v53 }
 0x18b   : > { %v15754_v5 = vpop.permute.xlu1 %11878  ;;  %v2435_v60 = vsel %vm2414_vm9, %v2402_v8, %v11865_v3  ;;  %v2436_v16 = vsel %vm2414_vm9, %v2403_v13, %v11866_v62 }
 0x18c   : > { %v11874_v12 = vpop.permute.xlu0 %11873  ;;  %v11881_v20 = vunpack.i.h.bf16 %v15754_v5  ;;  %v11880_v39 = vunpack.i.l.bf16 %v15754_v5 }
 0x18d   : > { %v11876_v42 = vunpack.i.h.bf16 %v11874_v12  ;;  %v11875_v15 = vunpack.i.l.bf16 %v11874_v12 }
 0x18e   : > { %v2244_v4 = vsel %vm550_vm0, %v931_v2, %v11881_v20  ;;  %v2243_v21 = vsel %vm550_vm0, %v930_v43, %v11880_v39 }
 0x18f   : > { %v2467_v22 = vsel %vm711_vm4, %v2435_v60, %v11875_v15  ;;  %v2468_v23 = vsel %vm711_vm4, %v2436_v16, %v11876_v42  ;;  %v11889_v61 = vpop.permute.xlu1 %11888 }
 0x190   : > { %v11884_v26 = vpop.permute.xlu0 %11883  ;;  %v2489_v27 = vpack.c.bf16 %v2468_v23, %v2467_v22  ;;  %v11891_v51 = vunpack.i.h.bf16 %v11889_v61  ;;  %v11890_v10 = vunpack.i.l.bf16 %v11889_v61 }
 0x191   : > { %v11886_v33 = vunpack.i.h.bf16 %v11884_v26  ;;  %v11885_v36 = vunpack.i.l.bf16 %v11884_v26 }
 0x192   : > { %11232 = vmatprep.mubr.msk.bf16.mxu0 %vm2522_vm10, %v2489_v27  ;;  %v2246_v30 = vsel %vm550_vm0, %v14383_v59, %v11891_v51  ;;  %v2245_v62 = vsel %vm550_vm0, %v14384_v58, %v11890_v10 }
 0x193   : > { %v2470_v38 = vsel %vm711_vm4, %v2438_v32, %v11886_v33  ;;  %v2469_v47 = vsel %vm711_vm4, %v2437_v17, %v11885_v36  ;;  %v11899_v14 = vpop.permute.xlu1 %11898 }
 0x194   : > { %v11894_v63 = vpop.permute.xlu0 %11893  ;;  %v2490_v37 = vpack.c.bf16 %v2470_v38, %v2469_v47  ;;  %v11901_v55 = vunpack.i.h.bf16 %v11899_v14  ;;  %v11900_v56 = vunpack.i.l.bf16 %v11899_v14 }
 0x195   : > { %v11896_v48 = vunpack.i.h.bf16 %v11894_v63  ;;  %v11895_v54 = vunpack.i.l.bf16 %v11894_v63 }
 0x196   : > { %11233 = vmatmul.mubr.msk.bf16.gmra.mrb[20].mxu0 %vm2522_vm10, %v2490_v37  ;;  %v2277_v52 = vsel %vm606_vm2, %v2245_v62, %v11900_v56  ;;  %v2278_v5 = vsel %vm606_vm2, %v2246_v30, %v11901_v55 }
 0x197   : > { %v11909_v31 = vpop.permute.xlu1 %11908  ;;  %v2276_v6 = vsel %vm606_vm2, %v2244_v4, %v11896_v48  ;;  %v2275_v9 = vsel %vm606_vm2, %v2243_v21, %v11895_v54 }
 0x198   : > { %v11904_v7 = vpop.permute.xlu0 %11903  ;;  %v11911_v44 = vunpack.i.h.bf16 %v11909_v31  ;;  %v11910_v45 = vunpack.i.l.bf16 %v11909_v31 }
 0x199   : > { %v11906_v3 = vunpack.i.h.bf16 %v11904_v7  ;;  %v11905_v40 = vunpack.i.l.bf16 %v11904_v7 }
 0x19a   : > { %v2310_v8 = vsel %vm2283_vm6, %v2277_v52, %v11910_v45  ;;  %v2311_v13 = vsel %vm2283_vm6, %v2278_v5, %v11911_v44 }
 0x19b   : > { %v15776_v46 = vpop.permute.xlu1 %11918  ;;  %v2308_v18 = vsel %vm2283_vm6, %v2275_v9, %v11905_v40  ;;  %v2309_v60 = vsel %vm2283_vm6, %v2276_v6, %v11906_v3 }
 0x19c   : > { %v11914_v49 = vpop.permute.xlu0 %11913  ;;  %v11921_v34 = vunpack.i.h.bf16 %v15776_v46  ;;  %v11920_v22 = vunpack.i.l.bf16 %v15776_v46 }
 0x19d   : > { %v11916_v41 = vunpack.i.h.bf16 %v11914_v49  ;;  %v11915_v11 = vunpack.i.l.bf16 %v11914_v49 }
 0x19e   : > { %v2342_v49 = vsel %vm682_vm3, %v2310_v8, %v11920_v22  ;;  %v14385_v8 = vld [vmem:[#allocation2 + $0x158] sm:$0xff]  ;;  %v14388_v22 = vld [vmem:[#allocation2 + $0x150] sm:$0xff] }
 0x19f   : > { %v15778_v1 = vpop.permute.xlu1 %11928  ;;  %v2340_v24 = vsel %vm682_vm3, %v2308_v18, %v11915_v11  ;;  %v2341_v25 = vsel %vm682_vm3, %v2309_v60, %v11916_v41  ;;  %v14387_v18 = vld [vmem:[#allocation2 + $0x168] sm:$0xff] }
 0x1a0   : > { %v11924_v50 = vpop.permute.xlu0 %11923  ;;  %v11931_v26 = vunpack.i.h.bf16 %v15778_v1  ;;  %v11930_v27 = vunpack.i.l.bf16 %v15778_v1  ;;  %v2343_v1 = vsel %vm682_vm3, %v2311_v13, %v11921_v34 }
 0x1a1   : > { %v11926_v42 = vunpack.i.h.bf16 %v11924_v50  ;;  %v11925_v15 = vunpack.i.l.bf16 %v11924_v50 }
 0x1a2   : > { %v2375_v20 = vsel %vm2348_vm7, %v2342_v49, %v11930_v27  ;;  %v2376_v39 = vsel %vm2348_vm7, %v2343_v1, %v11931_v26 }
 0x1a3   : > { %v11939_v57 = vpop.permute.xlu1 %11938  ;;  %v2373_v29 = vsel %vm2348_vm7, %v2340_v24, %v11925_v15  ;;  %v2374_v33 = vsel %vm2348_vm7, %v2341_v25, %v11926_v42  ;;  %v14386_v15 = vld [vmem:[#allocation2 + $0x170] sm:$0xff] }
 0x1a4   : > { %v11934_v35 = vpop.permute.xlu0 %11933  ;;  %v11941_v36 = vunpack.i.h.bf16 %v11939_v57  ;;  %v11940_v17 = vunpack.i.l.bf16 %v11939_v57 }
 0x1a5   : > { %v11936_v16 = vunpack.i.h.bf16 %v11934_v35  ;;  %v11935_v19 = vunpack.i.l.bf16 %v11934_v35 }
 0x1a6   : > { %v2408_v43 = vsel %vm2381_vm8, %v2375_v20, %v11940_v17  ;;  %v2409_v2 = vsel %vm2381_vm8, %v2376_v39, %v11941_v36 }
 0x1a7   : > { %v11949_v12 = vpop.permute.xlu1 %11948  ;;  %v2406_v38 = vsel %vm2381_vm8, %v2373_v29, %v11935_v19  ;;  %v2407_v47 = vsel %vm2381_vm8, %v2374_v33, %v11936_v16 }
 0x1a8   : > { %v11944_v53 = vpop.permute.xlu0 %11943  ;;  %v11951_v37 = vunpack.i.h.bf16 %v11949_v12  ;;  %v11950_v31 = vunpack.i.l.bf16 %v11949_v12 }
 0x1a9   : > { %v11946_v23 = vunpack.i.h.bf16 %v11944_v53  ;;  %v11945_v61 = vunpack.i.l.bf16 %v11944_v53 }
 0x1aa   : > { %v2441_v57 = vsel %vm2414_vm9, %v2408_v43, %v11950_v31  ;;  %v2442_v44 = vsel %vm2414_vm9, %v2409_v2, %v11951_v37 }
 0x1ab   : > { %v11959_v28 = vpop.permute.xlu1 %11958  ;;  %v2439_v7 = vsel %vm2414_vm9, %v2406_v38, %v11945_v61  ;;  %v2440_v46 = vsel %vm2414_vm9, %v2407_v47, %v11946_v23 }
 0x1ac   : > { %v11954_v32 = vpop.permute.xlu0 %11953  ;;  %v11961_v40 = vunpack.i.h.bf16 %v11959_v28  ;;  %v11960_v6 = vunpack.i.l.bf16 %v11959_v28 }
 0x1ad   : > { %v11956_v14 = vunpack.i.h.bf16 %v11954_v32  ;;  %v11955_v63 = vunpack.i.l.bf16 %v11954_v32 }
 0x1ae   : > { %v2248_v13 = vsel %vm550_vm0, %v14385_v8, %v11961_v40  ;;  %v2247_v23 = vsel %vm550_vm0, %v14388_v22, %v11960_v6 }
 0x1af   : > { %v2471_v50 = vsel %vm711_vm4, %v2439_v7, %v11955_v63  ;;  %v2472_v51 = vsel %vm711_vm4, %v2440_v46, %v11956_v14  ;;  %v11969_v10 = vpop.permute.xlu1 %11968 }
 0x1b0   : > { %v11964_v55 = vpop.permute.xlu0 %11963  ;;  %v2491_v56 = vpack.c.bf16 %v2472_v51, %v2471_v50  ;;  %v11971_v21 = vunpack.i.h.bf16 %v11969_v10  ;;  %v11970_v52 = vunpack.i.l.bf16 %v11969_v10 }
 0x1b1   : > { %v11966_v48 = vunpack.i.h.bf16 %v11964_v55  ;;  %v11965_v54 = vunpack.i.l.bf16 %v11964_v55 }
 0x1b2   : > { %11236 = vmatprep.mubr.msk.bf16.mxu0 %vm2522_vm10, %v2491_v56  ;;  %v2250_v53 = vsel %vm550_vm0, %v14386_v15, %v11971_v21  ;;  %v2249_v60 = vsel %vm550_vm0, %v14387_v18, %v11970_v52  ;;  %vm3287_vm0 = vcmask 523264  }
 0x1b3   : > { %v2474_v45 = vsel %vm711_vm4, %v2442_v44, %v11966_v48  ;;  %v2473_v35 = vsel %vm711_vm4, %v2441_v57, %v11965_v54  ;;  %v11979_v59 = vpop.permute.xlu1 %11978  ;;  %v15840_v48 = vld [vmem:[%s20402_s4] ss:$0 sm:$0xff] }
 0x1b4   : > { %v11974_v30 = vpop.permute.xlu0 %11973  ;;  %v2492_v58 = vpack.c.bf16 %v2474_v45, %v2473_v35  ;;  %v11981_v9 = vunpack.i.h.bf16 %v11979_v59  ;;  %v11980_v41 = vunpack.i.l.bf16 %v11979_v59 }
 0x1b5   : > { %v11976_v11 = vunpack.i.h.bf16 %v11974_v30  ;;  %v11975_v12 = vunpack.i.l.bf16 %v11974_v30 }
 0x1b6   : > { %11237 = vmatmul.mubr.msk.bf16.gmra.mrb[24].mxu0 %vm2522_vm10, %v2492_v58  ;;  %v2281_v61 = vsel %vm606_vm2, %v2249_v60, %v11980_v41  ;;  %v2282_v24 = vsel %vm606_vm2, %v2250_v53, %v11981_v9 }
 0x1b7   : > { %v11989_v62 = vpop.permute.xlu1 %11988  ;;  %v2280_v26 = vsel %vm606_vm2, %v2248_v13, %v11976_v11  ;;  %v2279_v27 = vsel %vm606_vm2, %v2247_v23, %v11975_v12 }
 0x1b8   : > { %v11984_v3 = vpop.permute.xlu0 %11983  ;;  %v11991_v16 = vunpack.i.h.bf16 %v11989_v62  ;;  %v11990_v19 = vunpack.i.l.bf16 %v11989_v62 }
 0x1b9   : > { %v11985_v25 = vunpack.i.l.bf16 %v11984_v3  ;;  %v11986_v28 = vunpack.i.h.bf16 %v11984_v3 }
 0x1ba   : > { %v2314_v47 = vsel %vm2283_vm6, %v2281_v61, %v11990_v19  ;;  %v2315_v14 = vsel %vm2283_vm6, %v2282_v24, %v11991_v16 }
 0x1bb   : > { %v11999_v4 = vpop.permute.xlu1 %11998  ;;  %v2312_v7 = vsel %vm2283_vm6, %v2279_v27, %v11985_v25  ;;  %v2313_v50 = vsel %vm2283_vm6, %v2280_v26, %v11986_v28  ;;  %vm704_vm6 = vcmask 128000  }
 0x1bc   : > { %v11994_v5 = vpop.permute.xlu0 %11993  ;;  %v12000_v29 = vunpack.i.l.bf16 %v11999_v4  ;;  %v12001_v33 = vunpack.i.h.bf16 %v11999_v4  ;;  %705 = vst.msk [vmem:[#allocation6] sm:$0x3f] %vm704_vm6, %v14443_v0  ;;  %706 = vst.msk [vmem:[#allocation6 + $0x8] sm:$0x3f] %vm704_vm6, %v14443_v0 }
 0x1bd   : > { %v11996_v36 = vunpack.i.h.bf16 %v11994_v5  ;;  %v11995_v17 = vunpack.i.l.bf16 %v11994_v5  ;;  %707 = vst.msk [vmem:[#allocation6 + $0x10] sm:$0x3f] %vm704_vm6, %v14443_v0  ;;  %708 = vst.msk [vmem:[#allocation6 + $0x18] sm:$0x3f] %vm704_vm6, %v14443_v0 }
 0x1be   : > { %v2346_v51 = vsel %vm682_vm3, %v2314_v47, %v12000_v29  ;;  %v2347_v39 = vsel %vm682_vm3, %v2315_v14, %v12001_v33  ;;  %709 = vst.msk [vmem:[#allocation6 + $0x20] sm:$0x3f] %vm704_vm6, %v14443_v0  ;;  %710 = vst.msk [vmem:[#allocation6 + $0x28] sm:$0x3f] %vm704_vm6, %v14443_v0  ;;  %v14333_v0 = vld [vmem:[%s20404_s2 + $0x10] sm:$0xff]  }
 0x1bf   : > { %v12009_v42 = vpop.permute.xlu1 %12008  ;;  %v2344_v55 = vsel %vm682_vm3, %v2312_v7, %v11995_v17  ;;  %v2345_v56 = vsel %vm682_vm3, %v2313_v50, %v11996_v36 }
 0x1c0   : > { %v12004_v34 = vpop.permute.xlu0 %12003  ;;  %v12010_v32 = vunpack.i.l.bf16 %v12009_v42  ;;  %v12011_v63 = vunpack.i.h.bf16 %v12009_v42 }
 0x1c1   : > { %v12005_v37 = vunpack.i.l.bf16 %v12004_v34  ;;  %v12006_v46 = vunpack.i.h.bf16 %v12004_v34 }
 0x1c2   : > { %v2379_v43 = vsel %vm2348_vm7, %v2346_v51, %v12010_v32  ;;  %v2380_v54 = vsel %vm2348_vm7, %v2347_v39, %v12011_v63 }
 0x1c3   : > { %v12019_v38 = vpop.permute.xlu1 %12018  ;;  %v2377_v57 = vsel %vm2348_vm7, %v2344_v55, %v12005_v37  ;;  %v2378_v59 = vsel %vm2348_vm7, %v2345_v56, %v12006_v46  ;;  %v2907_v37 = vld [vmem:[#allocation4 + $0x1] sm:$0xff]  ;;  %vm3488_vm7 = vcmask 125952  }
 0x1c4   : > { %v12014_v31 = vpop.permute.xlu0 %12013  ;;  %v12021_v49 = vunpack.i.h.bf16 %v12019_v38  ;;  %v12020_v1 = vunpack.i.l.bf16 %v12019_v38  ;;  %v2915_v46 = vld [vmem:[#allocation4 + $0x2] sm:$0xff] }
 0x1c5   : > { %v12016_v10 = vunpack.i.h.bf16 %v12014_v31  ;;  %v12015_v20 = vunpack.i.l.bf16 %v12014_v31 }
 0x1c6   : > { %v2412_v30 = vsel %vm2381_vm8, %v2379_v43, %v12020_v1  ;;  %v2413_v58 = vsel %vm2381_vm8, %v2380_v54, %v12021_v49 }
 0x1c7   : > { %v12029_v2 = vpop.permute.xlu1 %12028  ;;  %v2410_v40 = vsel %vm2381_vm8, %v2377_v57, %v12015_v20  ;;  %v2411_v4 = vsel %vm2381_vm8, %v2378_v59, %v12016_v10 }
 0x1c8   : > { %v12031_v44 = vunpack.i.h.bf16 %v12029_v2  ;;  %v12030_v45 = vunpack.i.l.bf16 %v12029_v2  ;;  %v12024_v35 = vpop.permute.xlu0 %12023 }
 0x1c9   : > { %v12025_v62 = vunpack.i.l.bf16 %v12024_v35  ;;  %v11214_v3 = vpop.f32.mrb[0].mxu0  ;;  %v12026_v21 = vunpack.i.h.bf16 %v12024_v35 }
 0x1ca   : > { %v2618_v52 = vadd.f32 %v11214_v3, %v15840_v48  ;;  %v2609_v5 = vpop.f32.mrb[1].mxu0  ;;  %v2445_v6 = vsel %vm2414_vm9, %v2412_v30, %v12030_v45  ;;  %v2446_v9 = vsel %vm2414_vm9, %v2413_v58, %v12031_v44 }
 0x1cb   : > { %v2443_v41 = vsel %vm2414_vm9, %v2410_v40, %v12025_v62  ;;  %v2610_v11 = vadd.f32 %v15840_v48, %v2609_v5  ;;  %v11215_v12 = vpop.f32.mrb[2].mxu0  ;;  %v12039_v8 = vpop.permute.xlu1 %12038  ;;  %v2444_v23 = vsel %vm2414_vm9, %v2411_v4, %v12026_v21  ;;  %vm3658_vm9 = vcmask 654336  }
 0x1cc   : > { %v2738_v13 = vmax.f32 %v2618_v52, 0.0  ;;  %v2621_v42 = vadd.f32 %v11215_v12, %v15840_v48  ;;  %v12041_v15 = vunpack.i.h.bf16 %v12039_v8  ;;  %v12040_v53 = vunpack.i.l.bf16 %v12039_v8  ;;  %v12034_v18 = vpop.permute.xlu0 %12033  ;;  %v2612_v60 = vpop.f32.mrb[3].mxu0 }
 0x1cd   : > { %v2736_v16 = vmax.f32 %v2610_v11, 0.0  ;;  %v12036_v19 = vunpack.i.h.bf16 %v12034_v18  ;;  %v12035_v34 = vunpack.i.l.bf16 %v12034_v18  ;;  %v2613_v22 = vadd.f32 %v15840_v48, %v2612_v60 }
 0x1ce   : > { %2771 = vst.msk [vmem:[#allocation3 + $0x31] sm:$0xff] %vm606_vm2, %v2738_v13  ;;  %v2739_v61 = vmax.f32 %v2621_v42, 0.0  ;;  %v2477_v24 = vsel %vm711_vm4, %v2445_v6, %v12040_v53  ;;  %v2478_v25 = vsel %vm711_vm4, %v2446_v9, %v12041_v15 }
 0x1cf   : > { %2769 = vst.msk [vmem:[#allocation3 + $0x19] sm:$0xff] %vm606_vm2, %v2736_v16  ;;  %v2475_v26 = vsel %vm711_vm4, %v2443_v41, %v12035_v34  ;;  %v2476_v27 = vsel %vm711_vm4, %v2444_v23, %v12036_v19  ;;  %v2737_v28 = vmax.f32 %v2613_v22, 0.0  ;;  %v2494_v29 = vpack.c.bf16 %v2478_v25, %v2477_v24 }
 0x1d0   : > { %2772 = vst.msk [vmem:[#allocation3 + $0x39] sm:$0xff] %vm606_vm2, %v2739_v61  ;;  %v2493_v33 = vpack.c.bf16 %v2476_v27, %v2475_v26 }
 0x1d1   : > { %2770 = vst.msk [vmem:[#allocation3 + $0x21] sm:$0xff] %vm606_vm2, %v2737_v28 }
 0x1d2   : > { %11240 = vmatprep.mubr.msk.bf16.mxu0 %vm2522_vm10, %v2493_v33 }
 0x1d3   : > { %11241 = vmatmul.mubr.msk.bf16.gmra.mrb[28].mxu0 %vm2522_vm10, %v2494_v29  ;;  %vm3663_vm10 = vcmask 785408  }
 0x1d7   : > { %v2835_v36 = vld [vmem:[#allocation3 + $0x31] ss:$2 sm:$0xff]  ;;  %v2851_v17 = vld [vmem:[#allocation3 + $0x32] ss:$2 sm:$0xff] }
 0x1d8   : > { %v2874_v32 = vmax.f32 %v2835_v36, %v2851_v17  ;;  %v2802_v38 = vld [vmem:[#allocation3 + $0x19] ss:$2 sm:$0xff]  ;;  %v2818_v47 = vld [vmem:[#allocation3 + $0x1a] ss:$2 sm:$0xff] }
 0x1d9   : > { %v2866_v14 = vmax.f32 %v2802_v38, %v2818_v47 }
 0x1db   : > { %v2882_v63 = vmax.f32 %v2866_v14, %v2874_v32 }
 0x1dd   : > { %2891 = vst.msk [vmem:[#allocation4 + $0x11] sm:$0xff] %vm606_vm2, %v2882_v63 }
 0x1e4   : > { %v2908_v31 = vld [vmem:[#allocation4 + $0x11] sm:$0xff] }
 0x1e5   : > { %v12042_v7 = vpack.i.bf16 %v2908_v31, %v2907_v37  ;;  %v2916_v49 = vld [vmem:[#allocation4 + $0x12] sm:$0xff] }
 0x1e6   : > { %v12047_v50 = vpack.i.bf16 %v2916_v49, %v2915_v46  ;;  %v15879_v40 = vld [vmem:[#allocation4 + $0x10] sm:$0xff] }
 0x1e7   : > { %12043 = vrot.lane.b32.xlu0 %v12042_v7, %s20297_s30 }
 0x1e9   : > { %v11218_v1 = vpop.f32.mrb[4].mxu0 }
 0x1ea   : > { %v2634_v51 = vadd.f32 %v11218_v1, %v15840_v48  ;;  %v2625_v10 = vpop.f32.mrb[5].mxu0 }
 0x1eb   : > { %v2626_v20 = vadd.f32 %v15840_v48, %v2625_v10  ;;  %v11219_v39 = vpop.f32.mrb[6].mxu0  ;;  %12048 = vrot.lane.b32.xlu0 %v12047_v50, %s20388_s1 }
 0x1ec   : > { %v2742_v55 = vmax.f32 %v2634_v51, 0.0  ;;  %v2637_v56 = vadd.f32 %v11219_v39, %v15840_v48  ;;  %v2628_v43 = vpop.f32.mrb[7].mxu0 }
 0x1ed   : > { %v2740_v2 = vmax.f32 %v2626_v20, 0.0  ;;  %v2629_v54 = vadd.f32 %v15840_v48, %v2628_v43 }
 0x1ee   : > { %2775 = vst.msk [vmem:[#allocation3 + $0x61] sm:$0xff] %vm606_vm2, %v2742_v55  ;;  %v2743_v57 = vmax.f32 %v2637_v56, 0.0 }
 0x1ef   : > { %2773 = vst.msk [vmem:[#allocation3 + $0x49] sm:$0xff] %vm606_vm2, %v2740_v2  ;;  %v2741_v44 = vmax.f32 %v2629_v54, 0.0 }
 0x1f0   : > { %2776 = vst.msk [vmem:[#allocation3 + $0x69] sm:$0xff] %vm606_vm2, %v2743_v57 }
 0x1f1   : > { %2774 = vst.msk [vmem:[#allocation3 + $0x51] sm:$0xff] %vm606_vm2, %v2741_v44 }
 0x1f7   : > { %v2837_v45 = vld [vmem:[#allocation3 + $0x61] ss:$2 sm:$0xff]  ;;  %v2853_v35 = vld [vmem:[#allocation3 + $0x62] ss:$2 sm:$0xff] }
 0x1f8   : > { %v2875_v59 = vmax.f32 %v2837_v45, %v2853_v35  ;;  %v2804_v30 = vld [vmem:[#allocation3 + $0x49] ss:$2 sm:$0xff]  ;;  %v2820_v58 = vld [vmem:[#allocation3 + $0x4a] ss:$2 sm:$0xff] }
 0x1f9   : > { %v2867_v62 = vmax.f32 %v2804_v30, %v2820_v58 }
 0x1fb   : > { %v2883_v3 = vmax.f32 %v2867_v62, %v2875_v59 }
 0x1fd   : > { %2892 = vst.msk [vmem:[#allocation4 + $0x21] sm:$0xff] %vm606_vm2, %v2883_v3 }
 0x204   : > { %v15881_v4 = vld [vmem:[#allocation4 + $0x20] sm:$0xff] }
 0x205   : > { %v12052_v21 = vpack.i.bf16 %v15881_v4, %v15879_v40  ;;  %v2932_v52 = vld [vmem:[#allocation4 + $0x21] sm:$0xff] }
 0x206   : > { %v12057_v6 = vpack.i.bf16 %v2932_v52, %v2908_v31  ;;  %v2940_v11 = vld [vmem:[#allocation4 + $0x22] sm:$0xff] }
 0x207   : > { %12053 = vrot.lane.b32.xlu0 %v12052_v21, %s20295_s23  ;;  %v12062_v60 = vpack.i.bf16 %v2940_v11, %v2916_v49 }
 0x209   : > { %v11222_v5 = vpop.f32.mrb[8].mxu0 }
 0x20a   : > { %v2650_v9 = vadd.f32 %v11222_v5, %v15840_v48  ;;  %v2641_v41 = vpop.f32.mrb[9].mxu0  ;;  %v14306_v5 = vld [vmem:[%s20277_s5] sm:$0xff]  }
 0x20b   : > { %v2642_v12 = vadd.f32 %v15840_v48, %v2641_v41  ;;  %v11223_v8 = vpop.f32.mrb[10].mxu0  ;;  %12058 = vrot.lane.b32.xlu0 %v12057_v6, %s20384_s22  ;;  %11244 = vmatprep.subr.bf16.mxu1 %v14306_v5 }
 0x20c   : > { %v2746_v13 = vmax.f32 %v2650_v9, 0.0  ;;  %v2653_v42 = vadd.f32 %v11223_v8, %v15840_v48  ;;  %v2644_v15 = vpop.f32.mrb[11].mxu0  ;;  %11245 = vmatpush3.bf16.msra.mxu1 %v14306_v5  ;;  %v14307_v8 = vld [vmem:[%s20277_s5 + $0x8] sm:$0xff]  }
 0x20d   : > { %v2744_v53 = vmax.f32 %v2642_v12, 0.0  ;;  %v2645_v18 = vadd.f32 %v15840_v48, %v2644_v15  ;;  %11246 = vmatprep.subr.bf16.mxu1 %v14307_v8 }
 0x20e   : > { %2779 = vst.msk [vmem:[#allocation3 + $0x91] sm:$0xff] %vm606_vm2, %v2746_v13  ;;  %v2747_v16 = vmax.f32 %v2653_v42, 0.0  ;;  %v14308_v13 = vld [vmem:[%s20277_s5 + $0x10] sm:$0xff]  }
 0x20f   : > { %2777 = vst.msk [vmem:[#allocation3 + $0x79] sm:$0xff] %vm606_vm2, %v2744_v53  ;;  %v2745_v19 = vmax.f32 %v2645_v18, 0.0  ;;  %12063 = vrot.lane.b32.xlu0 %v12062_v60, %s20293_s19 }
 0x210   : > { %2780 = vst.msk [vmem:[#allocation3 + $0x99] sm:$0xff] %vm606_vm2, %v2747_v16  ;;  %11247 = vmatpush3.bf16.msra.mxu1 %v14307_v8 }
 0x211   : > { %2778 = vst.msk [vmem:[#allocation3 + $0x81] sm:$0xff] %vm606_vm2, %v2745_v19  ;;  %11248 = vmatprep.subr.bf16.mxu1 %v14308_v13 }
 0x214   : > { %11249 = vmatpush3.bf16.msra.mxu1 %v14308_v13 }
 0x217   : > { %v2839_v34 = vld [vmem:[#allocation3 + $0x91] ss:$2 sm:$0xff]  ;;  %v2855_v22 = vld [vmem:[#allocation3 + $0x92] ss:$2 sm:$0xff] }
 0x218   : > { %v2876_v23 = vmax.f32 %v2839_v34, %v2855_v22  ;;  %v2806_v61 = vld [vmem:[#allocation3 + $0x79] ss:$2 sm:$0xff]  ;;  %v2822_v24 = vld [vmem:[#allocation3 + $0x7a] ss:$2 sm:$0xff]  ;;  %v14310_v22 = vld [vmem:[%s20277_s5 + $0x20] ss:$0 sps:$4 sm:$0xff]  }
 0x219   : > { %v2868_v25 = vmax.f32 %v2806_v61, %v2822_v24  ;;  %v14309_v34 = vld [vmem:[%s20277_s5 + $0x18] sm:$0xff]  }
 0x21a   : > { %11250 = vmatprep.subr.bf16.mxu1 %v14309_v34 }
 0x21b   : > { %v2884_v26 = vmax.f32 %v2868_v25, %v2876_v23  ;;  %11251 = vmatpush3.bf16.msra.mxu1 %v14309_v34  ;;  %v3358_v23 = vsel %vm3356_vm12, %v14310_v22, 0 }
 0x21c   : > { %11367 = vmatprep.subr.msk.bf16.mxu1 %vm3356_vm12, %v14310_v22 }
 0x21d   : > { %2893 = vst.msk [vmem:[#allocation4 + $0x31] sm:$0xff] %vm606_vm2, %v2884_v26 }
 0x21f   : > { %11253 = vmatpush3.bf16.msra.mxu1 %v3358_v23  ;;  %v2899_v23 = vld [vmem:[#allocation4] sm:$0xff] }
 0x224   : > { %v2910_v27 = vld [vmem:[#allocation4 + $0x31] sm:$0xff] }
 0x225   : > { %v15897_v28 = vld [vmem:[#allocation4 + $0x30] sm:$0xff]  ;;  %v12067_v29 = vpack.i.bf16 %v2910_v27, %v2932_v52 }
 0x226   : > { %v12077_v33 = vpack.i.bf16 %v15897_v28, %v15881_v4  ;;  %v2918_v36 = vld [vmem:[#allocation4 + $0x32] sm:$0xff] }
 0x227   : > { %12068 = vrot.lane.b32.xlu1 %v12067_v29, %s20297_s30  ;;  %v12072_v32 = vpack.i.bf16 %v2918_v36, %v2940_v11 }
 0x228   : > { %12078 = vrot.lane.b32.xlu0 %v12077_v33, %s20301_s20 }
 0x229   : > { %v11226_v17 = vpop.f32.mrb[12].mxu0 }
 0x22a   : > { %v2666_v38 = vadd.f32 %v11226_v17, %v15840_v48  ;;  %v2657_v47 = vpop.f32.mrb[13].mxu0 }
 0x22b   : > { %v2658_v14 = vadd.f32 %v15840_v48, %v2657_v47  ;;  %v11227_v63 = vpop.f32.mrb[14].mxu0  ;;  %12073 = vrot.lane.b32.xlu1 %v12072_v32, %s20388_s1 }
 0x22c   : > { %12083 = vrot.lane.b32.xlu0 %v12067_v29, %s20291_s26  ;;  %v2750_v37 = vmax.f32 %v2666_v38, 0.0  ;;  %v2669_v31 = vadd.f32 %v11227_v63, %v15840_v48  ;;  %v2660_v7 = vpop.f32.mrb[15].mxu0 }
 0x22d   : > { %v2748_v46 = vmax.f32 %v2658_v14, 0.0  ;;  %v2661_v49 = vadd.f32 %v15840_v48, %v2660_v7 }
 0x22e   : > { %2783 = vst.msk [vmem:[#allocation3 + $0xc1] sm:$0xff] %vm606_vm2, %v2750_v37  ;;  %v2751_v1 = vmax.f32 %v2669_v31, 0.0 }
 0x22f   : > { %2781 = vst.msk [vmem:[#allocation3 + $0xa9] sm:$0xff] %vm606_vm2, %v2748_v46  ;;  %v2749_v50 = vmax.f32 %v2661_v49, 0.0 }
 0x230   : > { %12088 = vrot.lane.b32.xlu0 %v12072_v32, %s20386_s27  ;;  %2784 = vst.msk [vmem:[#allocation3 + $0xc9] sm:$0xff] %vm606_vm2, %v2751_v1 }
 0x231   : > { %2782 = vst.msk [vmem:[#allocation3 + $0xb1] sm:$0xff] %vm606_vm2, %v2749_v50 }
 0x237   : > { %v2841_v51 = vld [vmem:[#allocation3 + $0xc1] ss:$2 sm:$0xff]  ;;  %v2857_v10 = vld [vmem:[#allocation3 + $0xc2] ss:$2 sm:$0xff] }
 0x238   : > { %v2877_v20 = vmax.f32 %v2841_v51, %v2857_v10  ;;  %v2808_v39 = vld [vmem:[#allocation3 + $0xa9] ss:$2 sm:$0xff]  ;;  %v2824_v55 = vld [vmem:[#allocation3 + $0xaa] ss:$2 sm:$0xff] }
 0x239   : > { %v2869_v56 = vmax.f32 %v2808_v39, %v2824_v55 }
 0x23b   : > { %v2885_v43 = vmax.f32 %v2869_v56, %v2877_v20 }
 0x23d   : > { %2894 = vst.msk [vmem:[#allocation4 + $0x41] sm:$0xff] %vm606_vm2, %v2885_v43 }
 0x244   : > { %v15915_v2 = vld [vmem:[#allocation4 + $0x40] sm:$0xff] }
 0x245   : > { %v12092_v54 = vpack.i.bf16 %v15915_v2, %v15897_v28  ;;  %v2934_v57 = vld [vmem:[#allocation4 + $0x41] sm:$0xff] }
 0x246   : > { %v12097_v45 = vpack.i.bf16 %v2934_v57, %v2910_v27  ;;  %v2942_v30 = vld [vmem:[#allocation4 + $0x42] sm:$0xff] }
 0x247   : > { %12093 = vrot.lane.b32.xlu1 %v12092_v54, %s20295_s23  ;;  %v12102_v41 = vpack.i.bf16 %v2942_v30, %v2918_v36 }
 0x249   : > { %v11230_v44 = vpop.f32.mrb[16].mxu0 }
 0x24a   : > { %v2682_v35 = vadd.f32 %v11230_v44, %v15840_v48  ;;  %v2673_v59 = vpop.f32.mrb[17].mxu0 }
 0x24b   : > { %v2674_v58 = vadd.f32 %v15840_v48, %v2673_v59  ;;  %v11231_v62 = vpop.f32.mrb[18].mxu0  ;;  %12098 = vrot.lane.b32.xlu1 %v12097_v45, %s20384_s22 }
 0x24c   : > { %v2754_v3 = vmax.f32 %v2682_v35, 0.0  ;;  %v2685_v21 = vadd.f32 %v11231_v62, %v15840_v48  ;;  %v2676_v52 = vpop.f32.mrb[19].mxu0 }
 0x24d   : > { %v2752_v6 = vmax.f32 %v2674_v58, 0.0  ;;  %v2677_v9 = vadd.f32 %v15840_v48, %v2676_v52 }
 0x24e   : > { %2787 = vst.msk [vmem:[#allocation3 + $0xf1] sm:$0xff] %vm606_vm2, %v2754_v3  ;;  %v2755_v11 = vmax.f32 %v2685_v21, 0.0 }
 0x24f   : > { %2785 = vst.msk [vmem:[#allocation3 + $0xd9] sm:$0xff] %vm606_vm2, %v2752_v6  ;;  %v2753_v12 = vmax.f32 %v2677_v9, 0.0  ;;  %12103 = vrot.lane.b32.xlu1 %v12102_v41, %s20293_s19 }
 0x250   : > { %2788 = vst.msk [vmem:[#allocation3 + $0xf9] sm:$0xff] %vm606_vm2, %v2755_v11 }
 0x251   : > { %2786 = vst.msk [vmem:[#allocation3 + $0xe1] sm:$0xff] %vm606_vm2, %v2753_v12 }
 0x257   : > { %v2843_v42 = vld [vmem:[#allocation3 + $0xf1] ss:$2 sm:$0xff]  ;;  %v2859_v15 = vld [vmem:[#allocation3 + $0xf2] ss:$2 sm:$0xff] }
 0x258   : > { %v2878_v53 = vmax.f32 %v2843_v42, %v2859_v15  ;;  %v2810_v18 = vld [vmem:[#allocation3 + $0xd9] ss:$2 sm:$0xff]  ;;  %v2826_v60 = vld [vmem:[#allocation3 + $0xda] ss:$2 sm:$0xff] }
 0x259   : > { %v2870_v16 = vmax.f32 %v2810_v18, %v2826_v60  ;;  %v12044_v55 = vpop.permute.xlu0 %12043 }
 0x25b   : > { %v2886_v19 = vmax.f32 %v2870_v16, %v2878_v53  ;;  %v12046_v16 = vunpack.i.h.bf16 %v12044_v55 }
 0x25d   : > { %2895 = vst.msk [vmem:[#allocation4 + $0x51] sm:$0xff] %vm606_vm2, %v2886_v19  ;;  %v12049_v43 = vpop.permute.xlu0 %12048  ;;  %v12045_v19 = vunpack.i.l.bf16 %v12044_v55 }
 0x264   : > { %v15948_v61 = vld [vmem:[#allocation4 + $0x50] sm:$0xff] }
 0x265   : > { %v2967_v24 = vld [vmem:[#allocation4 + $0x52] sm:$0xff]  ;;  %v12107_v25 = vpack.i.bf16 %v15948_v61, %v15915_v2 }
 0x266   : > { %v12122_v26 = vpack.i.bf16 %v2967_v24, %v2942_v30  ;;  %v2959_v27 = vld [vmem:[#allocation4 + $0x51] sm:$0xff] }
 0x267   : > { %12108 = vrot.lane.b32.xlu1 %v12107_v25, %s20301_s20  ;;  %v12112_v33 = vpack.i.bf16 %v2959_v27, %v2934_v57  ;;  %v12050_v25 = vunpack.i.l.bf16 %v12049_v43 }
 0x268   : > { %12123 = vrot.lane.b32.xlu0 %v12122_v26, %s20386_s27 }
 0x269   : > { %v11234_v29 = vpop.f32.mrb[20].mxu0 }
 0x26a   : > { %v2698_v36 = vadd.f32 %v11234_v29, %v15840_v48  ;;  %v2689_v17 = vpop.f32.mrb[21].mxu0 }
 0x26b   : > { %v2690_v32 = vadd.f32 %v15840_v48, %v2689_v17  ;;  %v11235_v38 = vpop.f32.mrb[22].mxu0  ;;  %12113 = vrot.lane.b32.xlu1 %v12112_v33, %s20291_s26  ;;  %v3228_v17 = vsel %vm606_vm2, %v2899_v23, %v12045_v19 }
 0x26c   : > { %12128 = vrot.lane.b32.xlu0 %v12122_v26, %s20388_s1  ;;  %v2758_v47 = vmax.f32 %v2698_v36, 0.0  ;;  %v2701_v14 = vadd.f32 %v11235_v38, %v15840_v48  ;;  %v2692_v63 = vpop.f32.mrb[23].mxu0 }
 0x26d   : > { %v2756_v37 = vmax.f32 %v2690_v32, 0.0  ;;  %v2693_v31 = vadd.f32 %v15840_v48, %v2692_v63  ;;  %v3229_v32 = vsel %vm606_vm2, %v15879_v40, %v12046_v16  ;;  %v3236_v63 = vsel %vm682_vm3, %v3228_v17, %v12050_v25 }
 0x26e   : > { %2791 = vst.msk [vmem:[#allocation3 + $0x121] sm:$0xff] %vm606_vm2, %v2758_v47  ;;  %v2759_v7 = vmax.f32 %v2701_v14, 0.0 }
 0x26f   : > { %2789 = vst.msk [vmem:[#allocation3 + $0x109] sm:$0xff] %vm606_vm2, %v2756_v37  ;;  %v2757_v46 = vmax.f32 %v2693_v31, 0.0  ;;  %12118 = vrot.lane.b32.xlu1 %v12112_v33, %s20297_s30 }
 0x270   : > { %2792 = vst.msk [vmem:[#allocation3 + $0x129] sm:$0xff] %vm606_vm2, %v2759_v7 }
 0x271   : > { %2790 = vst.msk [vmem:[#allocation3 + $0x111] sm:$0xff] %vm606_vm2, %v2757_v46 }
 0x277   : > { %v2845_v49 = vld [vmem:[#allocation3 + $0x121] ss:$2 sm:$0xff]  ;;  %v2861_v1 = vld [vmem:[#allocation3 + $0x122] ss:$2 sm:$0xff] }
 0x278   : > { %v2879_v50 = vmax.f32 %v2845_v49, %v2861_v1  ;;  %v2812_v51 = vld [vmem:[#allocation3 + $0x109] ss:$2 sm:$0xff]  ;;  %v2828_v10 = vld [vmem:[#allocation3 + $0x10a] ss:$2 sm:$0xff] }
 0x279   : > { %v2871_v20 = vmax.f32 %v2812_v51, %v2828_v10  ;;  %v12054_v44 = vpop.permute.xlu0 %12053 }
 0x27a   : > { %v12056_v26 = vunpack.i.h.bf16 %v12054_v44 }
 0x27b   : > { %v2887_v39 = vmax.f32 %v2871_v20, %v2879_v50 }
 0x27d   : > { %2896 = vst.msk [vmem:[#allocation4 + $0x61] sm:$0xff] %vm606_vm2, %v2887_v39  ;;  %v12059_v12 = vpop.permute.xlu0 %12058 }
 0x27e   : > { %v12061_v33 = vunpack.i.h.bf16 %v12059_v12  ;;  %v12060_v36 = vunpack.i.l.bf16 %v12059_v12 }
 0x281   : > { %v12064_v13 = vpop.permute.xlu0 %12063 }
 0x282   : > { %v12066_v38 = vunpack.i.h.bf16 %v12064_v13  ;;  %v12065_v47 = vunpack.i.l.bf16 %v12064_v13 }
 0x284   : > { %v15966_v56 = vld [vmem:[#allocation4 + $0x60] sm:$0xff] }
 0x285   : > { %v12132_v54 = vpack.i.bf16 %v15966_v56, %v15948_v61  ;;  %v15970_v57 = vld [vmem:[#allocation4 + $0x61] sm:$0xff] }
 0x286   : > { %v12137_v35 = vpack.i.bf16 %v15970_v57, %v2959_v27  ;;  %v15975_v58 = vld [vmem:[#allocation4 + $0x62] sm:$0xff]  ;;  %v12055_v27 = vunpack.i.l.bf16 %v12054_v44 }
 0x287   : > { %12133 = vrot.lane.b32.xlu0 %v12132_v54, %s20295_s23  ;;  %v12142_v41 = vpack.i.bf16 %v15975_v58, %v2967_v24  ;;  %v12051_v24 = vunpack.i.h.bf16 %v12049_v43 }
 0x288   : > { %v3244_v46 = vsel %vm2381_vm8, %v3236_v63, %v12055_v27 }
 0x289   : > { %v11238_v45 = vpop.f32.mrb[24].mxu0  ;;  %v3237_v37 = vsel %vm682_vm3, %v3229_v32, %v12051_v24  ;;  %v3252_v51 = vsel %vm711_vm4, %v3244_v46, %v12060_v36 }
 0x28a   : > { %v2714_v59 = vadd.f32 %v11238_v45, %v15840_v48  ;;  %v2705_v30 = vpop.f32.mrb[25].mxu0  ;;  %v3245_v49 = vsel %vm2381_vm8, %v3237_v37, %v12056_v26  ;;  %v3261_v10 = vsel %vm3260_vm13, %v3252_v51, %v12065_v47  ;;  %v2955_v47 = vld [vmem:[#allocation4 + $0x90] sm:$0xff] }
 0x28b   : > { %v2706_v62 = vadd.f32 %v15840_v48, %v2705_v30  ;;  %v11239_v3 = vpop.f32.mrb[26].mxu0  ;;  %12138 = vrot.lane.b32.xlu0 %v12137_v35, %s20384_s22  ;;  %v3253_v40 = vsel %vm711_vm4, %v3245_v49, %v12061_v33  ;;  %v2963_v37 = vld [vmem:[#allocation4 + $0x91] sm:$0xff] }
 0x28c   : > { %v2762_v21 = vmax.f32 %v2714_v59, 0.0  ;;  %v2717_v52 = vadd.f32 %v11239_v3, %v15840_v48  ;;  %v2708_v5 = vpop.f32.mrb[27].mxu0  ;;  %v3262_v20 = vsel %vm3260_vm13, %v3253_v40, %v12066_v38 }
 0x28d   : > { %v2760_v6 = vmax.f32 %v2706_v62, 0.0  ;;  %v2709_v9 = vadd.f32 %v15840_v48, %v2708_v5 }
 0x28e   : > { %2795 = vst.msk [vmem:[#allocation3 + $0x151] sm:$0xff] %vm606_vm2, %v2762_v21  ;;  %v2763_v11 = vmax.f32 %v2717_v52, 0.0 }
 0x28f   : > { %2793 = vst.msk [vmem:[#allocation3 + $0x139] sm:$0xff] %vm606_vm2, %v2760_v6  ;;  %v2761_v8 = vmax.f32 %v2709_v9, 0.0  ;;  %12143 = vrot.lane.b32.xlu0 %v12142_v41, %s20293_s19 }
 0x290   : > { %2796 = vst.msk [vmem:[#allocation3 + $0x159] sm:$0xff] %vm606_vm2, %v2763_v11 }
 0x291   : > { %2794 = vst.msk [vmem:[#allocation3 + $0x141] sm:$0xff] %vm606_vm2, %v2761_v8 }
 0x297   : > { %v2847_v42 = vld [vmem:[#allocation3 + $0x151] ss:$2 sm:$0xff]  ;;  %v2863_v15 = vld [vmem:[#allocation3 + $0x152] ss:$2 sm:$0xff] }
 0x298   : > { %v2880_v53 = vmax.f32 %v2847_v42, %v2863_v15  ;;  %v2814_v18 = vld [vmem:[#allocation3 + $0x139] ss:$2 sm:$0xff]  ;;  %v2830_v60 = vld [vmem:[#allocation3 + $0x13a] ss:$2 sm:$0xff] }
 0x299   : > { %v2872_v34 = vmax.f32 %v2814_v18, %v2830_v60  ;;  %v16026_v25 = vpop.permute.xlu1 %12068 }
 0x29a   : > { %v12079_v22 = vpop.permute.xlu0 %12078  ;;  %v12071_v49 = vunpack.i.h.bf16 %v16026_v25 }
 0x29b   : > { %v2888_v29 = vmax.f32 %v2872_v34, %v2880_v53  ;;  %v12081_v31 = vunpack.i.h.bf16 %v12079_v22  ;;  %v12080_v7 = vunpack.i.l.bf16 %v12079_v22 }
 0x29d   : > { %2897 = vst.msk [vmem:[#allocation4 + $0x71] sm:$0xff] %vm606_vm2, %v2888_v29  ;;  %v3270_v54 = vsel %vm3269_vm14, %v3261_v10, %v12080_v7  ;;  %v3271_v44 = vsel %vm3269_vm14, %v3262_v20, %v12081_v31  ;;  %v16030_v33 = vpop.permute.xlu1 %12073  ;;  %v2971_v7 = vld [vmem:[#allocation4 + $0x92] sm:$0xff] }
 0x29e   : > { %v12084_v14 = vpop.permute.xlu0 %12083  ;;  %v12076_v51 = vunpack.i.h.bf16 %v16030_v33  ;;  %v12075_v40 = vunpack.i.l.bf16 %v16030_v33 }
 0x29f   : > { %v12086_v1 = vunpack.i.h.bf16 %v12084_v14  ;;  %v12085_v50 = vunpack.i.l.bf16 %v12084_v14 }
 0x2a1   : > { %v3279_v45 = vsel %vm3278_vm15, %v3270_v54, %v12085_v50  ;;  %v3280_v35 = vsel %vm3278_vm15, %v3271_v44, %v12086_v1  ;;  %v12070_v1 = vunpack.i.l.bf16 %v16026_v25  ;;  %v3231_v54 = vsel %vm606_vm2, %v15897_v28, %v12071_v49 }
 0x2a2   : > { %v12089_v39 = vpop.permute.xlu0 %12088 }
 0x2a3   : > { %v12091_v55 = vunpack.i.h.bf16 %v12089_v39  ;;  %v12090_v43 = vunpack.i.l.bf16 %v12089_v39  ;;  %v3230_v44 = vsel %vm606_vm2, %v15881_v4, %v12070_v1 }
 0x2a4   : > { %v2914_v59 = vld [vmem:[#allocation4 + $0x71] sm:$0xff] }
 0x2a5   : > { %v16003_v30 = vld [vmem:[#allocation4 + $0x70] sm:$0xff]  ;;  %v3288_v62 = vsel %vm3287_vm0, %v3279_v45, %v12090_v43  ;;  %v3289_v3 = vsel %vm3287_vm0, %v3280_v35, %v12091_v55  ;;  %v12147_v21 = vpack.i.bf16 %v2914_v59, %v15970_v57 }
 0x2a6   : > { %v12157_v52 = vpack.i.bf16 %v16003_v30, %v15966_v56  ;;  %v3296_v5 = vpack.c.bf16 %v3289_v3, %v3288_v62  ;;  %v11242_v6 = vpop.f32.mrb[28].mxu0  ;;  %v2922_v9 = vld [vmem:[#allocation4 + $0x72] sm:$0xff]  ;;  %v3239_v62 = vsel %vm682_vm3, %v3231_v54, %v12076_v51 }
 0x2a7   : > { %v2730_v41 = vadd.f32 %v11242_v6, %v15840_v48  ;;  %v2721_v11 = vpop.f32.mrb[29].mxu0  ;;  %12148 = vrot.lane.b32.xlu1 %v12147_v21, %s20297_s30  ;;  %v12152_v15 = vpack.i.bf16 %v2922_v9, %v15975_v58  ;;  %s20443_s30 = smov 56  }
 0x2a8   : > { %12158 = vrot.lane.b32.xlu0 %v12157_v52, %s20301_s20  ;;  %v2722_v12 = vadd.f32 %v15840_v48, %v2721_v11  ;;  %11254 = vmatprep.mubr.msk.bf16.mxu1 %vm3343_vm1, %v3296_v5  ;;  %v11243_v8 = vpop.f32.mrb[30].mxu0 }
 0x2a9   : > { %v2766_v57 = vmax.f32 %v2730_v41, 0.0  ;;  %v2733_v13 = vadd.f32 %v11243_v8, %v15840_v48  ;;  %v2724_v42 = vpop.f32.mrb[31].mxu0 }
 0x2aa   : > { %v2764_v53 = vmax.f32 %v2722_v12, 0.0  ;;  %v2725_v18 = vadd.f32 %v15840_v48, %v2724_v42 }
 0x2ab   : > { %2799 = vst.msk [vmem:[#allocation3 + $0x181] sm:$0xff] %vm606_vm2, %v2766_v57  ;;  %v2767_v60 = vmax.f32 %v2733_v13, 0.0  ;;  %12153 = vrot.lane.b32.xlu1 %v12152_v15, %s20388_s1 }
 0x2ac   : > { %12163 = vrot.lane.b32.xlu0 %v12147_v21, %s20291_s26  ;;  %2797 = vst.msk [vmem:[#allocation3 + $0x169] sm:$0xff] %vm606_vm2, %v2764_v53  ;;  %v2765_v16 = vmax.f32 %v2725_v18, 0.0 }
 0x2ad   : > { %2800 = vst.msk [vmem:[#allocation3 + $0x189] sm:$0xff] %vm606_vm2, %v2767_v60 }
 0x2ae   : > { %2798 = vst.msk [vmem:[#allocation3 + $0x171] sm:$0xff] %vm606_vm2, %v2765_v16 }
 0x2b0   : > { %12168 = vrot.lane.b32.xlu0 %v12152_v15, %s20386_s27 }
 0x2b4   : > { %v2849_v58 = vld [vmem:[#allocation3 + $0x181] ss:$2 sm:$0xff]  ;;  %v2865_v19 = vld [vmem:[#allocation3 + $0x182] ss:$2 sm:$0xff] }
 0x2b5   : > { %v2881_v34 = vmax.f32 %v2849_v58, %v2865_v19  ;;  %v2816_v48 = vld [vmem:[#allocation3 + $0x169] ss:$2 sm:$0xff]  ;;  %v2832_v22 = vld [vmem:[#allocation3 + $0x16a] ss:$2 sm:$0xff] }
 0x2b6   : > { %v2873_v23 = vmax.f32 %v2816_v48, %v2832_v22 }
 0x2b8   : > { %v2889_v24 = vmax.f32 %v2873_v23, %v2881_v34 }
 0x2b9   : > { %v16033_v32 = vpop.permute.xlu1 %12093 }
 0x2ba   : > { %2898 = vst.msk [vmem:[#allocation4 + $0x81] sm:$0xff] %vm606_vm2, %v2889_v24  ;;  %v12096_v10 = vunpack.i.h.bf16 %v16033_v32  ;;  %v12095_v20 = vunpack.i.l.bf16 %v16033_v32 }
 0x2bc   : > { %v3247_v5 = vsel %vm2381_vm8, %v3239_v62, %v12096_v10 }
 0x2bd   : > { %v12099_v63 = vpop.permute.xlu1 %12098 }
 0x2be   : > { %v12101_v39 = vunpack.i.h.bf16 %v12099_v63  ;;  %v12100_v55 = vunpack.i.l.bf16 %v12099_v63 }
 0x2c0   : > { %v3255_v28 = vsel %vm711_vm4, %v3247_v5, %v12101_v39 }
 0x2c1   : > { %v2930_v26 = vld [vmem:[#allocation4 + $0x80] sm:$0xff]  ;;  %v12104_v46 = vpop.permute.xlu1 %12103 }
 0x2c2   : > { %v12172_v27 = vpack.i.bf16 %v2930_v26, %v16003_v30  ;;  %v2938_v29 = vld [vmem:[#allocation4 + $0x81] sm:$0xff]  ;;  %v12187_v14 = vpack.i.bf16 %v2955_v47, %v2930_v26  ;;  %v12106_v45 = vunpack.i.h.bf16 %v12104_v46  ;;  %v12105_v35 = vunpack.i.l.bf16 %v12104_v46 }
 0x2c3   : > { %v12177_v36 = vpack.i.bf16 %v2938_v29, %v2914_v59  ;;  %v2946_v17 = vld [vmem:[#allocation4 + $0x82] sm:$0xff]  ;;  %v12192_v31 = vpack.i.bf16 %v2963_v37, %v2938_v29  ;;  %v3238_v59 = vsel %vm682_vm3, %v3230_v44, %v12075_v40 }
 0x2c4   : > { %12173 = vrot.lane.b32.xlu1 %v12172_v27, %s20295_s23  ;;  %v12182_v38 = vpack.i.bf16 %v2946_v17, %v2922_v9  ;;  %v12197_v50 = vpack.i.bf16 %v2971_v7, %v2946_v17  ;;  %v3246_v52 = vsel %vm2381_vm8, %v3238_v59, %v12095_v20  ;;  %v3264_v11 = vsel %vm3260_vm13, %v3255_v28, %v12106_v45  ;;  %s20563_s23 = smov 64  }
 0x2c5   : > { %v3254_v9 = vsel %vm711_vm4, %v3246_v52, %v12100_v55 }
 0x2c6   : > { %v3263_v4 = vsel %vm3260_vm13, %v3254_v9, %v12105_v35 }
 0x2c8   : > { %12178 = vrot.lane.b32.xlu1 %v12177_v36, %s20384_s22 }
 0x2cc   : > { %12183 = vrot.lane.b32.xlu1 %v12182_v38, %s20293_s19  ;;  %s20439_s19 = smov 40  }
 0x2d0   : > { %12188 = vrot.lane.b32.xlu1 %v12187_v14, %s20301_s20 }
 0x2d4   : > { %12193 = vrot.lane.b32.xlu1 %v12192_v31, %s20291_s26  ;;  %s20442_s26 = smov 48  }
 0x2d8   : > { %12198 = vrot.lane.b32.xlu1 %v12197_v50, %s20386_s27 }
 0x2d9   : > { %v12109_v43 = vpop.permute.xlu1 %12108 }
 0x2da   : > { %v12111_v3 = vunpack.i.h.bf16 %v12109_v43  ;;  %v12110_v21 = vunpack.i.l.bf16 %v12109_v43  ;;  %v12124_v6 = vpop.permute.xlu0 %12123 }
 0x2db   : > { %v12126_v42 = vunpack.i.h.bf16 %v12124_v6  ;;  %v12125_v15 = vunpack.i.l.bf16 %v12124_v6 }
 0x2dc   : > { %v3272_v57 = vsel %vm3269_vm14, %v3263_v4, %v12110_v21  ;;  %v3273_v13 = vsel %vm3269_vm14, %v3264_v11, %v12111_v3 }
 0x2dd   : > { %v12114_v41 = vpop.permute.xlu1 %12113 }
 0x2de   : > { %v12116_v12 = vunpack.i.h.bf16 %v12114_v41  ;;  %v12115_v8 = vunpack.i.l.bf16 %v12114_v41  ;;  %v12129_v19 = vpop.permute.xlu0 %12128 }
 0x2df   : > { %v12131_v17 = vunpack.i.h.bf16 %v12129_v19  ;;  %v12130_v32 = vunpack.i.l.bf16 %v12129_v19 }
 0x2e0   : > { %v3281_v53 = vsel %vm3278_vm15, %v3272_v57, %v12115_v8  ;;  %v3282_v18 = vsel %vm3278_vm15, %v3273_v13, %v12116_v12 }
 0x2e1   : > { %v3290_v60 = vsel %vm3287_vm0, %v3281_v53, %v12125_v15  ;;  %v3291_v16 = vsel %vm3287_vm0, %v3282_v18, %v12126_v42  ;;  %v12119_v22 = vpop.permute.xlu1 %12118 }
 0x2e2   : > { %v3297_v58 = vpack.c.bf16 %v3291_v16, %v3290_v60  ;;  %v12121_v24 = vunpack.i.h.bf16 %v12119_v22  ;;  %v12120_v25 = vunpack.i.l.bf16 %v12119_v22 }
 0x2e4   : > { %11255 = vmatmul.mubr.msk.bf16.vlgmr.msra.gmra.mrb[0].mxu1 %vm3343_vm1, %v3297_v58  ;;  %v3233_v27 = vsel %vm606_vm2, %v15948_v61, %v12121_v24  ;;  %v3232_v29 = vsel %vm606_vm2, %v15915_v2, %v12120_v25 }
 0x2e5   : > { %v3240_v31 = vsel %vm682_vm3, %v3232_v29, %v12130_v32  ;;  %v3241_v7 = vsel %vm682_vm3, %v3233_v27, %v12131_v17 }
 0x2f9   : > { %v12134_v34 = vpop.permute.xlu0 %12133 }
 0x2fa   : > { %v12136_v33 = vunpack.i.h.bf16 %v12134_v34  ;;  %v12135_v36 = vunpack.i.l.bf16 %v12134_v34 }
 0x2fc   : > { %v3248_v61 = vsel %vm2381_vm8, %v3240_v31, %v12135_v36  ;;  %v3249_v1 = vsel %vm2381_vm8, %v3241_v7, %v12136_v33  ;;  %v3521_v31 = vld [vmem:[#allocation6 + $0x28] sm:$0xf] }
 0x2fd   : > { %v12139_v48 = vpop.permute.xlu0 %12138  ;;  %3620 = vrot.lane.b32.xlu1 %v3521_v31, %s20369_s28 }
 0x2fe   : > { %v12141_v38 = vunpack.i.h.bf16 %v12139_v48  ;;  %v12140_v47 = vunpack.i.l.bf16 %v12139_v48 }
 0x300   : > { %v3256_v51 = vsel %vm711_vm4, %v3248_v61, %v12140_v47  ;;  %v3257_v40 = vsel %vm711_vm4, %v3249_v1, %v12141_v38 }
 0x301   : > { %v12144_v23 = vpop.permute.xlu0 %12143 }
 0x302   : > { %v12146_v14 = vunpack.i.h.bf16 %v12144_v23  ;;  %v12145_v63 = vunpack.i.l.bf16 %v12144_v23 }
 0x304   : > { %v3265_v10 = vsel %vm3260_vm13, %v3256_v51, %v12145_v63  ;;  %v3266_v20 = vsel %vm3260_vm13, %v3257_v40, %v12146_v14 }
 0x319   : > { %v12149_v21 = vpop.permute.xlu1 %12148 }
 0x31a   : > { %v12159_v26 = vpop.permute.xlu0 %12158  ;;  %v12151_v28 = vunpack.i.h.bf16 %v12149_v21  ;;  %v12150_v41 = vunpack.i.l.bf16 %v12149_v21 }
 0x31b   : > { %v12161_v46 = vunpack.i.h.bf16 %v12159_v26  ;;  %v12160_v49 = vunpack.i.l.bf16 %v12159_v26 }
 0x31c   : > { %v3235_v15 = vsel %vm606_vm2, %v16003_v30, %v12151_v28  ;;  %v3234_v53 = vsel %vm606_vm2, %v15966_v56, %v12150_v41 }
 0x31d   : > { %v3274_v55 = vsel %vm3269_vm14, %v3265_v10, %v12160_v49  ;;  %v3275_v43 = vsel %vm3269_vm14, %v3266_v20, %v12161_v46  ;;  %v12154_v52 = vpop.permute.xlu1 %12153  ;;  %v3501_v46 = vld [vmem:[#allocation6 + $0x2] sm:$0xf]  ;;  %v16170_v49 = vld [vmem:[%s20278_s6] ss:$0 sm:$0xff] }
 0x31e   : > { %v12164_v37 = vpop.permute.xlu0 %12163  ;;  %v12156_v11 = vunpack.i.h.bf16 %v12154_v52  ;;  %v12155_v12 = vunpack.i.l.bf16 %v12154_v52 }
 0x31f   : > { %v12166_v2 = vunpack.i.h.bf16 %v12164_v37  ;;  %v12165_v50 = vunpack.i.l.bf16 %v12164_v37  ;;  %v3497_v37 = vld [vmem:[#allocation6 + $0x1] sm:$0xf] }
 0x320   : > { %v3242_v30 = vsel %vm682_vm3, %v3234_v53, %v12155_v12  ;;  %v3243_v58 = vsel %vm682_vm3, %v3235_v15, %v12156_v11  ;;  %3534 = vrot.lane.b32.xlu0 %v3497_v37, %s20388_s1 }
 0x321   : > { %v3283_v45 = vsel %vm3278_vm15, %v3274_v55, %v12165_v50  ;;  %v3284_v35 = vsel %vm3278_vm15, %v3275_v43, %v12166_v2 }
 0x322   : > { %v12169_v39 = vpop.permute.xlu0 %12168 }
 0x323   : > { %v12171_v54 = vunpack.i.h.bf16 %v12169_v39  ;;  %v12170_v44 = vunpack.i.l.bf16 %v12169_v39 }
 0x324   : > { %3550 = vrot.lane.b32.xlu0 %v3501_v46, %s20384_s22 }
 0x325   : > { %v3292_v59 = vsel %vm3287_vm0, %v3283_v45, %v12170_v44  ;;  %v3293_v62 = vsel %vm3287_vm0, %v3284_v35, %v12171_v54 }
 0x326   : > { %v3298_v3 = vpack.c.bf16 %v3293_v62, %v3292_v59 }
 0x328   : > { %11258 = vmatprep.mubr.msk.bf16.mxu1 %vm3343_vm1, %v3298_v3 }
 0x336   : > { %v12174_v5 = vpop.permute.xlu1 %12173 }
 0x337   : > { %v12176_v8 = vunpack.i.h.bf16 %v12174_v5  ;;  %v12175_v57 = vunpack.i.l.bf16 %v12174_v5 }
 0x339   : > { %v3250_v34 = vsel %vm2381_vm8, %v3242_v30, %v12175_v57  ;;  %v3251_v48 = vsel %vm2381_vm8, %v3243_v58, %v12176_v8 }
 0x33a   : > { %v12179_v6 = vpop.permute.xlu1 %12178 }
 0x33b   : > { %v12181_v13 = vunpack.i.h.bf16 %v12179_v6  ;;  %v12180_v42 = vunpack.i.l.bf16 %v12179_v6 }
 0x33d   : > { %v3258_v24 = vsel %vm711_vm4, %v3250_v34, %v12180_v42  ;;  %v3259_v25 = vsel %vm711_vm4, %v3251_v48, %v12181_v13  ;;  %v14313_v48 = vld [vmem:[%s20279_s7] sm:$0xff]  }
 0x33e   : > { %v12184_v9 = vpop.permute.xlu1 %12183 }
 0x33f   : > { %v12186_v18 = vunpack.i.h.bf16 %v12184_v9  ;;  %v12185_v60 = vunpack.i.l.bf16 %v12184_v9 }
 0x341   : > { %v3267_v26 = vsel %vm3260_vm13, %v3258_v24, %v12185_v60  ;;  %v3268_v27 = vsel %vm3260_vm13, %v3259_v25, %v12186_v18 }
 0x342   : > { %v12189_v4 = vpop.permute.xlu1 %12188 }
 0x343   : > { %v12191_v56 = vunpack.i.h.bf16 %v12189_v4  ;;  %v12190_v19 = vunpack.i.l.bf16 %v12189_v4 }
 0x345   : > { %v3276_v33 = vsel %vm3269_vm14, %v3267_v26, %v12190_v19  ;;  %v3277_v36 = vsel %vm3269_vm14, %v3268_v27, %v12191_v56 }
 0x346   : > { %v12194_v16 = vpop.permute.xlu1 %12193 }
 0x347   : > { %v12196_v22 = vunpack.i.h.bf16 %v12194_v16  ;;  %v12195_v23 = vunpack.i.l.bf16 %v12194_v16 }
 0x349   : > { %v3285_v38 = vsel %vm3278_vm15, %v3276_v33, %v12195_v23  ;;  %v3286_v47 = vsel %vm3278_vm15, %v3277_v36, %v12196_v22  ;;  %v20303_v22 = vmov 0  }
 0x34a   : > { %v12199_v29 = vpop.permute.xlu1 %12198  ;;  %3777 = vmatprep.subr.bf16.mxu1 %v20303_v22  ;;  %4740 = vmatprep.subr.bf16.mxu0 %v20303_v22 }
 0x34b   : > { %v12201_v17 = vunpack.i.h.bf16 %v12199_v29  ;;  %v12200_v32 = vunpack.i.l.bf16 %v12199_v29  ;;  %3778 = vmatpush1.bf16.msra.mxu1 %v14313_v48  ;;  %14302 = vset.pattern.permute.xlu0 %v20303_v22  ;;  %v4312_v48 = vld [vmem:[#allocation5 + $0x2] sm:$0xff] }
 0x34c   : > { %3779 = vmatprep.subr.bf16.mxu1 %v20303_v22 }
 0x34d   : > { %v3294_v14 = vsel %vm3287_vm0, %v3285_v38, %v12200_v32  ;;  %v3295_v63 = vsel %vm3287_vm0, %v3286_v47, %v12201_v17 }
 0x34e   : > { %v3299_v7 = vpack.c.bf16 %v3295_v63, %v3294_v14 }
 0x350   : > { %11259 = vmatmul.mubr.msk.bf16.gmra.mrb[4].mxu1 %vm3343_vm1, %v3299_v7 }
 0x3b7   : > { %v11256_v61 = vpop.f32.mrb[0].mxu1 }
 0x3b8   : > { %v3403_v1 = vadd.f32 %v11256_v61, %v16170_v49  ;;  %v3394_v2 = vpop.f32.mrb[1].mxu1 }
 0x3b9   : > { %v3395_v50 = vadd.f32 %v16170_v49, %v3394_v2  ;;  %v11257_v51 = vpop.f32.mrb[2].mxu1 }
 0x3ba   : > { %v3427_v40 = vmax.f32 %v3403_v1, 0.0  ;;  %v3406_v10 = vadd.f32 %v11257_v51, %v16170_v49  ;;  %v3397_v20 = vpop.f32.mrb[3].mxu1 }
 0x3bb   : > { %v3425_v39 = vmax.f32 %v3395_v50, 0.0  ;;  %v3398_v55 = vadd.f32 %v16170_v49, %v3397_v20 }
 0x3bc   : > { %3436 = vst.msk [vmem:[#allocation5 + $0x31] sm:$0xff] %vm682_vm3, %v3427_v40  ;;  %v3428_v43 = vmax.f32 %v3406_v10, 0.0 }
 0x3bd   : > { %3434 = vst.msk [vmem:[#allocation5 + $0x11] sm:$0xff] %vm682_vm3, %v3425_v39  ;;  %v3426_v54 = vmax.f32 %v3398_v55, 0.0  ;;  %v14314_v55 = vld [vmem:[%s20279_s7 + $0x8] sm:$0xff]  }
 0x3be   : > { %3437 = vst.msk [vmem:[#allocation5 + $0x41] sm:$0xff] %vm682_vm3, %v3428_v43  ;;  %3780 = vmatpush1.bf16.msra.mxu1 %v14314_v55 }
 0x3bf   : > { %3435 = vst.msk [vmem:[#allocation5 + $0x21] sm:$0xff] %vm682_vm3, %v3426_v54  ;;  %v14315_v54 = vld [vmem:[%s20279_s7 + $0x10] sm:$0xff]   ;;  %3781 = vmatprep.subr.bf16.mxu1 %v20303_v22 }
 0x3c2   : > { %3782 = vmatpush1.bf16.msra.mxu1 %v14315_v54 }
 0x3c3   : > { %v3445_v44 = vld [vmem:[#allocation5 + $0x31] ss:$2 sm:$0xf]  ;;  %v3453_v45 = vld [vmem:[#allocation5 + $0x32] ss:$2 sm:$0xf]  ;;  %3783 = vmatprep.subr.bf16.mxu1 %v20303_v22 }
 0x3c4   : > { %v3443_v35 = vld [vmem:[#allocation5 + $0x11] ss:$2 sm:$0xf]  ;;  %v3451_v59 = vld [vmem:[#allocation5 + $0x12] ss:$2 sm:$0xf]  ;;  %v3476_v5 = vmax.f32 %v3445_v44, %v3453_v45 }
 0x3c5   : > { %v3462_v62 = vld [vmem:[#allocation5 + $0x41] ss:$2 sm:$0xf]  ;;  %v3470_v3 = vld [vmem:[#allocation5 + $0x42] ss:$2 sm:$0xf]  ;;  %v3475_v41 = vmax.f32 %v3443_v35, %v3451_v59 }
 0x3c6   : > { %v3460_v21 = vld [vmem:[#allocation5 + $0x21] ss:$2 sm:$0xf]  ;;  %v3468_v52 = vld [vmem:[#allocation5 + $0x22] ss:$2 sm:$0xf]  ;;  %v3480_v6 = vmax.f32 %v3462_v62, %v3470_v3 }
 0x3c7   : > { %v16180_v9 = vld [vmem:[#allocation5 + $0x22] sm:$0xff]  ;;  %v16182_v28 = vld [vmem:[#allocation5 + $0x32] sm:$0xff]  ;;  %v3479_v4 = vmax.f32 %v3460_v21, %v3468_v52 }
 0x3c8   : > { %v4649_v11 = vpack.c.bf16 %v16182_v28, %v16180_v9  ;;  %v3484_v12 = vmax.f32 %v3476_v5, %v3480_v6  ;;  %v12227_v8 = vpack.i.bf16 %v16182_v28, %v16180_v9  ;;  %v14316_v35 = vld [vmem:[%s20279_s7 + $0x18] sm:$0xff]   ;;  %v14317_v5 = vld [vmem:[%s20279_s7 + $0x20] sm:$0xff]   ;;  %v16340_v55 = vld [vmem:[#allocation5 + $0x30] sm:$0xff] }
 0x3c9   : > { %v3483_v57 = vmax.f32 %v3475_v41, %v3479_v4  ;;  %3784 = vmatpush1.bf16.msra.mxu1 %v14316_v35  ;;  %v14318_v4 = vld [vmem:[%s20279_s7 + $0x28] sm:$0xff]  }
 0x3ca   : > { %10957 = vmatprep.mubr.msk.bf16.mxu0 %vm682_vm3, %v4649_v11  ;;  %3490 = vst.msk [vmem:[#allocation6 + $0x11] sm:$0xf] %vm3488_vm7, %v3484_v12  ;;  %3785 = vmatprep.subr.bf16.mxu1 %v20303_v22 }
 0x3cb   : > { %3489 = vst.msk [vmem:[#allocation6 + $0x9] sm:$0xf] %vm3488_vm7, %v3483_v57  ;;  %v14319_v57 = vld [vmem:[%s20279_s7 + $0x30] sm:$0xff]  }
 0x3cd   : > { %3786 = vmatpush1.bf16.msra.mxu1 %v14317_v5 }
 0x3ce   : > { %3787 = vmatprep.subr.bf16.mxu1 %v20303_v22 }
 0x3d1   : > { %v3506_v13 = vld [vmem:[#allocation6 + $0x10] sm:$0xf]  ;;  %3788 = vmatpush1.bf16.msra.mxu1 %v14318_v4  ;;  %v14330_v4 = vld [vmem:[%s20282_s10 + $0x40] sm:$0xff]  }
 0x3d2   : > { %v3499_v42 = vld [vmem:[#allocation6 + $0x11] sm:$0xf]  ;;  %3568 = vrot.lane.b32.xlu1 %v3506_v13, %s20301_s20  ;;  %v3498_v30 = vld [vmem:[#allocation6 + $0x9] sm:$0xf]  ;;  %3789 = vmatprep.subr.bf16.mxu1 %v20303_v22  ;;  %v4304_v13 = vld [vmem:[#allocation5 + $0x1] sm:$0xff] }
 0x3d3   : > { %3538 = vrot.lane.b32.xlu0 %v3499_v42, %s20388_s1  ;;  %v3510_v15 = vld [vmem:[#allocation6 + $0x11] sm:$0xf]  ;;  %v3505_v58 = vld [vmem:[#allocation6 + $0x8] sm:$0xf] }
 0x3d4   : > { %v3503_v53 = vld [vmem:[#allocation6 + $0x12] sm:$0xf]  ;;  %v3502_v56 = vld [vmem:[#allocation6 + $0xa] sm:$0xf] }
 0x3d5   : > { %v3514_v18 = vld [vmem:[#allocation6 + $0x12] sm:$0xf]  ;;  %v3509_v19 = vld [vmem:[#allocation6 + $0x9] sm:$0xf]  ;;  %3790 = vmatpush1.bf16.msra.mxu1 %v14319_v57 }
 0x3d6   : > { %3584 = vrot.lane.b32.xlu1 %v3510_v15, %s20386_s27  ;;  %v3518_v60 = vld [vmem:[#allocation6 + $0x10] sm:$0xf]  ;;  %v3513_v34 = vld [vmem:[#allocation6 + $0xa] sm:$0xf]  ;;  %3791 = vmatprep.subr.bf16.mxu1 %v20303_v22 }
 0x3d7   : > { %3554 = vrot.lane.b32.xlu0 %v3503_v53, %s20384_s22  ;;  %v3522_v16 = vld [vmem:[#allocation6 + $0x11] sm:$0xf] }
 0x3d8   : > { %v16258_v42 = vld [vmem:[#allocation5 + $0x11] sm:$0xff] }
 0x3da   : > { %3600 = vrot.lane.b32.xlu1 %v3514_v18, %s20299_s0  ;;  %v14320_v18 = vld [vmem:[%s20279_s7 + $0x38] sm:$0xff]  }
 0x3db   : > { %3614 = vrot.lane.b32.xlu0 %v3518_v60, %s20369_s28  ;;  %v12202_v60 = vpack.i.bf16 %v16258_v42, %v4304_v13  ;;  %3792 = vmatpush1.bf16.msra.mxu1 %v14320_v18  ;;  %v4351_v18 = vld [vmem:[#allocation5 + $0x90] sm:$0xff] }
 0x3dc   : > { %3793 = vmatprep.subr.bf16.mxu1 %v20303_v22 }
 0x3de   : > { %3536 = vrot.lane.b32.xlu1 %v3498_v30, %s20388_s1 }
 0x3df   : > { %3630 = vrot.lane.b32.xlu0 %v3522_v16, %s20367_s18 }
 0x3e2   : > { %3552 = vrot.lane.b32.xlu1 %v3502_v56, %s20384_s22  ;;  %v16274_v56 = vld [vmem:[#allocation5 + $0x41] sm:$0xff] }
 0x3e3   : > { %3566 = vrot.lane.b32.xlu0 %v3505_v58, %s20301_s20  ;;  %v14321_v58 = vld [vmem:[%s20279_s7 + $0x40] sm:$0xff]  }
 0x3e4   : > { %3794 = vmatpush1.bf16.msra.mxu1 %v14321_v58 }
 0x3e7   : > { %3582 = vrot.lane.b32.xlu0 %v3509_v19, %s20386_s27 }
 0x3eb   : > { %3598 = vrot.lane.b32.xlu0 %v3513_v34, %s20299_s0 }
 0x423   : > { %v11260_v23 = vpop.f32.mrb[4].mxu1 }
 0x424   : > { %v3419_v24 = vadd.f32 %v11260_v23, %v16170_v49  ;;  %v3410_v25 = vpop.f32.mrb[5].mxu1  ;;  %v16281_v23 = vld [vmem:[#allocation5 + $0x12] sm:$0xff] }
 0x425   : > { %v3411_v26 = vadd.f32 %v16170_v49, %v3410_v25  ;;  %v11261_v27 = vpop.f32.mrb[6].mxu1  ;;  %v14322_v25 = vld [vmem:[%s20282_s10] sm:$0xff]  }
 0x426   : > { %v3431_v29 = vmax.f32 %v3419_v24, 0.0  ;;  %v3422_v33 = vadd.f32 %v11261_v27, %v16170_v49  ;;  %v3413_v36 = vpop.f32.mrb[7].mxu1  ;;  %v3525_v24 = vld [vmem:[#allocation6 + $0x29] sm:$0xf]  ;;  %4741 = vmatpush1.bf16.msra.mxu0 %v14322_v25 }
 0x427   : > { %v3429_v17 = vmax.f32 %v3411_v26, 0.0  ;;  %v3414_v32 = vadd.f32 %v16170_v49, %v3413_v36  ;;  %v12222_v26 = vpack.i.bf16 %v16281_v23, %v4312_v48  ;;  %v4307_v36 = vld [vmem:[#allocation5 + $0x31] sm:$0xff]  ;;  %4742 = vmatprep.subr.bf16.mxu0 %v20303_v22 }
 0x428   : > { %3440 = vst.msk [vmem:[#allocation5 + $0x71] sm:$0xff] %vm682_vm3, %v3431_v29  ;;  %v3432_v38 = vmax.f32 %v3422_v33, 0.0  ;;  %v4306_v29 = vld [vmem:[#allocation5 + $0x21] sm:$0xff]  ;;  %v12267_v5 = vpack.i.bf16 %v16274_v56, %v4307_v36 }
 0x429   : > { %3438 = vst.msk [vmem:[#allocation5 + $0x51] sm:$0xff] %vm682_vm3, %v3429_v17  ;;  %v3430_v47 = vmax.f32 %v3414_v32, 0.0  ;;  %v16294_v33 = vld [vmem:[#allocation5 + $0x42] sm:$0xff] }
 0x42a   : > { %3441 = vst.msk [vmem:[#allocation5 + $0x81] sm:$0xff] %vm682_vm3, %v3432_v38  ;;  %v14323_v17 = vld [vmem:[%s20282_s10 + $0x8] sm:$0xff]   ;;  %v16302_v38 = vpack.i.bf16 %v4307_v36, %v4306_v29  ;;  %v12287_v57 = vpack.i.bf16 %v16294_v33, %v16182_v28  ;;  %v3621_v28 = vpop.permute.xlu1 %3620 }
 0x42b   : > { %3439 = vst.msk [vmem:[#allocation5 + $0x61] sm:$0xff] %vm682_vm3, %v3430_v47  ;;  %v16304_v47 = vld [vmem:[#allocation5 + $0x20] sm:$0xff]  ;;  %4743 = vmatpush1.bf16.msra.mxu0 %v14323_v17 }
 0x42c   : > { %4744 = vmatprep.subr.bf16.mxu0 %v20303_v22 }
 0x42f   : > { %v3449_v14 = vld [vmem:[#allocation5 + $0x71] ss:$2 sm:$0xf]  ;;  %v3457_v63 = vld [vmem:[#allocation5 + $0x72] ss:$2 sm:$0xf] }
 0x430   : > { %v3447_v37 = vld [vmem:[#allocation5 + $0x51] ss:$2 sm:$0xf]  ;;  %v3455_v31 = vld [vmem:[#allocation5 + $0x52] ss:$2 sm:$0xf]  ;;  %v3478_v2 = vmax.f32 %v3449_v14, %v3457_v63 }
 0x431   : > { %v3466_v7 = vld [vmem:[#allocation5 + $0x81] ss:$2 sm:$0xf]  ;;  %v3474_v46 = vld [vmem:[#allocation5 + $0x82] ss:$2 sm:$0xf]  ;;  %v3477_v50 = vmax.f32 %v3447_v37, %v3455_v31 }
 0x432   : > { %v3464_v61 = vld [vmem:[#allocation5 + $0x61] ss:$2 sm:$0xf]  ;;  %v3472_v1 = vld [vmem:[#allocation5 + $0x62] ss:$2 sm:$0xf]  ;;  %v3482_v49 = vmax.f32 %v3466_v7, %v3474_v46 }
 0x433   : > { %v3481_v51 = vmax.f32 %v3464_v61, %v3472_v1  ;;  %v16218_v20 = vld [vmem:[#allocation5 + $0x62] sm:$0xff]  ;;  %v16222_v39 = vld [vmem:[#allocation5 + $0x72] sm:$0xff] }
 0x434   : > { %v3486_v40 = vmax.f32 %v3478_v2, %v3482_v49  ;;  %v4653_v43 = vpack.c.bf16 %v16222_v39, %v16218_v20  ;;  %v16267_v30 = vld [vmem:[#allocation5 + $0x51] sm:$0xff]  ;;  %v4310_v14 = vld [vmem:[#allocation5 + $0x61] sm:$0xff] }
 0x435   : > { %v3485_v10 = vmax.f32 %v3477_v50, %v3481_v51  ;;  %v16279_v19 = vpack.i.bf16 %v16267_v30, %v16274_v56  ;;  %v16290_v27 = vld [vmem:[#allocation5 + $0x52] sm:$0xff]  ;;  %v4325_v61 = vld [vmem:[#allocation5 + $0x60] sm:$0xff]  ;;  %v12262_v51 = vpack.i.bf16 %v4306_v29, %v16258_v42  ;;  %v12272_v54 = vpack.i.bf16 %v4310_v14, %v16267_v30 }
 0x436   : > { %3492 = vst.msk [vmem:[#allocation6 + $0x21] sm:$0xf] %vm3488_vm7, %v3486_v40  ;;  %v12232_v32 = vpack.i.bf16 %v16290_v27, %v16294_v33  ;;  %v16309_v63 = vld [vmem:[#allocation5 + $0x10] sm:$0xff]  ;;  %v14325_v2 = vld [vmem:[%s20282_s10 + $0x18] sm:$0xff]   ;;  %v14326_v50 = vld [vmem:[%s20282_s10 + $0x20] sm:$0xff]   ;;  %v12237_v40 = vpack.i.bf16 %v16222_v39, %v16218_v20 }
 0x437   : > { %3491 = vst.msk [vmem:[#allocation6 + $0x19] sm:$0xf] %vm3488_vm7, %v3485_v10  ;;  %v4311_v37 = vld [vmem:[#allocation5 + $0x71] sm:$0xff]  ;;  %v12242_v7 = vpack.i.bf16 %v16304_v47, %v16309_v63  ;;  %v4323_v10 = vld [vmem:[#allocation5 + $0x40] sm:$0xff] }
 0x438   : > { %v14324_v31 = vld [vmem:[%s20282_s10 + $0x10] sm:$0xff]   ;;  %v16317_v46 = vpack.i.bf16 %v4311_v37, %v4310_v14  ;;  %v4343_v13 = vld [vmem:[#allocation5 + $0x82] sm:$0xff] }
 0x439   : > { %4745 = vmatpush1.bf16.msra.mxu0 %v14324_v31  ;;  %v4324_v1 = vld [vmem:[#allocation5 + $0x50] sm:$0xff]  ;;  %v12297_v42 = vpack.i.bf16 %v4343_v13, %v16222_v39 }
 0x43a   : > { %4746 = vmatprep.subr.bf16.mxu0 %v20303_v22  ;;  %v12252_v49 = vpack.i.bf16 %v4325_v61, %v4324_v1  ;;  %v4326_v35 = vld [vmem:[#allocation5 + $0x70] sm:$0xff] }
 0x43d   : > { %v3520_v44 = vld [vmem:[#allocation6 + $0x20] sm:$0xf]  ;;  %4747 = vmatpush1.bf16.msra.mxu0 %v14325_v2 }
 0x43e   : > { %v3508_v45 = vld [vmem:[#allocation6 + $0x20] sm:$0xf]  ;;  %3618 = vrot.lane.b32.xlu0 %v3520_v44, %s20369_s28  ;;  %v14311_v59 = vld [vmem:[#allocation6 + $0x12] ss:$8 sps:$4 sm:$0xff]   ;;  %4748 = vmatprep.subr.bf16.mxu0 %v20303_v22  ;;  %v12247_v44 = vpack.i.bf16 %v4323_v10, %v16340_v55 }
 0x43f   : > { %3572 = vrot.lane.b32.xlu1 %v3508_v45, %s20301_s20  ;;  %v14312_v62 = vld [vmem:[#allocation6 + $0x22] ss:$8 sps:$4 sm:$0xff]   ;;  %v3507_v3 = vld [vmem:[#allocation6 + $0x18] sm:$0xf] }
 0x440   : > { %v3512_v21 = vld [vmem:[#allocation6 + $0x21] sm:$0xf]  ;;  %v3694_v52 = vpack.c.bf16 %v14312_v62, %v14311_v59  ;;  %v3511_v6 = vld [vmem:[#allocation6 + $0x19] sm:$0xf]  ;;  %v14328_v59 = vld [vmem:[%s20282_s10 + $0x30] sm:$0xff]   ;;  %v12282_v62 = vpack.i.bf16 %v16180_v9, %v16281_v23  ;;  %v12302_v9 = vpack.i.bf16 %v16340_v55, %v16304_v47 }
 0x441   : > { %v3516_v41 = vld [vmem:[#allocation6 + $0x22] sm:$0xf]  ;;  %v3515_v11 = vld [vmem:[#allocation6 + $0x1a] sm:$0xf]  ;;  %4749 = vmatpush1.bf16.msra.mxu0 %v14326_v50 }
 0x442   : > { %3570 = vrot.lane.b32.xlu0 %v3507_v3, %s20301_s20  ;;  %10939 = vmatprep.mubr.msk.bf16.mxu1 %vm682_vm3, %v3694_v52  ;;  %v3500_v12 = vld [vmem:[#allocation6 + $0x19] sm:$0xf]  ;;  %v3524_v15 = vld [vmem:[#allocation6 + $0x21] sm:$0xf]  ;;  %v12292_v52 = vpack.i.bf16 %v16218_v20, %v16290_v27  ;;  %v10929_v20 = vld [vmem:[%s20280_s8] ss:$0 sm:$0xff] }
 0x443   : > { %3588 = vrot.lane.b32.xlu1 %v3512_v21, %s20386_s27  ;;  %v3504_v53 = vld [vmem:[#allocation6 + $0x1a] sm:$0xf]  ;;  %4750 = vmatprep.subr.bf16.mxu0 %v20303_v22  ;;  %v4327_v45 = vld [vmem:[#allocation5 + $0x80] sm:$0xff] }
 0x444   : > { %v3519_v16 = vld [vmem:[#allocation6 + $0x18] sm:$0xf]  ;;  %v12257_v3 = vpack.i.bf16 %v4327_v45, %v4326_v35  ;;  %v3569_v58 = vpop.permute.xlu1 %3568 }
 0x445   : > { %v3523_v34 = vld [vmem:[#allocation6 + $0x19] sm:$0xf] }
 0x446   : > { %3586 = vrot.lane.b32.xlu0 %v3511_v6, %s20386_s27  ;;  %v14329_v21 = vld [vmem:[%s20282_s10 + $0x38] sm:$0xff]   ;;  %v16365_v6 = vld [vmem:[#allocation5 + $0x81] sm:$0xff] }
 0x447   : > { %3604 = vrot.lane.b32.xlu1 %v3516_v41, %s20299_s0  ;;  %v12277_v41 = vpack.i.bf16 %v16365_v6, %v4311_v37  ;;  %v3496_v50 = vld [vmem:[#allocation6 + $0x18] sm:$0xf] }
 0x44a   : > { %3602 = vrot.lane.b32.xlu0 %v3515_v11, %s20299_s0  ;;  %v3535_v11 = vpop.permute.xlu0 %3534 }
 0x44b   : > { %3540 = vrot.lane.b32.xlu1 %v3500_v12, %s20388_s1  ;;  %v12312_v12 = vpack.i.bf16 %v4326_v35, %v4325_v61 }
 0x44e   : > { %3634 = vrot.lane.b32.xlu0 %v3524_v15, %s20367_s18  ;;  %v3551_v15 = vpop.permute.xlu0 %3550 }
 0x44f   : > { %3556 = vrot.lane.b32.xlu1 %v3504_v53, %s20384_s22  ;;  %v12307_v53 = vpack.i.bf16 %v4324_v1, %v4323_v10 }
 0x452   : > { %12203 = vrot.lane.b32.xlu0 %v12202_v60, %s20388_s1  ;;  %v3539_v60 = vpop.permute.xlu0 %3538 }
 0x453   : > { %3616 = vrot.lane.b32.xlu1 %v3519_v16, %s20369_s28  ;;  %v12317_v16 = vpack.i.bf16 %v4351_v18, %v4327_v45 }
 0x456   : > { %12213 = vrot.lane.b32.xlu0 %v16279_v19, %s20388_s1  ;;  %v3555_v30 = vpop.permute.xlu0 %3554 }
 0x457   : > { %3632 = vrot.lane.b32.xlu1 %v3523_v34, %s20367_s18  ;;  %v3585_v34 = vpop.permute.xlu1 %3584 }
 0x45a   : > { %12223 = vrot.lane.b32.xlu0 %v12222_v26, %s20384_s22  ;;  %v3615_v56 = vpop.permute.xlu0 %3614 }
 0x45b   : > { %3636 = vrot.lane.b32.xlu1 %v3525_v24, %s20367_s18  ;;  %v3601_v23 = vpop.permute.xlu1 %3600 }
 0x45e   : > { %12233 = vrot.lane.b32.xlu0 %v12232_v32, %s20384_s22  ;;  %v3631_v48 = vpop.permute.xlu0 %3630 }
 0x45f   : > { %12208 = vrot.lane.b32.xlu1 %v16302_v38, %s20388_s1  ;;  %v3537_v25 = vpop.permute.xlu1 %3536 }
 0x462   : > { %12243 = vrot.lane.b32.xlu0 %v12242_v7, %s20301_s20  ;;  %v3567_v24 = vpop.permute.xlu0 %3566  ;;  %v3493_v7 = vld [vmem:[#allocation6] sm:$0xf] }
 0x463   : > { %12218 = vrot.lane.b32.xlu1 %v16317_v46, %s20388_s1  ;;  %v3553_v29 = vpop.permute.xlu1 %3552  ;;  %v3642_v2 = vsel %vm682_vm3, %v3493_v7, %v3535_v11 }
 0x466   : > { %12253 = vrot.lane.b32.xlu0 %v12252_v49, %s20301_s20  ;;  %v3583_v26 = vpop.permute.xlu0 %3582 }
 0x467   : > { %12228 = vrot.lane.b32.xlu1 %v12227_v8, %s20384_s22  ;;  %v14327_v8 = vld [vmem:[%s20282_s10 + $0x28] sm:$0xff]  }
 0x468   : > { %4751 = vmatpush1.bf16.msra.mxu0 %v14327_v8 }
 0x469   : > { %4752 = vmatprep.subr.bf16.mxu0 %v20303_v22 }
 0x46a   : > { %12263 = vrot.lane.b32.xlu0 %v12262_v51, %s20386_s27  ;;  %v3599_v36 = vpop.permute.xlu0 %3598 }
 0x46b   : > { %12238 = vrot.lane.b32.xlu1 %v12237_v40, %s20384_s22 }
 0x46c   : > { %4753 = vmatpush1.bf16.msra.mxu0 %v14328_v59  ;;  %v3495_v59 = vld [vmem:[#allocation6 + $0x10] sm:$0xf] }
 0x46d   : > { %4754 = vmatprep.subr.bf16.mxu0 %v20303_v22 }
 0x46e   : > { %12273 = vrot.lane.b32.xlu0 %v12272_v54, %s20386_s27 }
 0x46f   : > { %12248 = vrot.lane.b32.xlu1 %v12247_v44, %s20301_s20  ;;  %v3646_v44 = vsel %vm711_vm4, %v3642_v2, %v3551_v15 }
 0x470   : > { %4755 = vmatpush1.bf16.msra.mxu0 %v14329_v21  ;;  %v3644_v21 = vsel %vm682_vm3, %v3495_v59, %v3539_v60 }
 0x471   : > { %4756 = vmatprep.subr.bf16.mxu0 %v20303_v22 }
 0x472   : > { %12283 = vrot.lane.b32.xlu0 %v12282_v62, %s20299_s0 }
 0x473   : > { %12258 = vrot.lane.b32.xlu1 %v12257_v3, %s20301_s20  ;;  %s20409_s20 = smov 8  }
 0x474   : > { %4757 = vmatpush1.bf16.msra.mxu0 %v14330_v4 }
 0x476   : > { %12293 = vrot.lane.b32.xlu0 %v12292_v52, %s20299_s0  ;;  %v3650_v52 = vsel %vm3269_vm14, %v3646_v44, %v3567_v24 }
 0x477   : > { %12268 = vrot.lane.b32.xlu1 %v12267_v5, %s20386_s27  ;;  %v3648_v5 = vsel %vm711_vm4, %v3644_v21, %v3555_v30 }
 0x47a   : > { %12303 = vrot.lane.b32.xlu0 %v12302_v9, %s20369_s28  ;;  %v3654_v9 = vsel %vm3287_vm0, %v3650_v52, %v3583_v26 }
 0x47b   : > { %12278 = vrot.lane.b32.xlu1 %v12277_v41, %s20386_s27  ;;  %v3659_v11 = vsel %vm3658_vm9, %v3654_v9, %v3599_v36 }
 0x47c   : > { %v3664_v60 = vsel %vm3663_vm10, %v3659_v11, %v3615_v56 }
 0x47e   : > { %12313 = vrot.lane.b32.xlu0 %v12312_v12, %s20369_s28 }
 0x47f   : > { %12288 = vrot.lane.b32.xlu1 %v12287_v57, %s20299_s0 }
 0x482   : > { %12323 = vrot.lane.b32.xlu0 %v16302_v38, %s20367_s18 }
 0x483   : > { %12298 = vrot.lane.b32.xlu1 %v12297_v42, %s20299_s0  ;;  %s20421_s0 = smov 24  }
 0x487   : > { %12308 = vrot.lane.b32.xlu1 %v12307_v53, %s20369_s28 }
 0x48b   : > { %12318 = vrot.lane.b32.xlu1 %v12317_v16, %s20369_s28 }
 0x48f   : > { %12328 = vrot.lane.b32.xlu1 %v16279_v19, %s20367_s18  ;;  %v3494_v19 = vld [vmem:[#allocation6 + $0x8] sm:$0xf] }
 0x490   : > { %v3643_v49 = vsel %vm682_vm3, %v3494_v19, %v3537_v25 }
 0x491   : > { %v3647_v51 = vsel %vm711_vm4, %v3643_v49, %v3553_v29  ;;  %v3669_v29 = vsel %vm3668_vm11, %v3664_v60, %v3631_v48 }
 0x492   : > { %v3651_v45 = vsel %vm3269_vm14, %v3647_v51, %v3569_v58 }
 0x493   : > { %v3655_v4 = vsel %vm3287_vm0, %v3651_v45, %v3585_v34 }
 0x494   : > { %v3660_v53 = vsel %vm3658_vm9, %v3655_v4, %v3601_v23 }
 0x4b0   : > { %v3619_v17 = vpop.permute.xlu0 %3618 }
 0x4b1   : > { %v3573_v32 = vpop.permute.xlu1 %3572 }
 0x4b4   : > { %v3571_v38 = vpop.permute.xlu0 %3570 }
 0x4b5   : > { %v3589_v14 = vpop.permute.xlu1 %3588  ;;  %v3652_v12 = vsel %vm3269_vm14, %v3648_v5, %v3571_v38 }
 0x4b8   : > { %v3587_v37 = vpop.permute.xlu0 %3586 }
 0x4b9   : > { %v3605_v31 = vpop.permute.xlu1 %3604  ;;  %v3656_v57 = vsel %vm3287_vm0, %v3652_v12, %v3587_v37 }
 0x4bc   : > { %v3603_v61 = vpop.permute.xlu0 %3602 }
 0x4bd   : > { %v3541_v1 = vpop.permute.xlu1 %3540  ;;  %v3661_v15 = vsel %vm3658_vm9, %v3656_v57, %v3603_v61 }
 0x4be   : > { %v3645_v40 = vsel %vm682_vm3, %v3496_v50, %v3541_v1  ;;  %v3666_v58 = vsel %vm3663_vm10, %v3661_v15, %v3619_v17 }
 0x4c0   : > { %v3635_v10 = vpop.permute.xlu0 %3634 }
 0x4c1   : > { %v3557_v8 = vpop.permute.xlu1 %3556  ;;  %v3671_v26 = vsel %vm3668_vm11, %v3666_v58, %v3635_v10 }
 0x4c2   : > { %v3649_v54 = vsel %vm711_vm4, %v3645_v40, %v3557_v8 }
 0x4c3   : > { %v3653_v35 = vsel %vm3269_vm14, %v3649_v54, %v3573_v32  ;;  %v4296_v54 = vld [vmem:[#allocation5] sm:$0xff] }
 0x4c4   : > { %v16398_v62 = vpop.permute.xlu0 %12203  ;;  %v3657_v41 = vsel %vm3287_vm0, %v3653_v35, %v3589_v14 }
 0x4c5   : > { %v3617_v3 = vpop.permute.xlu1 %3616  ;;  %v3662_v18 = vsel %vm3658_vm9, %v3657_v41, %v3605_v31  ;;  %v12206_v10 = vunpack.i.h.bf16 %v16398_v62  ;;  %v12205_v8 = vunpack.i.l.bf16 %v16398_v62 }
 0x4c6   : > { %v3665_v16 = vsel %vm3663_vm10, %v3660_v53, %v3617_v3  ;;  %v3667_v24 = vsel %vm3663_vm10, %v3662_v18, %v3621_v28 }
 0x4c7   : > { %v4593_v9 = vsel %vm682_vm3, %v16309_v63, %v12206_v10  ;;  %v4592_v41 = vsel %vm682_vm3, %v4296_v54, %v12205_v8 }
 0x4c8   : > { %v16409_v13 = vpop.permute.xlu0 %12213 }
 0x4c9   : > { %v3633_v42 = vpop.permute.xlu1 %3632 }
 0x4ca   : > { %v3670_v30 = vsel %vm3668_vm11, %v3665_v16, %v3633_v42 }
 0x4cb   : > { %v10925_v36 = vcombine.low %v3669_v29, %v3670_v30 }
 0x4cc   : > { %v12224_v34 = vpop.permute.xlu0 %12223 }
 0x4cd   : > { %v3637_v25 = vpop.permute.xlu1 %3636  ;;  %v12226_v44 = vunpack.i.h.bf16 %v12224_v34  ;;  %v12225_v45 = vunpack.i.l.bf16 %v12224_v34 }
 0x4ce   : > { %v3672_v23 = vsel %vm3668_vm11, %v3667_v24, %v3637_v25 }
 0x4cf   : > { %v10927_v32 = vcombine.low %v3671_v26, %v3672_v23  ;;  %v4600_v12 = vsel %vm711_vm4, %v4592_v41, %v12225_v45  ;;  %v4601_v62 = vsel %vm711_vm4, %v4593_v9, %v12226_v44 }
 0x4d0   : > { %v16422_v38 = vpop.permute.xlu0 %12233 }
 0x4d1   : > { %v3693_v56 = vpack.c.bf16 %v10927_v32, %v10925_v36  ;;  %v16424_v14 = vpop.permute.xlu1 %12208 }
 0x4d3   : > { %3810 = vmatmul.mubr.bf16.vlgmr.msra.gmra.mrb[8].mxu1 %v3693_v56  ;;  %v12211_v56 = vunpack.i.h.bf16 %v16424_v14 }
 0x4d4   : > { %v12244_v37 = vpop.permute.xlu0 %12243 }
 0x4d5   : > { %v16426_v17 = vpop.permute.xlu1 %12218  ;;  %v12246_v35 = vunpack.i.h.bf16 %v12244_v37  ;;  %v12245_v59 = vunpack.i.l.bf16 %v12244_v37  ;;  %v12210_v37 = vunpack.i.l.bf16 %v16424_v14 }
 0x4d7   : > { %v4608_v15 = vsel %vm3269_vm14, %v4600_v12, %v12245_v59  ;;  %v4609_v53 = vsel %vm3269_vm14, %v4601_v62, %v12246_v35 }
 0x4d8   : > { %v16428_v31 = vpop.permute.xlu0 %12253 }
 0x4d9   : > { %v16430_v28 = vpop.permute.xlu1 %12228 }
 0x4dc   : > { %v12264_v7 = vpop.permute.xlu0 %12263 }
 0x4dd   : > { %v16432_v61 = vpop.permute.xlu1 %12238  ;;  %v12266_v3 = vunpack.i.h.bf16 %v12264_v7  ;;  %v12265_v21 = vunpack.i.l.bf16 %v12264_v7  ;;  %v4651_v7 = vpack.c.bf16 %v16290_v27, %v16294_v33  ;;  %v4595_v27 = vsel %vm682_vm3, %v16340_v55, %v12211_v56 }
 0x4de   : > { %v4594_v33 = vsel %vm682_vm3, %v16304_v47, %v12210_v37 }
 0x4df   : > { %v4616_v18 = vsel %vm3287_vm0, %v4608_v15, %v12265_v21  ;;  %v4617_v60 = vsel %vm3287_vm0, %v4609_v53, %v12266_v3  ;;  %v14331_v53 = vld [vmem:[%s20404_s2] sm:$0xff]  }
 0x4e0   : > { %v16434_v48 = vpop.permute.xlu0 %12273  ;;  %11264 = vmatprep.mubr.msk.bf16.mxu1 %vm682_vm3, %v14331_v53  ;;  %v14345_v53 = vld [vmem:[%s20281_s9 + $0x68] sm:$0xff]  }
 0x4e1   : > { %v16436_v1 = vpop.permute.xlu1 %12248 }
 0x4e2   : > { %v12251_v10 = vunpack.i.h.bf16 %v16436_v1  ;;  %v12250_v8 = vunpack.i.l.bf16 %v16436_v1 }
 0x4e4   : > { %v12284_v19 = vpop.permute.xlu0 %12283 }
 0x4e5   : > { %v16438_v2 = vpop.permute.xlu1 %12258  ;;  %v12286_v4 = vunpack.i.h.bf16 %v12284_v19  ;;  %v12285_v11 = vunpack.i.l.bf16 %v12284_v19  ;;  %v12231_v19 = vunpack.i.h.bf16 %v16430_v28 }
 0x4e7   : > { %v4624_v30 = vsel %vm3658_vm9, %v4616_v18, %v12285_v11  ;;  %v4625_v58 = vsel %vm3658_vm9, %v4617_v60, %v12286_v4  ;;  %v4603_v1 = vsel %vm711_vm4, %v4595_v27, %v12231_v19 }
 0x4e8   : > { %v16440_v49 = vpop.permute.xlu0 %12293 }
 0x4e9   : > { %v16442_v50 = vpop.permute.xlu1 %12268 }
 0x4ea   : > { %v12271_v54 = vunpack.i.h.bf16 %v16442_v50  ;;  %v12270_v44 = vunpack.i.l.bf16 %v16442_v50  ;;  %v4611_v50 = vsel %vm3269_vm14, %v4603_v1, %v12251_v10  ;;  %v14336_v10 = vld [vmem:[%s20281_s9] sm:$0xff]   ;;  %v14341_v1 = vld [vmem:[%s20281_s9 + $0x58] sm:$0xff]  }
 0x4ec   : > { %v12304_v51 = vpop.permute.xlu0 %12303  ;;  %v4619_v41 = vsel %vm3287_vm0, %v4611_v50, %v12271_v54  ;;  %v14338_v54 = vld [vmem:[%s20281_s9 + $0x8] sm:$0xff]  }
 0x4ed   : > { %v16444_v40 = vpop.permute.xlu1 %12278  ;;  %v12306_v57 = vunpack.i.h.bf16 %v12304_v51  ;;  %v12305_v42 = vunpack.i.l.bf16 %v12304_v51  ;;  %v12230_v51 = vunpack.i.l.bf16 %v16430_v28 }
 0x4ef   : > { %v4632_v25 = vsel %vm3663_vm10, %v4624_v30, %v12305_v42  ;;  %v4633_v26 = vsel %vm3663_vm10, %v4625_v58, %v12306_v57  ;;  %v4602_v35 = vsel %vm711_vm4, %v4594_v33, %v12230_v51  ;;  %v14335_v51 = vld [vmem:[%s20281_s9 + $0x40] sm:$0xff]   ;;  %v14339_v33 = vld [vmem:[%s20281_s9 + $0x50] sm:$0xff]  }
 0x4f0   : > { %v16448_v52 = vpop.permute.xlu0 %12313  ;;  %v4610_v21 = vsel %vm3269_vm14, %v4602_v35, %v12250_v8  ;;  %v14337_v8 = vld [vmem:[%s20281_s9 + $0x48] sm:$0xff]  }
 0x4f1   : > { %v12289_v5 = vpop.permute.xlu1 %12288  ;;  %v4618_v9 = vsel %vm3287_vm0, %v4610_v21, %v12270_v44 }
 0x4f2   : > { %v12291_v14 = vunpack.i.h.bf16 %v12289_v5  ;;  %v12290_v28 = vunpack.i.l.bf16 %v12289_v5 }
 0x4f4   : > { %v12324_v16 = vpop.permute.xlu0 %12323  ;;  %v4626_v4 = vsel %vm3658_vm9, %v4618_v9, %v12290_v28  ;;  %v4627_v47 = vsel %vm3658_vm9, %v4619_v41, %v12291_v14  ;;  %v14340_v14 = vld [vmem:[%s20281_s9 + $0x10] sm:$0xff]  }
 0x4f5   : > { %v16459_v63 = vpop.permute.xlu1 %12298  ;;  %v12326_v34 = vunpack.i.h.bf16 %v12324_v16  ;;  %v12325_v24 = vunpack.i.l.bf16 %v12324_v16 }
 0x4f7   : > { %v4640_v29 = vsel %vm3668_vm11, %v4632_v25, %v12325_v24  ;;  %v4641_v23 = vsel %vm3668_vm11, %v4633_v26, %v12326_v34  ;;  %v14332_v25 = vld [vmem:[%s20404_s2 + $0x8] sm:$0xff]   ;;  %v14334_v26 = vld [vmem:[%s20404_s2 + $0x18] sm:$0xff]  }
 0x4f8   : > { %v4648_v36 = vpack.c.bf16 %v4641_v23, %v4640_v29 }
 0x4f9   : > { %v12309_v32 = vpop.permute.xlu1 %12308 }
 0x4fa   : > { %4773 = vmatmul.mubr.bf16.vlgmr.msra.gmra.mrb[32].mxu0 %v4648_v36  ;;  %v12311_v59 = vunpack.i.h.bf16 %v12309_v32  ;;  %v12310_v3 = vunpack.i.l.bf16 %v12309_v32 }
 0x4fb   : > { %10958 = vmatprep.mubr.msk.bf16.mxu0 %vm682_vm3, %v4651_v7 }
 0x4fc   : > { %v4634_v12 = vsel %vm3663_vm10, %v4626_v4, %v12310_v3  ;;  %v4635_v62 = vsel %vm3663_vm10, %v4627_v47, %v12311_v59  ;;  %v14342_v59 = vld [vmem:[%s20281_s9 + $0x18] sm:$0xff]  }
 0x4fd   : > { %v16478_v45 = vpop.permute.xlu1 %12318  ;;  %v3943_v3 = vld [vmem:[#allocation7 + $0x1] sm:$0xff] }
 0x4fe   : > { %20403 = vst [vmem:[#allocation10_spill] sm:$0xff] %v16478_v45  ;;  %v16788_v45 = vld [vmem:[#allocation3 + $0xd8] sm:$0xff] }
 0x501   : > { %v12329_v55 = vpop.permute.xlu1 %12328 }
 0x502   : > { %v12331_v5 = vunpack.i.h.bf16 %v12329_v55  ;;  %v12330_v11 = vunpack.i.l.bf16 %v12329_v55 }
 0x504   : > { %v4642_v57 = vsel %vm3668_vm11, %v4634_v12, %v12330_v11  ;;  %v4643_v42 = vsel %vm3668_vm11, %v4635_v62, %v12331_v5  ;;  %v3951_v11 = vld [vmem:[#allocation7 + $0x2] sm:$0xff] }
 0x505   : > { %v4650_v15 = vpack.c.bf16 %v4643_v42, %v4642_v57  ;;  %v14343_v42 = vld [vmem:[%s20281_s9 + $0x60] sm:$0xff]  }
 0x507   : > { %4781 = vmatmul.mubr.bf16.gmra.mrb[36].mxu0 %v4650_v15  ;;  %v14344_v15 = vld [vmem:[%s20281_s9 + $0x20] sm:$0xff]  }
 0x508   : > { %10959 = vmatprep.mubr.msk.bf16.mxu0 %vm682_vm3, %v4653_v43 }
 0x5a6   : > { %v3811_v39 = vpop.f32.mrb[8].mxu1 }
 0x5a7   : > { %v3812_v43 = vadd.f32 %v10929_v20, %v3811_v39  ;;  %v3813_v18 = vpop.f32.mrb[9].mxu1 }
 0x5a8   : > { %v3814_v60 = vpop.f32.mrb[10].mxu1 }
 0x5a9   : > { %v3815_v16 = vadd.f32 %v10929_v20, %v3814_v60  ;;  %v3816_v30 = vpop.f32.mrb[11].mxu1  ;;  %v3818_v58 = vmax.f32 %v3812_v43, 0.0  ;;  %v14346_v60 = vld [vmem:[%s20281_s9 + $0x28] sm:$0xff]  }
 0x5ab   : > { %v3819_v34 = vmax.f32 %v3815_v16, 0.0 }
 0x5ad   : > { %v3828_v24 = vpack.c.bf16 %v3819_v34, %v3818_v58 }
 0x5af   : > { %11262 = vmatprep.subr.bf16.mxu1 %v3828_v24 }
 0x5b0   : > { %11263 = vmatpush3.bf16.msra.mxu1 %v3828_v24 }
 0x5b1   : > { %11101 = vmatprep.subr.bf16.mxu1 %v14335_v51 }
 0x5b3   : > { %11265 = vmatmul.mubr.msk.bf16.vlgmr.msra.gmra.mrb[12].mxu1 %vm682_vm3, %v14332_v25 }
 0x5b4   : > { %11268 = vmatprep.mubr.msk.bf16.mxu1 %vm682_vm3, %v14333_v0  ;;  %11102 = vmatpush3.bf16.msra.mxu1 %v14336_v10  ;;  %v14347_v0 = vld [vmem:[%s20281_s9 + $0x70] sm:$0xff]  }
 0x5b5   : > { %11103 = vmatprep.subr.bf16.mxu1 %v14337_v8 }
 0x5b8   : > { %11104 = vmatpush3.bf16.msra.mxu1 %v14338_v54 }
 0x5b9   : > { %11105 = vmatprep.subr.bf16.mxu1 %v14339_v33 }
 0x5bb   : > { %11269 = vmatmul.mubr.msk.bf16.gmra.mrb[16].mxu1 %vm682_vm3, %v14334_v26  ;;  %v14348_v26 = vld [vmem:[%s20281_s9 + $0x30] sm:$0xff]  }
 0x5bc   : > { %11106 = vmatpush3.bf16.msra.mxu1 %v14340_v14 }
 0x5bd   : > { %11107 = vmatprep.subr.bf16.mxu1 %v14341_v1 }
 0x5c0   : > { %11108 = vmatpush3.bf16.msra.mxu1 %v14342_v59 }
 0x5c1   : > { %11109 = vmatprep.subr.bf16.mxu1 %v14343_v42 }
 0x5c4   : > { %11110 = vmatpush3.bf16.msra.mxu1 %v14344_v15 }
 0x5c5   : > { %11111 = vmatprep.subr.bf16.mxu1 %v14345_v53 }
 0x5c8   : > { %11112 = vmatpush3.bf16.msra.mxu1 %v14346_v60 }
 0x5c9   : > { %11113 = vmatprep.subr.bf16.mxu1 %v14347_v0  ;;  %v5659_v0 = vld [vmem:[#allocation8 + $0x198] sm:$0xff] }
 0x5cc   : > { %11114 = vmatpush3.bf16.msra.mxu1 %v14348_v26  ;;  %v5660_v26 = vld [vmem:[#allocation8 + $0x1a0] sm:$0xff] }
 0x5cd   : > { %v16529_v29 = vpop.f32.mrb[32].mxu0 }
 0x5ce   : > { %20405 = vst [vmem:[#allocation11_spill] sm:$0xff] %v16529_v29  ;;  %v4776_v23 = vpop.f32.mrb[33].mxu0  ;;  %v16774_v29 = vld [vmem:[#allocation3 + $0xc8] sm:$0xff] }
 0x5cf   : > { %v16531_v36 = vpop.f32.mrb[34].mxu0  ;;  %v14349_v23 = vld [vmem:[%s20281_s9 + $0x78] sm:$0xff]  }
 0x5d0   : > { %20406 = vst [vmem:[#allocation12_spill] sm:$0xff] %v16531_v36  ;;  %v4779_v32 = vpop.f32.mrb[35].mxu0  ;;  %11115 = vmatprep.subr.bf16.mxu1 %v14349_v23  ;;  %v16772_v36 = vld [vmem:[#allocation3 + $0xb0] sm:$0xff] }
 0x5da   : > { %v16533_v56 = vpop.f32.mrb[36].mxu0 }
 0x5db   : > { %20407 = vst [vmem:[#allocation13_spill] sm:$0xff] %v16533_v56  ;;  %v4784_v37 = vpop.f32.mrb[37].mxu0  ;;  %v6996_v56 = vld [vmem:[#allocation3 + $0x50] sm:$0xff] }
 0x5dc   : > { %v16535_v7 = vpop.f32.mrb[38].mxu0 }
 0x5dd   : > { %20408 = vst [vmem:[#allocation14_spill] sm:$0xff] %v16535_v7  ;;  %v4787_v19 = vpop.f32.mrb[39].mxu0 }
 0x5de   : > { %v14350_v19 = vld [vmem:[%s20281_s9 + $0x38] sm:$0xff]  }
 0x5df   : > { %11116 = vmatpush3.bf16.msra.mxu1 %v14350_v19  ;;  %v5500_v19 = vld [vmem:[#allocation8 + $0x2] sm:$0xff] }
 0x686   : > { %v11266_v44 = vpop.f32.mrb[12].mxu1 }
 0x687   : > { %3929 = vst.msk [vmem:[#allocation7 + $0x31] sm:$0xff] %vm711_vm4, %v11266_v44  ;;  %v3895_v27 = vpop.f32.mrb[13].mxu1 }
 0x688   : > { %3927 = vst.msk [vmem:[#allocation7 + $0x11] sm:$0xff] %vm711_vm4, %v3895_v27  ;;  %v11267_v28 = vpop.f32.mrb[14].mxu1 }
 0x689   : > { %3930 = vst.msk [vmem:[#allocation7 + $0x41] sm:$0xff] %vm711_vm4, %v11267_v28  ;;  %v3898_v35 = vpop.f32.mrb[15].mxu1 }
 0x68a   : > { %3928 = vst.msk [vmem:[#allocation7 + $0x21] sm:$0xff] %vm711_vm4, %v3898_v35 }
 0x68e   : > { %v11270_v21 = vpop.f32.mrb[16].mxu1  ;;  %v16570_v55 = vld [vmem:[#allocation7 + $0x30] sm:$0xff] }
 0x68f   : > { %3933 = vst.msk [vmem:[#allocation7 + $0x71] sm:$0xff] %vm711_vm4, %v11270_v21  ;;  %v3911_v50 = vpop.f32.mrb[17].mxu1  ;;  %v16566_v9 = vld [vmem:[#allocation7 + $0x11] sm:$0xff] }
 0x690   : > { %3931 = vst.msk [vmem:[#allocation7 + $0x51] sm:$0xff] %vm711_vm4, %v3911_v50  ;;  %v12332_v41 = vpack.i.bf16 %v16566_v9, %v3943_v3  ;;  %v16572_v4 = vld [vmem:[#allocation7 + $0x40] sm:$0xff]  ;;  %v11271_v47 = vpop.f32.mrb[18].mxu1  ;;  %v3952_v12 = vld [vmem:[#allocation7 + $0x12] sm:$0xff] }
 0x691   : > { %v12342_v5 = vpack.i.bf16 %v16572_v4, %v16570_v55  ;;  %3934 = vst.msk [vmem:[#allocation7 + $0x81] sm:$0xff] %vm711_vm4, %v11271_v47  ;;  %v3914_v62 = vpop.f32.mrb[19].mxu1  ;;  %v3978_v57 = vld [vmem:[#allocation7 + $0x42] sm:$0xff]  ;;  %v12337_v20 = vpack.i.bf16 %v3952_v12, %v3951_v11  ;;  %v3977_v39 = vld [vmem:[#allocation7 + $0x32] sm:$0xff] }
 0x692   : > { %12333 = vrot.lane.b32.xlu0 %v12332_v41, %s20384_s22  ;;  %3932 = vst.msk [vmem:[#allocation7 + $0x61] sm:$0xff] %vm711_vm4, %v3914_v62  ;;  %v12347_v43 = vpack.i.bf16 %v3978_v57, %v3977_v39  ;;  %v16589_v18 = vld [vmem:[#allocation7 + $0x20] sm:$0xff]  ;;  %v16598_v30 = vld [vmem:[#allocation7 + $0x10] sm:$0xff] }
 0x693   : > { %12343 = vrot.lane.b32.xlu1 %v12342_v5, %s20369_s28  ;;  %v16595_v16 = vld [vmem:[#allocation7 + $0x21] sm:$0xff]  ;;  %v12362_v58 = vpack.i.bf16 %v16589_v18, %v16598_v30  ;;  %v16602_v34 = vld [vmem:[#allocation7 + $0x31] sm:$0xff]  ;;  %v12372_v10 = vpack.i.bf16 %v16570_v55, %v16589_v18 }
 0x694   : > { %v12352_v24 = vpack.i.bf16 %v16602_v34, %v16595_v16  ;;  %v3976_v25 = vld [vmem:[#allocation7 + $0x22] sm:$0xff]  ;;  %v3991_v41 = vld [vmem:[#allocation7 + $0x90] sm:$0xff] }
 0x695   : > { %v12367_v32 = vpack.i.bf16 %v3976_v25, %v3952_v12  ;;  %v12357_v37 = vpack.i.bf16 %v3977_v39, %v3976_v25  ;;  %v16632_v44 = vld [vmem:[#allocation7 + $0x41] sm:$0xff]  ;;  %v3999_v62 = vld [vmem:[#allocation7 + $0x91] sm:$0xff]  ;;  %v5469_v25 = vld [vmem:[#allocation8 + $0x9] sm:$0xff] }
 0x696   : > { %12338 = vrot.lane.b32.xlu0 %v12337_v20, %s20386_s27  ;;  %v16637_v33 = vld [vmem:[#allocation7 + $0x70] sm:$0xff] }
 0x697   : > { %12348 = vrot.lane.b32.xlu1 %v12347_v43, %s20384_s22  ;;  %v16621_v51 = vld [vmem:[#allocation7 + $0x50] sm:$0xff] }
 0x698   : > { %v12392_v8 = vpack.i.bf16 %v16621_v51, %v16572_v4  ;;  %v16629_v54 = vld [vmem:[#allocation7 + $0x51] sm:$0xff]  ;;  %v3966_v14 = vld [vmem:[#allocation7 + $0x80] sm:$0xff] }
 0x699   : > { %v12397_v27 = vpack.i.bf16 %v16629_v54, %v16632_v44  ;;  %v12402_v28 = vpack.i.bf16 %v3966_v14, %v16637_v33  ;;  %v3956_v35 = vld [vmem:[#allocation7 + $0x52] sm:$0xff]  ;;  %v3982_v59 = vld [vmem:[#allocation7 + $0x82] sm:$0xff]  ;;  %v12412_v5 = vpack.i.bf16 %v3991_v41, %v3966_v14 }
 0x69a   : > { %12363 = vrot.lane.b32.xlu0 %v12362_v58, %s20369_s28  ;;  %v3981_v1 = vld [vmem:[#allocation7 + $0x72] sm:$0xff]  ;;  %v12387_v3 = vpack.i.bf16 %v3956_v35, %v3978_v57  ;;  %v16643_v50 = vld [vmem:[#allocation7 + $0x60] sm:$0xff] }
 0x69b   : > { %12353 = vrot.lane.b32.xlu1 %v12352_v24, %s20384_s22  ;;  %v12407_v21 = vpack.i.bf16 %v3982_v59, %v3981_v1  ;;  %v12432_v47 = vpack.i.bf16 %v16643_v50, %v16621_v51  ;;  %v3980_v11 = vld [vmem:[#allocation7 + $0x62] sm:$0xff]  ;;  %v16657_v53 = vld [vmem:[#allocation7 + $0x71] sm:$0xff]  ;;  %v12442_v20 = vpack.i.bf16 %v16637_v33, %v16643_v50  ;;  %v6932_v41 = vld [vmem:[#allocation3 + $0x39] sm:$0xff] }
 0x69c   : > { %v16650_v12 = vld [vmem:[#allocation7 + $0x81] sm:$0xff]  ;;  %v12437_v57 = vpack.i.bf16 %v3980_v11, %v3956_v35  ;;  %v14351_v43 = vld [vmem:[%s20281_s9 + $0x80] sm:$0xff]   ;;  %v12427_v60 = vpack.i.bf16 %v3981_v1, %v3980_v11 }
 0x69d   : > { %v12417_v42 = vpack.i.bf16 %v3999_v62, %v16650_v12  ;;  %v16655_v15 = vld [vmem:[#allocation7 + $0x61] sm:$0xff]  ;;  %11272 = vmatprep.subr.bf16.mxu0 %v14351_v43  ;;  %v6928_v1 = vld [vmem:[#allocation3 + $0x9] sm:$0xff] }
 0x69e   : > { %12368 = vrot.lane.b32.xlu0 %v12367_v32, %s20384_s22  ;;  %v12422_v39 = vpack.i.bf16 %v16657_v53, %v16655_v15  ;;  %v4359_v58 = vld [vmem:[#allocation5 + $0x91] sm:$0xff]  ;;  %11273 = vmatpush3.bf16.msra.mxu0 %v14351_v43  ;;  %v6933_v62 = vld [vmem:[#allocation3 + $0x49] sm:$0xff] }
 0x69f   : > { %12358 = vrot.lane.b32.xlu1 %v12357_v37, %s20386_s27  ;;  %v12457_v23 = vpack.i.bf16 %v4359_v58, %v16365_v6  ;;  %v12472_v37 = vpack.i.bf16 %v5660_v26, %v5659_v0  ;;  %v6927_v35 = vld [vmem:[#allocation3 + $0x1] sm:$0xff]  ;;  %v6939_v0 = vld [vmem:[#allocation3 + $0x91] sm:$0xff] }
 0x6a0   : > { %v12482_v6 = vpack.i.bf16 %v6928_v1, %v6927_v35  ;;  %v6930_v59 = vld [vmem:[#allocation3 + $0x21] sm:$0xff]  ;;  %v6950_v35 = vld [vmem:[#allocation3 + $0x111] sm:$0xff] }
 0x6a1   : > { %v6947_v1 = vld [vmem:[#allocation3 + $0xf1] sm:$0xff] }
 0x6a2   : > { %12373 = vrot.lane.b32.xlu0 %v12372_v10, %s20386_s27  ;;  %v5501_v10 = vld [vmem:[#allocation8 + $0xa] sm:$0xff] }
 0x6a3   : > { %12393 = vrot.lane.b32.xlu1 %v12392_v8, %s20386_s27  ;;  %v5691_v8 = vld [vmem:[#allocation8 + $0x199] sm:$0xff]  ;;  %v12467_v14 = vpack.i.bf16 %v5501_v10, %v5500_v19  ;;  %v6946_v19 = vld [vmem:[#allocation3 + $0xe1] sm:$0xff] }
 0x6a4   : > { %v6943_v10 = vld [vmem:[#allocation3 + $0xc1] sm:$0xff] }
 0x6a6   : > { %12378 = vrot.lane.b32.xlu0 %v12352_v24, %s20369_s28  ;;  %v5468_v24 = vld [vmem:[#allocation8 + $0x1] sm:$0xff] }
 0x6a7   : > { %12398 = vrot.lane.b32.xlu1 %v12397_v27, %s20369_s28  ;;  %v12462_v32 = vpack.i.bf16 %v5469_v25, %v5468_v24  ;;  %v6940_v24 = vld [vmem:[#allocation3 + $0x99] sm:$0xff]  ;;  %v6942_v25 = vld [vmem:[#allocation3 + $0xb1] sm:$0xff] }
 0x6a8   : > { %v16704_v26 = vpack.i.bf16 %v6940_v24, %v6939_v0  ;;  %v6959_v24 = vld [vmem:[#allocation3 + $0x2] sm:$0xff] }
 0x6aa   : > { %12383 = vrot.lane.b32.xlu0 %v12397_v27, %s20384_s22  ;;  %v5692_v27 = vld [vmem:[#allocation8 + $0x1a1] sm:$0xff]  ;;  %20411 = vst [vmem:[#allocation16_spill] sm:$0xff] %v16704_v26 }
 0x6ab   : > { %12403 = vrot.lane.b32.xlu1 %v12402_v28, %s20369_s28  ;;  %v12477_v28 = vpack.i.bf16 %v5692_v27, %v5691_v8  ;;  %v6945_v27 = vld [vmem:[#allocation3 + $0xd9] sm:$0xff] }
 0x6ae   : > { %12388 = vrot.lane.b32.xlu0 %v12387_v3, %s20386_s27  ;;  %v6929_v3 = vld [vmem:[#allocation3 + $0x19] sm:$0xff] }
 0x6af   : > { %12408 = vrot.lane.b32.xlu1 %v12407_v21, %s20384_s22  ;;  %v16683_v21 = vpack.i.bf16 %v6930_v59, %v6929_v3  ;;  %v6952_v3 = vld [vmem:[#allocation3 + $0x129] sm:$0xff] }
 0x6b2   : > { %12433 = vrot.lane.b32.xlu0 %v12432_v47, %s20369_s28  ;;  %v6934_v47 = vld [vmem:[#allocation3 + $0x51] sm:$0xff] }
 0x6b3   : > { %12413 = vrot.lane.b32.xlu1 %v12412_v5, %s20386_s27  ;;  %v6931_v5 = vld [vmem:[#allocation3 + $0x31] sm:$0xff] }
 0x6b4   : > { %v16688_v11 = vpack.i.bf16 %v6932_v41, %v6931_v5  ;;  %v6954_v41 = vld [vmem:[#allocation3 + $0x141] sm:$0xff] }
 0x6b6   : > { %12438 = vrot.lane.b32.xlu0 %v12437_v57, %s20384_s22  ;;  %v16690_v57 = vpack.i.bf16 %v6934_v47, %v6933_v62  ;;  %v6951_v47 = vld [vmem:[#allocation3 + $0x121] sm:$0xff]  ;;  %v6953_v62 = vld [vmem:[#allocation3 + $0x139] sm:$0xff] }
 0x6b7   : > { %12418 = vrot.lane.b32.xlu1 %v12417_v42, %s20369_s28  ;;  %v6936_v42 = vld [vmem:[#allocation3 + $0x69] sm:$0xff]  ;;  %v16728_v5 = vpack.i.bf16 %v6952_v3, %v6951_v47  ;;  %v6966_v3 = vld [vmem:[#allocation3 + $0x52] sm:$0xff] }
 0x6b9   : > { %20417 = vst [vmem:[#allocation22_spill] sm:$0xff] %v16728_v5 }
 0x6ba   : > { %12443 = vrot.lane.b32.xlu0 %v12442_v20, %s20386_s27  ;;  %v6938_v20 = vld [vmem:[#allocation3 + $0x81] sm:$0xff] }
 0x6bb   : > { %12423 = vrot.lane.b32.xlu1 %v12422_v39, %s20384_s22 }
 0x6be   : > { %12448 = vrot.lane.b32.xlu0 %v12422_v39, %s20369_s28  ;;  %v6935_v39 = vld [vmem:[#allocation3 + $0x61] sm:$0xff] }
 0x6bf   : > { %12428 = vrot.lane.b32.xlu1 %v12427_v60, %s20386_s27  ;;  %v16696_v43 = vpack.i.bf16 %v6936_v42, %v6935_v39  ;;  %v6937_v60 = vld [vmem:[#allocation3 + $0x79] sm:$0xff]  ;;  %v16730_v42 = vpack.i.bf16 %v6954_v41, %v6953_v62  ;;  %v6958_v39 = vld [vmem:[#allocation3 + $0x171] sm:$0xff]  ;;  %v6967_v62 = vld [vmem:[#allocation3 + $0x62] sm:$0xff] }
 0x6c0   : > { %v16698_v58 = vpack.i.bf16 %v6938_v20, %v6937_v60  ;;  %v6956_v20 = vld [vmem:[#allocation3 + $0x159] sm:$0xff]  ;;  %v6955_v60 = vld [vmem:[#allocation3 + $0x151] sm:$0xff] }
 0x6c1   : > { %20418 = vst [vmem:[#allocation23_spill] sm:$0xff] %v16730_v42  ;;  %v16736_v0 = vpack.i.bf16 %v6956_v20, %v6955_v60  ;;  %v6968_v20 = vld [vmem:[#allocation3 + $0x6a] sm:$0xff]  ;;  %v6970_v60 = vld [vmem:[#allocation3 + $0x82] sm:$0xff] }
 0x6c2   : > { %12453 = vrot.lane.b32.xlu0 %v16317_v46, %s20367_s18  ;;  %v14352_v46 = vld [vmem:[%s20281_s9 + $0x88] sm:$0xff]   ;;  %20410 = vst [vmem:[#allocation15_spill] sm:$0xff] %v16698_v58 }
 0x6c3   : > { %12458 = vrot.lane.b32.xlu1 %v12457_v23, %s20367_s18  ;;  %11274 = vmatprep.subr.bf16.mxu0 %v14352_v46  ;;  %v6941_v23 = vld [vmem:[#allocation3 + $0xa9] sm:$0xff]  ;;  %20419 = vst [vmem:[#allocation24_spill] sm:$0xff] %v16736_v0 }
 0x6c4   : > { %11275 = vmatpush3.bf16.msra.mxu0 %v14352_v46 }
 0x6c5   : > { %8829 = vmatprep.subr.bf16.mxu0 %v20303_v22 }
 0x6c6   : > { %12463 = vrot.lane.b32.xlu0 %v12462_v32, %s20388_s1  ;;  %v16706_v32 = vpack.i.bf16 %v6942_v25, %v6941_v23  ;;  %v6960_v25 = vld [vmem:[#allocation3 + $0xa] sm:$0xff] }
 0x6c7   : > { %12473 = vrot.lane.b32.xlu1 %v12472_v37, %s20369_s28  ;;  %v6944_v37 = vld [vmem:[#allocation3 + $0xc9] sm:$0xff]  ;;  %s20567_s28 = smov 112  }
 0x6c8   : > { %20412 = vst [vmem:[#allocation17_spill] sm:$0xff] %v16706_v32  ;;  %v16712_v8 = vpack.i.bf16 %v6944_v37, %v6943_v10  ;;  %v6957_v23 = vld [vmem:[#allocation3 + $0x169] sm:$0xff]  ;;  %v6961_v10 = vld [vmem:[#allocation3 + $0x1a] sm:$0xff] }
 0x6c9   : > { %v16738_v37 = vpack.i.bf16 %v6958_v39, %v6957_v23  ;;  %v6969_v39 = vld [vmem:[#allocation3 + $0x7a] sm:$0xff]  ;;  %v6971_v23 = vld [vmem:[#allocation3 + $0x92] sm:$0xff] }
 0x6ca   : > { %12468 = vrot.lane.b32.xlu0 %v12467_v14, %s20384_s22  ;;  %20413 = vst [vmem:[#allocation18_spill] sm:$0xff] %v16712_v8  ;;  %v16714_v14 = vpack.i.bf16 %v6946_v19, %v6945_v27  ;;  %v12562_v19 = vpack.i.bf16 %v6960_v25, %v6959_v24  ;;  %v6962_v27 = vld [vmem:[#allocation3 + $0x22] sm:$0xff]  ;;  %v12582_v24 = vpack.i.bf16 %v6968_v20, %v6967_v62  ;;  %v6979_v20 = vld [vmem:[#allocation3 + $0xf2] sm:$0xff] }
 0x6cb   : > { %12478 = vrot.lane.b32.xlu1 %v12477_v28, %s20367_s18  ;;  %v6948_v28 = vld [vmem:[#allocation3 + $0xf9] sm:$0xff]  ;;  %20420 = vst [vmem:[#allocation25_spill] sm:$0xff] %v16738_v37  ;;  %v12587_v25 = vpack.i.bf16 %v6970_v60, %v6969_v39  ;;  %v6981_v60 = vld [vmem:[#allocation3 + $0x10a] sm:$0xff]  ;;  %s20568_s18 = smov 16  }
 0x6cc   : > { %20414 = vst [vmem:[#allocation19_spill] sm:$0xff] %v16714_v14  ;;  %v16720_v46 = vpack.i.bf16 %v6948_v28, %v6947_v1  ;;  %v12567_v28 = vpack.i.bf16 %v6962_v27, %v6961_v10  ;;  %v6964_v1 = vld [vmem:[#allocation3 + $0x3a] sm:$0xff]  ;;  %v6974_v27 = vld [vmem:[#allocation3 + $0xb2] sm:$0xff] }
 0x6cd   : > { %v6972_v10 = vld [vmem:[#allocation3 + $0x9a] sm:$0xff] }
 0x6ce   : > { %12483 = vrot.lane.b32.xlu0 %v12482_v6, %s20409_s20  ;;  %20415 = vst [vmem:[#allocation20_spill] sm:$0xff] %v16720_v46  ;;  %v6949_v6 = vld [vmem:[#allocation3 + $0x109] sm:$0xff]  ;;  %v6980_v39 = vld [vmem:[#allocation3 + $0xfa] sm:$0xff] }
 0x6cf   : > { %12488 = vrot.lane.b32.xlu1 %v16683_v21, %s20409_s20  ;;  %v16722_v59 = vpack.i.bf16 %v6950_v35, %v6949_v6  ;;  %v6963_v35 = vld [vmem:[#allocation3 + $0x32] sm:$0xff]  ;;  %v6965_v6 = vld [vmem:[#allocation3 + $0x4a] sm:$0xff] }
 0x6d0   : > { %v12572_v41 = vpack.i.bf16 %v6964_v1, %v6963_v35  ;;  %v12577_v47 = vpack.i.bf16 %v6966_v3, %v6965_v6  ;;  %v6975_v1 = vld [vmem:[#allocation3 + $0xc2] sm:$0xff]  ;;  %v6976_v6 = vld [vmem:[#allocation3 + $0xca] sm:$0xff]  ;;  %v6977_v3 = vld [vmem:[#allocation3 + $0xda] sm:$0xff] }
 0x6d1   : > { %20416 = vst [vmem:[#allocation21_spill] sm:$0xff] %v16722_v59 }
 0x6d2   : > { %12493 = vrot.lane.b32.xlu0 %v16688_v11, %s20409_s20 }
 0x6d3   : > { %12498 = vrot.lane.b32.xlu1 %v16690_v57, %s20409_s20 }
 0x6d6   : > { %12503 = vrot.lane.b32.xlu0 %v16696_v43, %s20409_s20 }
 0x6d7   : > { %12508 = vrot.lane.b32.xlu1 %v16698_v58, %s20409_s20  ;;  %v16790_v58 = vld [vmem:[#allocation3 + $0xf0] sm:$0xff] }
 0x6da   : > { %12513 = vrot.lane.b32.xlu0 %v16704_v26, %s20409_s20 }
 0x6db   : > { %12518 = vrot.lane.b32.xlu1 %v16706_v32, %s20409_s20  ;;  %v7005_v32 = vld [vmem:[#allocation3 + $0xc0] sm:$0xff] }
 0x6de   : > { %12523 = vrot.lane.b32.xlu0 %v16712_v8, %s20409_s20  ;;  %v7003_v8 = vld [vmem:[#allocation3 + $0xa8] sm:$0xff] }
 0x6df   : > { %12528 = vrot.lane.b32.xlu1 %v16714_v14, %s20409_s20 }
 0x6e2   : > { %12533 = vrot.lane.b32.xlu0 %v16720_v46, %s20409_s20 }
 0x6e3   : > { %12538 = vrot.lane.b32.xlu1 %v16722_v59, %s20409_s20 }
 0x6e6   : > { %12543 = vrot.lane.b32.xlu0 %v16728_v5, %s20409_s20 }
 0x6e7   : > { %12548 = vrot.lane.b32.xlu1 %v16730_v42, %s20409_s20  ;;  %v3935_v42 = vld [vmem:[#allocation7] sm:$0xff] }
 0x6ea   : > { %12553 = vrot.lane.b32.xlu0 %v16736_v0, %s20409_s20  ;;  %v7012_v0 = vld [vmem:[#allocation3 + $0x110] sm:$0xff] }
 0x6eb   : > { %12558 = vrot.lane.b32.xlu1 %v16738_v37, %s20409_s20  ;;  %v16778_v37 = vld [vmem:[#allocation3 + $0xe0] sm:$0xff] }
 0x6ee   : > { %12563 = vrot.lane.b32.xlu0 %v12562_v19, %s20388_s1  ;;  %v6973_v19 = vld [vmem:[#allocation3 + $0xaa] sm:$0xff] }
 0x6ef   : > { %12568 = vrot.lane.b32.xlu1 %v12567_v28, %s20388_s1  ;;  %v12592_v28 = vpack.i.bf16 %v6972_v10, %v6971_v23  ;;  %v12597_v35 = vpack.i.bf16 %v6974_v27, %v6973_v19  ;;  %v6983_v10 = vld [vmem:[#allocation3 + $0x122] sm:$0xff]  ;;  %v6984_v19 = vld [vmem:[#allocation3 + $0x12a] sm:$0xff]  ;;  %v6985_v27 = vld [vmem:[#allocation3 + $0x13a] sm:$0xff] }
 0x6f2   : > { %12573 = vrot.lane.b32.xlu0 %v12572_v41, %s20388_s1  ;;  %v6978_v41 = vld [vmem:[#allocation3 + $0xe2] sm:$0xff] }
 0x6f3   : > { %12578 = vrot.lane.b32.xlu1 %v12577_v47, %s20388_s1  ;;  %v12602_v47 = vpack.i.bf16 %v6976_v6, %v6975_v1  ;;  %v12607_v62 = vpack.i.bf16 %v6978_v41, %v6977_v3  ;;  %v12622_v1 = vpack.i.bf16 %v6984_v19, %v6983_v10  ;;  %v6987_v41 = vld [vmem:[#allocation3 + $0x152] sm:$0xff] }
 0x6f4   : > { %v6994_v10 = vld [vmem:[#allocation3 + $0x38] sm:$0xff] }
 0x6f5   : > { %v6991_v19 = vld [vmem:[#allocation3 + $0x18] sm:$0xff] }
 0x6f6   : > { %12583 = vrot.lane.b32.xlu0 %v12582_v24, %s20388_s1  ;;  %v6982_v24 = vld [vmem:[#allocation3 + $0x112] sm:$0xff] }
 0x6f7   : > { %12588 = vrot.lane.b32.xlu1 %v12587_v25, %s20388_s1  ;;  %v12612_v25 = vpack.i.bf16 %v6980_v39, %v6979_v20  ;;  %v12617_v23 = vpack.i.bf16 %v6982_v24, %v6981_v60  ;;  %v6990_v20 = vld [vmem:[#allocation3 + $0x172] sm:$0xff] }
 0x6fa   : > { %12593 = vrot.lane.b32.xlu0 %v12592_v28, %s20388_s1  ;;  %v6986_v28 = vld [vmem:[#allocation3 + $0x142] sm:$0xff] }
 0x6fb   : > { %12598 = vrot.lane.b32.xlu1 %v12597_v35, %s20388_s1  ;;  %v12627_v3 = vpack.i.bf16 %v6986_v28, %v6985_v27 }
 0x6fe   : > { %12603 = vrot.lane.b32.xlu0 %v12602_v47, %s20388_s1  ;;  %v6988_v47 = vld [vmem:[#allocation3 + $0x15a] sm:$0xff] }
 0x6ff   : > { %12608 = vrot.lane.b32.xlu1 %v12607_v62, %s20388_s1  ;;  %v6989_v62 = vld [vmem:[#allocation3 + $0x16a] sm:$0xff]  ;;  %v12632_v60 = vpack.i.bf16 %v6988_v47, %v6987_v41  ;;  %v6997_v41 = vld [vmem:[#allocation3 + $0x60] sm:$0xff] }
 0x700   : > { %v6998_v47 = vld [vmem:[#allocation3 + $0x68] sm:$0xff] }
 0x701   : > { %v12657_v46 = vpack.i.bf16 %v6998_v47, %v6997_v41  ;;  %v12677_v41 = vpack.i.bf16 %v16774_v29, %v7005_v32 }
 0x702   : > { %12613 = vrot.lane.b32.xlu0 %v12612_v25, %s20388_s1  ;;  %v12637_v25 = vpack.i.bf16 %v6990_v20, %v6989_v62  ;;  %v6999_v62 = vld [vmem:[#allocation3 + $0x78] sm:$0xff]  ;;  %v7000_v20 = vld [vmem:[#allocation3 + $0x80] sm:$0xff] }
 0x703   : > { %12618 = vrot.lane.b32.xlu1 %v12617_v23, %s20388_s1  ;;  %v6992_v23 = vld [vmem:[#allocation3 + $0x20] sm:$0xff]  ;;  %v12662_v14 = vpack.i.bf16 %v7000_v20, %v6999_v62 }
 0x704   : > { %v16756_v35 = vpop.permute.xlu0 %12333  ;;  %v12642_v28 = vpack.i.bf16 %v6992_v23, %v6991_v19 }
 0x705   : > { %v16758_v6 = vpop.permute.xlu1 %12343  ;;  %v12336_v23 = vunpack.i.h.bf16 %v16756_v35 }
 0x706   : > { %12623 = vrot.lane.b32.xlu0 %v12622_v1, %s20388_s1  ;;  %v6993_v1 = vld [vmem:[#allocation3 + $0x30] sm:$0xff] }
 0x707   : > { %12628 = vrot.lane.b32.xlu1 %v12627_v3, %s20388_s1  ;;  %v12647_v7 = vpack.i.bf16 %v6994_v10, %v6993_v1  ;;  %v6995_v3 = vld [vmem:[#allocation3 + $0x48] sm:$0xff]  ;;  %v12335_v10 = vunpack.i.l.bf16 %v16756_v35 }
 0x708   : > { %v12339_v39 = vpop.permute.xlu0 %12338  ;;  %v12652_v1 = vpack.i.bf16 %v6996_v56, %v6995_v3  ;;  %v12672_v3 = vpack.i.bf16 %v16772_v36, %v7003_v8  ;;  %v4201_v36 = vsel %vm711_vm4, %v16598_v30, %v12336_v23 }
 0x709   : > { %v16762_v24 = vpop.permute.xlu1 %12348  ;;  %v12341_v5 = vunpack.i.h.bf16 %v12339_v39  ;;  %v4200_v20 = vsel %vm711_vm4, %v3935_v42, %v12335_v10 }
 0x70a   : > { %12633 = vrot.lane.b32.xlu0 %v12632_v60, %s20388_s1  ;;  %v7001_v60 = vld [vmem:[#allocation3 + $0x90] sm:$0xff]  ;;  %v12351_v26 = vunpack.i.h.bf16 %v16762_v24  ;;  %v12350_v35 = vunpack.i.l.bf16 %v16762_v24 }
 0x70b   : > { %12638 = vrot.lane.b32.xlu1 %v12637_v25, %s20388_s1  ;;  %v7002_v25 = vld [vmem:[#allocation3 + $0x98] sm:$0xff]  ;;  %v4209_v32 = vsel %vm3287_vm0, %v4201_v36, %v12341_v5  ;;  %v16823_v36 = vld [vmem:[#allocation3 + $0x128] sm:$0xff] }
 0x70c   : > { %v16766_v27 = vpop.permute.xlu0 %12363  ;;  %v12667_v56 = vpack.i.bf16 %v7002_v25, %v7001_v60  ;;  %v4226_v42 = vsel %vm711_vm4, %v16602_v34, %v12350_v35 }
 0x70d   : > { %v16768_v22 = vpop.permute.xlu1 %12353  ;;  %v12366_v8 = vunpack.i.h.bf16 %v16766_v27  ;;  %v12365_v60 = vunpack.i.l.bf16 %v16766_v27 }
 0x70e   : > { %12643 = vrot.lane.b32.xlu0 %v12642_v28, %s20421_s0  ;;  %v16780_v28 = vld [vmem:[#allocation3 + $0xf8] sm:$0xff]  ;;  %v12356_v27 = vunpack.i.h.bf16 %v16768_v22  ;;  %v12355_v23 = vunpack.i.l.bf16 %v16768_v22 }
 0x70f   : > { %12648 = vrot.lane.b32.xlu1 %v12647_v7, %s20421_s0  ;;  %v12340_v7 = vunpack.i.l.bf16 %v12339_v39  ;;  %v7011_v39 = vld [vmem:[#allocation3 + $0x108] sm:$0xff]  ;;  %v12687_v24 = vpack.i.bf16 %v16780_v28, %v16790_v58  ;;  %v4217_v5 = vsel %vm3663_vm10, %v4209_v32, %v12366_v8  ;;  %v12236_v28 = vunpack.i.h.bf16 %v16422_v38 }
 0x710   : > { %v12369_v19 = vpop.permute.xlu0 %12368  ;;  %v16798_v62 = vpack.i.bf16 %v7012_v0, %v7011_v39  ;;  %v4227_v0 = vsel %vm711_vm4, %v16632_v44, %v12351_v26 }
 0x711   : > { %v16782_v59 = vpop.permute.xlu1 %12358  ;;  %v4208_v29 = vsel %vm3287_vm0, %v4200_v20, %v12340_v7  ;;  %v12371_v25 = vunpack.i.h.bf16 %v12369_v19 }
 0x712   : > { %12653 = vrot.lane.b32.xlu0 %v12652_v1, %s20421_s0  ;;  %v12370_v1 = vunpack.i.l.bf16 %v12369_v19  ;;  %v4216_v19 = vsel %vm3663_vm10, %v4208_v29, %v12365_v60  ;;  %v12361_v44 = vunpack.i.h.bf16 %v16782_v59  ;;  %v12360_v34 = vunpack.i.l.bf16 %v16782_v59  ;;  %v16830_v29 = vld [vmem:[#allocation3 + $0x158] sm:$0xff] }
 0x713   : > { %12658 = vrot.lane.b32.xlu1 %v12657_v46, %s20421_s0 }
 0x714   : > { %v12374_v46 = vpop.permute.xlu0 %12373  ;;  %v4224_v35 = vsel %vm711_vm4, %v16566_v9, %v12370_v1  ;;  %v7013_v1 = vld [vmem:[#allocation3 + $0x120] sm:$0xff] }
 0x715   : > { %v12394_v47 = vpop.permute.xlu1 %12393  ;;  %v12376_v10 = vunpack.i.h.bf16 %v12374_v46  ;;  %v12375_v30 = vunpack.i.l.bf16 %v12374_v46  ;;  %v16828_v46 = vld [vmem:[#allocation3 + $0x140] sm:$0xff] }
 0x716   : > { %12663 = vrot.lane.b32.xlu0 %v12662_v14, %s20421_s0  ;;  %v12396_v7 = vunpack.i.h.bf16 %v12394_v47  ;;  %v12395_v39 = vunpack.i.l.bf16 %v12394_v47  ;;  %v4225_v14 = vsel %vm711_vm4, %v16595_v16, %v12371_v25 }
 0x717   : > { %12668 = vrot.lane.b32.xlu1 %v12667_v56, %s20421_s0  ;;  %v4232_v60 = vsel %vm3287_vm0, %v4224_v35, %v12375_v30  ;;  %v4233_v59 = vsel %vm3287_vm0, %v4225_v14, %v12376_v10  ;;  %v16844_v35 = vld [vmem:[#allocation3 + $0x138] sm:$0xff] }
 0x718   : > { %v12379_v26 = vpop.permute.xlu0 %12378  ;;  %v4234_v32 = vsel %vm3287_vm0, %v4226_v42, %v12395_v39  ;;  %v4235_v25 = vsel %vm3287_vm0, %v4227_v0, %v12396_v7  ;;  %v4248_v42 = vpack.c.bf16 %v4217_v5, %v4216_v19  ;;  %v12702_v39 = vpack.i.bf16 %v16828_v46, %v16844_v35 }
 0x719   : > { %v12381_v22 = vunpack.i.h.bf16 %v12379_v26  ;;  %v12380_v20 = vunpack.i.l.bf16 %v12379_v26  ;;  %v12399_v47 = vpop.permute.xlu1 %12398  ;;  %v4202_v5 = vsel %vm711_vm4, %v16589_v18, %v12355_v23  ;;  %v20422_v19 = vpack.i.bf16 %v16778_v37, %v16788_v45 }
 0x71a   : > { %v12401_v56 = vunpack.i.h.bf16 %v12399_v47  ;;  %v12400_v8 = vunpack.i.l.bf16 %v12399_v47  ;;  %12673 = vrot.lane.b32.xlu0 %v12672_v3, %s20421_s0  ;;  %v16837_v3 = vld [vmem:[#allocation3 + $0x188] sm:$0xff]  ;;  %v12215_v37 = vunpack.i.l.bf16 %v16409_v13  ;;  %v12345_v23 = vunpack.i.l.bf16 %v16758_v6 }
 0x71b   : > { %12678 = vrot.lane.b32.xlu1 %v12677_v41, %s20421_s0  ;;  %v4240_v9 = vsel %vm3663_vm10, %v4232_v60, %v12380_v20  ;;  %v4241_v16 = vsel %vm3663_vm10, %v4233_v59, %v12381_v22  ;;  %v12697_v41 = vpack.i.bf16 %v16823_v36, %v7013_v1  ;;  %v16846_v20 = vld [vmem:[#allocation3 + $0x150] sm:$0xff]  ;;  %v16860_v36 = vld [vmem:[#allocation5 + $0x92] sm:$0xff]  ;;  %v4203_v60 = vsel %vm711_vm4, %v16570_v55, %v12356_v27 }
 0x71c   : > { %v16839_v30 = vpop.permute.xlu0 %12383  ;;  %v4249_v10 = vpack.c.bf16 %v4241_v16, %v4240_v9  ;;  %v4242_v26 = vsel %vm3663_vm10, %v4234_v32, %v12400_v8  ;;  %v4243_v14 = vsel %vm3663_vm10, %v4235_v25, %v12401_v56  ;;  %v16848_v22 = vld [vmem:[#allocation3 + $0x170] sm:$0xff]  ;;  %v12707_v47 = vpack.i.bf16 %v16830_v29, %v16846_v20  ;;  %v16856_v8 = vld [vmem:[#allocation3 + $0x180] sm:$0xff]  ;;  %v16870_v59 = vld [vmem:[#allocation3 + $0x168] sm:$0xff] }
 0x71d   : > { %v16850_v0 = vpop.permute.xlu1 %12403  ;;  %v4252_v7 = vpack.c.bf16 %v4243_v14, %v4242_v26  ;;  %v16858_v56 = vld [vmem:[#allocation5 + $0x82] sm:$0xff]  ;;  %v12717_v46 = vpack.i.bf16 %v16837_v3, %v16856_v8  ;;  %v12216_v29 = vunpack.i.h.bf16 %v16409_v13  ;;  %v4210_v55 = vsel %vm3287_vm0, %v4202_v5, %v12360_v34  ;;  %v14389_v1 = vld [vmem:[#allocation5 + $0x50] sm:$0xff] }
 0x71e   : > { %4957 = vmatprep.mubr.bf16.mxu1 %v4249_v10  ;;  %12683 = vrot.lane.b32.xlu0 %v20422_v19, %s20421_s0  ;;  %v4211_v18 = vsel %vm3287_vm0, %v4203_v60, %v12361_v44  ;;  %v12712_v45 = vpack.i.bf16 %v16848_v22, %v16870_v59  ;;  %v12346_v27 = vunpack.i.h.bf16 %v16758_v6  ;;  %v4655_v58 = vpack.c.bf16 %v16860_v36, %v16858_v56  ;;  %v14390_v14 = vld [vmem:[#allocation5 + $0x40] sm:$0xff]  ;;  %v14391_v59 = vld [vmem:[#allocation5 + $0x70] sm:$0xff]  ;;  %v20432_v56 = vld [vmem:[#allocation19_spill] sm:$0xff] }
 0x71f   : > { %4958 = vmatmul.mubr.bf16.vlgmr.msra.gmra.mrb[20].mxu1 %v4248_v42  ;;  %12688 = vrot.lane.b32.xlu1 %v12687_v24, %s20421_s0  ;;  %v12235_v24 = vunpack.i.l.bf16 %v16422_v38  ;;  %v12221_v44 = vunpack.i.h.bf16 %v16426_v17  ;;  %v12220_v34 = vunpack.i.l.bf16 %v16426_v17  ;;  %v12256_v13 = vunpack.i.h.bf16 %v16428_v31  ;;  %v4000_v36 = vld [vmem:[#allocation7 + $0x22] sm:$0xff] }
 0x720   : > { %4965 = vmatprep.mubr.bf16.mxu1 %v4252_v7  ;;  %v16886_v9 = vpop.permute.xlu0 %12388  ;;  %v12255_v6 = vunpack.i.l.bf16 %v16428_v31  ;;  %v4218_v32 = vsel %vm3663_vm10, %v4210_v55, %v12345_v23  ;;  %v4219_v25 = vsel %vm3663_vm10, %v4211_v18, %v12346_v27  ;;  %v4597_v38 = vsel %vm682_vm3, %v14389_v1, %v12216_v29  ;;  %v14392_v29 = vld [vmem:[#allocation5 + $0x60] sm:$0xff] }
 0x721   : > { %v16894_v16 = vpop.permute.xlu1 %12408  ;;  %v12241_v10 = vunpack.i.h.bf16 %v16432_v61  ;;  %v12240_v17 = vunpack.i.l.bf16 %v16432_v61  ;;  %v12275_v26 = vunpack.i.l.bf16 %v16434_v48  ;;  %v4596_v31 = vsel %vm682_vm3, %v14390_v14, %v12215_v37 }
 0x722   : > { %12693 = vrot.lane.b32.xlu0 %v16798_v62, %s20421_s0  ;;  %v12276_v35 = vunpack.i.h.bf16 %v16434_v48  ;;  %v12260_v20 = vunpack.i.l.bf16 %v16438_v2  ;;  %v12295_v22 = vunpack.i.l.bf16 %v16440_v49  ;;  %v4604_v7 = vsel %vm711_vm4, %v4596_v31, %v12235_v24 }
 0x723   : > { %12698 = vrot.lane.b32.xlu1 %v12697_v41, %s20421_s0  ;;  %v4605_v60 = vsel %vm711_vm4, %v4597_v38, %v12236_v28  ;;  %v12296_v61 = vunpack.i.h.bf16 %v16440_v49  ;;  %v4251_v19 = vpack.c.bf16 %v4219_v25, %v4218_v32  ;;  %v4599_v41 = vsel %vm682_vm3, %v14391_v59, %v12221_v44 }
 0x724   : > { %v12434_v42 = vpop.permute.xlu0 %12433  ;;  %v4598_v55 = vsel %vm682_vm3, %v14392_v29, %v12220_v34  ;;  %v4612_v48 = vsel %vm3269_vm14, %v4604_v7, %v12255_v6  ;;  %v4613_v18 = vsel %vm3269_vm14, %v4605_v60, %v12256_v13  ;;  %v16921_v27 = vsel %vm711_vm4, %v4599_v41, %v12241_v10 }
 0x725   : > { %v12414_v5 = vpop.permute.xlu1 %12413  ;;  %v4606_v37 = vsel %vm711_vm4, %v4598_v55, %v12240_v17  ;;  %v4620_v49 = vsel %vm3287_vm0, %v4612_v48, %v12275_v26  ;;  %v12385_v23 = vunpack.i.l.bf16 %v16839_v30  ;;  %v4621_v28 = vsel %vm3287_vm0, %v4613_v18, %v12276_v35 }
 0x726   : > { %12703 = vrot.lane.b32.xlu0 %v12702_v39, %s20421_s0  ;;  %v12261_v24 = vunpack.i.h.bf16 %v16438_v2  ;;  %v16929_v44 = vsel %vm3269_vm14, %v4606_v37, %v12260_v20  ;;  %v4628_v39 = vsel %vm3658_vm9, %v4620_v49, %v12295_v22  ;;  %v4629_v13 = vsel %vm3658_vm9, %v4621_v28, %v12296_v61 }
 0x727   : > { %4966 = vmatmul.mubr.bf16.gmra.mrb[24].mxu1 %v4251_v19  ;;  %12708 = vrot.lane.b32.xlu1 %v12707_v47, %s20421_s0  ;;  %v12281_v6 = vunpack.i.h.bf16 %v16444_v40  ;;  %v12386_v32 = vunpack.i.h.bf16 %v16839_v30  ;;  %v12390_v25 = vunpack.i.l.bf16 %v16886_v9  ;;  %v12280_v47 = vunpack.i.l.bf16 %v16444_v40  ;;  %v20429_v40 = vld [vmem:[#allocation18_spill] sm:$0xff] }
 0x728   : > { %v12439_v34 = vpop.permute.xlu0 %12438  ;;  %v12316_v38 = vunpack.i.h.bf16 %v16448_v52  ;;  %v12391_v10 = vunpack.i.h.bf16 %v16886_v9  ;;  %v12411_v17 = vunpack.i.h.bf16 %v16894_v16  ;;  %v4204_v26 = vsel %vm711_vm4, %v16572_v4, %v12385_v23 }
 0x729   : > { %v12419_v1 = vpop.permute.xlu1 %12418  ;;  %v12410_v14 = vunpack.i.l.bf16 %v16894_v16  ;;  %v12436_v31 = vunpack.i.h.bf16 %v12434_v42  ;;  %v12435_v30 = vunpack.i.l.bf16 %v12434_v42  ;;  %v12416_v35 = vunpack.i.h.bf16 %v12414_v5 }
 0x72a   : > { %12713 = vrot.lane.b32.xlu0 %v12712_v45, %s20421_s0  ;;  %v12415_v20 = vunpack.i.l.bf16 %v12414_v5  ;;  %v12441_v22 = vunpack.i.h.bf16 %v12439_v34  ;;  %v12440_v9 = vunpack.i.l.bf16 %v12439_v34  ;;  %v12315_v60 = vunpack.i.l.bf16 %v16448_v52 }
 0x72b   : > { %12718 = vrot.lane.b32.xlu1 %v12717_v46, %s20421_s0  ;;  %v4205_v45 = vsel %vm711_vm4, %v16621_v51, %v12386_v32  ;;  %v12420_v4 = vunpack.i.l.bf16 %v12419_v1  ;;  %v4212_v16 = vsel %vm3287_vm0, %v4204_v26, %v12390_v25  ;;  %v4231_v42 = vsel %vm711_vm4, %v16650_v12, %v12411_v17 }
 0x72c   : > { %v12444_v7 = vpop.permute.xlu0 %12443  ;;  %v4213_v8 = vsel %vm3287_vm0, %v4205_v45, %v12391_v10  ;;  %v4230_v52 = vsel %vm711_vm4, %v16657_v53, %v12410_v14  ;;  %v12421_v46 = vunpack.i.h.bf16 %v12419_v1  ;;  %v4220_v51 = vsel %vm3663_vm10, %v4212_v16, %v12435_v30 }
 0x72d   : > { %v12424_v61 = vpop.permute.xlu1 %12423  ;;  %v12446_v19 = vunpack.i.h.bf16 %v12444_v7  ;;  %v12445_v3 = vunpack.i.l.bf16 %v12444_v7  ;;  %v4221_v5 = vsel %vm3663_vm10, %v4213_v8, %v12436_v31  ;;  %v4229_v12 = vsel %vm711_vm4, %v16655_v15, %v12441_v22  ;;  %v20423_v22 = vld [vmem:[#allocation15_spill] sm:$0xff] }
 0x72e   : > { %12723 = vrot.lane.b32.xlu0 %v16683_v21, %s20384_s22  ;;  %v4228_v59 = vsel %vm711_vm4, %v16629_v54, %v12440_v9  ;;  %v4238_v41 = vsel %vm3287_vm0, %v4230_v52, %v12415_v20  ;;  %v4239_v29 = vsel %vm3287_vm0, %v4231_v42, %v12416_v35  ;;  %v12425_v53 = vunpack.i.l.bf16 %v12424_v61 }
 0x72f   : > { %12728 = vrot.lane.b32.xlu1 %v16688_v11, %s20384_s22  ;;  %v4246_v11 = vsel %vm3663_vm10, %v4238_v41, %v12420_v4  ;;  %v12426_v37 = vunpack.i.h.bf16 %v12424_v61  ;;  %v4236_v15 = vsel %vm3287_vm0, %v4228_v59, %v12445_v3  ;;  %v4237_v54 = vsel %vm3287_vm0, %v4229_v12, %v12446_v19 }
 0x730   : > { %v12449_v21 = vpop.permute.xlu0 %12448  ;;  %v4247_v32 = vsel %vm3663_vm10, %v4239_v29, %v12421_v46  ;;  %v12301_v25 = vunpack.i.h.bf16 %v16459_v63  ;;  %v4637_v17 = vsel %vm3663_vm10, %v4629_v13, %v12316_v38  ;;  %v4206_v26 = vsel %vm711_vm4, %v16643_v50, %v12425_v53  ;;  %v20424_v13 = vld [vmem:[#allocation10_spill] sm:$0xff]  ;;  %v20425_v50 = vld [vmem:[#allocation16_spill] sm:$0xff]  ;;  %v20428_v46 = vld [vmem:[#allocation17_spill] sm:$0xff] }
 0x731   : > { %v12451_v55 = vunpack.i.h.bf16 %v12449_v21  ;;  %v12450_v48 = vunpack.i.l.bf16 %v12449_v21  ;;  %v12429_v18 = vpop.permute.xlu1 %12428  ;;  %v4254_v30 = vpack.c.bf16 %v4221_v5, %v4220_v51  ;;  %v12300_v35 = vunpack.i.l.bf16 %v16459_v63  ;;  %v4001_v53 = vld [vmem:[#allocation7 + $0x32] sm:$0xff] }
 0x732   : > { %v12430_v49 = vunpack.i.l.bf16 %v12429_v18  ;;  %12733 = vrot.lane.b32.xlu0 %v16690_v57, %s20384_s22  ;;  %v12431_v23 = vunpack.i.h.bf16 %v12429_v18  ;;  %v4636_v57 = vsel %vm3663_vm10, %v4628_v39, %v12315_v60  ;;  %v4207_v20 = vsel %vm711_vm4, %v16637_v33, %v12426_v37  ;;  %v20434_v18 = vld [vmem:[#allocation21_spill] sm:$0xff] }
 0x733   : > { %12738 = vrot.lane.b32.xlu1 %v16696_v43, %s20384_s22  ;;  %v4244_v28 = vsel %vm3663_vm10, %v4236_v15, %v12450_v48  ;;  %v4245_v34 = vsel %vm3663_vm10, %v4237_v54, %v12451_v55  ;;  %v4258_v9 = vpack.c.bf16 %v4247_v32, %v4246_v11  ;;  %v12321_v38 = vunpack.i.h.bf16 %v20424_v13  ;;  %v20435_v11 = vld [vmem:[#allocation22_spill] sm:$0xff]  ;;  %v4003_v15 = vld [vmem:[#allocation7 + $0x52] sm:$0xff]  ;;  %v20436_v54 = vld [vmem:[#allocation23_spill] sm:$0xff] }
 0x734   : > { %v12454_v1 = vpop.permute.xlu0 %12453  ;;  %v4255_v10 = vpack.c.bf16 %v4245_v34, %v4244_v28  ;;  %v4214_v39 = vsel %vm3287_vm0, %v4206_v26, %v12430_v49  ;;  %v4215_v60 = vsel %vm3287_vm0, %v4207_v20, %v12431_v23  ;;  %v12320_v33 = vunpack.i.l.bf16 %v20424_v13  ;;  %v7054_v23 = vld [vmem:[#allocation3 + $0x189] sm:$0xff]  ;;  %v4005_v34 = vld [vmem:[#allocation7 + $0x72] sm:$0xff]  ;;  %v7058_v20 = vld [vmem:[#allocation3 + $0x3a] sm:$0xff] }
 0x735   : > { %v12456_v14 = vunpack.i.h.bf16 %v12454_v1  ;;  %v12455_v31 = vunpack.i.l.bf16 %v12454_v1  ;;  %v12459_v43 = vpop.permute.xlu1 %12458  ;;  %v12406_v45 = vunpack.i.h.bf16 %v16850_v0  ;;  %v12405_v4 = vunpack.i.l.bf16 %v16850_v0  ;;  %v4004_v28 = vld [vmem:[#allocation7 + $0x62] sm:$0xff]  ;;  %v20437_v32 = vld [vmem:[#allocation24_spill] sm:$0xff] }
 0x736   : > { %12743 = vrot.lane.b32.xlu0 %v20423_v22, %s20384_s22  ;;  %4973 = vmatprep.mubr.bf16.mxu1 %v4255_v10  ;;  %v4615_v42 = vsel %vm3269_vm14, %v16921_v27, %v12261_v24  ;;  %v4622_v19 = vsel %vm3287_vm0, %v16929_v44, %v12280_v47  ;;  %v12461_v3 = vunpack.i.h.bf16 %v12459_v43  ;;  %v12460_v8 = vunpack.i.l.bf16 %v12459_v43  ;;  %v7056_v43 = vld [vmem:[#allocation3 + $0x22] sm:$0xff] }
 0x737   : > { %4974 = vmatmul.mubr.bf16.gmra.mrb[28].mxu1 %v4254_v30  ;;  %12748 = vrot.lane.b32.xlu1 %v20425_v50, %s20384_s22  ;;  %v4644_v7 = vsel %vm3668_vm11, %v4636_v57, %v12455_v31  ;;  %v4645_v63 = vsel %vm3668_vm11, %v4637_v17, %v12456_v14  ;;  %v4623_v0 = vsel %vm3287_vm0, %v4615_v42, %v12281_v6  ;;  %v7053_v57 = vld [vmem:[#allocation3 + $0x181] sm:$0xff]  ;;  %v20438_v30 = vld [vmem:[#allocation25_spill] sm:$0xff] }
 0x738   : > { %v16999_v61 = vpop.permute.xlu0 %12463  ;;  %4981 = vmatprep.mubr.bf16.mxu1 %v4258_v9  ;;  %v4652_v16 = vpack.c.bf16 %v4645_v63, %v4644_v7  ;;  %v4222_v2 = vsel %vm3663_vm10, %v4214_v39, %v12405_v4  ;;  %v4223_v27 = vsel %vm3663_vm10, %v4215_v60, %v12406_v45  ;;  %v4630_v24 = vsel %vm3658_vm9, %v4622_v19, %v12300_v35  ;;  %v7055_v31 = vld [vmem:[#allocation3 + $0x1a] sm:$0xff]  ;;  %v7057_v35 = vld [vmem:[#allocation3 + $0x32] sm:$0xff]  ;;  %v7059_v39 = vld [vmem:[#allocation3 + $0x4a] sm:$0xff] }
 0x739   : > { %20426 = vst [vmem:[#allocation15_spill] sm:$0xff] %v16999_v61  ;;  %v17009_v52 = vpop.permute.xlu1 %12473  ;;  %v4631_v44 = vsel %vm3658_vm9, %v4623_v0, %v12301_v25  ;;  %v4638_v47 = vsel %vm3663_vm10, %v4630_v24, %v12320_v33  ;;  %v4257_v12 = vpack.c.bf16 %v4223_v27, %v4222_v2  ;;  %v4250_v48 = vpack.c.bf16 %v4001_v53, %v4000_v36  ;;  %v4002_v25 = vld [vmem:[#allocation7 + $0x42] sm:$0xff]  ;;  %v7060_v50 = vld [vmem:[#allocation3 + $0x52] sm:$0xff]  ;;  %v7062_v33 = vld [vmem:[#allocation3 + $0x6a] sm:$0xff] }
 0x73a   : > { %20427 = vst [vmem:[#allocation10_spill] sm:$0xff] %v17009_v52  ;;  %12753 = vrot.lane.b32.xlu0 %v20428_v46, %s20384_s22  ;;  %4789 = vmatmul.mubr.bf16.gmra.mrb[40].mxu0 %v4652_v16  ;;  %v4639_v51 = vsel %vm3663_vm10, %v4631_v44, %v12321_v38  ;;  %v4646_v59 = vsel %vm3668_vm11, %v4638_v47, %v12460_v8  ;;  %v4006_v7 = vld [vmem:[#allocation7 + $0x82] sm:$0xff]  ;;  %v4007_v63 = vld [vmem:[#allocation7 + $0x92] sm:$0xff]  ;;  %v7066_v46 = vld [vmem:[#allocation3 + $0x9a] sm:$0xff] }
 0x73b   : > { %10960 = vmatprep.mubr.msk.bf16.mxu0 %vm682_vm3, %v4655_v58  ;;  %12758 = vrot.lane.b32.xlu1 %v20429_v40, %s20384_s22  ;;  %v4647_v21 = vsel %vm3668_vm11, %v4639_v51, %v12461_v3  ;;  %v20433_v58 = vld [vmem:[#allocation20_spill] sm:$0xff]  ;;  %v4253_v10 = vpack.c.bf16 %v4003_v15, %v4002_v25  ;;  %v12797_v26 = vpack.i.bf16 %v7054_v23, %v7053_v57  ;;  %v7061_v60 = vld [vmem:[#allocation3 + $0x62] sm:$0xff]  ;;  %v7063_v3 = vld [vmem:[#allocation3 + $0x7a] sm:$0xff] }
 0x73c   : > { %v17026_v6 = vpop.permute.xlu0 %12468  ;;  %v4654_v29 = vpack.c.bf16 %v4647_v21, %v4646_v59  ;;  %v4256_v14 = vpack.c.bf16 %v4005_v34, %v4004_v28  ;;  %v12802_v9 = vpack.i.bf16 %v7056_v43, %v7055_v31  ;;  %v17068_v38 = vpack.i.bf16 %v7058_v20, %v7057_v35  ;;  %v7064_v8 = vld [vmem:[#allocation3 + $0x82] sm:$0xff]  ;;  %v7065_v0 = vld [vmem:[#allocation3 + $0x92] sm:$0xff]  ;;  %v7067_v40 = vld [vmem:[#allocation3 + $0xaa] sm:$0xff] }
 0x73d   : > { %20430 = vst [vmem:[#allocation16_spill] sm:$0xff] %v17026_v6  ;;  %v17030_v5 = vpop.permute.xlu1 %12478  ;;  %v17075_v4 = vpack.i.bf16 %v7060_v50, %v7059_v39  ;;  %v4259_v16 = vpack.c.bf16 %v4007_v63, %v4006_v7  ;;  %v17079_v19 = vpack.i.bf16 %v7062_v33, %v7061_v60  ;;  %v17088_v27 = vpack.i.bf16 %v7064_v8, %v7063_v3  ;;  %v7068_v47 = vld [vmem:[#allocation3 + $0xb2] sm:$0xff]  ;;  %v7069_v51 = vld [vmem:[#allocation3 + $0xc2] sm:$0xff]  ;;  %v7071_v36 = vld [vmem:[#allocation3 + $0xda] sm:$0xff] }
 0x73e   : > { %20431 = vst [vmem:[#allocation17_spill] sm:$0xff] %v17030_v5  ;;  %12763 = vrot.lane.b32.xlu0 %v20432_v56, %s20384_s22  ;;  %v17092_v44 = vpack.i.bf16 %v7066_v46, %v7065_v0  ;;  %v17100_v21 = vpack.i.bf16 %v7068_v47, %v7067_v40  ;;  %v7073_v53 = vld [vmem:[#allocation3 + $0xf2] sm:$0xff]  ;;  %v7077_v28 = vld [vmem:[#allocation3 + $0x122] sm:$0xff]  ;;  %v7078_v34 = vld [vmem:[#allocation3 + $0x12a] sm:$0xff] }
 0x73f   : > { %12768 = vrot.lane.b32.xlu1 %v20433_v58, %s20384_s22  ;;  %4982 = vmatmul.mubr.bf16.gmra.mrb[32].mxu1 %v4257_v12  ;;  %v7070_v12 = vld [vmem:[#allocation3 + $0xca] sm:$0xff]  ;;  %v7072_v58 = vld [vmem:[#allocation3 + $0xe2] sm:$0xff]  ;;  %v7076_v23 = vld [vmem:[#allocation3 + $0x112] sm:$0xff]  ;;  %v17126_v57 = vpack.i.bf16 %v7078_v34, %v7077_v28 }
 0x740   : > { %v17038_v41 = vpop.permute.xlu0 %12483  ;;  %v17102_v56 = vpack.i.bf16 %v7070_v12, %v7069_v51  ;;  %v7081_v31 = vld [vmem:[#allocation3 + $0x152] sm:$0xff]  ;;  %v7082_v43 = vld [vmem:[#allocation3 + $0x15a] sm:$0xff]  ;;  %v7085_v7 = vld [vmem:[#allocation3 + $0x182] sm:$0xff] }
 0x741   : > { %v17040_v55 = vpop.permute.xlu1 %12488  ;;  %v17136_v20 = vpack.i.bf16 %v7082_v43, %v7081_v31  ;;  %v7084_v39 = vld [vmem:[#allocation3 + $0x172] sm:$0xff]  ;;  %v7086_v63 = vld [vmem:[#allocation3 + $0x18a] sm:$0xff] }
 0x742   : > { %12773 = vrot.lane.b32.xlu0 %v20434_v18, %s20384_s22  ;;  %4797 = vmatmul.mubr.bf16.gmra.mrb[44].mxu0 %v4654_v29  ;;  %v12877_v33 = vpack.i.bf16 %v7086_v63, %v7085_v7  ;;  %v7090_v8 = vld [vmem:[#allocation3 + $0x50] sm:$0xff]  ;;  %v7089_v47 = vld [vmem:[#allocation3 + $0x48] sm:$0xff]  ;;  %v7096_v28 = vld [vmem:[#allocation3 + $0x98] sm:$0xff] }
 0x743   : > { %12778 = vrot.lane.b32.xlu1 %v20435_v11, %s20384_s22  ;;  %11276 = vmatprep.mubr.msk.bf16.mxu0 %vm711_vm4, %v4250_v48  ;;  %v7074_v48 = vld [vmem:[#allocation3 + $0xfa] sm:$0xff]  ;;  %v17112_v11 = vpack.i.bf16 %v7072_v58, %v7071_v36  ;;  %v7087_v0 = vld [vmem:[#allocation3 + $0x30] sm:$0xff]  ;;  %v12887_v51 = vpack.i.bf16 %v7090_v8, %v7089_v47  ;;  %v7092_v12 = vld [vmem:[#allocation3 + $0x68] sm:$0xff] }
 0x744   : > { %v17047_v37 = vpop.permute.xlu0 %12493  ;;  %v17114_v15 = vpack.i.bf16 %v7074_v48, %v7073_v53  ;;  %v7094_v36 = vld [vmem:[#allocation3 + $0x80] sm:$0xff]  ;;  %v7097_v43 = vld [vmem:[#allocation3 + $0xa8] sm:$0xff]  ;;  %v7104_v47 = vld [vmem:[#allocation3 + $0xf8] sm:$0xff] }
 0x745   : > { %v17049_v49 = vpop.permute.xlu1 %12498  ;;  %v7091_v58 = vld [vmem:[#allocation3 + $0x60] sm:$0xff] }
 0x746   : > { %12783 = vrot.lane.b32.xlu0 %v20436_v54, %s20384_s22  ;;  %v7075_v54 = vld [vmem:[#allocation3 + $0x10a] sm:$0xff]  ;;  %v12892_v48 = vpack.i.bf16 %v7092_v12, %v7091_v58  ;;  %v7102_v63 = vld [vmem:[#allocation3 + $0xe0] sm:$0xff] }
 0x747   : > { %12788 = vrot.lane.b32.xlu1 %v20437_v32, %s20384_s22  ;;  %v7120_v58 = vld [vmem:[#allocation3 + $0x39] sm:$0xff] }
 0x748   : > { %v17055_v1 = vpop.permute.xlu0 %12503 }
 0x749   : > { %v17057_v17 = vpop.permute.xlu1 %12508 }
 0x74a   : > { %12793 = vrot.lane.b32.xlu0 %v20438_v30, %s20384_s22  ;;  %11277 = vmatmul.mubr.msk.bf16.vlgmr.msra.gmra.mrb[48].mxu0 %vm711_vm4, %v4253_v10  ;;  %v17124_v10 = vpack.i.bf16 %v7076_v23, %v7075_v54  ;;  %v7093_v54 = vld [vmem:[#allocation3 + $0x78] sm:$0xff] }
 0x74b   : > { %12798 = vrot.lane.b32.xlu1 %v12797_v26, %s20384_s22  ;;  %11280 = vmatprep.mubr.msk.bf16.mxu0 %vm711_vm4, %v4256_v14  ;;  %v7079_v26 = vld [vmem:[#allocation3 + $0x13a] sm:$0xff]  ;;  %v7080_v14 = vld [vmem:[#allocation3 + $0x142] sm:$0xff]  ;;  %v12897_v23 = vpack.i.bf16 %v7094_v36, %v7093_v54  ;;  %v7122_v54 = vld [vmem:[#allocation3 + $0x51] sm:$0xff]  ;;  %s20565_s22 = smov 80  }
 0x74c   : > { %v17064_v22 = vpop.permute.xlu0 %12513  ;;  %v17134_v35 = vpack.i.bf16 %v7080_v14, %v7079_v26  ;;  %v7098_v26 = vld [vmem:[#allocation3 + $0xb0] sm:$0xff] }
 0x74d   : > { %v17066_v13 = vpop.permute.xlu1 %12518  ;;  %v7095_v14 = vld [vmem:[#allocation3 + $0x90] sm:$0xff] }
 0x74e   : > { %12803 = vrot.lane.b32.xlu0 %v12802_v9, %s20439_s19  ;;  %v7083_v9 = vld [vmem:[#allocation3 + $0x16a] sm:$0xff]  ;;  %v12902_v31 = vpack.i.bf16 %v7096_v28, %v7095_v14 }
 0x74f   : > { %12808 = vrot.lane.b32.xlu1 %v17068_v38, %s20439_s19  ;;  %v17144_v60 = vpack.i.bf16 %v7084_v39, %v7083_v9  ;;  %v12907_v9 = vpack.i.bf16 %v7098_v26, %v7097_v43  ;;  %v7100_v39 = vld [vmem:[#allocation3 + $0xc8] sm:$0xff] }
 0x750   : > { %v17073_v45 = vpop.permute.xlu0 %12523  ;;  %v7121_v26 = vld [vmem:[#allocation3 + $0x49] sm:$0xff] }
 0x751   : > { %v17077_v42 = vpop.permute.xlu1 %12528  ;;  %v12937_v14 = vpack.i.bf16 %v7122_v54, %v7121_v26  ;;  %v7129_v54 = vld [vmem:[#allocation3 + $0xa9] sm:$0xff] }
 0x752   : > { %12813 = vrot.lane.b32.xlu0 %v17075_v4, %s20439_s19  ;;  %11281 = vmatmul.mubr.msk.bf16.gmra.mrb[52].mxu0 %vm711_vm4, %v4259_v16  ;;  %v7088_v16 = vld [vmem:[#allocation3 + $0x38] sm:$0xff]  ;;  %v7132_v26 = vld [vmem:[#allocation3 + $0xc9] sm:$0xff] }
 0x753   : > { %12818 = vrot.lane.b32.xlu1 %v17079_v19, %s20439_s19  ;;  %v12882_v40 = vpack.i.bf16 %v7088_v16, %v7087_v0  ;;  %v7101_v0 = vld [vmem:[#allocation3 + $0xd8] sm:$0xff] }
 0x754   : > { %v17086_v2 = vpop.permute.xlu0 %12533 }
 0x755   : > { %v17090_v24 = vpop.permute.xlu1 %12538 }
 0x756   : > { %12823 = vrot.lane.b32.xlu0 %v17088_v27, %s20439_s19 }
 0x757   : > { %12828 = vrot.lane.b32.xlu1 %v17092_v44, %s20439_s19 }
 0x758   : > { %v17098_v59 = vpop.permute.xlu0 %12543 }
 0x759   : > { %v17104_v29 = vpop.permute.xlu1 %12548 }
 0x75a   : > { %12833 = vrot.lane.b32.xlu0 %v17100_v21, %s20439_s19 }
 0x75b   : > { %12838 = vrot.lane.b32.xlu1 %v17102_v56, %s20439_s19 }
 0x75c   : > { %v17110_v18 = vpop.permute.xlu0 %12553 }
 0x75d   : > { %20440 = vst [vmem:[#allocation18_spill] sm:$0xff] %v17110_v18  ;;  %v17120_v32 = vpop.permute.xlu1 %12558 }
 0x75e   : > { %12843 = vrot.lane.b32.xlu0 %v17112_v11, %s20439_s19  ;;  %20441 = vst [vmem:[#allocation19_spill] sm:$0xff] %v17120_v32 }
 0x75f   : > { %12848 = vrot.lane.b32.xlu1 %v17114_v15, %s20439_s19 }
 0x760   : > { %v17122_v25 = vpop.permute.xlu0 %12563 }
 0x761   : > { %v17138_v50 = vpop.permute.xlu1 %12568 }
 0x762   : > { %12853 = vrot.lane.b32.xlu0 %v17124_v10, %s20439_s19 }
 0x763   : > { %12858 = vrot.lane.b32.xlu1 %v17126_v57, %s20439_s19 }
 0x764   : > { %v17132_v30 = vpop.permute.xlu0 %12573 }
 0x765   : > { %v17151_v46 = vpop.permute.xlu1 %12578 }
 0x766   : > { %12863 = vrot.lane.b32.xlu0 %v17134_v35, %s20439_s19 }
 0x767   : > { %12868 = vrot.lane.b32.xlu1 %v17136_v20, %s20439_s19 }
 0x768   : > { %v17146_v3 = vpop.permute.xlu0 %12583 }
 0x769   : > { %v17157_v34 = vpop.permute.xlu1 %12588 }
 0x76a   : > { %12873 = vrot.lane.b32.xlu0 %v17144_v60, %s20439_s19 }
 0x76b   : > { %12878 = vrot.lane.b32.xlu1 %v12877_v33, %s20439_s19  ;;  %v7099_v33 = vld [vmem:[#allocation3 + $0xc0] sm:$0xff] }
 0x76c   : > { %v17155_v53 = vpop.permute.xlu0 %12593  ;;  %v12912_v8 = vpack.i.bf16 %v7100_v39, %v7099_v33  ;;  %v7126_v39 = vld [vmem:[#allocation3 + $0x81] sm:$0xff] }
 0x76d   : > { %v17165_v16 = vpop.permute.xlu1 %12598 }
 0x76e   : > { %12883 = vrot.lane.b32.xlu0 %v12882_v40, %s20442_s26  ;;  %v12917_v40 = vpack.i.bf16 %v7102_v63, %v7101_v0 }
 0x76f   : > { %12888 = vrot.lane.b32.xlu1 %v12887_v51, %s20442_s26  ;;  %v7103_v51 = vld [vmem:[#allocation3 + $0xf0] sm:$0xff] }
 0x770   : > { %v17161_v7 = vpop.permute.xlu0 %12603  ;;  %v12922_v36 = vpack.i.bf16 %v7104_v47, %v7103_v51  ;;  %v7128_v47 = vld [vmem:[#allocation3 + $0x99] sm:$0xff] }
 0x772   : > { %12893 = vrot.lane.b32.xlu0 %v12892_v48, %s20442_s26  ;;  %v17171_v48 = vpop.permute.xlu1 %12608 }
 0x773   : > { %12898 = vrot.lane.b32.xlu1 %v12897_v23, %s20442_s26  ;;  %v7119_v23 = vld [vmem:[#allocation3 + $0x31] sm:$0xff] }
 0x774   : > { %v17169_v12 = vpop.permute.xlu0 %12613  ;;  %v12932_v28 = vpack.i.bf16 %v7120_v58, %v7119_v23 }
 0x776   : > { %12903 = vrot.lane.b32.xlu0 %v12902_v31, %s20442_s26  ;;  %v17180_v43 = vpop.permute.xlu1 %12618 }
 0x777   : > { %12908 = vrot.lane.b32.xlu1 %v12907_v9, %s20442_s26  ;;  %v7124_v9 = vld [vmem:[#allocation3 + $0x69] sm:$0xff] }
 0x778   : > { %v17176_v31 = vpop.permute.xlu0 %12623 }
 0x77a   : > { %12913 = vrot.lane.b32.xlu0 %v12912_v8, %s20442_s26  ;;  %v7125_v8 = vld [vmem:[#allocation3 + $0x79] sm:$0xff] }
 0x77b   : > { %12918 = vrot.lane.b32.xlu1 %v12917_v40, %s20442_s26  ;;  %v12957_v0 = vpack.i.bf16 %v7126_v39, %v7125_v8  ;;  %v17188_v40 = vpop.permute.xlu1 %12628  ;;  %v7133_v39 = vld [vmem:[#allocation3 + $0xd9] sm:$0xff] }
 0x77c   : > { %v17186_v63 = vpop.permute.xlu0 %12633 }
 0x77d   : > { %20444 = vst [vmem:[#allocation20_spill] sm:$0xff] %v17186_v63 }
 0x77e   : > { %12923 = vrot.lane.b32.xlu0 %v12922_v36, %s20442_s26 }
 0x77f   : > { %12928 = vrot.lane.b32.xlu1 %v16798_v62, %s20442_s26  ;;  %v7123_v62 = vld [vmem:[#allocation3 + $0x61] sm:$0xff]  ;;  %v17198_v36 = vpop.permute.xlu1 %12638 }
 0x780   : > { %v12952_v33 = vpack.i.bf16 %v7124_v9, %v7123_v62  ;;  %v17192_v51 = vpop.permute.xlu0 %12643  ;;  %20445 = vst [vmem:[#allocation21_spill] sm:$0xff] %v17198_v36 }
 0x782   : > { %12933 = vrot.lane.b32.xlu0 %v12932_v28, %s20443_s30 }
 0x783   : > { %12938 = vrot.lane.b32.xlu1 %v12937_v14, %s20443_s30  ;;  %v17204_v14 = vpop.permute.xlu1 %12648 }
 0x784   : > { %v17202_v28 = vpop.permute.xlu0 %12653 }
 0x786   : > { %12943 = vrot.lane.b32.xlu0 %v17068_v38, %s20386_s27  ;;  %v7130_v38 = vld [vmem:[#allocation3 + $0xb1] sm:$0xff] }
 0x787   : > { %12948 = vrot.lane.b32.xlu1 %v17075_v4, %s20386_s27  ;;  %v7127_v4 = vld [vmem:[#allocation3 + $0x91] sm:$0xff]  ;;  %v12977_v23 = vpack.i.bf16 %v7130_v38, %v7129_v54  ;;  %v17214_v8 = vpop.permute.xlu1 %12658 }
 0x788   : > { %v12972_v58 = vpack.i.bf16 %v7128_v47, %v7127_v4  ;;  %v7137_v4 = vld [vmem:[#allocation3 + $0x109] sm:$0xff] }
 0x78a   : > { %12953 = vrot.lane.b32.xlu0 %v12952_v33, %s20443_s30  ;;  %v17210_v33 = vpop.permute.xlu0 %12663 }
 0x78b   : > { %12958 = vrot.lane.b32.xlu1 %v12957_v0, %s20443_s30  ;;  %v7136_v0 = vld [vmem:[#allocation3 + $0xf9] sm:$0xff]  ;;  %v17222_v54 = vpop.permute.xlu1 %12668 }
 0x78c   : > { %20447 = vst [vmem:[#allocation23_spill] sm:$0xff] %v17222_v54  ;;  %v12600_v54 = vunpack.i.l.bf16 %v17165_v16 }
 0x78e   : > { %12963 = vrot.lane.b32.xlu0 %v17079_v19, %s20386_s27  ;;  %v7134_v19 = vld [vmem:[#allocation3 + $0xe1] sm:$0xff]  ;;  %v17220_v47 = vpop.permute.xlu0 %12673 }
 0x78f   : > { %12968 = vrot.lane.b32.xlu1 %v17088_v27, %s20386_s27  ;;  %v7131_v27 = vld [vmem:[#allocation3 + $0xc1] sm:$0xff]  ;;  %v12997_v62 = vpack.i.bf16 %v7134_v19, %v7133_v39  ;;  %20446 = vst [vmem:[#allocation22_spill] sm:$0xff] %v17220_v47  ;;  %v17232_v19 = vpop.permute.xlu1 %12678 }
 0x790   : > { %v12992_v9 = vpack.i.bf16 %v7132_v26, %v7131_v27  ;;  %20449 = vst [vmem:[#allocation25_spill] sm:$0xff] %v17232_v19 }
 0x792   : > { %12973 = vrot.lane.b32.xlu0 %v12972_v58, %s20443_s30  ;;  %v17226_v26 = vpop.permute.xlu0 %12683 }
 0x793   : > { %12978 = vrot.lane.b32.xlu1 %v12977_v23, %s20443_s30  ;;  %v7108_v23 = vld [vmem:[#allocation3 + $0x128] sm:$0xff]  ;;  %20448 = vst [vmem:[#allocation24_spill] sm:$0xff] %v17226_v26 }
 0x796   : > { %12983 = vrot.lane.b32.xlu0 %v17092_v44, %s20386_s27  ;;  %v7138_v44 = vld [vmem:[#allocation3 + $0x111] sm:$0xff] }
 0x797   : > { %12988 = vrot.lane.b32.xlu1 %v17100_v21, %s20386_s27  ;;  %v7135_v21 = vld [vmem:[#allocation3 + $0xf1] sm:$0xff]  ;;  %v13017_v58 = vpack.i.bf16 %v7138_v44, %v7137_v4  ;;  %v7139_v44 = vld [vmem:[#allocation3 + $0x121] sm:$0xff] }
 0x798   : > { %v13012_v38 = vpack.i.bf16 %v7136_v0, %v7135_v21  ;;  %v7142_v0 = vld [vmem:[#allocation3 + $0x141] sm:$0xff]  ;;  %v17236_v21 = vpop.permute.xlu0 %12693 }
 0x799   : > { %20450 = vst [vmem:[#allocation26_spill] sm:$0xff] %v17236_v21 }
 0x79a   : > { %12993 = vrot.lane.b32.xlu0 %v12992_v9, %s20443_s30  ;;  %v7109_v9 = vld [vmem:[#allocation3 + $0x138] sm:$0xff] }
 0x79b   : > { %12998 = vrot.lane.b32.xlu1 %v12997_v62, %s20443_s30  ;;  %v7140_v62 = vld [vmem:[#allocation3 + $0x129] sm:$0xff] }
 0x79e   : > { %13003 = vrot.lane.b32.xlu0 %v17102_v56, %s20386_s27  ;;  %v7110_v56 = vld [vmem:[#allocation3 + $0x140] sm:$0xff] }
 0x79f   : > { %13008 = vrot.lane.b32.xlu1 %v17112_v11, %s20386_s27  ;;  %v7107_v11 = vld [vmem:[#allocation3 + $0x120] sm:$0xff]  ;;  %v13037_v39 = vpack.i.bf16 %v7110_v56, %v7109_v9  ;;  %v7114_v56 = vld [vmem:[#allocation3 + $0x170] sm:$0xff] }
 0x7a0   : > { %v13032_v27 = vpack.i.bf16 %v7108_v23, %v7107_v11  ;;  %v17242_v23 = vpop.permute.xlu0 %12703  ;;  %v7111_v11 = vld [vmem:[#allocation3 + $0x150] sm:$0xff] }
 0x7a1   : > { %20452 = vst [vmem:[#allocation28_spill] sm:$0xff] %v17242_v23 }
 0x7a2   : > { %13013 = vrot.lane.b32.xlu0 %v13012_v38, %s20443_s30  ;;  %v7141_v38 = vld [vmem:[#allocation3 + $0x139] sm:$0xff] }
 0x7a3   : > { %13018 = vrot.lane.b32.xlu1 %v13017_v58, %s20443_s30  ;;  %v13047_v4 = vpack.i.bf16 %v7142_v0, %v7141_v38  ;;  %v17238_v58 = vpop.permute.xlu1 %12688  ;;  %v7144_v0 = vld [vmem:[#allocation3 + $0x159] sm:$0xff] }
 0x7a4   : > { %20451 = vst [vmem:[#allocation27_spill] sm:$0xff] %v17238_v58  ;;  %v17252_v38 = vpop.permute.xlu0 %12713 }
 0x7a5   : > { %20454 = vst [vmem:[#allocation30_spill] sm:$0xff] %v17252_v38 }
 0x7a6   : > { %13023 = vrot.lane.b32.xlu0 %v17114_v15, %s20386_s27  ;;  %v13042_v15 = vpack.i.bf16 %v7140_v62, %v7139_v44  ;;  %v7146_v44 = vld [vmem:[#allocation3 + $0x171] sm:$0xff] }
 0x7a7   : > { %13028 = vrot.lane.b32.xlu1 %v17124_v10, %s20386_s27  ;;  %v7112_v10 = vld [vmem:[#allocation3 + $0x158] sm:$0xff] }
 0x7a8   : > { %v13062_v9 = vpack.i.bf16 %v7112_v10, %v7111_v11  ;;  %v7117_v10 = vld [vmem:[#allocation3 + $0x198] sm:$0xff]  ;;  %v7116_v11 = vld [vmem:[#allocation3 + $0x188] sm:$0xff] }
 0x7aa   : > { %13033 = vrot.lane.b32.xlu0 %v13032_v27, %s20442_s26  ;;  %v17248_v27 = vpop.permute.xlu1 %12698 }
 0x7ab   : > { %13038 = vrot.lane.b32.xlu1 %v13037_v39, %s20442_s26  ;;  %20453 = vst [vmem:[#allocation29_spill] sm:$0xff] %v17248_v27  ;;  %v7113_v39 = vld [vmem:[#allocation3 + $0x168] sm:$0xff] }
 0x7ac   : > { %v13067_v62 = vpack.i.bf16 %v7114_v56, %v7113_v39  ;;  %v7118_v56 = vld [vmem:[#allocation3 + $0x1a0] sm:$0xff] }
 0x7ad   : > { %v7115_v39 = vld [vmem:[#allocation3 + $0x180] sm:$0xff] }
 0x7ae   : > { %13043 = vrot.lane.b32.xlu0 %v13042_v15, %s20443_s30  ;;  %v7143_v15 = vld [vmem:[#allocation3 + $0x151] sm:$0xff]  ;;  %v17254_v52 = vpop.permute.xlu1 %12708 }
 0x7af   : > { %13048 = vrot.lane.b32.xlu1 %v13047_v4, %s20443_s30  ;;  %v7145_v4 = vld [vmem:[#allocation3 + $0x169] sm:$0xff]  ;;  %20455 = vst [vmem:[#allocation31_spill] sm:$0xff] %v17254_v52 }
 0x7b0   : > { %v13077_v5 = vpack.i.bf16 %v7146_v44, %v7145_v4  ;;  %v7148_v44 = vld [vmem:[#allocation3 + $0x189] sm:$0xff] }
 0x7b2   : > { %13053 = vrot.lane.b32.xlu0 %v17126_v57, %s20386_s27  ;;  %v13072_v57 = vpack.i.bf16 %v7144_v0, %v7143_v15  ;;  %v13092_v0 = vpack.i.bf16 %v7116_v11, %v7115_v39  ;;  %v7147_v15 = vld [vmem:[#allocation3 + $0x181] sm:$0xff] }
 0x7b3   : > { %13058 = vrot.lane.b32.xlu1 %v17134_v35, %s20386_s27  ;;  %v14353_v35 = vld [vmem:[%s20456_s21] sm:$0xff]   ;;  %v13102_v4 = vpack.i.bf16 %v7148_v44, %v7147_v15 }
 0x7b4   : > { %11292 = vmatprep.mubr.msk.bf16.mxu1 %vm3287_vm0, %v14353_v35 }
 0x7b6   : > { %13063 = vrot.lane.b32.xlu0 %v13062_v9, %s20442_s26  ;;  %v17262_v9 = vpop.permute.xlu0 %12723 }
 0x7b7   : > { %13068 = vrot.lane.b32.xlu1 %v13067_v62, %s20442_s26  ;;  %20457 = vst [vmem:[#allocation32_spill] sm:$0xff] %v17262_v9  ;;  %v13097_v62 = vpack.i.bf16 %v7118_v56, %v7117_v10 }
 0x7ba   : > { %13073 = vrot.lane.b32.xlu0 %v13072_v57, %s20443_s30  ;;  %v17272_v57 = vpop.permute.xlu0 %12733 }
 0x7bb   : > { %13078 = vrot.lane.b32.xlu1 %v13077_v5, %s20443_s30  ;;  %v17268_v5 = vpop.permute.xlu1 %12718  ;;  %20459 = vst [vmem:[#allocation34_spill] sm:$0xff] %v17272_v57 }
 0x7bc   : > { %20458 = vst [vmem:[#allocation33_spill] sm:$0xff] %v17268_v5 }
 0x7be   : > { %13083 = vrot.lane.b32.xlu0 %v17136_v20, %s20386_s27  ;;  %v17277_v20 = vpop.permute.xlu0 %12743 }
 0x7bf   : > { %13088 = vrot.lane.b32.xlu1 %v17144_v60, %s20386_s27  ;;  %v17274_v35 = vpop.permute.xlu1 %12728  ;;  %20461 = vst [vmem:[#allocation36_spill] sm:$0xff] %v17277_v20  ;;  %s20566_s27 = smov 96  }
 0x7c0   : > { %20460 = vst [vmem:[#allocation35_spill] sm:$0xff] %v17274_v35 }
 0x7c2   : > { %13093 = vrot.lane.b32.xlu0 %v13092_v0, %s20442_s26  ;;  %v17281_v10 = vpop.permute.xlu0 %12753 }
 0x7c3   : > { %13098 = vrot.lane.b32.xlu1 %v13097_v62, %s20442_s26  ;;  %v17279_v60 = vpop.permute.xlu1 %12738  ;;  %20463 = vst [vmem:[#allocation38_spill] sm:$0xff] %v17281_v10 }
 0x7c4   : > { %20462 = vst [vmem:[#allocation37_spill] sm:$0xff] %v17279_v60 }
 0x7c6   : > { %13103 = vrot.lane.b32.xlu0 %v13102_v4, %s20443_s30  ;;  %v17285_v11 = vpop.permute.xlu0 %12763 }
 0x7c7   : > { %v17283_v56 = vpop.permute.xlu1 %12748  ;;  %20465 = vst [vmem:[#allocation40_spill] sm:$0xff] %v17285_v11  ;;  %v20477_v11 = vld [vmem:[#allocation11_spill] sm:$0xff] }
 0x7c8   : > { %20464 = vst [vmem:[#allocation39_spill] sm:$0xff] %v17283_v56 }
 0x7ca   : > { %v17289_v62 = vpop.permute.xlu0 %12773 }
 0x7cb   : > { %v17287_v39 = vpop.permute.xlu1 %12758  ;;  %20467 = vst [vmem:[#allocation42_spill] sm:$0xff] %v17289_v62 }
 0x7cc   : > { %20466 = vst [vmem:[#allocation41_spill] sm:$0xff] %v17287_v39  ;;  %v20478_v39 = vld [vmem:[#allocation12_spill] sm:$0xff] }
 0x7ce   : > { %v17293_v44 = vpop.permute.xlu0 %12783 }
 0x7cf   : > { %v17291_v0 = vpop.permute.xlu1 %12768  ;;  %20469 = vst [vmem:[#allocation44_spill] sm:$0xff] %v17293_v44 }
 0x7d0   : > { %20468 = vst [vmem:[#allocation43_spill] sm:$0xff] %v17291_v0 }
 0x7d2   : > { %v17297_v4 = vpop.permute.xlu0 %12793 }
 0x7d3   : > { %v17295_v15 = vpop.permute.xlu1 %12778  ;;  %20471 = vst [vmem:[#allocation46_spill] sm:$0xff] %v17297_v4 }
 0x7d4   : > { %20470 = vst [vmem:[#allocation45_spill] sm:$0xff] %v17295_v15 }
 0x7d6   : > { %v17301_v38 = vpop.permute.xlu0 %12803 }
 0x7d7   : > { %v17299_v5 = vpop.permute.xlu1 %12788  ;;  %20473 = vst [vmem:[#allocation48_spill] sm:$0xff] %v17301_v38 }
 0x7d8   : > { %20472 = vst [vmem:[#allocation47_spill] sm:$0xff] %v17299_v5 }
 0x7da   : > { %v17305_v18 = vpop.permute.xlu0 %12813 }
 0x7db   : > { %v17303_v36 = vpop.permute.xlu1 %12798  ;;  %20475 = vst [vmem:[#allocation50_spill] sm:$0xff] %v17305_v18 }
 0x7dc   : > { %20474 = vst [vmem:[#allocation49_spill] sm:$0xff] %v17303_v36 }
 0x7de   : > { %v17311_v10 = vpop.permute.xlu0 %12823 }
 0x7df   : > { %v17307_v0 = vpop.permute.xlu1 %12808  ;;  %20479 = vst [vmem:[#allocation11_spill] sm:$0xff] %v17311_v10 }
 0x7e0   : > { %20476 = vst [vmem:[#allocation51_spill] sm:$0xff] %v17307_v0  ;;  %v20483_v0 = vld [vmem:[#allocation14_spill] sm:$0xff] }
 0x7e2   : > { %v17316_v60 = vpop.permute.xlu0 %12833 }
 0x7e3   : > { %v17313_v56 = vpop.permute.xlu1 %12818 }
 0x7e4   : > { %20480 = vst [vmem:[#allocation12_spill] sm:$0xff] %v17313_v56 }
 0x7f2   : > { %v11117_v63 = vpop.f32.mrb[20].mxu1 }
 0x7f3   : > { %v11118_v32 = vpop.f32.mrb[21].mxu1 }
 0x7f4   : > { %v11119_v6 = vadd.f32 %v11118_v32, %v11117_v63  ;;  %v11120_v61 = vpop.f32.mrb[22].mxu1  ;;  %v20481_v32 = vld [vmem:[#allocation13_spill] sm:$0xff] }
 0x7f5   : > { %v11121_v62 = vpop.f32.mrb[23].mxu1  ;;  %20482 = vst [vmem:[#allocation13_spill] sm:$0xff] %v17316_v60 }
 0x7f6   : > { %v11122_v44 = vadd.f32 %v11121_v62, %v11120_v61  ;;  %v4960_v15 = vadd.f32 %v11119_v6, %v20477_v11  ;;  %v17319_v62 = vpop.permute.xlu1 %12828  ;;  %v17321_v6 = vpop.permute.xlu0 %12843 }
 0x7f7   : > { %20484 = vst [vmem:[#allocation14_spill] sm:$0xff] %v17319_v62  ;;  %20485 = vst [vmem:[#allocation52_spill] sm:$0xff] %v17321_v6 }
 0x7f8   : > { %v4963_v4 = vadd.f32 %v11122_v44, %v20478_v39 }
 0x7fa   : > { %v11123_v5 = vpop.f32.mrb[24].mxu1  ;;  %v17323_v11 = vpop.permute.xlu1 %12838 }
 0x7fb   : > { %v11124_v38 = vpop.f32.mrb[25].mxu1  ;;  %20486 = vst [vmem:[#allocation53_spill] sm:$0xff] %v17323_v11  ;;  %v17325_v10 = vpop.permute.xlu0 %12853 }
 0x7fc   : > { %v11125_v36 = vadd.f32 %v11124_v38, %v11123_v5  ;;  %v11126_v20 = vpop.f32.mrb[26].mxu1  ;;  %20487 = vst [vmem:[#allocation54_spill] sm:$0xff] %v17325_v10 }
 0x7fd   : > { %v11127_v52 = vpop.f32.mrb[27].mxu1 }
 0x7fe   : > { %v11128_v18 = vadd.f32 %v11127_v52, %v11126_v20  ;;  %v4968_v63 = vadd.f32 %v11125_v36, %v20481_v32  ;;  %v17327_v20 = vpop.permute.xlu1 %12848 }
 0x7ff   : > { %20488 = vst [vmem:[#allocation55_spill] sm:$0xff] %v17327_v20  ;;  %v17329_v6 = vpop.permute.xlu0 %12863 }
 0x800   : > { %v4971_v61 = vadd.f32 %v11128_v18, %v20483_v0  ;;  %20489 = vst [vmem:[#allocation56_spill] sm:$0xff] %v17329_v6 }
 0x802   : > { %v17331_v35 = vpop.permute.xlu1 %12858 }
 0x803   : > { %20490 = vst [vmem:[#allocation57_spill] sm:$0xff] %v17331_v35 }
 0x80a   : > { %v11129_v39 = vpop.f32.mrb[28].mxu1 }
 0x80b   : > { %v11130_v44 = vpop.f32.mrb[29].mxu1 }
 0x80c   : > { %v11131_v38 = vadd.f32 %v11130_v44, %v11129_v39  ;;  %v11132_v5 = vpop.f32.mrb[30].mxu1 }
 0x80d   : > { %v4790_v56 = vpop.f32.mrb[40].mxu0  ;;  %v11133_v52 = vpop.f32.mrb[31].mxu1 }
 0x80e   : > { %v4976_v36 = vadd.f32 %v11131_v38, %v4790_v56  ;;  %v11134_v32 = vadd.f32 %v11133_v52, %v11132_v5  ;;  %v4792_v60 = vpop.f32.mrb[41].mxu0  ;;  %v17335_v5 = vpop.permute.xlu1 %12868  ;;  %v10983_v52 = vld [vmem:[%s20283_s11] ss:$0 sm:$0xff] }
 0x80f   : > { %v4793_v18 = vpop.f32.mrb[42].mxu0  ;;  %v17333_v60 = vpop.permute.xlu0 %12873  ;;  %20492 = vst [vmem:[#allocation59_spill] sm:$0xff] %v17335_v5 }
 0x810   : > { %v4979_v0 = vadd.f32 %v11134_v32, %v4793_v18  ;;  %v4795_v62 = vpop.f32.mrb[43].mxu0  ;;  %20491 = vst [vmem:[#allocation58_spill] sm:$0xff] %v17333_v60 }
 0x812   : > { %v11135_v57 = vpop.f32.mrb[32].mxu1 }
 0x813   : > { %v11136_v11 = vpop.f32.mrb[33].mxu1 }
 0x814   : > { %v11137_v9 = vadd.f32 %v11136_v11, %v11135_v57  ;;  %v11138_v10 = vpop.f32.mrb[34].mxu1  ;;  %v17340_v11 = vpop.permute.xlu0 %12883 }
 0x815   : > { %v4798_v39 = vpop.f32.mrb[44].mxu0  ;;  %v11139_v44 = vpop.f32.mrb[35].mxu1  ;;  %20493 = vst [vmem:[#allocation60_spill] sm:$0xff] %v17340_v11 }
 0x816   : > { %v4984_v23 = vadd.f32 %v11137_v9, %v4798_v39  ;;  %v11140_v27 = vadd.f32 %v11139_v44, %v11138_v10  ;;  %v4800_v21 = vpop.f32.mrb[45].mxu0  ;;  %v17342_v9 = vpop.permute.xlu1 %12878 }
 0x817   : > { %v4801_v20 = vpop.f32.mrb[46].mxu0  ;;  %20494 = vst [vmem:[#allocation61_spill] sm:$0xff] %v17342_v9 }
 0x818   : > { %v4987_v56 = vadd.f32 %v11140_v27, %v4801_v20  ;;  %v4803_v38 = vpop.f32.mrb[47].mxu0  ;;  %v17344_v35 = vpop.permute.xlu0 %12893 }
 0x819   : > { %20495 = vst [vmem:[#allocation62_spill] sm:$0xff] %v17344_v35  ;;  %v12580_v35 = vunpack.i.l.bf16 %v17151_v46 }
 0x81d   : > { %v11278_v62 = vpop.f32.mrb[48].mxu0 }
 0x81e   : > { %v5033_v32 = vadd.f32 %v11278_v62, %v4968_v63  ;;  %v5024_v57 = vpop.f32.mrb[49].mxu0  ;;  %v17346_v63 = vpop.permute.xlu1 %12888 }
 0x81f   : > { %v11279_v18 = vpop.f32.mrb[50].mxu0  ;;  %v5025_v10 = vadd.f32 %v5024_v57, %v4960_v15  ;;  %20496 = vst [vmem:[#allocation63_spill] sm:$0xff] %v17346_v63  ;;  %v12586_v63 = vunpack.i.h.bf16 %v17146_v3 }
 0x820   : > { %v5064_v21 = vadd.f32 %v10983_v52, %v5033_v32  ;;  %v5036_v27 = vadd.f32 %v11279_v18, %v4971_v61  ;;  %v5027_v20 = vpop.f32.mrb[51].mxu0 }
 0x821   : > { %v5062_v39 = vadd.f32 %v10983_v52, %v5025_v10  ;;  %v5028_v38 = vadd.f32 %v5027_v20, %v4963_v4  ;;  %v17348_v20 = vpop.permute.xlu0 %12903 }
 0x822   : > { %v5065_v44 = vadd.f32 %v10983_v52, %v5036_v27  ;;  %v5072_v60 = vmax.f32 %v5064_v21, 0.0  ;;  %20497 = vst [vmem:[#allocation64_spill] sm:$0xff] %v17348_v20  ;;  %v12551_v20 = vunpack.i.h.bf16 %v17104_v29 }
 0x823   : > { %v5063_v6 = vadd.f32 %v10983_v52, %v5028_v38  ;;  %v5070_v62 = vmax.f32 %v5062_v39, 0.0  ;;  %v12496_v38 = vunpack.i.h.bf16 %v17047_v37 }
 0x824   : > { %v5073_v5 = vmax.f32 %v5065_v44, 0.0  ;;  %v17350_v44 = vpop.permute.xlu1 %12898 }
 0x825   : > { %v11282_v58 = vpop.f32.mrb[52].mxu0  ;;  %v5071_v11 = vmax.f32 %v5063_v6, 0.0  ;;  %20498 = vst [vmem:[#allocation65_spill] sm:$0xff] %v17350_v44 }
 0x826   : > { %v5049_v26 = vadd.f32 %v11282_v58, %v4984_v23  ;;  %v5040_v19 = vpop.f32.mrb[53].mxu0  ;;  %v5111_v9 = vpack.c.bf16 %v5073_v5, %v5072_v60  ;;  %v6896_v5 = vld [vmem:[#allocation3 + $0x8] sm:$0xff] }
 0x827   : > { %v11283_v32 = vpop.f32.mrb[54].mxu0  ;;  %v5041_v61 = vadd.f32 %v5040_v19, %v4976_v36  ;;  %v5110_v10 = vpack.c.bf16 %v5071_v11, %v5070_v62  ;;  %v12486_v19 = vunpack.i.h.bf16 %v17038_v41  ;;  %v12485_v36 = vunpack.i.l.bf16 %v17038_v41 }
 0x828   : > { %v5068_v15 = vadd.f32 %v10983_v52, %v5049_v26  ;;  %v5052_v57 = vadd.f32 %v11283_v32, %v4987_v56  ;;  %v5043_v18 = vpop.f32.mrb[55].mxu0  ;;  %v12491_v56 = vunpack.i.h.bf16 %v17040_v55  ;;  %v12490_v11 = vunpack.i.l.bf16 %v17040_v55 }
 0x829   : > { %v5066_v4 = vadd.f32 %v10983_v52, %v5041_v61  ;;  %v5044_v27 = vadd.f32 %v5043_v18, %v4979_v0  ;;  %11284 = vmatprep.subr.bf16.mxu1 %v5110_v10  ;;  %v6895_v0 = vld [vmem:[#allocation3] sm:$0xff]  ;;  %v12495_v62 = vunpack.i.l.bf16 %v17047_v37  ;;  %v12501_v32 = vunpack.i.h.bf16 %v17049_v49  ;;  %v17365_v18 = vpop.permute.xlu1 %12908 }
 0x82a   : > { %v5069_v21 = vadd.f32 %v10983_v52, %v5052_v57  ;;  %11285 = vmatpush3.bf16.msra.mxu1 %v5110_v10  ;;  %v5076_v39 = vmax.f32 %v5068_v15, 0.0  ;;  %v12500_v15 = vunpack.i.l.bf16 %v17049_v49  ;;  %v12506_v61 = vunpack.i.h.bf16 %v17055_v1  ;;  %v17362_v57 = vpop.permute.xlu0 %12913  ;;  %20500 = vst [vmem:[#allocation67_spill] sm:$0xff] %v17365_v18  ;;  %v14393_v49 = vld [vmem:[#allocation3 + $0x20] sm:$0xff] }
 0x82b   : > { %v5067_v58 = vadd.f32 %v10983_v52, %v5044_v27  ;;  %11286 = vmatprep.subr.bf16.mxu1 %v5111_v9  ;;  %v5074_v23 = vmax.f32 %v5066_v4, 0.0  ;;  %v12505_v41 = vunpack.i.l.bf16 %v17055_v1  ;;  %20499 = vst [vmem:[#allocation66_spill] sm:$0xff] %v17362_v57  ;;  %v17368_v55 = vsel %vm606_vm2, %v6896_v5, %v12486_v19  ;;  %v14394_v1 = vld [vmem:[#allocation3 + $0x18] sm:$0xff]  ;;  %v14398_v19 = vld [vmem:[#allocation3 + $0x48] sm:$0xff]  ;;  %v14400_v5 = vld [vmem:[#allocation3 + $0x60] sm:$0xff] }
 0x82c   : > { %v5077_v6 = vmax.f32 %v5069_v21, 0.0  ;;  %v17371_v37 = vsel %vm606_vm2, %v6895_v0, %v12485_v36  ;;  %v12510_v10 = vunpack.i.l.bf16 %v17057_v17  ;;  %v17375_v4 = vsel %vm606_vm2, %v14393_v49, %v12491_v56  ;;  %v14395_v27 = vld [vmem:[#allocation3 + $0x38] sm:$0xff]  ;;  %v14399_v56 = vld [vmem:[#allocation3 + $0x68] sm:$0xff]  ;;  %v14405_v57 = vld [vmem:[#allocation3 + $0xb0] sm:$0xff] }
 0x82d   : > { %v5075_v60 = vmax.f32 %v5067_v58, 0.0  ;;  %v17378_v21 = vsel %vm606_vm2, %v14394_v1, %v12490_v11  ;;  %v17393_v36 = vsel %vm606_vm2, %v14398_v19, %v12500_v15  ;;  %v17396_v0 = vsel %vm606_vm2, %v14399_v56, %v12506_v61  ;;  %v14354_v15 = vld [vmem:[%s20456_s21 + $0x8] sm:$0xff]  }
 0x82e   : > { %v5113_v26 = vpack.c.bf16 %v5077_v6, %v5076_v39  ;;  %11287 = vmatpush3.bf16.msra.mxu1 %v5111_v9  ;;  %v12511_v9 = vunpack.i.h.bf16 %v17057_v17  ;;  %v17381_v39 = vsel %vm606_vm2, %v14395_v27, %v12496_v38  ;;  %v14396_v6 = vld [vmem:[#allocation3 + $0x30] sm:$0xff]  ;;  %v17399_v11 = vsel %vm606_vm2, %v14400_v5, %v12505_v41  ;;  %v14401_v38 = vld [vmem:[#allocation3 + $0x80] sm:$0xff]  ;;  %v14402_v61 = vld [vmem:[#allocation3 + $0x78] sm:$0xff] }
 0x82f   : > { %v5112_v52 = vpack.c.bf16 %v5075_v60, %v5074_v23  ;;  %v17384_v58 = vsel %vm606_vm2, %v14396_v6, %v12495_v62  ;;  %v14365_v17 = vld [vmem:[%s20285_s13] sm:$0xff]   ;;  %v12521_v49 = vunpack.i.h.bf16 %v17066_v13  ;;  %v17411_v1 = vsel %vm606_vm2, %v14402_v61, %v12510_v10  ;;  %v17416_v6 = vpop.permute.xlu0 %12923 }
 0x830   : > { %v14397_v23 = vld [vmem:[#allocation3 + $0x50] sm:$0xff]  ;;  %v17402_v62 = vsel %vm606_vm2, %v14401_v38, %v12511_v9  ;;  %v12520_v41 = vunpack.i.l.bf16 %v17066_v13  ;;  %v12526_v27 = vunpack.i.h.bf16 %v17073_v45  ;;  %v12525_v9 = vunpack.i.l.bf16 %v17073_v45  ;;  %20501 = vst [vmem:[#allocation68_spill] sm:$0xff] %v17416_v6  ;;  %v17425_v13 = vpop.permute.xlu1 %12918  ;;  %v14368_v45 = vld [vmem:[%s20285_s13 + $0x8] sm:$0xff]  }
 0x831   : > { %11288 = vmatprep.subr.bf16.mxu1 %v5112_v52  ;;  %v17390_v60 = vsel %vm606_vm2, %v14397_v23, %v12501_v32  ;;  %v12515_v32 = vunpack.i.l.bf16 %v17064_v22  ;;  %v12531_v23 = vunpack.i.h.bf16 %v17077_v42  ;;  %v12530_v19 = vunpack.i.l.bf16 %v17077_v42  ;;  %20502 = vst [vmem:[#allocation69_spill] sm:$0xff] %v17425_v13  ;;  %v14403_v42 = vld [vmem:[#allocation3 + $0x98] sm:$0xff] }
 0x832   : > { %11289 = vmatpush3.bf16.msra.mxu1 %v5112_v52  ;;  %v12516_v52 = vunpack.i.h.bf16 %v17064_v22  ;;  %v14355_v22 = vld [vmem:[%s20456_s21 + $0x10] sm:$0xff]   ;;  %v12536_v10 = vunpack.i.h.bf16 %v17086_v2  ;;  %v12535_v56 = vunpack.i.l.bf16 %v17086_v2  ;;  %v12540_v5 = vunpack.i.l.bf16 %v17090_v24  ;;  %v14404_v2 = vld [vmem:[#allocation3 + $0x90] sm:$0xff] }
 0x833   : > { %11290 = vmatprep.subr.bf16.mxu1 %v5113_v26  ;;  %v12546_v38 = vunpack.i.h.bf16 %v17098_v59  ;;  %v12545_v61 = vunpack.i.l.bf16 %v17098_v59  ;;  %v17438_v13 = vsel %vm606_vm2, %v14404_v2, %v12515_v32  ;;  %v17441_v18 = vsel %vm606_vm2, %v14405_v57, %v12521_v49  ;;  %v14407_v59 = vld [vmem:[#allocation3 + $0xc8] sm:$0xff]  ;;  %v14409_v57 = vld [vmem:[#allocation3 + $0xe0] sm:$0xff] }
 0x834   : > { %v17435_v6 = vsel %vm606_vm2, %v14403_v42, %v12516_v52  ;;  %v17449_v52 = vsel %vm606_vm2, %v14407_v59, %v12526_v27  ;;  %v14408_v42 = vld [vmem:[#allocation3 + $0xc0] sm:$0xff]  ;;  %v12550_v2 = vunpack.i.l.bf16 %v17104_v29  ;;  %v17457_v49 = vsel %vm606_vm2, %v14409_v57, %v12531_v23  ;;  %v14412_v59 = vld [vmem:[#allocation3 + $0xf0] sm:$0xff]  ;;  %v14414_v23 = vld [vmem:[#allocation3 + $0x108] sm:$0xff] }
 0x835   : > { %v17452_v32 = vsel %vm606_vm2, %v14408_v42, %v12525_v9  ;;  %v17466_v9 = vsel %vm606_vm2, %v14412_v59, %v12535_v56  ;;  %v14369_v29 = vld [vmem:[%s20285_s13 + $0x10] sm:$0xff]   ;;  %v14415_v42 = vld [vmem:[#allocation3 + $0x128] sm:$0xff] }
 0x836   : > { %11291 = vmatpush3.bf16.msra.mxu1 %v5113_v26  ;;  %v12541_v26 = vunpack.i.h.bf16 %v17090_v24  ;;  %v14406_v24 = vld [vmem:[#allocation3 + $0xa8] sm:$0xff]  ;;  %v14416_v57 = vld [vmem:[#allocation3 + $0x120] sm:$0xff] }
 0x837   : > { %11324 = vmatprep.subr.bf16.mxu1 %v14365_v17  ;;  %v17446_v44 = vsel %vm606_vm2, %v14406_v24, %v12520_v41  ;;  %v14411_v24 = vld [vmem:[#allocation3 + $0xf8] sm:$0xff]  ;;  %v17481_v56 = vsel %vm606_vm2, %v14416_v57, %v12545_v61  ;;  %v12571_v57 = vunpack.i.h.bf16 %v17138_v50 }
 0x838   : > { %v17463_v27 = vsel %vm606_vm2, %v14411_v24, %v12536_v10  ;;  %v17478_v10 = vsel %vm606_vm2, %v14415_v42, %v12546_v38  ;;  %v14417_v24 = vld [vmem:[#allocation3 + $0x140] sm:$0xff]  ;;  %v14356_v38 = vld [vmem:[%s20456_s21 + $0x18] sm:$0xff]   ;;  %v14418_v61 = vld [vmem:[#allocation3 + $0x138] sm:$0xff] }
 0x839   : > { %11293 = vmatmul.mubr.msk.bf16.vlgmr.msra.gmra.mrb[36].mxu1 %vm3287_vm0, %v14354_v15  ;;  %v14410_v15 = vld [vmem:[#allocation3 + $0xd8] sm:$0xff]  ;;  %v17486_v59 = vsel %vm606_vm2, %v14417_v24, %v12551_v20  ;;  %v17497_v42 = vsel %vm606_vm2, %v14418_v61, %v12550_v2  ;;  %v12576_v20 = vunpack.i.h.bf16 %v17132_v30  ;;  %v12575_v24 = vunpack.i.l.bf16 %v17132_v30 }
 0x83a   : > { %11296 = vmatprep.mubr.msk.bf16.mxu1 %vm3287_vm0, %v14355_v22  ;;  %11325 = vmatpush3.bf16.msra.mxu1 %v14365_v17  ;;  %v17460_v41 = vsel %vm606_vm2, %v14410_v15, %v12530_v19  ;;  %v14413_v17 = vld [vmem:[#allocation3 + $0x110] sm:$0xff]  ;;  %v17475_v19 = vsel %vm606_vm2, %v14414_v23, %v12540_v5  ;;  %v17483_v15 = vpop.permute.xlu0 %12933  ;;  %v12570_v5 = vunpack.i.l.bf16 %v17138_v50  ;;  %v17491_v23 = vpop.permute.xlu1 %12928  ;;  %v12585_v2 = vunpack.i.l.bf16 %v17146_v3  ;;  %v14372_v50 = vld [vmem:[%s20285_s13 + $0x18] sm:$0xff]  }
 0x83b   : > { %11326 = vmatprep.subr.bf16.mxu1 %v14368_v45  ;;  %v17472_v22 = vsel %vm606_vm2, %v14413_v17, %v12541_v26  ;;  %20503 = vst [vmem:[#allocation70_spill] sm:$0xff] %v17483_v15  ;;  %v12566_v26 = vunpack.i.h.bf16 %v17122_v25  ;;  %v12565_v17 = vunpack.i.l.bf16 %v17122_v25  ;;  %20504 = vst [vmem:[#allocation71_spill] sm:$0xff] %v17491_v23  ;;  %v14357_v25 = vld [vmem:[%s20456_s21 + $0x20] sm:$0xff]   ;;  %v12581_v23 = vunpack.i.h.bf16 %v17151_v46 }
 0x83c   : > { %v12591_v30 = vunpack.i.h.bf16 %v17157_v34  ;;  %v12590_v61 = vunpack.i.l.bf16 %v17157_v34  ;;  %v12596_v15 = vunpack.i.h.bf16 %v17155_v53  ;;  %v17526_v47 = vsel %vm682_vm3, %v17378_v21, %v12570_v5 }
 0x83d   : > { %v17518_v46 = vsel %vm682_vm3, %v17371_v37, %v12565_v17  ;;  %v17522_v3 = vsel %vm682_vm3, %v17368_v55, %v12566_v26  ;;  %v17532_v34 = vsel %vm682_vm3, %v17375_v4, %v12571_v57  ;;  %v17540_v55 = vsel %vm682_vm3, %v17381_v39, %v12576_v20 }
 0x83e   : > { %11327 = vmatpush3.bf16.msra.mxu1 %v14368_v45  ;;  %v12595_v45 = vunpack.i.l.bf16 %v17155_v53  ;;  %v17536_v53 = vsel %vm682_vm3, %v17384_v58, %v12575_v24  ;;  %v12601_v37 = vunpack.i.h.bf16 %v17165_v16  ;;  %v17543_v21 = vpop.permute.xlu0 %12943  ;;  %v17548_v26 = vsel %vm682_vm3, %v17393_v36, %v12580_v35  ;;  %v17562_v39 = vpop.permute.xlu1 %12938  ;;  %v14373_v35 = vld [vmem:[%s20285_s13 + $0x20] ss:$0 sps:$4 sm:$0xff]  }
 0x83f   : > { %11328 = vmatprep.subr.bf16.mxu1 %v14369_v29  ;;  %v17552_v4 = vsel %vm682_vm3, %v17390_v60, %v12581_v23  ;;  %v17556_v58 = vsel %vm682_vm3, %v17399_v11, %v12585_v2  ;;  %v17560_v16 = vsel %vm682_vm3, %v17396_v0, %v12586_v63  ;;  %v17569_v36 = vsel %vm682_vm3, %v17411_v1, %v12590_v61 }
 0x840   : > { %v17573_v60 = vsel %vm682_vm3, %v17402_v62, %v12591_v30  ;;  %v17577_v11 = vsel %vm682_vm3, %v17438_v13, %v12595_v45  ;;  %v17581_v63 = vsel %vm682_vm3, %v17435_v6, %v12596_v15  ;;  %v17585_v0 = vsel %vm682_vm3, %v17446_v44, %v12600_v54  ;;  %v14358_v62 = vld [vmem:[%s20456_s21 + $0x28] sm:$0xff]  }
 0x841   : > { %11297 = vmatmul.mubr.msk.bf16.gmra.mrb[40].mxu1 %vm3287_vm0, %v14356_v38  ;;  %v12605_v1 = vunpack.i.l.bf16 %v17161_v7  ;;  %v12610_v17 = vunpack.i.l.bf16 %v17171_v48  ;;  %v17595_v13 = vsel %vm682_vm3, %v17441_v18, %v12601_v37  ;;  %v12611_v6 = vunpack.i.h.bf16 %v17171_v48 }
 0x842   : > { %11300 = vmatprep.mubr.msk.bf16.mxu1 %vm3287_vm0, %v14357_v25  ;;  %11329 = vmatpush3.bf16.msra.mxu1 %v14369_v29  ;;  %v12606_v29 = vunpack.i.h.bf16 %v17161_v7  ;;  %v12616_v15 = vunpack.i.h.bf16 %v17169_v12  ;;  %v12615_v54 = vunpack.i.l.bf16 %v17169_v12  ;;  %v14359_v7 = vld [vmem:[%s20456_s21 + $0x30] sm:$0xff]   ;;  %v12621_v44 = vunpack.i.h.bf16 %v17180_v43  ;;  %v17612_v20 = vpop.permute.xlu0 %12953  ;;  %v17623_v2 = vpop.permute.xlu1 %12948 }
 0x843   : > { %11330 = vmatprep.subr.bf16.mxu1 %v14372_v50  ;;  %v12620_v5 = vunpack.i.l.bf16 %v17180_v43  ;;  %v12625_v23 = vunpack.i.l.bf16 %v17176_v31  ;;  %v8564_v18 = vsel %vm3356_vm12, %v14373_v35, 0  ;;  %v12626_v48 = vunpack.i.h.bf16 %v17176_v31 }
 0x844   : > { %v12631_v38 = vunpack.i.h.bf16 %v17188_v40  ;;  %v12630_v12 = vunpack.i.l.bf16 %v17188_v40  ;;  %v12645_v57 = vunpack.i.l.bf16 %v17192_v51  ;;  %v8255_v24 = vsel %vm682_vm3, %v17452_v32, %v12605_v1 }
 0x845   : > { %v8256_v43 = vsel %vm682_vm3, %v17449_v52, %v12606_v29  ;;  %v17620_v25 = vsel %vm682_vm3, %v17460_v41, %v12610_v17  ;;  %v12646_v31 = vunpack.i.h.bf16 %v17192_v51  ;;  %v8258_v40 = vsel %vm682_vm3, %v17457_v49, %v12611_v6  ;;  %v20507_v29 = vld [vmem:[#allocation23_spill] sm:$0xff]  ;;  %v20508_v17 = vld [vmem:[#allocation22_spill] sm:$0xff]  ;;  %v20509_v6 = vld [vmem:[#allocation25_spill] sm:$0xff] }
 0x846   : > { %11331 = vmatpush3.bf16.msra.mxu1 %v14372_v50  ;;  %v17630_v50 = vsel %vm682_vm3, %v17466_v9, %v12615_v54  ;;  %v12651_v32 = vunpack.i.h.bf16 %v17204_v14  ;;  %v12650_v52 = vunpack.i.l.bf16 %v17204_v14  ;;  %v17637_v51 = vsel %vm682_vm3, %v17463_v27, %v12616_v15  ;;  %v17687_v37 = vpop.permute.xlu0 %12963 }
 0x847   : > { %11368 = vmatprep.subr.msk.bf16.mxu1 %vm3356_vm12, %v14373_v35  ;;  %v17641_v41 = vsel %vm682_vm3, %v17475_v19, %v12620_v5  ;;  %v17645_v49 = vsel %vm682_vm3, %v17472_v22, %v12621_v44  ;;  %v17649_v9 = vsel %vm682_vm3, %v17481_v56, %v12625_v23  ;;  %v17653_v14 = vsel %vm682_vm3, %v17478_v10, %v12626_v48 }
 0x848   : > { %v17657_v27 = vsel %vm682_vm3, %v17497_v42, %v12630_v12  ;;  %v17661_v19 = vsel %vm682_vm3, %v17486_v59, %v12631_v38  ;;  %v17665_v22 = vsel %vm2381_vm8, %v17518_v46, %v12645_v57  ;;  %v17669_v56 = vsel %vm2381_vm8, %v17522_v3, %v12646_v31  ;;  %v14360_v42 = vld [vmem:[%s20456_s21 + $0x38] sm:$0xff]  }
 0x849   : > { %11301 = vmatmul.mubr.msk.bf16.gmra.mrb[44].mxu1 %vm3287_vm0, %v14358_v62  ;;  %20505 = vst [vmem:[#allocation72_spill] sm:$0xff] %v17657_v27  ;;  %20506 = vst [vmem:[#allocation73_spill] sm:$0xff] %v17661_v19  ;;  %v12656_v30 = vunpack.i.h.bf16 %v17202_v28  ;;  %v12655_v10 = vunpack.i.l.bf16 %v17202_v28  ;;  %v12660_v61 = vunpack.i.l.bf16 %v17214_v8  ;;  %v17679_v59 = vsel %vm2381_vm8, %v17526_v47, %v12650_v52  ;;  %v14361_v28 = vld [vmem:[%s20456_s21 + $0x40] sm:$0xff]   ;;  %v20511_v12 = vld [vmem:[#allocation27_spill] sm:$0xff] }
 0x84a   : > { %11304 = vmatprep.mubr.msk.bf16.mxu1 %vm3287_vm0, %v14359_v7  ;;  %11333 = vmatpush3.bf16.msra.mxu1 %v8564_v18  ;;  %v17683_v45 = vsel %vm2381_vm8, %v17532_v34, %v12651_v32  ;;  %v12661_v46 = vunpack.i.h.bf16 %v17214_v8  ;;  %v12665_v3 = vunpack.i.l.bf16 %v17210_v33  ;;  %v12666_v35 = vunpack.i.h.bf16 %v17210_v33  ;;  %v17696_v34 = vpop.permute.xlu1 %12958  ;;  %v20510_v7 = vld [vmem:[#allocation24_spill] sm:$0xff]  ;;  %v20512_v52 = vld [vmem:[#allocation26_spill] sm:$0xff] }
 0x84b   : > { %v12671_v1 = vunpack.i.h.bf16 %v20507_v29  ;;  %v12670_v47 = vunpack.i.l.bf16 %v20507_v29  ;;  %v12675_v62 = vunpack.i.l.bf16 %v20508_v17  ;;  %v12676_v8 = vunpack.i.h.bf16 %v20508_v17  ;;  %v20515_v29 = vld [vmem:[#allocation32_spill] sm:$0xff]  ;;  %v20516_v17 = vld [vmem:[#allocation35_spill] sm:$0xff] }
 0x84c   : > { %v12681_v15 = vunpack.i.h.bf16 %v20509_v6  ;;  %v12680_v54 = vunpack.i.l.bf16 %v20509_v6  ;;  %v12685_v44 = vunpack.i.l.bf16 %v20510_v7  ;;  %v8275_v5 = vsel %vm2381_vm8, %v17536_v53, %v12655_v10  ;;  %v20513_v10 = vld [vmem:[#allocation29_spill] sm:$0xff] }
 0x84d   : > { %v8276_v33 = vsel %vm2381_vm8, %v17540_v55, %v12656_v30  ;;  %v8277_v23 = vsel %vm2381_vm8, %v17548_v26, %v12660_v61  ;;  %v12686_v18 = vunpack.i.h.bf16 %v20510_v7  ;;  %v8278_v48 = vsel %vm2381_vm8, %v17552_v4, %v12661_v46  ;;  %v20514_v46 = vld [vmem:[#allocation28_spill] sm:$0xff] }
 0x84e   : > { %v17714_v38 = vsel %vm2381_vm8, %v17556_v58, %v12665_v3  ;;  %v12691_v57 = vunpack.i.h.bf16 %v20511_v12  ;;  %v12690_v53 = vunpack.i.l.bf16 %v20511_v12  ;;  %v17721_v55 = vsel %vm2381_vm8, %v17560_v16, %v12666_v35 }
 0x84f   : > { %v17725_v26 = vsel %vm2381_vm8, %v17569_v36, %v12670_v47  ;;  %v17729_v4 = vsel %vm2381_vm8, %v17573_v60, %v12671_v1  ;;  %v17733_v58 = vsel %vm2381_vm8, %v17577_v11, %v12675_v62  ;;  %v17737_v31 = vsel %vm2381_vm8, %v17581_v63, %v12676_v8  ;;  %v17750_v60 = vpop.permute.xlu0 %12973 }
 0x850   : > { %v17741_v16 = vsel %vm2381_vm8, %v17585_v0, %v12680_v54  ;;  %v17745_v36 = vsel %vm2381_vm8, %v17595_v13, %v12681_v15  ;;  %v17748_v32 = vsel %vm2381_vm8, %v8255_v24, %v12685_v44  ;;  %v17753_v11 = vsel %vm2381_vm8, %v8256_v43, %v12686_v18  ;;  %v17758_v0 = vpop.permute.xlu1 %12968  ;;  %v14362_v13 = vld [vmem:[%s20456_s21 + $0x48] sm:$0xff]  }
 0x851   : > { %11305 = vmatmul.mubr.msk.bf16.gmra.mrb[48].mxu1 %vm3287_vm0, %v14360_v42  ;;  %v12696_v30 = vunpack.i.h.bf16 %v20512_v52  ;;  %v12695_v63 = vunpack.i.l.bf16 %v20512_v52  ;;  %v12700_v61 = vunpack.i.l.bf16 %v20513_v10  ;;  %v17765_v24 = vsel %vm2381_vm8, %v17620_v25, %v12690_v53  ;;  %v20518_v15 = vld [vmem:[#allocation37_spill] sm:$0xff]  ;;  %v20519_v52 = vld [vmem:[#allocation31_spill] sm:$0xff] }
 0x852   : > { %11308 = vmatprep.mubr.msk.bf16.mxu1 %vm3287_vm0, %v14361_v28  ;;  %v17768_v42 = vsel %vm2381_vm8, %v8258_v40, %v12691_v57  ;;  %v12701_v43 = vunpack.i.h.bf16 %v20513_v10  ;;  %v12705_v3 = vunpack.i.l.bf16 %v20514_v46  ;;  %v14363_v28 = vld [vmem:[%s20456_s21 + $0x50] sm:$0xff]   ;;  %v12706_v35 = vunpack.i.h.bf16 %v20514_v46 }
 0x853   : > { %v12726_v1 = vunpack.i.h.bf16 %v20515_v29  ;;  %v12725_v47 = vunpack.i.l.bf16 %v20515_v29  ;;  %v12730_v25 = vunpack.i.l.bf16 %v20516_v17  ;;  %v12731_v62 = vunpack.i.h.bf16 %v20516_v17  ;;  %v20517_v40 = vld [vmem:[#allocation34_spill] sm:$0xff]  ;;  %v20523_v29 = vld [vmem:[#allocation41_spill] sm:$0xff]  ;;  %v20524_v17 = vld [vmem:[#allocation40_spill] sm:$0xff] }
 0x854   : > { %v12736_v8 = vunpack.i.h.bf16 %v20517_v40  ;;  %v12735_v6 = vunpack.i.l.bf16 %v20517_v40  ;;  %v12740_v54 = vunpack.i.l.bf16 %v20518_v15  ;;  %v8291_v7 = vsel %vm2381_vm8, %v17630_v50, %v12695_v63  ;;  %v17799_v63 = vpop.permute.xlu0 %12983  ;;  %v20525_v40 = vld [vmem:[#allocation43_spill] sm:$0xff] }
 0x855   : > { %v8292_v44 = vsel %vm2381_vm8, %v17637_v51, %v12696_v30  ;;  %v8293_v18 = vsel %vm2381_vm8, %v17641_v41, %v12700_v61  ;;  %v12741_v12 = vunpack.i.h.bf16 %v20518_v15  ;;  %v8294_v57 = vsel %vm2381_vm8, %v17645_v49, %v12701_v43  ;;  %v17818_v30 = vpop.permute.xlu1 %12978  ;;  %v20526_v15 = vld [vmem:[#allocation42_spill] sm:$0xff] }
 0x856   : > { %v17795_v53 = vsel %vm2381_vm8, %v17649_v9, %v12705_v3  ;;  %v17804_v51 = vsel %vm2381_vm8, %v17653_v14, %v12706_v35  ;;  %v17808_v41 = vsel %vm711_vm4, %v17665_v22, %v12725_v47  ;;  %v17812_v49 = vsel %vm711_vm4, %v17669_v56, %v12726_v1  ;;  %v20521_v3 = vld [vmem:[#allocation39_spill] sm:$0xff] }
 0x857   : > { %v17816_v9 = vsel %vm711_vm4, %v17679_v59, %v12730_v25  ;;  %v17822_v61 = vsel %vm711_vm4, %v17683_v45, %v12731_v62  ;;  %v17825_v14 = vsel %vm711_vm4, %v8275_v5, %v12735_v6  ;;  %v17828_v22 = vsel %vm711_vm4, %v8276_v33, %v12736_v8  ;;  %v20520_v59 = vld [vmem:[#allocation36_spill] sm:$0xff]  ;;  %v14364_v45 = vld [vmem:[%s20456_s21 + $0x58] sm:$0xff]   ;;  %v20522_v33 = vld [vmem:[#allocation38_spill] sm:$0xff] }
 0x858   : > { %v17834_v56 = vsel %vm711_vm4, %v8278_v48, %v12741_v12  ;;  %v12746_v43 = vunpack.i.h.bf16 %v20520_v59  ;;  %v12745_v46 = vunpack.i.l.bf16 %v20520_v59  ;;  %v12751_v5 = vunpack.i.h.bf16 %v20521_v3  ;;  %v14366_v48 = vld [vmem:[%s20456_s21 + $0x60] sm:$0xff]   ;;  %v20527_v59 = vld [vmem:[#allocation45_spill] sm:$0xff] }
 0x859   : > { %11309 = vmatmul.mubr.msk.bf16.gmra.mrb[52].mxu1 %vm3287_vm0, %v14362_v13  ;;  %v17831_v13 = vsel %vm711_vm4, %v8277_v23, %v12740_v54  ;;  %v12756_v35 = vunpack.i.h.bf16 %v20522_v33  ;;  %v12755_v23 = vunpack.i.l.bf16 %v20522_v33  ;;  %v12760_v1 = vunpack.i.l.bf16 %v20523_v29  ;;  %v17857_v33 = vpop.permute.xlu0 %12993  ;;  %v17872_v50 = vpop.permute.xlu1 %12988 }
 0x85a   : > { %11312 = vmatprep.mubr.msk.bf16.mxu1 %vm3287_vm0, %v14363_v28  ;;  %v12750_v28 = vunpack.i.l.bf16 %v20521_v3  ;;  %v12761_v47 = vunpack.i.h.bf16 %v20523_v29  ;;  %v12766_v25 = vunpack.i.h.bf16 %v20524_v17  ;;  %v12765_v62 = vunpack.i.l.bf16 %v20524_v17 }
 0x85b   : > { %v12770_v8 = vunpack.i.l.bf16 %v20525_v40  ;;  %v12771_v6 = vunpack.i.h.bf16 %v20525_v40  ;;  %v12776_v54 = vunpack.i.h.bf16 %v20526_v15  ;;  %v12775_v12 = vunpack.i.l.bf16 %v20526_v15 }
 0x85c   : > { %v12780_v3 = vunpack.i.l.bf16 %v20527_v59  ;;  %v17861_v10 = vsel %vm711_vm4, %v17714_v38, %v12745_v46  ;;  %v17865_v29 = vsel %vm711_vm4, %v17721_v55, %v12746_v43  ;;  %v17869_v17 = vsel %vm711_vm4, %v17725_v26, %v12750_v28  ;;  %v20528_v28 = vld [vmem:[#allocation44_spill] sm:$0xff] }
 0x85d   : > { %v12781_v40 = vunpack.i.h.bf16 %v20527_v59  ;;  %v17877_v15 = vsel %vm711_vm4, %v17729_v4, %v12751_v5  ;;  %v17881_v38 = vsel %vm711_vm4, %v17733_v58, %v12755_v23  ;;  %v17885_v55 = vsel %vm711_vm4, %v17737_v31, %v12756_v35  ;;  %v17943_v59 = vpop.permute.xlu1 %12998 }
 0x85e   : > { %v17889_v26 = vsel %vm711_vm4, %v17741_v16, %v12760_v1  ;;  %v17894_v43 = vsel %vm711_vm4, %v17745_v36, %v12761_v47  ;;  %v17898_v4 = vsel %vm711_vm4, %v17748_v32, %v12765_v62  ;;  %v17902_v58 = vsel %vm711_vm4, %v17753_v11, %v12766_v25  ;;  %v20531_v1 = vld [vmem:[#allocation51_spill] sm:$0xff]  ;;  %v14370_v47 = vld [vmem:[%s20456_s21 + $0x70] sm:$0xff]  }
 0x85f   : > { %v17906_v31 = vsel %vm711_vm4, %v17765_v24, %v12770_v8  ;;  %v17910_v16 = vsel %vm711_vm4, %v17768_v42, %v12771_v6  ;;  %v17913_v46 = vsel %vm711_vm4, %v8291_v7, %v12775_v12  ;;  %v17916_v36 = vsel %vm711_vm4, %v8292_v44, %v12776_v54  ;;  %v14367_v42 = vld [vmem:[%s20456_s21 + $0x68] sm:$0xff]   ;;  %v20530_v44 = vld [vmem:[#allocation48_spill] sm:$0xff]  ;;  %v20532_v62 = vld [vmem:[#allocation50_spill] sm:$0xff] }
 0x860   : > { %v17919_v32 = vsel %vm711_vm4, %v8293_v18, %v12780_v3  ;;  %v17922_v11 = vsel %vm711_vm4, %v8294_v57, %v12781_v40  ;;  %v12785_v24 = vunpack.i.l.bf16 %v20528_v28  ;;  %v12806_v23 = vunpack.i.h.bf16 %v20530_v44  ;;  %v17934_v57 = vpop.permute.xlu0 %13003  ;;  %v20533_v6 = vld [vmem:[#allocation60_spill] sm:$0xff] }
 0x861   : > { %11313 = vmatmul.mubr.msk.bf16.gmra.mrb[56].mxu1 %vm3287_vm0, %v14364_v45  ;;  %v12786_v45 = vunpack.i.h.bf16 %v20528_v28  ;;  %v12805_v18 = vunpack.i.l.bf16 %v20530_v44  ;;  %v12811_v25 = vunpack.i.h.bf16 %v20531_v1  ;;  %v12815_v8 = vunpack.i.l.bf16 %v20532_v62  ;;  %v20534_v40 = vld [vmem:[#allocation12_spill] sm:$0xff]  ;;  %v20535_v44 = vld [vmem:[#allocation70_spill] sm:$0xff] }
 0x862   : > { %11316 = vmatprep.mubr.msk.bf16.mxu1 %vm3287_vm0, %v14366_v48  ;;  %v12810_v48 = vunpack.i.l.bf16 %v20531_v1  ;;  %v12886_v54 = vunpack.i.h.bf16 %v20533_v6  ;;  %v12885_v12 = vunpack.i.l.bf16 %v20533_v6  ;;  %v12816_v3 = vunpack.i.h.bf16 %v20532_v62 }
 0x863   : > { %v12820_v28 = vunpack.i.l.bf16 %v20534_v40  ;;  %v12936_v35 = vunpack.i.h.bf16 %v20535_v44  ;;  %v12935_v7 = vunpack.i.l.bf16 %v20535_v44  ;;  %v17951_v5 = vsel %vm711_vm4, %v17795_v53, %v12785_v24 }
 0x864   : > { %v12821_v1 = vunpack.i.h.bf16 %v20534_v40  ;;  %v12946_v19 = vunpack.i.h.bf16 %v17543_v21  ;;  %v12945_v6 = vunpack.i.l.bf16 %v17543_v21  ;;  %v17959_v62 = vsel %vm711_vm4, %v17804_v51, %v12786_v45 }
 0x865   : > { %v8335_v27 = vsel %vm3260_vm13, %v17808_v41, %v12805_v18  ;;  %v8336_v44 = vsel %vm3260_vm13, %v17812_v49, %v12806_v23  ;;  %v8337_v53 = vsel %vm3260_vm13, %v17816_v9, %v12810_v48  ;;  %v8338_v21 = vsel %vm3260_vm13, %v17822_v61, %v12811_v25  ;;  %v17982_v23 = vpop.permute.xlu0 %13013  ;;  %v17991_v48 = vpop.permute.xlu1 %13008 }
 0x866   : > { %v8339_v24 = vsel %vm3260_vm13, %v17825_v14, %v12815_v8  ;;  %v8367_v51 = vsel %vm3269_vm14, %v8335_v27, %v12885_v12  ;;  %v8368_v45 = vsel %vm3269_vm14, %v8336_v44, %v12886_v54  ;;  %v8340_v41 = vsel %vm3260_vm13, %v17828_v22, %v12816_v3  ;;  %v20536_v27 = vld [vmem:[#allocation11_spill] sm:$0xff]  ;;  %v20539_v44 = vld [vmem:[#allocation14_spill] sm:$0xff] }
 0x867   : > { %v17978_v49 = vsel %vm3260_vm13, %v17831_v13, %v12820_v28  ;;  %v8399_v9 = vsel %vm3278_vm15, %v8367_v51, %v12935_v7  ;;  %v17986_v61 = vsel %vm3260_vm13, %v17834_v56, %v12821_v1  ;;  %v12826_v14 = vunpack.i.h.bf16 %v20536_v27  ;;  %v14371_v13 = vld [vmem:[%s20456_s21 + $0x78] sm:$0xff]   ;;  %v20538_v56 = vld [vmem:[#allocation62_spill] sm:$0xff] }
 0x868   : > { %v8431_v18 = vsel %vm3287_vm0, %v8399_v9, %v12945_v6  ;;  %v20537_v7 = vld [vmem:[#allocation63_spill] sm:$0xff]  ;;  %v12896_v8 = vunpack.i.h.bf16 %v20538_v56  ;;  %v12895_v54 = vunpack.i.l.bf16 %v20538_v56  ;;  %v12941_v12 = vunpack.i.h.bf16 %v17562_v39 }
 0x869   : > { %11317 = vmatmul.mubr.msk.bf16.gmra.mrb[60].mxu1 %vm3287_vm0, %v14367_v42  ;;  %v8400_v42 = vsel %vm3278_vm15, %v8368_v45, %v12936_v35  ;;  %v12825_v35 = vunpack.i.l.bf16 %v20536_v27  ;;  %v12890_v25 = vunpack.i.l.bf16 %v20537_v7  ;;  %v12951_v3 = vunpack.i.h.bf16 %v17623_v2 }
 0x86a   : > { %11320 = vmatprep.mubr.msk.bf16.mxu1 %vm3287_vm0, %v14370_v47  ;;  %v8432_v22 = vsel %vm3287_vm0, %v8400_v42, %v12946_v19  ;;  %v12891_v47 = vunpack.i.h.bf16 %v20537_v7  ;;  %v12940_v19 = vunpack.i.l.bf16 %v17562_v39  ;;  %v12950_v40 = vunpack.i.l.bf16 %v17623_v2 }
 0x86b   : > { %v12956_v28 = vunpack.i.h.bf16 %v17612_v20  ;;  %v12955_v1 = vunpack.i.l.bf16 %v17612_v20  ;;  %v8463_v6 = vpack.c.bf16 %v8432_v22, %v8431_v18  ;;  %v12831_v51 = vunpack.i.h.bf16 %v20539_v44  ;;  %v18018_v18 = vpop.permute.xlu0 %13023 }
 0x86c   : > { %v12830_v45 = vunpack.i.l.bf16 %v20539_v44  ;;  %v12966_v9 = vunpack.i.h.bf16 %v17687_v37  ;;  %v12965_v42 = vunpack.i.l.bf16 %v17687_v37  ;;  %v8343_v39 = vsel %vm3260_vm13, %v17861_v10, %v12825_v35  ;;  %v18025_v10 = vpop.permute.xlu1 %13018 }
 0x86d   : > { %v8344_v2 = vsel %vm3260_vm13, %v17865_v29, %v12826_v14  ;;  %v8369_v27 = vsel %vm3269_vm14, %v8337_v53, %v12890_v25  ;;  %v8370_v20 = vsel %vm3269_vm14, %v8338_v21, %v12891_v47  ;;  %v8371_v22 = vsel %vm3269_vm14, %v8339_v24, %v12895_v54  ;;  %v20540_v25 = vld [vmem:[#allocation65_spill] sm:$0xff]  ;;  %v20541_v54 = vld [vmem:[#allocation64_spill] sm:$0xff] }
 0x86e   : > { %v8372_v37 = vsel %vm3269_vm14, %v8340_v41, %v12896_v8  ;;  %v8402_v7 = vsel %vm3278_vm15, %v8370_v20, %v12941_v12  ;;  %v8403_v21 = vsel %vm3278_vm15, %v8371_v22, %v12955_v1  ;;  %v8345_v35 = vsel %vm3260_vm13, %v17869_v17, %v12830_v45  ;;  %v20542_v45 = vld [vmem:[#allocation13_spill] sm:$0xff] }
 0x86f   : > { %v8434_v53 = vsel %vm3287_vm0, %v8402_v7, %v12951_v3  ;;  %v8404_v14 = vsel %vm3278_vm15, %v8372_v37, %v12956_v28  ;;  %v8346_v24 = vsel %vm3260_vm13, %v17877_v15, %v12831_v51  ;;  %v8435_v41 = vsel %vm3287_vm0, %v8403_v21, %v12965_v42  ;;  %v18047_v44 = vpop.permute.xlu0 %13033 }
 0x870   : > { %v8436_v47 = vsel %vm3287_vm0, %v8404_v14, %v12966_v9  ;;  %v12901_v56 = vunpack.i.h.bf16 %v20540_v25  ;;  %v12900_v8 = vunpack.i.l.bf16 %v20540_v25  ;;  %v12906_v12 = vunpack.i.h.bf16 %v20541_v54  ;;  %v20544_v25 = vld [vmem:[#allocation67_spill] sm:$0xff] }
 0x871   : > { %11321 = vmatmul.mubr.msk.bf16.gmra.mrb[64].mxu1 %vm3287_vm0, %v14371_v13  ;;  %v8401_v13 = vsel %vm3278_vm15, %v8369_v27, %v12940_v19  ;;  %v12905_v19 = vunpack.i.l.bf16 %v20541_v54  ;;  %v12960_v17 = vunpack.i.l.bf16 %v17696_v34  ;;  %v12971_v28 = vunpack.i.h.bf16 %v17758_v0  ;;  %v20545_v54 = vld [vmem:[#allocation66_spill] sm:$0xff] }
 0x872   : > { %11334 = vmatprep.mubr.msk.bf16.mxu1 %vm3343_vm1, %v8463_v6  ;;  %v8433_v29 = vsel %vm3287_vm0, %v8401_v13, %v12950_v40  ;;  %v12961_v40 = vunpack.i.h.bf16 %v17696_v34  ;;  %v12970_v15 = vunpack.i.l.bf16 %v17758_v0  ;;  %v12976_v1 = vunpack.i.h.bf16 %v17750_v60  ;;  %v18053_v34 = vpop.permute.xlu1 %13028  ;;  %v20543_v0 = vld [vmem:[#allocation53_spill] sm:$0xff] }
 0x873   : > { %v8464_v3 = vpack.c.bf16 %v8434_v53, %v8433_v29  ;;  %v12975_v6 = vunpack.i.l.bf16 %v17750_v60  ;;  %v8465_v51 = vpack.c.bf16 %v8436_v47, %v8435_v41  ;;  %v12836_v9 = vunpack.i.h.bf16 %v20542_v45 }
 0x874   : > { %v12835_v42 = vunpack.i.l.bf16 %v20542_v45  ;;  %v12986_v27 = vunpack.i.h.bf16 %v17799_v63  ;;  %v12985_v20 = vunpack.i.l.bf16 %v17799_v63  ;;  %v12841_v22 = vunpack.i.h.bf16 %v20543_v0 }
 0x875   : > { %v12840_v37 = vunpack.i.l.bf16 %v20543_v0  ;;  %v8373_v60 = vsel %vm3269_vm14, %v17978_v49, %v12900_v8  ;;  %v8374_v13 = vsel %vm3269_vm14, %v17986_v61, %v12901_v56  ;;  %v8375_v7 = vsel %vm3269_vm14, %v8343_v39, %v12905_v19 }
 0x876   : > { %v8376_v63 = vsel %vm3269_vm14, %v8344_v2, %v12906_v12  ;;  %v8405_v29 = vsel %vm3278_vm15, %v8373_v60, %v12960_v17  ;;  %v8406_v53 = vsel %vm3278_vm15, %v8374_v13, %v12961_v40  ;;  %v8407_v41 = vsel %vm3278_vm15, %v8375_v7, %v12975_v6  ;;  %v18086_v17 = vpop.permute.xlu1 %13038 }
 0x877   : > { %v8437_v21 = vsel %vm3287_vm0, %v8405_v29, %v12970_v15  ;;  %v8438_v14 = vsel %vm3287_vm0, %v8406_v53, %v12971_v28  ;;  %v8408_v49 = vsel %vm3278_vm15, %v8376_v63, %v12976_v1  ;;  %v8347_v61 = vsel %vm3260_vm13, %v17881_v38, %v12835_v42 }
 0x878   : > { %v8348_v39 = vsel %vm3260_vm13, %v17885_v55, %v12836_v9  ;;  %v8439_v2 = vsel %vm3287_vm0, %v8407_v41, %v12985_v20  ;;  %v8440_v47 = vsel %vm3287_vm0, %v8408_v49, %v12986_v27  ;;  %v12911_v56 = vunpack.i.h.bf16 %v20544_v25  ;;  %v20546_v27 = vld [vmem:[#allocation52_spill] sm:$0xff]  ;;  %v20548_v41 = vld [vmem:[#allocation55_spill] sm:$0xff] }
 0x879   : > { %11335 = vmatmul.mubr.msk.bf16.vlgmr.msra.gmra.mrb[68].mxu1 %vm3343_vm1, %v8464_v3  ;;  %v12910_v8 = vunpack.i.l.bf16 %v20544_v25  ;;  %v12916_v12 = vunpack.i.h.bf16 %v20545_v54  ;;  %v12915_v19 = vunpack.i.l.bf16 %v20545_v54  ;;  %v18081_v3 = vpop.permute.xlu0 %13043  ;;  %v12981_v40 = vunpack.i.h.bf16 %v17818_v30 }
 0x87a   : > { %11338 = vmatprep.mubr.msk.bf16.mxu1 %vm3343_vm1, %v8465_v51  ;;  %v12980_v38 = vunpack.i.l.bf16 %v17818_v30  ;;  %v12991_v55 = vunpack.i.h.bf16 %v17872_v50  ;;  %v8466_v28 = vpack.c.bf16 %v8438_v14, %v8437_v21  ;;  %v12990_v15 = vunpack.i.l.bf16 %v17872_v50  ;;  %v18117_v14 = vpop.permute.xlu1 %13048 }
 0x87b   : > { %v12996_v1 = vunpack.i.h.bf16 %v17857_v33  ;;  %v12995_v6 = vunpack.i.l.bf16 %v17857_v33  ;;  %v8467_v51 = vpack.c.bf16 %v8440_v47, %v8439_v2  ;;  %v8349_v45 = vsel %vm3260_vm13, %v17889_v26, %v12840_v37 }
 0x87c   : > { %v8350_v9 = vsel %vm3260_vm13, %v17894_v43, %v12841_v22  ;;  %v13006_v30 = vunpack.i.h.bf16 %v17934_v57  ;;  %v13005_v42 = vunpack.i.l.bf16 %v17934_v57  ;;  %v12846_v20 = vunpack.i.h.bf16 %v20546_v27 }
 0x87d   : > { %v12845_v50 = vunpack.i.l.bf16 %v20546_v27  ;;  %v8377_v0 = vsel %vm3269_vm14, %v8345_v35, %v12910_v8  ;;  %v8378_v33 = vsel %vm3269_vm14, %v8346_v24, %v12911_v56  ;;  %v8379_v26 = vsel %vm3269_vm14, %v8347_v61, %v12915_v19  ;;  %v18111_v7 = vpop.permute.xlu0 %13053  ;;  %v20547_v24 = vld [vmem:[#allocation69_spill] sm:$0xff]  ;;  %v20549_v61 = vld [vmem:[#allocation68_spill] sm:$0xff] }
 0x87e   : > { %v8380_v43 = vsel %vm3269_vm14, %v8348_v39, %v12916_v12  ;;  %v8409_v22 = vsel %vm3278_vm15, %v8377_v0, %v12980_v38  ;;  %v8410_v57 = vsel %vm3278_vm15, %v8378_v33, %v12981_v40  ;;  %v8411_v13 = vsel %vm3278_vm15, %v8379_v26, %v12995_v6  ;;  %v20551_v0 = vld [vmem:[#allocation71_spill] sm:$0xff] }
 0x87f   : > { %v8441_v37 = vsel %vm3287_vm0, %v8409_v22, %v12990_v15  ;;  %v8442_v60 = vsel %vm3287_vm0, %v8410_v57, %v12991_v55  ;;  %v8412_v35 = vsel %vm3278_vm15, %v8380_v43, %v12996_v1  ;;  %v12921_v63 = vunpack.i.h.bf16 %v20547_v24 }
 0x880   : > { %v12920_v29 = vunpack.i.l.bf16 %v20547_v24  ;;  %v8443_v53 = vsel %vm3287_vm0, %v8411_v13, %v13005_v42  ;;  %v8444_v21 = vsel %vm3287_vm0, %v8412_v35, %v13006_v30  ;;  %v12851_v49 = vunpack.i.h.bf16 %v20548_v41  ;;  %v20550_v42 = vld [vmem:[#allocation54_spill] sm:$0xff] }
 0x881   : > { %11339 = vmatmul.mubr.msk.bf16.gmra.mrb[72].mxu1 %vm3343_vm1, %v8466_v28  ;;  %v12926_v39 = vunpack.i.h.bf16 %v20549_v61  ;;  %v13001_v2 = vunpack.i.h.bf16 %v17943_v59  ;;  %v13000_v47 = vunpack.i.l.bf16 %v17943_v59  ;;  %v12925_v25 = vunpack.i.l.bf16 %v20549_v61 }
 0x882   : > { %11342 = vmatprep.mubr.msk.bf16.mxu1 %vm3343_vm1, %v8467_v51  ;;  %v13011_v56 = vunpack.i.h.bf16 %v17991_v48  ;;  %v13010_v8 = vunpack.i.l.bf16 %v17991_v48  ;;  %v8468_v54 = vpack.c.bf16 %v8442_v60, %v8441_v37  ;;  %v12850_v12 = vunpack.i.l.bf16 %v20548_v41  ;;  %v18140_v51 = vpop.permute.xlu0 %13063 }
 0x883   : > { %v13016_v19 = vunpack.i.h.bf16 %v17982_v23  ;;  %v13015_v40 = vunpack.i.l.bf16 %v17982_v23  ;;  %v8469_v38 = vpack.c.bf16 %v8444_v21, %v8443_v53  ;;  %v8381_v55 = vsel %vm3269_vm14, %v8349_v45, %v12920_v29 }
 0x884   : > { %v8382_v28 = vsel %vm3269_vm14, %v8350_v9, %v12921_v63  ;;  %v13026_v59 = vunpack.i.h.bf16 %v18018_v18  ;;  %v13025_v15 = vunpack.i.l.bf16 %v18018_v18  ;;  %v8351_v48 = vsel %vm3260_vm13, %v17898_v4, %v12845_v50  ;;  %v18147_v4 = vpop.permute.xlu1 %13058 }
 0x885   : > { %v8352_v1 = vsel %vm3260_vm13, %v17902_v58, %v12846_v20  ;;  %v8413_v6 = vsel %vm3278_vm15, %v8381_v55, %v13000_v47  ;;  %v8414_v23 = vsel %vm3278_vm15, %v8382_v28, %v13001_v2  ;;  %v8383_v45 = vsel %vm3269_vm14, %v8351_v48, %v12925_v25 }
 0x886   : > { %v8384_v18 = vsel %vm3269_vm14, %v8352_v1, %v12926_v39  ;;  %v8445_v9 = vsel %vm3287_vm0, %v8413_v6, %v13010_v8  ;;  %v8446_v30 = vsel %vm3287_vm0, %v8414_v23, %v13011_v56  ;;  %v8353_v58 = vsel %vm3260_vm13, %v17906_v31, %v12850_v12  ;;  %v13074_v41 = vpop.permute.xlu0 %13073 }
 0x887   : > { %v12856_v27 = vunpack.i.h.bf16 %v20550_v42  ;;  %v8415_v20 = vsel %vm3278_vm15, %v8383_v45, %v13015_v40  ;;  %v8416_v50 = vsel %vm3278_vm15, %v8384_v18, %v13016_v19  ;;  %v12931_v33 = vunpack.i.h.bf16 %v20551_v0  ;;  %v20553_v40 = vld [vmem:[#allocation56_spill] sm:$0xff] }
 0x888   : > { %v12930_v26 = vunpack.i.l.bf16 %v20551_v0  ;;  %v8447_v43 = vsel %vm3287_vm0, %v8415_v20, %v13025_v15  ;;  %v8448_v22 = vsel %vm3287_vm0, %v8416_v50, %v13026_v59  ;;  %v12855_v57 = vunpack.i.l.bf16 %v20550_v42  ;;  %v18173_v47 = vpop.permute.xlu1 %13068 }
 0x889   : > { %11343 = vmatmul.mubr.msk.bf16.gmra.mrb[76].mxu1 %vm3343_vm1, %v8468_v54  ;;  %v13021_v37 = vunpack.i.h.bf16 %v18025_v10  ;;  %v13020_v31 = vunpack.i.l.bf16 %v18025_v10  ;;  %v8470_v60 = vpack.c.bf16 %v8446_v30, %v8445_v9  ;;  %v13031_v13 = vunpack.i.h.bf16 %v18053_v34  ;;  %v20552_v54 = vld [vmem:[#allocation57_spill] sm:$0xff] }
 0x88a   : > { %11346 = vmatprep.mubr.msk.bf16.mxu1 %vm3343_vm1, %v8469_v38  ;;  %v13030_v35 = vunpack.i.l.bf16 %v18053_v34  ;;  %v13036_v24 = vunpack.i.h.bf16 %v18047_v44  ;;  %v13035_v63 = vunpack.i.l.bf16 %v18047_v44  ;;  %v8354_v29 = vsel %vm3260_vm13, %v17910_v16, %v12851_v49  ;;  %v13084_v6 = vpop.permute.xlu0 %13083 }
 0x88b   : > { %v13046_v53 = vunpack.i.h.bf16 %v18081_v3  ;;  %v13045_v21 = vunpack.i.l.bf16 %v18081_v3  ;;  %v8471_v61 = vpack.c.bf16 %v8448_v22, %v8447_v43  ;;  %v8385_v10 = vsel %vm3269_vm14, %v8353_v58, %v12930_v26 }
 0x88c   : > { %v8386_v39 = vsel %vm3269_vm14, %v8354_v29, %v12931_v33  ;;  %v13056_v2 = vunpack.i.h.bf16 %v18111_v7  ;;  %v13055_v34 = vunpack.i.l.bf16 %v18111_v7  ;;  %v8355_v16 = vsel %vm3260_vm13, %v17913_v46, %v12855_v57  ;;  %v13079_v58 = vpop.permute.xlu1 %13078 }
 0x88d   : > { %v8356_v44 = vsel %vm3260_vm13, %v17916_v36, %v12856_v27  ;;  %v8417_v3 = vsel %vm3278_vm15, %v8385_v10, %v13020_v31  ;;  %v8418_v49 = vsel %vm3278_vm15, %v8386_v39, %v13021_v37  ;;  %v8387_v56 = vsel %vm3269_vm14, %v8355_v16, %v13035_v63  ;;  %v20558_v10 = vld [vmem:[#allocation73_spill] sm:$0xff]  ;;  %v20559_v16 = vld [vmem:[#allocation47_spill] sm:$0xff] }
 0x88e   : > { %v8449_v25 = vsel %vm3287_vm0, %v8417_v3, %v13030_v35  ;;  %v8450_v7 = vsel %vm3287_vm0, %v8418_v49, %v13031_v13  ;;  %v8388_v8 = vsel %vm3269_vm14, %v8356_v44, %v13036_v24  ;;  %v12861_v12 = vunpack.i.h.bf16 %v20552_v54 }
 0x88f   : > { %v12860_v46 = vunpack.i.l.bf16 %v20552_v54  ;;  %v8419_v36 = vsel %vm3278_vm15, %v8387_v56, %v13045_v21  ;;  %v8420_v19 = vsel %vm3278_vm15, %v8388_v8, %v13046_v53  ;;  %v12866_v38 = vunpack.i.h.bf16 %v20553_v40  ;;  %v20556_v21 = vld [vmem:[#allocation72_spill] sm:$0xff] }
 0x890   : > { %v12865_v55 = vunpack.i.l.bf16 %v20553_v40  ;;  %v8451_v28 = vsel %vm3287_vm0, %v8419_v36, %v13055_v34  ;;  %v8452_v59 = vsel %vm3287_vm0, %v8420_v19, %v13056_v2  ;;  %v13041_v15 = vunpack.i.h.bf16 %v18086_v17  ;;  %v13089_v29 = vpop.permute.xlu1 %13088 }
 0x891   : > { %11347 = vmatmul.mubr.msk.bf16.gmra.mrb[80].mxu1 %vm3343_vm1, %v8470_v60  ;;  %v13040_v48 = vunpack.i.l.bf16 %v18086_v17  ;;  %v13051_v1 = vunpack.i.h.bf16 %v18117_v14  ;;  %v8472_v23 = vpack.c.bf16 %v8450_v7, %v8449_v25  ;;  %v13050_v45 = vunpack.i.l.bf16 %v18117_v14  ;;  %v20554_v60 = vld [vmem:[#allocation59_spill] sm:$0xff] }
 0x892   : > { %11350 = vmatprep.mubr.msk.bf16.mxu1 %vm3343_vm1, %v8471_v61  ;;  %v13061_v18 = vunpack.i.h.bf16 %v18147_v4  ;;  %v13066_v9 = vunpack.i.h.bf16 %v18140_v51  ;;  %v13065_v30 = vunpack.i.l.bf16 %v18140_v51  ;;  %v13060_v42 = vunpack.i.l.bf16 %v18147_v4 }
 0x893   : > { %v13076_v27 = vunpack.i.h.bf16 %v13074_v41  ;;  %v13075_v20 = vunpack.i.l.bf16 %v13074_v41  ;;  %v8473_v50 = vpack.c.bf16 %v8452_v59, %v8451_v28  ;;  %v8357_v17 = vsel %vm3260_vm13, %v17919_v32, %v12860_v46 }
 0x894   : > { %v8358_v0 = vsel %vm3260_vm13, %v17922_v11, %v12861_v12  ;;  %v13086_v33 = vunpack.i.h.bf16 %v13084_v6  ;;  %v13085_v14 = vunpack.i.l.bf16 %v13084_v6  ;;  %v8359_v26 = vsel %vm3260_vm13, %v17951_v5, %v12865_v55 }
 0x895   : > { %v8360_v51 = vsel %vm3260_vm13, %v17959_v62, %v12866_v38  ;;  %v8389_v4 = vsel %vm3269_vm14, %v8357_v17, %v13040_v48  ;;  %v8390_v43 = vsel %vm3269_vm14, %v8358_v0, %v13041_v15  ;;  %v8391_v22 = vsel %vm3269_vm14, %v8359_v26, %v13065_v30  ;;  %v14374_v15 = vld [vmem:[%s20284_s12] sm:$0xff]  }
 0x896   : > { %v8421_v32 = vsel %vm3278_vm15, %v8389_v4, %v13050_v45  ;;  %v8422_v11 = vsel %vm3278_vm15, %v8390_v43, %v13051_v1  ;;  %v8392_v57 = vsel %vm3269_vm14, %v8360_v51, %v13066_v9  ;;  %v8423_v62 = vsel %vm3278_vm15, %v8391_v22, %v13075_v20  ;;  %8830 = vmatpush1.bf16.msra.mxu0 %v14374_v15  ;;  %v14375_v45 = vld [vmem:[%s20284_s12 + $0x8] sm:$0xff]   ;;  %v14376_v9 = vld [vmem:[%s20284_s12 + $0x10] sm:$0xff]  }
 0x897   : > { %v8453_v37 = vsel %vm3287_vm0, %v8421_v32, %v13060_v42  ;;  %v8454_v5 = vsel %vm3287_vm0, %v8422_v11, %v13061_v18  ;;  %v8424_v31 = vsel %vm3278_vm15, %v8392_v57, %v13076_v27  ;;  %v12871_v13 = vunpack.i.h.bf16 %v20554_v60  ;;  %v14378_v32 = vld [vmem:[%s20284_s12 + $0x20] sm:$0xff]  }
 0x898   : > { %v12870_v35 = vunpack.i.l.bf16 %v20554_v60  ;;  %v8455_v24 = vsel %vm3287_vm0, %v8423_v62, %v13085_v14  ;;  %v8456_v63 = vsel %vm3287_vm0, %v8424_v31, %v13086_v33  ;;  %v20555_v53 = vunpack.i.l.bf16 %v20519_v52 }
 0x899   : > { %11351 = vmatmul.mubr.msk.bf16.gmra.mrb[84].mxu1 %vm3343_vm1, %v8472_v23  ;;  %v20557_v61 = vunpack.i.h.bf16 %v20519_v52  ;;  %v13071_v2 = vunpack.i.h.bf16 %v18173_v47  ;;  %v13070_v34 = vunpack.i.l.bf16 %v18173_v47  ;;  %v20560_v44 = vunpack.i.l.bf16 %v20559_v16 }
 0x89a   : > { %11354 = vmatprep.mubr.msk.bf16.mxu1 %vm3343_vm1, %v8473_v50  ;;  %v8297_v41 = vsel %vm2381_vm8, %v20556_v21, %v20555_v53  ;;  %v13081_v49 = vunpack.i.h.bf16 %v13079_v58  ;;  %v13080_v25 = vunpack.i.l.bf16 %v13079_v58  ;;  %v8474_v7 = vpack.c.bf16 %v8454_v5, %v8453_v37  ;;  %v14377_v58 = vld [vmem:[%s20284_s12 + $0x18] sm:$0xff]  }
 0x89b   : > { %v8298_v39 = vsel %vm2381_vm8, %v20558_v10, %v20557_v61  ;;  %v8329_v3 = vsel %vm711_vm4, %v8297_v41, %v20560_v44  ;;  %v20561_v56 = vunpack.i.h.bf16 %v20559_v16  ;;  %v13091_v54 = vunpack.i.h.bf16 %v13089_v29 }
 0x89c   : > { %v13090_v52 = vunpack.i.l.bf16 %v13089_v29  ;;  %v8475_v12 = vpack.c.bf16 %v8456_v63, %v8455_v24  ;;  %v8361_v46 = vsel %vm3260_vm13, %v8329_v3, %v12870_v35  ;;  %v20562_v48 = vmov 0   ;;  %v14380_v63 = vld [vmem:[%s20284_s12 + $0x30] sm:$0xff]   ;;  %v18512_v35 = vpop.permute.xlu1 %13098 }
 0x89d   : > { %v8330_v8 = vsel %vm711_vm4, %v8298_v39, %v20561_v56  ;;  %v8393_v47 = vsel %vm3269_vm14, %v8361_v46, %v13070_v34  ;;  %8831 = vmatprep.subr.bf16.mxu0 %v20562_v48  ;;  %v14381_v56 = vld [vmem:[%s20284_s12 + $0x38] sm:$0xff]  }
 0x89e   : > { %v8362_v36 = vsel %vm3260_vm13, %v8330_v8, %v12871_v13  ;;  %v8425_v40 = vsel %vm3278_vm15, %v8393_v47, %v13080_v25  ;;  %8832 = vmatpush1.bf16.msra.mxu0 %v14375_v45  ;;  %v14379_v13 = vld [vmem:[%s20284_s12 + $0x28] sm:$0xff]  }
 0x89f   : > { %v8394_v19 = vsel %vm3269_vm14, %v8362_v36, %v13071_v2  ;;  %v8457_v55 = vsel %vm3287_vm0, %v8425_v40, %v13090_v52  ;;  %8833 = vmatprep.subr.bf16.mxu0 %v20562_v48  ;;  %v14382_v52 = vld [vmem:[%s20284_s12 + $0x40] sm:$0xff]  }
 0x8a0   : > { %v8426_v38 = vsel %vm3278_vm15, %v8394_v19, %v13081_v49 }
 0x8a1   : > { %11355 = vmatmul.mubr.msk.bf16.gmra.mrb[88].mxu1 %vm3343_vm1, %v8474_v7  ;;  %v8458_v28 = vsel %vm3287_vm0, %v8426_v38, %v13091_v54 }
 0x8a2   : > { %11358 = vmatprep.mubr.msk.bf16.mxu1 %vm3343_vm1, %v8475_v12  ;;  %v8476_v59 = vpack.c.bf16 %v8458_v28, %v8457_v55  ;;  %8834 = vmatpush1.bf16.msra.mxu0 %v14376_v9 }
 0x8a3   : > { %8835 = vmatprep.subr.bf16.mxu0 %v20562_v48 }
 0x8a6   : > { %8836 = vmatpush1.bf16.msra.mxu0 %v14377_v58 }
 0x8a7   : > { %8837 = vmatprep.subr.bf16.mxu0 %v20562_v48 }
 0x8a9   : > { %11359 = vmatmul.mubr.msk.bf16.gmra.mrb[92].mxu1 %vm3343_vm1, %v8476_v59 }
 0x8aa   : > { %8838 = vmatpush1.bf16.msra.mxu0 %v14378_v32 }
 0x8ab   : > { %8839 = vmatprep.subr.bf16.mxu0 %v20562_v48 }
 0x8ae   : > { %8840 = vmatpush1.bf16.msra.mxu0 %v14379_v13 }
 0x8af   : > { %8841 = vmatprep.subr.bf16.mxu0 %v20562_v48 }
 0x8b2   : > { %8842 = vmatpush1.bf16.msra.mxu0 %v14380_v63 }
 0x8b3   : > { %8843 = vmatprep.subr.bf16.mxu0 %v20562_v48 }
 0x8b6   : > { %8844 = vmatpush1.bf16.msra.mxu0 %v14381_v56 }
 0x8b7   : > { %8845 = vmatprep.subr.bf16.mxu0 %v20562_v48 }
 0x8ba   : > { %8846 = vmatpush1.bf16.msra.mxu0 %v14382_v52 }
 0x90c   : > { %v11294_v1 = vpop.f32.mrb[36].mxu1 }
 0x90d   : > { %5406 = vst.msk [vmem:[#allocation8 + $0x31] sm:$0xff] %vm682_vm3, %v11294_v1  ;;  %v5276_v6 = vpop.f32.mrb[37].mxu1 }
 0x90e   : > { %5404 = vst.msk [vmem:[#allocation8 + $0x19] sm:$0xff] %vm682_vm3, %v5276_v6  ;;  %v11295_v23 = vpop.f32.mrb[38].mxu1 }
 0x90f   : > { %5407 = vst.msk [vmem:[#allocation8 + $0x39] sm:$0xff] %vm682_vm3, %v11295_v23  ;;  %v5279_v18 = vpop.f32.mrb[39].mxu1 }
 0x910   : > { %5405 = vst.msk [vmem:[#allocation8 + $0x21] sm:$0xff] %vm682_vm3, %v5279_v18 }
 0x914   : > { %v11298_v30 = vpop.f32.mrb[40].mxu1  ;;  %v18272_v42 = vld [vmem:[#allocation8 + $0x30] sm:$0xff] }
 0x915   : > { %v5472_v27 = vld [vmem:[#allocation8 + $0x31] sm:$0xff]  ;;  %5410 = vst.msk [vmem:[#allocation8 + $0x61] sm:$0xff] %vm682_vm3, %v11298_v30  ;;  %v5292_v20 = vpop.f32.mrb[41].mxu1  ;;  %v5470_v24 = vld [vmem:[#allocation8 + $0x19] sm:$0xff] }
 0x916   : > { %v18276_v50 = vld [vmem:[#allocation8 + $0x38] sm:$0xff]  ;;  %5408 = vst.msk [vmem:[#allocation8 + $0x49] sm:$0xff] %vm682_vm3, %v5292_v20  ;;  %v11299_v33 = vpop.f32.mrb[42].mxu1 }
 0x917   : > { %v5473_v17 = vld [vmem:[#allocation8 + $0x39] sm:$0xff]  ;;  %v13117_v14 = vpack.i.bf16 %v18276_v50, %v18272_v42  ;;  %5411 = vst.msk [vmem:[#allocation8 + $0x69] sm:$0xff] %vm682_vm3, %v11299_v33  ;;  %v5295_v4 = vpop.f32.mrb[43].mxu1  ;;  %v5471_v31 = vld [vmem:[#allocation8 + $0x21] sm:$0xff] }
 0x918   : > { %v5504_v0 = vld [vmem:[#allocation8 + $0x32] sm:$0xff]  ;;  %v13107_v26 = vpack.i.bf16 %v5473_v17, %v5472_v27  ;;  %v5505_v51 = vld [vmem:[#allocation8 + $0x3a] sm:$0xff]  ;;  %5409 = vst.msk [vmem:[#allocation8 + $0x51] sm:$0xff] %vm682_vm3, %v5295_v4  ;;  %v13142_v29 = vpack.i.bf16 %v5471_v31, %v5470_v24  ;;  %v5503_v41 = vld [vmem:[#allocation8 + $0x22] sm:$0xff] }
 0x919   : > { %v6846_v43 = vpack.c.bf16 %v5505_v51, %v5504_v0  ;;  %13118 = vrot.lane.b32.xlu1 %v13117_v14, %s20442_s26  ;;  %v13112_v11 = vpack.i.bf16 %v5505_v51, %v5504_v0  ;;  %v18312_v53 = vld [vmem:[#allocation8 + $0x20] sm:$0xff]  ;;  %v18317_v39 = vld [vmem:[#allocation8 + $0x18] sm:$0xff] }
 0x91a   : > { %13108 = vrot.lane.b32.xlu0 %v13107_v26, %s20388_s1  ;;  %v5502_v21 = vld [vmem:[#allocation8 + $0x1a] sm:$0xff]  ;;  %v13152_v34 = vpack.i.bf16 %v18312_v53, %v18317_v39 }
 0x91b   : > { %11046 = vmatprep.mubr.msk.bf16.mxu0 %vm682_vm3, %v6846_v43  ;;  %v13147_v16 = vpack.i.bf16 %v5503_v41, %v5502_v21 }
 0x91c   : > { %v11302_v22 = vpop.f32.mrb[44].mxu1  ;;  %v18322_v44 = vld [vmem:[#allocation8 + $0x60] sm:$0xff] }
 0x91d   : > { %13123 = vrot.lane.b32.xlu1 %v13107_v26, %s20563_s23  ;;  %5414 = vst.msk [vmem:[#allocation8 + $0x91] sm:$0xff] %vm682_vm3, %v11302_v22  ;;  %v5308_v57 = vpop.f32.mrb[45].mxu1  ;;  %v5570_v12 = vld [vmem:[#allocation8 + $0x61] sm:$0xff]  ;;  %v5474_v15 = vld [vmem:[#allocation8 + $0x49] sm:$0xff] }
 0x91e   : > { %13113 = vrot.lane.b32.xlu0 %v13112_v11, %s20564_s29  ;;  %5412 = vst.msk [vmem:[#allocation8 + $0x79] sm:$0xff] %vm682_vm3, %v5308_v57  ;;  %v11303_v37 = vpop.f32.mrb[46].mxu1  ;;  %v18328_v25 = vld [vmem:[#allocation8 + $0x68] sm:$0xff] }
 0x91f   : > { %5415 = vst.msk [vmem:[#allocation8 + $0x99] sm:$0xff] %vm682_vm3, %v11303_v37  ;;  %v5311_v5 = vpop.f32.mrb[47].mxu1  ;;  %v18296_v62 = vld [vmem:[#allocation8 + $0x4a] sm:$0xff]  ;;  %v18299_v60 = vld [vmem:[#allocation8 + $0x52] sm:$0xff]  ;;  %v13177_v54 = vpack.i.bf16 %v18328_v25, %v18322_v44  ;;  %v5602_v55 = vld [vmem:[#allocation8 + $0x62] sm:$0xff] }
 0x920   : > { %5413 = vst.msk [vmem:[#allocation8 + $0x81] sm:$0xff] %vm682_vm3, %v5311_v5  ;;  %v5571_v46 = vld [vmem:[#allocation8 + $0x69] sm:$0xff]  ;;  %v5475_v48 = vld [vmem:[#allocation8 + $0x51] sm:$0xff]  ;;  %v13207_v9 = vpack.i.bf16 %v18299_v60, %v18296_v62 }
 0x921   : > { %13128 = vrot.lane.b32.xlu1 %v13112_v11, %s20565_s22  ;;  %v13182_v40 = vpack.i.bf16 %v5571_v46, %v5570_v12  ;;  %v5603_v28 = vld [vmem:[#allocation8 + $0x6a] sm:$0xff]  ;;  %v13202_v45 = vpack.i.bf16 %v5475_v48, %v5474_v15 }
 0x922   : > { %13133 = vrot.lane.b32.xlu0 %v13117_v14, %s20566_s27  ;;  %v13187_v59 = vpack.i.bf16 %v5603_v28, %v5602_v55  ;;  %v18364_v30 = vld [vmem:[#allocation8 + $0x48] sm:$0xff]  ;;  %v18366_v58 = vld [vmem:[#allocation8 + $0x50] sm:$0xff] }
 0x923   : > { %v13227_v0 = vpack.i.bf16 %v18366_v58, %v18364_v30 }
 0x924   : > { %v11306_v61 = vpop.f32.mrb[48].mxu1  ;;  %v18384_v43 = vld [vmem:[#allocation8 + $0x90] sm:$0xff] }
 0x925   : > { %13143 = vrot.lane.b32.xlu1 %v13142_v29, %s20568_s18  ;;  %5418 = vst.msk [vmem:[#allocation8 + $0xc1] sm:$0xff] %vm682_vm3, %v11306_v61  ;;  %v5324_v10 = vpop.f32.mrb[49].mxu1  ;;  %v5574_v5 = vld [vmem:[#allocation8 + $0x91] sm:$0xff] }
 0x926   : > { %13138 = vrot.lane.b32.xlu0 %v13107_v26, %s20567_s28  ;;  %5416 = vst.msk [vmem:[#allocation8 + $0xa9] sm:$0xff] %vm682_vm3, %v5324_v10  ;;  %v11307_v2 = vpop.f32.mrb[50].mxu1  ;;  %v18386_v32 = vld [vmem:[#allocation8 + $0x98] sm:$0xff] }
 0x927   : > { %5419 = vst.msk [vmem:[#allocation8 + $0xc9] sm:$0xff] %vm682_vm3, %v11307_v2  ;;  %v5327_v3 = vpop.f32.mrb[51].mxu1  ;;  %v18325_v49 = vld [vmem:[#allocation8 + $0x7a] sm:$0xff]  ;;  %v18331_v7 = vld [vmem:[#allocation8 + $0x82] sm:$0xff]  ;;  %v13247_v57 = vpack.i.bf16 %v18386_v32, %v18384_v43  ;;  %v5606_v63 = vld [vmem:[#allocation8 + $0x92] sm:$0xff] }
 0x928   : > { %5417 = vst.msk [vmem:[#allocation8 + $0xb1] sm:$0xff] %vm682_vm3, %v5327_v3  ;;  %v5575_v31 = vld [vmem:[#allocation8 + $0x99] sm:$0xff]  ;;  %v13277_v12 = vpack.i.bf16 %v18331_v7, %v18325_v49 }
 0x929   : > { %13148 = vrot.lane.b32.xlu1 %v13147_v16, %s20564_s29  ;;  %v13252_v13 = vpack.i.bf16 %v5575_v31, %v5574_v5  ;;  %v5478_v2 = vld [vmem:[#allocation8 + $0x79] sm:$0xff] }
 0x92a   : > { %13153 = vrot.lane.b32.xlu0 %v13152_v34, %s20442_s26  ;;  %v5479_v34 = vld [vmem:[#allocation8 + $0x81] sm:$0xff]  ;;  %v18422_v46 = vld [vmem:[#allocation8 + $0x78] sm:$0xff] }
 0x92c   : > { %v11310_v36 = vpop.f32.mrb[52].mxu1  ;;  %v5546_v55 = vld [vmem:[#allocation8 + $0xc0] sm:$0xff] }
 0x92d   : > { %13178 = vrot.lane.b32.xlu1 %v13177_v54, %s20442_s26  ;;  %5422 = vst.msk [vmem:[#allocation8 + $0xf1] sm:$0xff] %vm682_vm3, %v11310_v36  ;;  %v5340_v47 = vpop.f32.mrb[53].mxu1  ;;  %v18424_v36 = vld [vmem:[#allocation8 + $0x80] sm:$0xff] }
 0x92e   : > { %13158 = vrot.lane.b32.xlu0 %v13142_v29, %s20563_s23  ;;  %5420 = vst.msk [vmem:[#allocation8 + $0xd9] sm:$0xff] %vm682_vm3, %v5340_v47  ;;  %v11311_v19 = vpop.f32.mrb[54].mxu1  ;;  %v5607_v29 = vld [vmem:[#allocation8 + $0x9a] sm:$0xff]  ;;  %v13297_v47 = vpack.i.bf16 %v18424_v36, %v18422_v46  ;;  %v5547_v28 = vld [vmem:[#allocation8 + $0xc8] sm:$0xff] }
 0x92f   : > { %5423 = vst.msk [vmem:[#allocation8 + $0xf9] sm:$0xff] %vm682_vm3, %v11311_v19  ;;  %v5343_v38 = vpop.f32.mrb[55].mxu1  ;;  %v13257_v10 = vpack.i.bf16 %v5607_v29, %v5606_v63  ;;  %v5514_v63 = vld [vmem:[#allocation8 + $0xaa] sm:$0xff]  ;;  %v5515_v29 = vld [vmem:[#allocation8 + $0xb2] sm:$0xff] }
 0x930   : > { %5421 = vst.msk [vmem:[#allocation8 + $0xe1] sm:$0xff] %vm682_vm3, %v5343_v38 }
 0x931   : > { %13183 = vrot.lane.b32.xlu1 %v13182_v40, %s20563_s23 }
 0x932   : > { %13163 = vrot.lane.b32.xlu0 %v13147_v16, %s20565_s22  ;;  %v13272_v16 = vpack.i.bf16 %v5479_v34, %v5478_v2  ;;  %v5639_v34 = vld [vmem:[#allocation8 + $0xa8] sm:$0xff] }
 0x934   : > { %v11314_v1 = vpop.f32.mrb[56].mxu1 }
 0x935   : > { %13188 = vrot.lane.b32.xlu1 %v13187_v59, %s20565_s22  ;;  %5426 = vst.msk [vmem:[#allocation8 + $0x121] sm:$0xff] %vm682_vm3, %v11314_v1  ;;  %v5356_v6 = vpop.f32.mrb[57].mxu1  ;;  %v13317_v1 = vpack.i.bf16 %v5547_v28, %v5546_v55 }
 0x936   : > { %13168 = vrot.lane.b32.xlu0 %v13182_v40, %s20568_s18  ;;  %5424 = vst.msk [vmem:[#allocation8 + $0x109] sm:$0xff] %vm682_vm3, %v5356_v6  ;;  %v11315_v23 = vpop.f32.mrb[58].mxu1  ;;  %v5614_v51 = vld [vmem:[#allocation8 + $0xf2] sm:$0xff]  ;;  %v5615_v8 = vld [vmem:[#allocation8 + $0xfa] sm:$0xff] }
 0x937   : > { %5427 = vst.msk [vmem:[#allocation8 + $0x129] sm:$0xff] %vm682_vm3, %v11315_v23  ;;  %v5359_v18 = vpop.f32.mrb[59].mxu1 }
 0x938   : > { %5425 = vst.msk [vmem:[#allocation8 + $0x111] sm:$0xff] %vm682_vm3, %v5359_v18  ;;  %v5579_v18 = vld [vmem:[#allocation8 + $0xc9] sm:$0xff] }
 0x939   : > { %13203 = vrot.lane.b32.xlu1 %v13202_v45, %s20568_s18 }
 0x93a   : > { %13173 = vrot.lane.b32.xlu0 %v13187_v59, %s20564_s29 }
 0x93c   : > { %v11318_v27 = vpop.f32.mrb[60].mxu1 }
 0x93d   : > { %13208 = vrot.lane.b32.xlu1 %v13207_v9, %s20564_s29  ;;  %5430 = vst.msk [vmem:[#allocation8 + $0x151] sm:$0xff] %vm682_vm3, %v11318_v27  ;;  %v5372_v20 = vpop.f32.mrb[61].mxu1 }
 0x93e   : > { %13193 = vrot.lane.b32.xlu0 %v13177_v54, %s20566_s27  ;;  %5428 = vst.msk [vmem:[#allocation8 + $0x139] sm:$0xff] %vm682_vm3, %v5372_v20  ;;  %v11319_v17 = vpop.f32.mrb[62].mxu1 }
 0x93f   : > { %5431 = vst.msk [vmem:[#allocation8 + $0x159] sm:$0xff] %vm682_vm3, %v11319_v17  ;;  %v5375_v33 = vpop.f32.mrb[63].mxu1  ;;  %v18375_v14 = vld [vmem:[#allocation8 + $0x10a] sm:$0xff]  ;;  %v18378_v26 = vld [vmem:[#allocation8 + $0x112] sm:$0xff] }
 0x940   : > { %5429 = vst.msk [vmem:[#allocation8 + $0x141] sm:$0xff] %vm682_vm3, %v5375_v33  ;;  %v5611_v33 = vld [vmem:[#allocation8 + $0xca] sm:$0xff] }
 0x941   : > { %13228 = vrot.lane.b32.xlu1 %v13227_v0, %s20566_s27 }
 0x942   : > { %13198 = vrot.lane.b32.xlu0 %v13182_v40, %s20567_s28 }
 0x944   : > { %v11322_v4 = vpop.f32.mrb[64].mxu1 }
 0x945   : > { %13233 = vrot.lane.b32.xlu1 %v13202_v45, %s20567_s28  ;;  %5434 = vst.msk [vmem:[#allocation8 + $0x181] sm:$0xff] %vm682_vm3, %v11322_v4  ;;  %v5388_v11 = vpop.f32.mrb[65].mxu1 }
 0x946   : > { %13213 = vrot.lane.b32.xlu0 %v13227_v0, %s20442_s26  ;;  %5432 = vst.msk [vmem:[#allocation8 + $0x169] sm:$0xff] %vm682_vm3, %v5388_v11  ;;  %v11323_v22 = vpop.f32.mrb[66].mxu1  ;;  %v5610_v0 = vld [vmem:[#allocation8 + $0xc2] sm:$0xff] }
 0x947   : > { %5435 = vst.msk [vmem:[#allocation8 + $0x189] sm:$0xff] %vm682_vm3, %v11323_v22  ;;  %v5391_v37 = vpop.f32.mrb[67].mxu1  ;;  %v18440_v15 = vld [vmem:[#allocation8 + $0x13a] sm:$0xff]  ;;  %v18442_v48 = vld [vmem:[#allocation8 + $0x142] sm:$0xff]  ;;  %v13327_v4 = vpack.i.bf16 %v5611_v33, %v5610_v0 }
 0x948   : > { %5433 = vst.msk [vmem:[#allocation8 + $0x171] sm:$0xff] %vm682_vm3, %v5391_v37  ;;  %v5482_v22 = vld [vmem:[#allocation8 + $0xa9] sm:$0xff] }
 0x949   : > { %13248 = vrot.lane.b32.xlu1 %v13247_v57, %s20442_s26 }
 0x94a   : > { %13218 = vrot.lane.b32.xlu0 %v13202_v45, %s20563_s23  ;;  %v5578_v45 = vld [vmem:[#allocation8 + $0xc1] sm:$0xff] }
 0x94b   : > { %v13322_v17 = vpack.i.bf16 %v5579_v18, %v5578_v45  ;;  %v5550_v45 = vld [vmem:[#allocation8 + $0xf0] sm:$0xff]  ;;  %v5551_v18 = vld [vmem:[#allocation8 + $0xf8] sm:$0xff] }
 0x94c   : > { %v18398_v24 = vpop.f32.mrb[68].mxu1  ;;  %v13387_v33 = vpack.i.bf16 %v5551_v18, %v5550_v45  ;;  %v5518_v18 = vld [vmem:[#allocation8 + $0xda] sm:$0xff] }
 0x94d   : > { %20569 = vst [vmem:[#allocation23_spill] sm:$0xff] %v18398_v24  ;;  %13253 = vrot.lane.b32.xlu1 %v13252_v13, %s20563_s23  ;;  %v18402_v21 = vpop.f32.mrb[69].mxu1 }
 0x94e   : > { %13223 = vrot.lane.b32.xlu0 %v13207_v9, %s20565_s22  ;;  %v18404_v41 = vpop.f32.mrb[70].mxu1 }
 0x94f   : > { %20570 = vst [vmem:[#allocation22_spill] sm:$0xff] %v18404_v41  ;;  %v18406_v61 = vpop.f32.mrb[71].mxu1 }
 0x950   : > { %20571 = vst [vmem:[#allocation25_spill] sm:$0xff] %v18406_v61 }
 0x951   : > { %13258 = vrot.lane.b32.xlu1 %v13257_v10, %s20565_s22 }
 0x952   : > { %13238 = vrot.lane.b32.xlu0 %v13252_v13, %s20568_s18 }
 0x954   : > { %v18410_v3 = vpop.f32.mrb[72].mxu1 }
 0x955   : > { %20572 = vst [vmem:[#allocation24_spill] sm:$0xff] %v18410_v3  ;;  %13273 = vrot.lane.b32.xlu1 %v13272_v16, %s20568_s18  ;;  %v18414_v56 = vpop.f32.mrb[73].mxu1 }
 0x956   : > { %13243 = vrot.lane.b32.xlu0 %v13257_v10, %s20564_s29  ;;  %20573 = vst [vmem:[#allocation27_spill] sm:$0xff] %v18414_v56  ;;  %v18416_v54 = vpop.f32.mrb[74].mxu1  ;;  %v13347_v10 = vpack.i.bf16 %v5515_v29, %v5514_v63  ;;  %v18496_v29 = vld [vmem:[#allocation8 + $0x18a] sm:$0xff] }
 0x957   : > { %20574 = vst [vmem:[#allocation26_spill] sm:$0xff] %v18416_v54  ;;  %v18418_v52 = vpop.f32.mrb[75].mxu1 }
 0x958   : > { %20575 = vst [vmem:[#allocation29_spill] sm:$0xff] %v18418_v52 }
 0x959   : > { %13278 = vrot.lane.b32.xlu1 %v13277_v12, %s20564_s29 }
 0x95a   : > { %13263 = vrot.lane.b32.xlu0 %v13247_v57, %s20566_s27  ;;  %v5483_v57 = vld [vmem:[#allocation8 + $0xb1] sm:$0xff] }
 0x95c   : > { %v18430_v19 = vpop.f32.mrb[76].mxu1 }
 0x95d   : > { %20576 = vst [vmem:[#allocation28_spill] sm:$0xff] %v18430_v19  ;;  %13298 = vrot.lane.b32.xlu1 %v13297_v47, %s20566_s27  ;;  %v18434_v40 = vpop.f32.mrb[77].mxu1 }
 0x95e   : > { %13268 = vrot.lane.b32.xlu0 %v13252_v13, %s20567_s28  ;;  %20577 = vst [vmem:[#allocation32_spill] sm:$0xff] %v18434_v40  ;;  %v18436_v38 = vpop.f32.mrb[78].mxu1  ;;  %v13342_v13 = vpack.i.bf16 %v5483_v57, %v5482_v22  ;;  %v5582_v22 = vld [vmem:[#allocation8 + $0xf1] sm:$0xff]  ;;  %v5583_v57 = vld [vmem:[#allocation8 + $0xf9] sm:$0xff] }
 0x95f   : > { %20578 = vst [vmem:[#allocation35_spill] sm:$0xff] %v18436_v38  ;;  %v18438_v59 = vpop.f32.mrb[79].mxu1  ;;  %v13392_v45 = vpack.i.bf16 %v5583_v57, %v5582_v22 }
 0x960   : > { %20579 = vst [vmem:[#allocation34_spill] sm:$0xff] %v18438_v59 }
 0x961   : > { %13303 = vrot.lane.b32.xlu1 %v13272_v16, %s20567_s28 }
 0x962   : > { %13283 = vrot.lane.b32.xlu0 %v13297_v47, %s20442_s26 }
 0x964   : > { %v18448_v23 = vpop.f32.mrb[80].mxu1 }
 0x965   : > { %20580 = vst [vmem:[#allocation37_spill] sm:$0xff] %v18448_v23  ;;  %13318 = vrot.lane.b32.xlu1 %v13317_v1, %s20442_s26  ;;  %v18452_v9 = vpop.f32.mrb[81].mxu1  ;;  %v5437_v23 = vld [vmem:[#allocation8 + $0x8] sm:$0xff] }
 0x966   : > { %13288 = vrot.lane.b32.xlu0 %v13272_v16, %s20563_s23  ;;  %20581 = vst [vmem:[#allocation31_spill] sm:$0xff] %v18452_v9  ;;  %v18454_v27 = vpop.f32.mrb[82].mxu1  ;;  %v5640_v16 = vld [vmem:[#allocation8 + $0xb0] sm:$0xff] }
 0x967   : > { %20582 = vst [vmem:[#allocation36_spill] sm:$0xff] %v18454_v27  ;;  %v18456_v20 = vpop.f32.mrb[83].mxu1  ;;  %v13367_v28 = vpack.i.bf16 %v5640_v16, %v5639_v34  ;;  %v18498_v34 = vld [vmem:[#allocation8 + $0x16a] sm:$0xff]  ;;  %v18500_v16 = vld [vmem:[#allocation8 + $0x172] sm:$0xff]  ;;  %v5436_v27 = vld [vmem:[#allocation8] sm:$0xff] }
 0x968   : > { %20583 = vst [vmem:[#allocation39_spill] sm:$0xff] %v18456_v20  ;;  %v20597_v20 = vld [vmem:[#allocation16_spill] sm:$0xff] }
 0x969   : > { %13323 = vrot.lane.b32.xlu1 %v13322_v17, %s20563_s23  ;;  %v12471_v9 = vunpack.i.h.bf16 %v20597_v20  ;;  %v12470_v38 = vunpack.i.l.bf16 %v20597_v20 }
 0x96a   : > { %13293 = vrot.lane.b32.xlu0 %v13277_v12, %s20565_s22 }
 0x96c   : > { %v18460_v11 = vpop.f32.mrb[84].mxu1 }
 0x96d   : > { %20584 = vst [vmem:[#allocation38_spill] sm:$0xff] %v18460_v11  ;;  %13328 = vrot.lane.b32.xlu1 %v13327_v4, %s20565_s22  ;;  %v18464_v37 = vpop.f32.mrb[85].mxu1 }
 0x96e   : > { %13308 = vrot.lane.b32.xlu0 %v13322_v17, %s20568_s18  ;;  %20585 = vst [vmem:[#allocation41_spill] sm:$0xff] %v18464_v37  ;;  %v18466_v5 = vpop.f32.mrb[86].mxu1 }
 0x96f   : > { %20586 = vst [vmem:[#allocation40_spill] sm:$0xff] %v18466_v5  ;;  %v18468_v31 = vpop.f32.mrb[87].mxu1 }
 0x970   : > { %20587 = vst [vmem:[#allocation43_spill] sm:$0xff] %v18468_v31 }
 0x971   : > { %13343 = vrot.lane.b32.xlu1 %v13342_v13, %s20568_s18 }
 0x972   : > { %13313 = vrot.lane.b32.xlu0 %v13327_v4, %s20564_s29 }
 0x974   : > { %v18472_v2 = vpop.f32.mrb[88].mxu1 }
 0x975   : > { %20588 = vst [vmem:[#allocation42_spill] sm:$0xff] %v18472_v2  ;;  %13348 = vrot.lane.b32.xlu1 %v13347_v10, %s20564_s29  ;;  %v18476_v12 = vpop.f32.mrb[89].mxu1  ;;  %v5644_v2 = vld [vmem:[#allocation8 + $0xe0] sm:$0xff] }
 0x976   : > { %13333 = vrot.lane.b32.xlu0 %v13317_v1, %s20566_s27  ;;  %20589 = vst [vmem:[#allocation45_spill] sm:$0xff] %v18476_v12  ;;  %v18478_v47 = vpop.f32.mrb[90].mxu1  ;;  %v5555_v12 = vld [vmem:[#allocation8 + $0x128] sm:$0xff] }
 0x977   : > { %20590 = vst [vmem:[#allocation44_spill] sm:$0xff] %v18478_v47  ;;  %v18480_v55 = vpop.f32.mrb[91].mxu1  ;;  %v5643_v47 = vld [vmem:[#allocation8 + $0xd8] sm:$0xff] }
 0x978   : > { %20591 = vst [vmem:[#allocation48_spill] sm:$0xff] %v18480_v55 }
 0x979   : > { %13368 = vrot.lane.b32.xlu1 %v13367_v28, %s20566_s27 }
 0x97a   : > { %13338 = vrot.lane.b32.xlu0 %v13322_v17, %s20567_s28  ;;  %v18494_v17 = vld [vmem:[#allocation8 + $0x182] sm:$0xff] }
 0x97c   : > { %v18484_v0 = vpop.f32.mrb[92].mxu1 }
 0x97d   : > { %20592 = vst [vmem:[#allocation51_spill] sm:$0xff] %v18484_v0  ;;  %13373 = vrot.lane.b32.xlu1 %v13342_v13, %s20567_s28  ;;  %v18488_v1 = vpop.f32.mrb[93].mxu1  ;;  %v5486_v0 = vld [vmem:[#allocation8 + $0xd9] sm:$0xff] }
 0x97e   : > { %13353 = vrot.lane.b32.xlu0 %v13367_v28, %s20442_s26  ;;  %20593 = vst [vmem:[#allocation50_spill] sm:$0xff] %v18488_v1  ;;  %v18490_v4 = vpop.f32.mrb[94].mxu1  ;;  %v18502_v28 = vpop.permute.xlu0 %13093 }
 0x97f   : > { %20594 = vst [vmem:[#allocation60_spill] sm:$0xff] %v18490_v4  ;;  %v18492_v63 = vpop.f32.mrb[95].mxu1 }
 0x980   : > { %20595 = vst [vmem:[#allocation12_spill] sm:$0xff] %v18492_v63  ;;  %v5487_v63 = vld [vmem:[#allocation8 + $0xe1] sm:$0xff] }
 0x981   : > { %13388 = vrot.lane.b32.xlu1 %v13387_v33, %s20442_s26  ;;  %v13412_v6 = vpack.i.bf16 %v5487_v63, %v5486_v0  ;;  %v13437_v63 = vpack.i.bf16 %v5644_v2, %v5643_v47  ;;  %v20596_v2 = vld [vmem:[#allocation15_spill] sm:$0xff] }
 0x982   : > { %13358 = vrot.lane.b32.xlu0 %v13342_v13, %s20563_s23  ;;  %v18514_v4 = vpop.permute.xlu0 %13103  ;;  %v13397_v13 = vpack.i.bf16 %v5615_v8, %v5614_v51  ;;  %v12466_v47 = vunpack.i.h.bf16 %v20596_v2 }
 0x985   : > { %13393 = vrot.lane.b32.xlu1 %v13392_v45, %s20563_s23 }
 0x986   : > { %13363 = vrot.lane.b32.xlu0 %v13347_v10, %s20565_s22  ;;  %v5519_v10 = vld [vmem:[#allocation8 + $0xe2] sm:$0xff] }
 0x987   : > { %v13417_v51 = vpack.i.bf16 %v5519_v10, %v5518_v18  ;;  %v5586_v18 = vld [vmem:[#allocation8 + $0x121] sm:$0xff]  ;;  %v5587_v10 = vld [vmem:[#allocation8 + $0x129] sm:$0xff] }
 0x989   : > { %13398 = vrot.lane.b32.xlu1 %v13397_v13, %s20565_s22 }
 0x98a   : > { %13378 = vrot.lane.b32.xlu0 %v13392_v45, %s20568_s18 }
 0x98b   : > { %v18518_v22 = vpop.permute.xlu1 %13118 }
 0x98c   : > { %v18520_v57 = vpop.permute.xlu0 %13108 }
 0x98d   : > { %13413 = vrot.lane.b32.xlu1 %v13412_v6, %s20568_s18 }
 0x98e   : > { %13383 = vrot.lane.b32.xlu0 %v13397_v13, %s20564_s29  ;;  %v5554_v13 = vld [vmem:[#allocation8 + $0x120] sm:$0xff] }
 0x98f   : > { %v18524_v1 = vpop.permute.xlu1 %13123 }
 0x990   : > { %v18526_v8 = vpop.permute.xlu0 %13113 }
 0x991   : > { %13418 = vrot.lane.b32.xlu1 %v13417_v51, %s20564_s29 }
 0x992   : > { %13403 = vrot.lane.b32.xlu0 %v13387_v33, %s20566_s27  ;;  %v18538_v33 = vpack.i.bf16 %v5555_v12, %v5554_v13  ;;  %v5618_v12 = vld [vmem:[#allocation8 + $0x122] sm:$0xff]  ;;  %v5619_v13 = vld [vmem:[#allocation8 + $0x12a] sm:$0xff] }
 0x993   : > { %v18530_v55 = vpop.permute.xlu1 %13128 }
 0x994   : > { %v13134_v0 = vpop.permute.xlu0 %13133 }
 0x995   : > { %13438 = vrot.lane.b32.xlu1 %v13437_v63, %s20566_s27  ;;  %v13135_v24 = vunpack.i.l.bf16 %v13134_v0 }
 0x996   : > { %13408 = vrot.lane.b32.xlu0 %v13392_v45, %s20567_s28  ;;  %v12465_v45 = vunpack.i.l.bf16 %v20596_v2  ;;  %v6622_v2 = vsel %vm682_vm3, %v5437_v23, %v12466_v47 }
 0x997   : > { %v18534_v11 = vpop.permute.xlu1 %13143  ;;  %v6654_v20 = vsel %vm711_vm4, %v6622_v2, %v12471_v9 }
 0x998   : > { %v13139_v5 = vpop.permute.xlu0 %13138  ;;  %v6621_v40 = vsel %vm682_vm3, %v5436_v27, %v12465_v45  ;;  %v5491_v45 = vld [vmem:[#allocation8 + $0x111] sm:$0xff] }
 0x999   : > { %13443 = vrot.lane.b32.xlu1 %v13412_v6, %s20567_s28 }
 0x99a   : > { %13423 = vrot.lane.b32.xlu0 %v13437_v63, %s20442_s26  ;;  %v18547_v63 = vpack.i.bf16 %v5587_v10, %v5586_v18  ;;  %v13467_v18 = vpack.i.bf16 %v5619_v13, %v5618_v12  ;;  %v6653_v10 = vsel %vm711_vm4, %v6621_v40, %v12470_v38  ;;  %v13141_v40 = vunpack.i.h.bf16 %v13139_v5 }
 0x99b   : > { %v18540_v37 = vpop.permute.xlu1 %13148  ;;  %v13140_v38 = vunpack.i.l.bf16 %v13139_v5  ;;  %v13146_v5 = vunpack.i.h.bf16 %v18534_v11 }
 0x99c   : > { %v13154_v31 = vpop.permute.xlu0 %13153 }
 0x99d   : > { %13458 = vrot.lane.b32.xlu1 %v18538_v33, %s20442_s26  ;;  %v13156_v54 = vunpack.i.h.bf16 %v13154_v31 }
 0x99e   : > { %13428 = vrot.lane.b32.xlu0 %v13412_v6, %s20563_s23  ;;  %v13155_v6 = vunpack.i.l.bf16 %v13154_v31 }
 0x99f   : > { %v18551_v59 = vpop.permute.xlu1 %13178  ;;  %v6686_v23 = vsel %vm3269_vm14, %v6654_v20, %v13156_v54  ;;  %v13150_v20 = vunpack.i.l.bf16 %v18540_v37 }
 0x9a0   : > { %v13159_v19 = vpop.permute.xlu0 %13158  ;;  %v6685_v27 = vsel %vm3269_vm14, %v6653_v10, %v13155_v6  ;;  %v13151_v10 = vunpack.i.h.bf16 %v18540_v37 }
 0x9a1   : > { %v13161_v3 = vunpack.i.h.bf16 %v13159_v19  ;;  %v13160_v52 = vunpack.i.l.bf16 %v13159_v19  ;;  %13463 = vrot.lane.b32.xlu1 %v18547_v63, %s20563_s23  ;;  %v5490_v19 = vld [vmem:[#allocation8 + $0x109] sm:$0xff] }
 0x9a2   : > { %13433 = vrot.lane.b32.xlu0 %v13417_v51, %s20565_s22  ;;  %v13136_v51 = vunpack.i.h.bf16 %v13134_v0 }
 0x9a3   : > { %v18560_v41 = vpop.permute.xlu1 %13183  ;;  %v6717_v61 = vsel %vm3287_vm0, %v6685_v27, %v13160_v52  ;;  %v6718_v12 = vsel %vm3287_vm0, %v6686_v23, %v13161_v3  ;;  %v13482_v3 = vpack.i.bf16 %v5491_v45, %v5490_v19  ;;  %v6624_v19 = vsel %vm682_vm3, %v18312_v53, %v13146_v5  ;;  %v5558_v53 = vld [vmem:[#allocation8 + $0x150] sm:$0xff] }
 0x9a4   : > { %v13164_v56 = vpop.permute.xlu0 %13163 }
 0x9a5   : > { %v13166_v31 = vunpack.i.h.bf16 %v13164_v56  ;;  %v13165_v47 = vunpack.i.l.bf16 %v13164_v56  ;;  %13468 = vrot.lane.b32.xlu1 %v13467_v18, %s20565_s22 }
 0x9a6   : > { %13448 = vrot.lane.b32.xlu0 %v18547_v63, %s20568_s18 }
 0x9a7   : > { %v6749_v54 = vsel %vm3658_vm9, %v6717_v61, %v13165_v47  ;;  %v6750_v9 = vsel %vm3658_vm9, %v6718_v12, %v13166_v31  ;;  %v18573_v0 = vpop.permute.xlu1 %13188  ;;  %v18591_v31 = vpack.i.bf16 %v18378_v26, %v18375_v14  ;;  %v18597_v47 = vld [vmem:[#allocation8 + $0x108] sm:$0xff]  ;;  %v13121_v12 = vunpack.i.h.bf16 %v18518_v22 }
 0x9a8   : > { %v6781_v56 = vsel %vm3663_vm10, %v6749_v54, %v13135_v24  ;;  %v6782_v13 = vsel %vm3663_vm10, %v6750_v9, %v13136_v51  ;;  %v18575_v52 = vpop.permute.xlu0 %13168  ;;  %v13145_v24 = vunpack.i.l.bf16 %v18534_v11  ;;  %v18599_v11 = vld [vmem:[#allocation8 + $0x110] sm:$0xff]  ;;  %v13126_v9 = vunpack.i.h.bf16 %v18524_v1 }
 0x9a9   : > { %v6813_v2 = vsel %vm3668_vm11, %v6781_v56, %v13140_v38  ;;  %v6814_v6 = vsel %vm3668_vm11, %v6782_v13, %v13141_v40  ;;  %13483 = vrot.lane.b32.xlu1 %v13482_v3, %s20568_s18  ;;  %v13120_v40 = vunpack.i.l.bf16 %v18518_v22  ;;  %v13125_v56 = vunpack.i.l.bf16 %v18524_v1  ;;  %v5590_v1 = vld [vmem:[#allocation8 + $0x151] sm:$0xff] }
 0x9aa   : > { %13453 = vrot.lane.b32.xlu0 %v13467_v18, %s20564_s29  ;;  %v6845_v61 = vpack.c.bf16 %v6814_v6, %v6813_v2  ;;  %v20598_v18 = vpack.c.bf16 %v18299_v60, %v18296_v62  ;;  %v6623_v37 = vsel %vm682_vm3, %v18317_v39, %v13145_v24  ;;  %v6656_v60 = vsel %vm711_vm4, %v6624_v19, %v13151_v10  ;;  %v5559_v39 = vld [vmem:[#allocation8 + $0x158] sm:$0xff] }
 0x9ab   : > { %v18587_v27 = vpop.permute.xlu1 %13203  ;;  %v6655_v62 = vsel %vm711_vm4, %v6623_v37, %v13150_v20  ;;  %v6688_v54 = vsel %vm3269_vm14, %v6656_v60, %v13121_v12  ;;  %v18628_v6 = vpack.i.bf16 %v5559_v39, %v5558_v53  ;;  %v13131_v24 = vunpack.i.h.bf16 %v18530_v55  ;;  %v5591_v20 = vld [vmem:[#allocation8 + $0x159] sm:$0xff]  ;;  %v5697_v53 = vld [vmem:[#allocation8 + $0x62] sm:$0xff]  ;;  %v5698_v39 = vld [vmem:[#allocation8 + $0x6a] sm:$0xff] }
 0x9ac   : > { %8862 = vmatmul.mubr.bf16.vlgmr.msra.gmra.mrb[56].mxu0 %v6845_v61  ;;  %v18585_v23 = vpop.permute.xlu0 %13173  ;;  %v6687_v38 = vsel %vm3269_vm14, %v6655_v62, %v13120_v40  ;;  %v6720_v5 = vsel %vm3287_vm0, %v6688_v54, %v13126_v9  ;;  %v13130_v10 = vunpack.i.l.bf16 %v18530_v55  ;;  %v18643_v55 = vpack.i.bf16 %v5591_v20, %v5590_v1 }
 0x9ad   : > { %11047 = vmatprep.mubr.msk.bf16.mxu0 %vm682_vm3, %v20598_v18  ;;  %13488 = vrot.lane.b32.xlu1 %v18591_v31, %s20564_s29  ;;  %v13110_v54 = vunpack.i.l.bf16 %v18520_v57  ;;  %v6850_v20 = vpack.c.bf16 %v5698_v39, %v5697_v53 }
 0x9ae   : > { %13473 = vrot.lane.b32.xlu0 %v18538_v33, %s20566_s27  ;;  %v13507_v33 = vpack.i.bf16 %v18599_v11, %v18597_v47 }
 0x9af   : > { %v18613_v51 = vpop.permute.xlu1 %13208 }
 0x9b0   : > { %v18611_v45 = vpop.permute.xlu0 %13193 }
 0x9b1   : > { %13508 = vrot.lane.b32.xlu1 %v13507_v33, %s20566_s27 }
 0x9b2   : > { %13478 = vrot.lane.b32.xlu0 %v18547_v63, %s20567_s28  ;;  %v6719_v63 = vsel %vm3287_vm0, %v6687_v38, %v13125_v56  ;;  %v13111_v38 = vunpack.i.h.bf16 %v18520_v57  ;;  %v6625_v57 = vsel %vm682_vm3, %v18272_v42, %v13110_v54  ;;  %v13195_v54 = vunpack.i.l.bf16 %v18611_v45 }
 0x9b3   : > { %v13229_v2 = vpop.permute.xlu1 %13228  ;;  %v6751_v60 = vsel %vm3658_vm9, %v6719_v63, %v13130_v10 }
 0x9b4   : > { %v18626_v13 = vpop.permute.xlu0 %13198  ;;  %v13231_v22 = vunpack.i.h.bf16 %v13229_v2  ;;  %v13230_v61 = vunpack.i.l.bf16 %v13229_v2  ;;  %v13115_v2 = vunpack.i.l.bf16 %v18526_v8 }
 0x9b5   : > { %13513 = vrot.lane.b32.xlu1 %v13482_v3, %s20567_s28 }
 0x9b6   : > { %13493 = vrot.lane.b32.xlu0 %v13507_v33, %s20442_s26  ;;  %v6752_v33 = vsel %vm3658_vm9, %v6720_v5, %v13131_v24  ;;  %v6783_v12 = vsel %vm3663_vm10, %v6751_v60, %v13230_v61  ;;  %v5622_v5 = vld [vmem:[#allocation8 + $0x152] sm:$0xff]  ;;  %v5623_v24 = vld [vmem:[#allocation8 + $0x15a] sm:$0xff] }
 0x9b7   : > { %v13234_v37 = vpop.permute.xlu1 %13233  ;;  %v6784_v40 = vsel %vm3663_vm10, %v6752_v33, %v13231_v22 }
 0x9b8   : > { %v13214_v18 = vpop.permute.xlu0 %13213  ;;  %v13236_v19 = vunpack.i.h.bf16 %v13234_v37  ;;  %v13235_v62 = vunpack.i.l.bf16 %v13234_v37 }
 0x9b9   : > { %13528 = vrot.lane.b32.xlu1 %v18628_v6, %s20442_s26  ;;  %v13216_v10 = vunpack.i.h.bf16 %v13214_v18  ;;  %v13215_v1 = vunpack.i.l.bf16 %v13214_v18  ;;  %v6657_v18 = vsel %vm711_vm4, %v6625_v57, %v13115_v2  ;;  %v13205_v57 = vunpack.i.l.bf16 %v18587_v27 }
 0x9ba   : > { %13498 = vrot.lane.b32.xlu0 %v13482_v3, %s20563_s23  ;;  %v6815_v9 = vsel %vm3668_vm11, %v6783_v12, %v13235_v62  ;;  %v6816_v56 = vsel %vm3668_vm11, %v6784_v40, %v13236_v19  ;;  %v13116_v3 = vunpack.i.h.bf16 %v18526_v8  ;;  %v6626_v8 = vsel %vm682_vm3, %v18276_v50, %v13111_v38  ;;  %v5495_v40 = vld [vmem:[#allocation8 + $0x141] sm:$0xff] }
 0x9bb   : > { %v18651_v61 = vpop.permute.xlu1 %13248  ;;  %v6847_v22 = vpack.c.bf16 %v6816_v56, %v6815_v9  ;;  %v13537_v19 = vpack.i.bf16 %v5623_v24, %v5622_v5  ;;  %v6689_v53 = vsel %vm3269_vm14, %v6657_v18, %v13215_v1  ;;  %v13196_v38 = vunpack.i.h.bf16 %v18611_v45 }
 0x9bc   : > { %v13219_v63 = vpop.permute.xlu0 %13218  ;;  %v6658_v62 = vsel %vm711_vm4, %v6626_v8, %v13116_v3  ;;  %v13200_v5 = vunpack.i.l.bf16 %v18626_v13  ;;  %v18693_v8 = vpack.i.bf16 %v18442_v48, %v18440_v15  ;;  %v13211_v18 = vunpack.i.h.bf16 %v18613_v51 }
 0x9bd   : > { %v13221_v37 = vunpack.i.h.bf16 %v13219_v63  ;;  %v13220_v60 = vunpack.i.l.bf16 %v13219_v63  ;;  %8870 = vmatmul.mubr.bf16.gmra.mrb[60].mxu0 %v6847_v22  ;;  %13533 = vrot.lane.b32.xlu1 %v18643_v55, %s20563_s23  ;;  %v6690_v42 = vsel %vm3269_vm14, %v6658_v62, %v13216_v10  ;;  %v13201_v22 = vunpack.i.h.bf16 %v18626_v13 }
 0x9be   : > { %13503 = vrot.lane.b32.xlu0 %v18591_v31, %s20565_s22  ;;  %11048 = vmatprep.mubr.msk.bf16.mxu0 %vm682_vm3, %v6850_v20  ;;  %v5494_v31 = vld [vmem:[#allocation8 + $0x139] sm:$0xff]  ;;  %v13210_v62 = vunpack.i.l.bf16 %v18613_v51  ;;  %v6627_v51 = vsel %vm682_vm3, %v18364_v30, %v13205_v57  ;;  %v13180_v30 = vunpack.i.l.bf16 %v18551_v59 }
 0x9bf   : > { %v18664_v12 = vpop.permute.xlu1 %13253  ;;  %v6721_v9 = vsel %vm3287_vm0, %v6689_v53, %v13220_v60  ;;  %v6722_v56 = vsel %vm3287_vm0, %v6690_v42, %v13221_v37  ;;  %v13552_v63 = vpack.i.bf16 %v5495_v40, %v5494_v31  ;;  %v13206_v60 = vunpack.i.h.bf16 %v18587_v27  ;;  %v18701_v31 = vld [vmem:[#allocation8 + $0x138] sm:$0xff]  ;;  %v18703_v40 = vld [vmem:[#allocation8 + $0x140] sm:$0xff] }
 0x9c0   : > { %v13224_v33 = vpop.permute.xlu0 %13223  ;;  %v20599_v27 = vpack.c.bf16 %v18331_v7, %v18325_v49  ;;  %v13577_v53 = vpack.i.bf16 %v18703_v40, %v18701_v31 }
 0x9c1   : > { %v13226_v50 = vunpack.i.h.bf16 %v13224_v33  ;;  %v13225_v39 = vunpack.i.l.bf16 %v13224_v33  ;;  %13538 = vrot.lane.b32.xlu1 %v13537_v19, %s20565_s22  ;;  %v6628_v42 = vsel %vm682_vm3, %v18366_v58, %v13206_v60  ;;  %v5595_v60 = vld [vmem:[#allocation8 + $0x189] sm:$0xff] }
 0x9c2   : > { %13518 = vrot.lane.b32.xlu0 %v18643_v55, %s20568_s18  ;;  %v6660_v49 = vsel %vm711_vm4, %v6628_v42, %v13211_v18 }
 0x9c3   : > { %v6753_v3 = vsel %vm3658_vm9, %v6721_v9, %v13225_v39  ;;  %v6754_v2 = vsel %vm3658_vm9, %v6722_v56, %v13226_v50  ;;  %v18679_v24 = vpop.permute.xlu1 %13258  ;;  %v6659_v50 = vsel %vm711_vm4, %v6627_v51, %v13210_v62  ;;  %v13185_v9 = vunpack.i.l.bf16 %v18560_v41 }
 0x9c4   : > { %v18681_v45 = vpop.permute.xlu0 %13238  ;;  %v6785_v10 = vsel %vm3663_vm10, %v6753_v3, %v13195_v54  ;;  %v6786_v1 = vsel %vm3663_vm10, %v6754_v2, %v13196_v38  ;;  %v6691_v58 = vsel %vm3269_vm14, %v6659_v50, %v13180_v30  ;;  %v13186_v54 = vunpack.i.h.bf16 %v18560_v41  ;;  %v5562_v2 = vld [vmem:[#allocation8 + $0x180] sm:$0xff]  ;;  %v5701_v50 = vld [vmem:[#allocation8 + $0x92] sm:$0xff] }
 0x9c5   : > { %v6817_v20 = vsel %vm3668_vm11, %v6785_v10, %v13200_v5  ;;  %v6818_v37 = vsel %vm3668_vm11, %v6786_v1, %v13201_v22  ;;  %13553 = vrot.lane.b32.xlu1 %v13552_v63, %s20568_s18  ;;  %v5563_v22 = vld [vmem:[#allocation8 + $0x188] sm:$0xff]  ;;  %v13191_v1 = vunpack.i.h.bf16 %v18573_v0  ;;  %v13170_v30 = vunpack.i.l.bf16 %v18575_v52 }
 0x9c6   : > { %13523 = vrot.lane.b32.xlu0 %v13537_v19, %s20564_s29  ;;  %v6849_v13 = vpack.c.bf16 %v6818_v37, %v6817_v20  ;;  %v13190_v20 = vunpack.i.l.bf16 %v18573_v0  ;;  %v13587_v41 = vpack.i.bf16 %v5563_v22, %v5562_v2  ;;  %v5594_v37 = vld [vmem:[#allocation8 + $0x181] sm:$0xff] }
 0x9c7   : > { %v18699_v33 = vpop.permute.xlu1 %13273  ;;  %v13592_v0 = vpack.i.bf16 %v5595_v60, %v5594_v37 }
 0x9c8   : > { %v18697_v19 = vpop.permute.xlu0 %13243  ;;  %8878 = vmatmul.mubr.bf16.gmra.mrb[64].mxu0 %v6849_v13 }
 0x9c9   : > { %11049 = vmatprep.mubr.msk.bf16.mxu0 %vm682_vm3, %v20599_v27  ;;  %13558 = vrot.lane.b32.xlu1 %v18693_v8, %s20564_s29 }
 0x9ca   : > { %13543 = vrot.lane.b32.xlu0 %v18628_v6, %s20566_s27  ;;  %v13181_v6 = vunpack.i.h.bf16 %v18551_v59 }
 0x9cb   : > { %v18723_v39 = vpop.permute.xlu1 %13278 }
 0x9cc   : > { %v18721_v7 = vpop.permute.xlu0 %13263  ;;  %v6692_v38 = vsel %vm3269_vm14, %v6660_v49, %v13181_v6  ;;  %v5702_v49 = vld [vmem:[#allocation8 + $0x9a] sm:$0xff]  ;;  %v13171_v6 = vunpack.i.h.bf16 %v18575_v52  ;;  %v6629_v52 = vsel %vm682_vm3, %v18322_v44, %v13170_v30  ;;  %v18780_v30 = vld [vmem:[#allocation8 + $0x168] sm:$0xff] }
 0x9cd   : > { %13578 = vrot.lane.b32.xlu1 %v13577_v53, %s20566_s27  ;;  %v6724_v10 = vsel %vm3287_vm0, %v6692_v38, %v13186_v54  ;;  %v13176_v54 = vunpack.i.h.bf16 %v18585_v23 }
 0x9ce   : > { %13548 = vrot.lane.b32.xlu0 %v18643_v55, %s20567_s28  ;;  %v6723_v55 = vsel %vm3287_vm0, %v6691_v58, %v13185_v9  ;;  %v6756_v51 = vsel %vm3658_vm9, %v6724_v10, %v13191_v1  ;;  %v6630_v1 = vsel %vm682_vm3, %v18328_v25, %v13171_v6 }
 0x9cf   : > { %v13299_v3 = vpop.permute.xlu1 %13298  ;;  %v6755_v27 = vsel %vm3658_vm9, %v6723_v55, %v13190_v20  ;;  %v6662_v37 = vsel %vm711_vm4, %v6630_v1, %v13176_v54  ;;  %v13617_v1 = vpack.i.bf16 %v18500_v16, %v18498_v34 }
 0x9d0   : > { %v18734_v56 = vpop.permute.xlu0 %13268  ;;  %v13301_v5 = vunpack.i.h.bf16 %v13299_v3  ;;  %v13300_v59 = vunpack.i.l.bf16 %v13299_v3 }
 0x9d1   : > { %13583 = vrot.lane.b32.xlu1 %v13552_v63, %s20567_s28 }
 0x9d2   : > { %13563 = vrot.lane.b32.xlu0 %v13577_v53, %s20442_s26  ;;  %v6787_v42 = vsel %vm3663_vm10, %v6755_v27, %v13300_v59  ;;  %v6788_v53 = vsel %vm3663_vm10, %v6756_v51, %v13301_v5  ;;  %v6854_v59 = vpack.c.bf16 %v5702_v49, %v5701_v50  ;;  %v13266_v27 = vunpack.i.h.bf16 %v18721_v7 }
 0x9d3   : > { %v13304_v13 = vpop.permute.xlu1 %13303  ;;  %v13265_v51 = vunpack.i.l.bf16 %v18721_v7  ;;  %v13270_v7 = vunpack.i.l.bf16 %v18734_v56 }
 0x9d4   : > { %v13284_v57 = vpop.permute.xlu0 %13283  ;;  %v13306_v18 = vunpack.i.h.bf16 %v13304_v13  ;;  %v13305_v62 = vunpack.i.l.bf16 %v13304_v13  ;;  %v5499_v13 = vld [vmem:[#allocation8 + $0x171] sm:$0xff] }
 0x9d5   : > { %13588 = vrot.lane.b32.xlu1 %v13587_v41, %s20442_s26  ;;  %v13286_v22 = vunpack.i.h.bf16 %v13284_v57  ;;  %v13285_v5 = vunpack.i.l.bf16 %v13284_v57 }
 0x9d6   : > { %13568 = vrot.lane.b32.xlu0 %v13552_v63, %s20563_s23  ;;  %v6819_v58 = vsel %vm3668_vm11, %v6787_v42, %v13305_v62  ;;  %v6820_v38 = vsel %vm3668_vm11, %v6788_v53, %v13306_v18  ;;  %v13175_v63 = vunpack.i.l.bf16 %v18585_v23  ;;  %v13597_v23 = vpack.i.bf16 %v18496_v29, %v18494_v17 }
 0x9d7   : > { %v18754_v3 = vpop.permute.xlu1 %13318  ;;  %v6851_v2 = vpack.c.bf16 %v6820_v38, %v6819_v58  ;;  %v6694_v44 = vsel %vm3269_vm14, %v6662_v37, %v13286_v22  ;;  %v18782_v58 = vld [vmem:[#allocation8 + $0x170] sm:$0xff]  ;;  %v13271_v38 = vunpack.i.h.bf16 %v18734_v56  ;;  %v13276_v56 = vunpack.i.h.bf16 %v18699_v33 }
 0x9d8   : > { %v13289_v9 = vpop.permute.xlu0 %13288  ;;  %v6661_v20 = vsel %vm711_vm4, %v6629_v52, %v13175_v63  ;;  %v5704_v22 = vld [vmem:[#allocation8 + $0xb2] sm:$0xff] }
 0x9d9   : > { %v13291_v55 = vunpack.i.h.bf16 %v13289_v9  ;;  %v13290_v10 = vunpack.i.l.bf16 %v13289_v9  ;;  %8886 = vmatmul.mubr.bf16.gmra.mrb[68].mxu0 %v6851_v2  ;;  %13593 = vrot.lane.b32.xlu1 %v13592_v0, %s20563_s23  ;;  %v6693_v25 = vsel %vm3269_vm14, %v6661_v20, %v13285_v5  ;;  %v5703_v2 = vld [vmem:[#allocation8 + $0xaa] sm:$0xff] }
 0x9da   : > { %13573 = vrot.lane.b32.xlu0 %v18693_v8, %s20565_s22  ;;  %11050 = vmatprep.mubr.msk.bf16.mxu0 %vm682_vm3, %v6854_v59  ;;  %v5498_v8 = vld [vmem:[#allocation8 + $0x169] sm:$0xff] }
 0x9db   : > { %v18768_v57 = vpop.permute.xlu1 %13323  ;;  %v6725_v42 = vsel %vm3287_vm0, %v6693_v25, %v13290_v10  ;;  %v6726_v53 = vsel %vm3287_vm0, %v6694_v44, %v13291_v55  ;;  %v13612_v6 = vpack.i.bf16 %v5499_v13, %v5498_v8  ;;  %v13622_v55 = vpack.i.bf16 %v18782_v58, %v18780_v30 }
 0x9dc   : > { %v13294_v60 = vpop.permute.xlu0 %13293  ;;  %v13275_v10 = vunpack.i.l.bf16 %v18699_v33  ;;  %v6632_v8 = vsel %vm682_vm3, %v18424_v36, %v13276_v56 }
 0x9dd   : > { %v13296_v18 = vunpack.i.h.bf16 %v13294_v60  ;;  %v13295_v62 = vunpack.i.l.bf16 %v13294_v60  ;;  %13598 = vrot.lane.b32.xlu1 %v13597_v23, %s20565_s22  ;;  %v13281_v23 = vunpack.i.h.bf16 %v18723_v39  ;;  %v6856_v60 = vpack.c.bf16 %v5704_v22, %v5703_v2 }
 0x9de   : > { %13603 = vrot.lane.b32.xlu0 %v13587_v41, %s20566_s27  ;;  %v6631_v33 = vsel %vm682_vm3, %v18422_v46, %v13275_v10  ;;  %v13261_v22 = vunpack.i.h.bf16 %v18679_v24 }
 0x9df   : > { %v6757_v50 = vsel %vm3658_vm9, %v6725_v42, %v13295_v62  ;;  %v6758_v49 = vsel %vm3658_vm9, %v6726_v53, %v13296_v18  ;;  %v18786_v54 = vpop.permute.xlu1 %13328  ;;  %v6664_v13 = vsel %vm711_vm4, %v6632_v8, %v13281_v23  ;;  %v13251_v18 = vunpack.i.h.bf16 %v18651_v61 }
 0x9e0   : > { %v18788_v63 = vpop.permute.xlu0 %13308  ;;  %v6789_v41 = vsel %vm3663_vm10, %v6757_v50, %v13265_v51  ;;  %v6790_v9 = vsel %vm3663_vm10, %v6758_v49, %v13266_v27  ;;  %v13250_v62 = vunpack.i.l.bf16 %v18651_v61  ;;  %v13256_v27 = vunpack.i.h.bf16 %v18664_v12  ;;  %v7149_v50 = vld [vmem:[#allocation3 + $0x199] sm:$0xff]  ;;  %v7150_v49 = vld [vmem:[#allocation3 + $0x1a1] sm:$0xff] }
 0x9e1   : > { %v6821_v5 = vsel %vm3668_vm11, %v6789_v41, %v13270_v7  ;;  %v6822_v59 = vsel %vm3668_vm11, %v6790_v9, %v13271_v38  ;;  %13613 = vrot.lane.b32.xlu1 %v13612_v6, %s20568_s18  ;;  %v6696_v36 = vsel %vm3269_vm14, %v6664_v13, %v13251_v18  ;;  %v13255_v51 = vunpack.i.l.bf16 %v18664_v12  ;;  %v7179_v38 = vld [vmem:[#allocation3 + $0x182] sm:$0xff]  ;;  %v7180_v7 = vld [vmem:[#allocation3 + $0x18a] sm:$0xff] }
 0x9e2   : > { %13608 = vrot.lane.b32.xlu0 %v13592_v0, %s20567_s28  ;;  %v6853_v52 = vpack.c.bf16 %v6822_v59, %v6821_v5  ;;  %v13280_v0 = vunpack.i.l.bf16 %v18723_v39  ;;  %v6728_v2 = vsel %vm3287_vm0, %v6696_v36, %v13256_v27  ;;  %v13260_v5 = vunpack.i.l.bf16 %v18679_v24  ;;  %v7181_v59 = vld [vmem:[#allocation3 + $0x19a] sm:$0xff] }
 0x9e3   : > { %v18806_v37 = vpop.permute.xlu1 %13343  ;;  %v13647_v12 = vpack.i.bf16 %v7150_v49, %v7149_v50  ;;  %v13241_v13 = vunpack.i.h.bf16 %v18681_v45  ;;  %v13240_v18 = vunpack.i.l.bf16 %v18681_v45  ;;  %v13246_v36 = vunpack.i.h.bf16 %v18697_v19 }
 0x9e4   : > { %v18804_v20 = vpop.permute.xlu0 %13313  ;;  %8894 = vmatmul.mubr.bf16.gmra.mrb[72].mxu0 %v6853_v52  ;;  %v6663_v39 = vsel %vm711_vm4, %v6631_v33, %v13280_v0  ;;  %v13652_v52 = vpack.i.bf16 %v7180_v7, %v7179_v38  ;;  %v13245_v27 = vunpack.i.l.bf16 %v18697_v19 }
 0x9e5   : > { %11051 = vmatprep.mubr.msk.bf16.mxu0 %vm682_vm3, %v6856_v60  ;;  %13618 = vrot.lane.b32.xlu1 %v13617_v1, %s20564_s29  ;;  %v6695_v46 = vsel %vm3269_vm14, %v6663_v39, %v13250_v62  ;;  %v6760_v60 = vsel %vm3658_vm9, %v6728_v2, %v13261_v22  ;;  %v5706_v39 = vld [vmem:[#allocation8 + $0xca] sm:$0xff]  ;;  %v6633_v45 = vsel %vm682_vm3, %v18384_v43, %v13240_v18 }
 0x9e6   : > { %13623 = vrot.lane.b32.xlu0 %v13622_v55, %s20442_s26  ;;  %v6727_v9 = vsel %vm3287_vm0, %v6695_v46, %v13255_v51  ;;  %v6665_v19 = vsel %vm711_vm4, %v6633_v45, %v13245_v27  ;;  %v13320_v45 = vunpack.i.l.bf16 %v18754_v3 }
 0x9e7   : > { %v18819_v25 = vpop.permute.xlu1 %13348 }
 0x9e8   : > { %v18817_v44 = vpop.permute.xlu0 %13333  ;;  %v13351_v27 = vunpack.i.h.bf16 %v18819_v25 }
 0x9e9   : > { %13638 = vrot.lane.b32.xlu1 %v13622_v55, %s20566_s27  ;;  %v7182_v55 = vld [vmem:[#allocation3 + $0x1a2] sm:$0xff] }
 0x9ea   : > { %13628 = vrot.lane.b32.xlu0 %v13612_v6, %s20563_s23  ;;  %v13657_v8 = vpack.i.bf16 %v7182_v55, %v7181_v59 }
 0x9eb   : > { %v13369_v53 = vpop.permute.xlu1 %13368 }
 0x9ec   : > { %v18829_v42 = vpop.permute.xlu0 %13338  ;;  %v13371_v61 = vunpack.i.h.bf16 %v13369_v53  ;;  %v13370_v41 = vunpack.i.l.bf16 %v13369_v53 }
 0x9ed   : > { %13643 = vrot.lane.b32.xlu1 %v13612_v6, %s20567_s28  ;;  %v5705_v6 = vld [vmem:[#allocation8 + $0xc2] sm:$0xff] }
 0x9ee   : > { %13633 = vrot.lane.b32.xlu0 %v13617_v1, %s20565_s22  ;;  %v6759_v1 = vsel %vm3658_vm9, %v6727_v9, %v13260_v5  ;;  %v6792_v24 = vsel %vm3663_vm10, %v6760_v60, %v13371_v61  ;;  %v6858_v7 = vpack.c.bf16 %v5706_v39, %v5705_v6  ;;  %v6634_v9 = vsel %vm682_vm3, %v18386_v32, %v13241_v13  ;;  %v5707_v6 = vld [vmem:[#allocation8 + $0xda] sm:$0xff]  ;;  %v5708_v39 = vld [vmem:[#allocation8 + $0xe2] sm:$0xff] }
 0x9ef   : > { %v13374_v10 = vpop.permute.xlu1 %13373  ;;  %v6791_v33 = vsel %vm3663_vm10, %v6759_v1, %v13370_v41  ;;  %v6666_v2 = vsel %vm711_vm4, %v6634_v9, %v13246_v36  ;;  %v13335_v32 = vunpack.i.l.bf16 %v18817_v44  ;;  %v13341_v1 = vunpack.i.h.bf16 %v18829_v42 }
 0x9f0   : > { %v13354_v56 = vpop.permute.xlu0 %13353  ;;  %v13376_v23 = vunpack.i.h.bf16 %v13374_v10  ;;  %v13375_v0 = vunpack.i.l.bf16 %v13374_v10  ;;  %v13340_v60 = vunpack.i.l.bf16 %v18829_v42  ;;  %v13345_v13 = vunpack.i.l.bf16 %v18806_v37 }
 0x9f1   : > { %13648 = vrot.lane.b32.xlu1 %v13647_v12, %s20443_s30  ;;  %v13356_v49 = vunpack.i.h.bf16 %v13354_v56  ;;  %v13355_v38 = vunpack.i.l.bf16 %v13354_v56  ;;  %v13336_v56 = vunpack.i.h.bf16 %v18817_v44  ;;  %v13350_v42 = vunpack.i.l.bf16 %v18819_v25 }
 0x9f2   : > { %13653 = vrot.lane.b32.xlu0 %v13652_v52, %s20563_s23  ;;  %v6823_v62 = vsel %vm3668_vm11, %v6791_v33, %v13375_v0  ;;  %v6824_v46 = vsel %vm3668_vm11, %v6792_v24, %v13376_v23 }
 0x9f3   : > { %v18849_v53 = vpop.permute.xlu1 %13388  ;;  %v6855_v50 = vpack.c.bf16 %v6824_v46, %v6823_v62  ;;  %v6698_v12 = vsel %vm3269_vm14, %v6666_v2, %v13356_v49  ;;  %v6697_v59 = vsel %vm3269_vm14, %v6665_v19, %v13355_v38  ;;  %v13346_v46 = vunpack.i.h.bf16 %v18806_v37  ;;  %v5450_v38 = vld [vmem:[#allocation8 + $0xa8] sm:$0xff] }
 0x9f4   : > { %v13359_v51 = vpop.permute.xlu0 %13358  ;;  %v6860_v49 = vpack.c.bf16 %v5708_v39, %v5707_v6  ;;  %v13321_v2 = vunpack.i.h.bf16 %v18754_v3  ;;  %v13331_v39 = vunpack.i.h.bf16 %v18786_v54 }
 0x9f5   : > { %v13361_v61 = vunpack.i.h.bf16 %v13359_v51  ;;  %v13360_v41 = vunpack.i.l.bf16 %v13359_v51  ;;  %8902 = vmatmul.mubr.bf16.gmra.mrb[76].mxu0 %v6855_v50  ;;  %13658 = vrot.lane.b32.xlu1 %v13657_v8, %s20563_s23 }
 0x9f6   : > { %11052 = vmatprep.mubr.msk.bf16.mxu0 %vm682_vm3, %v6858_v7  ;;  %v5451_v7 = vld [vmem:[#allocation8 + $0xb0] sm:$0xff] }
 0x9f7   : > { %v18859_v5 = vpop.permute.xlu1 %13393  ;;  %v6729_v10 = vsel %vm3287_vm0, %v6697_v59, %v13360_v41  ;;  %v6730_v52 = vsel %vm3287_vm0, %v6698_v12, %v13361_v61  ;;  %v6635_v61 = vsel %vm682_vm3, %v5450_v38, %v13345_v13  ;;  %v6636_v41 = vsel %vm682_vm3, %v5451_v7, %v13346_v46 }
 0x9f8   : > { %v13364_v22 = vpop.permute.xlu0 %13363  ;;  %v6667_v37 = vsel %vm711_vm4, %v6635_v61, %v13350_v42  ;;  %v6668_v25 = vsel %vm711_vm4, %v6636_v41, %v13351_v27  ;;  %v13325_v12 = vunpack.i.l.bf16 %v18768_v57  ;;  %v5709_v61 = vld [vmem:[#allocation8 + $0xf2] sm:$0xff]  ;;  %v5710_v41 = vld [vmem:[#allocation8 + $0xfa] sm:$0xff] }
 0x9f9   : > { %v13366_v55 = vunpack.i.h.bf16 %v13364_v22  ;;  %v13365_v43 = vunpack.i.l.bf16 %v13364_v22  ;;  %v6699_v22 = vsel %vm3269_vm14, %v6667_v37, %v13320_v45  ;;  %v6700_v59 = vsel %vm3269_vm14, %v6668_v25, %v13321_v2 }
 0x9fa   : > { %v13310_v37 = vunpack.i.l.bf16 %v18788_v63  ;;  %v13316_v2 = vunpack.i.h.bf16 %v18804_v20 }
 0x9fb   : > { %v6761_v23 = vsel %vm3658_vm9, %v6729_v10, %v13365_v43  ;;  %v6762_v0 = vsel %vm3658_vm9, %v6730_v52, %v13366_v55  ;;  %v18871_v33 = vpop.permute.xlu1 %13398  ;;  %v13326_v55 = vunpack.i.h.bf16 %v18768_v57  ;;  %v9127_v10 = vld [vmem:[#allocation9 + $0x9] sm:$0xff]  ;;  %v13330_v57 = vunpack.i.l.bf16 %v18786_v54 }
 0x9fc   : > { %v18873_v24 = vpop.permute.xlu0 %13378  ;;  %v6793_v8 = vsel %vm3663_vm10, %v6761_v23, %v13335_v32  ;;  %v6794_v44 = vsel %vm3663_vm10, %v6762_v0, %v13336_v56  ;;  %v9126_v32 = vld [vmem:[#allocation9 + $0x1] sm:$0xff]  ;;  %v6731_v23 = vsel %vm3287_vm0, %v6699_v22, %v13325_v12  ;;  %v9159_v0 = vld [vmem:[#allocation9 + $0xa] sm:$0xff]  ;;  %v13311_v54 = vunpack.i.h.bf16 %v18788_v63 }
 0x9fd   : > { %v6825_v18 = vsel %vm3668_vm11, %v6793_v8, %v13340_v60  ;;  %v6826_v62 = vsel %vm3668_vm11, %v6794_v44, %v13341_v1  ;;  %v9158_v52 = vld [vmem:[#allocation9 + $0x2] sm:$0xff]  ;;  %v9317_v1 = vld [vmem:[#allocation9 + $0x198] sm:$0xff]  ;;  %v6732_v44 = vsel %vm3287_vm0, %v6700_v59, %v13326_v55  ;;  %v13662_v6 = vpack.i.bf16 %v9127_v10, %v9126_v32 }
 0x9fe   : > { %v6857_v36 = vpack.c.bf16 %v6826_v62, %v6825_v18  ;;  %v9318_v60 = vld [vmem:[#allocation9 + $0x1a0] sm:$0xff]  ;;  %v13667_v62 = vpack.i.bf16 %v9159_v0, %v9158_v52  ;;  %v6763_v27 = vsel %vm3658_vm9, %v6731_v23, %v13330_v57  ;;  %v13315_v22 = vunpack.i.l.bf16 %v18804_v20  ;;  %v5452_v52 = vld [vmem:[#allocation8 + $0xc0] sm:$0xff]  ;;  %v5453_v23 = vld [vmem:[#allocation8 + $0xc8] sm:$0xff] }
 0x9ff   : > { %v18885_v50 = vpop.permute.xlu1 %13413  ;;  %13663 = vrot.lane.b32.xlu0 %v13662_v6, %s20409_s20  ;;  %v13672_v46 = vpack.i.bf16 %v9318_v60, %v9317_v1  ;;  %v6862_v10 = vpack.c.bf16 %v5710_v41, %v5709_v61  ;;  %v6637_v1 = vsel %vm682_vm3, %v5452_v52, %v13310_v37  ;;  %v6638_v60 = vsel %vm682_vm3, %v5453_v23, %v13311_v54 }
 0xa00   : > { %v18883_v51 = vpop.permute.xlu0 %13383  ;;  %8910 = vmatmul.mubr.bf16.gmra.mrb[80].mxu0 %v6857_v36  ;;  %v6669_v20 = vsel %vm711_vm4, %v6637_v1, %v13315_v22  ;;  %v13391_v1 = vunpack.i.h.bf16 %v18849_v53 }
 0xa01   : > { %11053 = vmatprep.mubr.msk.bf16.mxu0 %vm682_vm3, %v6860_v49  ;;  %v6764_v49 = vsel %vm3658_vm9, %v6732_v44, %v13331_v39  ;;  %13673 = vrot.lane.b32.xlu1 %v13672_v46, %s20442_s26 }
 0xa03   : > { %v18895_v19 = vpop.permute.xlu1 %13418  ;;  %13668 = vrot.lane.b32.xlu0 %v13667_v62, %s20568_s18 }
 0xa04   : > { %v18893_v9 = vpop.permute.xlu0 %13403  ;;  %v13421_v22 = vunpack.i.h.bf16 %v18895_v19 }
 0xa05   : > { %v13405_v62 = vunpack.i.l.bf16 %v18893_v9 }
 0xa07   : > { %v13439_v56 = vpop.permute.xlu1 %13438 }
 0xa08   : > { %v18902_v43 = vpop.permute.xlu0 %13408  ;;  %v13441_v3 = vunpack.i.h.bf16 %v13439_v56  ;;  %v13440_v8 = vunpack.i.l.bf16 %v13439_v56 }
 0xa0a   : > { %v6795_v38 = vsel %vm3663_vm10, %v6763_v27, %v13440_v8  ;;  %v6796_v7 = vsel %vm3663_vm10, %v6764_v49, %v13441_v3  ;;  %v6670_v3 = vsel %vm711_vm4, %v6638_v60, %v13316_v2  ;;  %v13411_v49 = vunpack.i.h.bf16 %v18902_v43 }
 0xa0b   : > { %v13444_v18 = vpop.permute.xlu1 %13443  ;;  %v13390_v60 = vunpack.i.l.bf16 %v18849_v53  ;;  %v13400_v53 = vunpack.i.l.bf16 %v18871_v33 }
 0xa0c   : > { %v13424_v13 = vpop.permute.xlu0 %13423  ;;  %v13446_v42 = vunpack.i.h.bf16 %v13444_v18  ;;  %v13445_v36 = vunpack.i.l.bf16 %v13444_v18  ;;  %v13406_v18 = vunpack.i.h.bf16 %v18893_v9 }
 0xa0d   : > { %v13426_v56 = vunpack.i.h.bf16 %v13424_v13  ;;  %v13425_v32 = vunpack.i.l.bf16 %v13424_v13 }
 0xa0e   : > { %v6827_v45 = vsel %vm3668_vm11, %v6795_v38, %v13445_v36  ;;  %v6828_v25 = vsel %vm3668_vm11, %v6796_v7, %v13446_v42  ;;  %v13410_v38 = vunpack.i.l.bf16 %v18902_v43  ;;  %v13420_v43 = vunpack.i.l.bf16 %v18895_v19 }
 0xa0f   : > { %v18920_v59 = vpop.permute.xlu1 %13458  ;;  %v6859_v55 = vpack.c.bf16 %v6828_v25, %v6827_v45  ;;  %v6702_v6 = vsel %vm3269_vm14, %v6670_v3, %v13426_v56  ;;  %v6701_v39 = vsel %vm3269_vm14, %v6669_v20, %v13425_v32  ;;  %v13416_v45 = vunpack.i.h.bf16 %v18885_v50  ;;  %v5454_v56 = vld [vmem:[#allocation8 + $0xd8] sm:$0xff]  ;;  %v5455_v32 = vld [vmem:[#allocation8 + $0xe0] sm:$0xff] }
 0xa10   : > { %v13429_v12 = vpop.permute.xlu0 %13428  ;;  %v13415_v25 = vunpack.i.l.bf16 %v18885_v50  ;;  %v13396_v20 = vunpack.i.h.bf16 %v18859_v5  ;;  %v13395_v3 = vunpack.i.l.bf16 %v18859_v5 }
 0xa11   : > { %v13431_v63 = vunpack.i.h.bf16 %v13429_v12  ;;  %v13430_v0 = vunpack.i.l.bf16 %v13429_v12  ;;  %8918 = vmatmul.mubr.bf16.gmra.mrb[84].mxu0 %v6859_v55  ;;  %v6640_v50 = vsel %vm682_vm3, %v5455_v32, %v13416_v45  ;;  %v13380_v45 = vunpack.i.l.bf16 %v18873_v24 }
 0xa12   : > { %11054 = vmatprep.mubr.msk.bf16.mxu0 %vm682_vm3, %v6862_v10  ;;  %v20600_v10 = vpack.c.bf16 %v18378_v26, %v18375_v14  ;;  %v6639_v52 = vsel %vm682_vm3, %v5454_v56, %v13415_v25  ;;  %v6672_v19 = vsel %vm711_vm4, %v6640_v50, %v13421_v22  ;;  %v13385_v22 = vunpack.i.l.bf16 %v18883_v51 }
 0xa13   : > { %v18928_v44 = vpop.permute.xlu1 %13463  ;;  %v6733_v46 = vsel %vm3287_vm0, %v6701_v39, %v13430_v0  ;;  %v6734_v42 = vsel %vm3287_vm0, %v6702_v6, %v13431_v63  ;;  %v6671_v23 = vsel %vm711_vm4, %v6639_v52, %v13420_v43  ;;  %v6704_v26 = vsel %vm3269_vm14, %v6672_v19, %v13391_v1  ;;  %v5457_v19 = vld [vmem:[#allocation8 + $0xf8] sm:$0xff] }
 0xa14   : > { %v13434_v8 = vpop.permute.xlu0 %13433  ;;  %v6703_v14 = vsel %vm3269_vm14, %v6671_v23, %v13390_v60  ;;  %v5456_v23 = vld [vmem:[#allocation8 + $0xf0] sm:$0xff] }
 0xa15   : > { %v13436_v57 = vunpack.i.h.bf16 %v13434_v8  ;;  %v13435_v13 = vunpack.i.l.bf16 %v13434_v8 }
 0xa17   : > { %v6765_v36 = vsel %vm3658_vm9, %v6733_v46, %v13435_v13  ;;  %v6766_v27 = vsel %vm3658_vm9, %v6734_v42, %v13436_v57  ;;  %v18940_v7 = vpop.permute.xlu1 %13468  ;;  %v6735_v13 = vsel %vm3287_vm0, %v6703_v14, %v13395_v3 }
 0xa18   : > { %v18942_v61 = vpop.permute.xlu0 %13448  ;;  %v6797_v41 = vsel %vm3663_vm10, %v6765_v36, %v13405_v62  ;;  %v6798_v9 = vsel %vm3663_vm10, %v6766_v27, %v13406_v18  ;;  %v6736_v18 = vsel %vm3287_vm0, %v6704_v26, %v13396_v20  ;;  %v13401_v62 = vunpack.i.h.bf16 %v18871_v33 }
 0xa19   : > { %v6829_v54 = vsel %vm3668_vm11, %v6797_v41, %v13410_v38  ;;  %v6830_v37 = vsel %vm3668_vm11, %v6798_v9, %v13411_v49  ;;  %v6767_v49 = vsel %vm3658_vm9, %v6735_v13, %v13400_v53  ;;  %v5713_v9 = vld [vmem:[#allocation8 + $0x122] sm:$0xff] }
 0xa1a   : > { %v6861_v2 = vpack.c.bf16 %v6830_v37, %v6829_v54  ;;  %v6768_v5 = vsel %vm3658_vm9, %v6736_v18, %v13401_v62  ;;  %v5714_v54 = vld [vmem:[#allocation8 + $0x12a] sm:$0xff]  ;;  %v13381_v37 = vunpack.i.h.bf16 %v18873_v24  ;;  %v6641_v24 = vsel %vm682_vm3, %v5456_v23, %v13380_v45 }
 0xa1b   : > { %v18954_v55 = vpop.permute.xlu1 %13483  ;;  %v6866_v50 = vpack.c.bf16 %v5714_v54, %v5713_v9 }
 0xa1c   : > { %v18952_v12 = vpop.permute.xlu0 %13453  ;;  %8926 = vmatmul.mubr.bf16.gmra.mrb[88].mxu0 %v6861_v2  ;;  %v13386_v2 = vunpack.i.h.bf16 %v18883_v51  ;;  %v6642_v14 = vsel %vm682_vm3, %v5457_v19, %v13381_v37  ;;  %v6673_v51 = vsel %vm711_vm4, %v6641_v24, %v13385_v22  ;;  %v13486_v45 = vunpack.i.h.bf16 %v18954_v55  ;;  %v20604_v19 = vld [vmem:[#allocation20_spill] sm:$0xff] }
 0xa1d   : > { %11055 = vmatprep.mubr.msk.bf16.mxu0 %vm682_vm3, %v20600_v10 }
 0xa1e   : > { %v6674_v26 = vsel %vm711_vm4, %v6642_v14, %v13386_v2 }
 0xa1f   : > { %v18966_v0 = vpop.permute.xlu1 %13488 }
 0xa20   : > { %v18964_v63 = vpop.permute.xlu0 %13473  ;;  %v13490_v2 = vunpack.i.l.bf16 %v18966_v0 }
 0xa21   : > { %v13476_v18 = vunpack.i.h.bf16 %v18964_v63  ;;  %v13475_v62 = vunpack.i.l.bf16 %v18964_v63 }
 0xa23   : > { %v13509_v6 = vpop.permute.xlu1 %13508 }
 0xa24   : > { %v13479_v8 = vpop.permute.xlu0 %13478  ;;  %v13511_v39 = vunpack.i.h.bf16 %v13509_v6  ;;  %v13510_v57 = vunpack.i.l.bf16 %v13509_v6 }
 0xa26   : > { %v6799_v38 = vsel %vm3663_vm10, %v6767_v49, %v13510_v57  ;;  %v6800_v41 = vsel %vm3663_vm10, %v6768_v5, %v13511_v39 }
 0xa27   : > { %v13514_v42 = vpop.permute.xlu1 %13513 }
 0xa28   : > { %v13494_v46 = vpop.permute.xlu0 %13493  ;;  %v13516_v36 = vunpack.i.h.bf16 %v13514_v42  ;;  %v13515_v27 = vunpack.i.l.bf16 %v13514_v42  ;;  %v13481_v42 = vunpack.i.h.bf16 %v13479_v8 }
 0xa29   : > { %v13496_v10 = vunpack.i.h.bf16 %v13494_v46  ;;  %v13495_v52 = vunpack.i.l.bf16 %v13494_v46 }
 0xa2a   : > { %v6831_v33 = vsel %vm3668_vm11, %v6799_v38, %v13515_v27  ;;  %v6832_v25 = vsel %vm3668_vm11, %v6800_v41, %v13516_v36  ;;  %v13480_v36 = vunpack.i.l.bf16 %v13479_v8  ;;  %v13485_v8 = vunpack.i.l.bf16 %v18954_v55 }
 0xa2b   : > { %v18988_v56 = vpop.permute.xlu1 %13528  ;;  %v6863_v32 = vpack.c.bf16 %v6832_v25, %v6831_v33  ;;  %v6706_v3 = vsel %vm3269_vm14, %v6674_v26, %v13496_v10  ;;  %v6705_v6 = vsel %vm3269_vm14, %v6673_v51, %v13495_v52  ;;  %v13491_v25 = vunpack.i.h.bf16 %v18966_v0 }
 0xa2c   : > { %v13499_v43 = vpop.permute.xlu0 %13498  ;;  %v6643_v0 = vsel %vm682_vm3, %v18597_v47, %v13485_v8  ;;  %v13461_v47 = vunpack.i.h.bf16 %v18920_v59  ;;  %v13466_v8 = vunpack.i.h.bf16 %v18928_v44 }
 0xa2d   : > { %v13501_v1 = vunpack.i.h.bf16 %v13499_v43  ;;  %v13500_v60 = vunpack.i.l.bf16 %v13499_v43  ;;  %8934 = vmatmul.mubr.bf16.gmra.mrb[92].mxu0 %v6863_v32  ;;  %v20601_v43 = vpack.c.bf16 %v18442_v48, %v18440_v15  ;;  %v20602_v32 = vld [vmem:[#allocation18_spill] sm:$0xff]  ;;  %v12635_v15 = vunpack.i.l.bf16 %v20604_v19  ;;  %v20605_v48 = vld [vmem:[#allocation21_spill] sm:$0xff] }
 0xa2e   : > { %11056 = vmatprep.mubr.msk.bf16.mxu0 %vm682_vm3, %v6866_v50  ;;  %v12556_v10 = vunpack.i.h.bf16 %v20602_v32  ;;  %v12555_v52 = vunpack.i.l.bf16 %v20602_v32  ;;  %v20603_v50 = vld [vmem:[#allocation19_spill] sm:$0xff]  ;;  %v12641_v14 = vunpack.i.h.bf16 %v20605_v48  ;;  %v6675_v51 = vsel %vm711_vm4, %v6643_v0, %v13490_v2 }
 0xa2f   : > { %v18997_v13 = vpop.permute.xlu1 %13533  ;;  %v6737_v53 = vsel %vm3287_vm0, %v6705_v6, %v13500_v60  ;;  %v6738_v46 = vsel %vm3287_vm0, %v6706_v3, %v13501_v1  ;;  %v12561_v55 = vunpack.i.h.bf16 %v20603_v50  ;;  %v12560_v23 = vunpack.i.l.bf16 %v20603_v50  ;;  %v20606_v6 = vld [vmem:[#allocation30_spill] sm:$0xff] }
 0xa30   : > { %v13504_v20 = vpop.permute.xlu0 %13503  ;;  %v12636_v1 = vunpack.i.h.bf16 %v20604_v19  ;;  %v6644_v60 = vsel %vm682_vm3, %v18599_v11, %v13486_v45  ;;  %v12640_v3 = vunpack.i.l.bf16 %v20605_v48  ;;  %v13460_v11 = vunpack.i.l.bf16 %v18920_v59 }
 0xa31   : > { %v13506_v39 = vunpack.i.h.bf16 %v13504_v20  ;;  %v13505_v57 = vunpack.i.l.bf16 %v13504_v20  ;;  %v6676_v26 = vsel %vm711_vm4, %v6644_v60, %v13491_v25  ;;  %v13465_v25 = vunpack.i.l.bf16 %v18928_v44 }
 0xa32   : > { %v6708_v59 = vsel %vm3269_vm14, %v6676_v26, %v13461_v47  ;;  %v13471_v44 = vunpack.i.h.bf16 %v18940_v7  ;;  %v13451_v26 = vunpack.i.h.bf16 %v18942_v61 }
 0xa33   : > { %v6769_v27 = vsel %vm3658_vm9, %v6737_v53, %v13505_v57  ;;  %v6770_v49 = vsel %vm3658_vm9, %v6738_v46, %v13506_v39  ;;  %v19009_v9 = vpop.permute.xlu1 %13538  ;;  %v12715_v39 = vunpack.i.l.bf16 %v20606_v6  ;;  %v14419_v57 = vld [vmem:[#allocation3 + $0x158] sm:$0xff]  ;;  %v14421_v46 = vld [vmem:[#allocation3 + $0x170] sm:$0xff]  ;;  %v6740_v19 = vsel %vm3287_vm0, %v6708_v59, %v13466_v8  ;;  %v5461_v59 = vld [vmem:[#allocation8 + $0x128] sm:$0xff] }
 0xa34   : > { %v19005_v5 = vpop.permute.xlu0 %13518  ;;  %v6801_v38 = vsel %vm3663_vm10, %v6769_v27, %v13475_v62  ;;  %v6802_v41 = vsel %vm3663_vm10, %v6770_v49, %v13476_v18  ;;  %v8236_v18 = vsel %vm606_vm2, %v14419_v57, %v12556_v10  ;;  %v14420_v62 = vld [vmem:[#allocation3 + $0x150] sm:$0xff]  ;;  %v12716_v49 = vunpack.i.h.bf16 %v20606_v6 }
 0xa35   : > { %v6833_v63 = vsel %vm3668_vm11, %v6801_v38, %v13480_v36  ;;  %v6834_v54 = vsel %vm3668_vm11, %v6802_v41, %v13481_v42  ;;  %v8235_v53 = vsel %vm606_vm2, %v14420_v62, %v12555_v52  ;;  %v8238_v42 = vsel %vm606_vm2, %v14421_v46, %v12561_v55  ;;  %v14422_v36 = vld [vmem:[#allocation3 + $0x168] sm:$0xff]  ;;  %v20607_v38 = vld [vmem:[#allocation33_spill] sm:$0xff] }
 0xa36   : > { %v6865_v37 = vpack.c.bf16 %v6834_v54, %v6833_v63  ;;  %v8237_v27 = vsel %vm606_vm2, %v14422_v36, %v12560_v23  ;;  %v12720_v41 = vunpack.i.l.bf16 %v20607_v38  ;;  %v6707_v63 = vsel %vm3269_vm14, %v6675_v51, %v13460_v11  ;;  %v5718_v62 = vld [vmem:[#allocation8 + $0x15a] sm:$0xff] }
 0xa37   : > { %v19019_v22 = vpop.permute.xlu1 %13553  ;;  %v12721_v45 = vunpack.i.h.bf16 %v20607_v38  ;;  %v8269_v32 = vsel %vm682_vm3, %v8237_v27, %v12640_v3  ;;  %v8270_v10 = vsel %vm682_vm3, %v8238_v42, %v12641_v14  ;;  %v6739_v23 = vsel %vm3287_vm0, %v6707_v63, %v13465_v25  ;;  %v20608_v14 = vld [vmem:[#allocation46_spill] sm:$0xff] }
 0xa38   : > { %8942 = vmatmul.mubr.bf16.gmra.mrb[96].mxu0 %v6865_v37  ;;  %v19015_v33 = vpop.permute.xlu0 %13523  ;;  %v8267_v37 = vsel %vm682_vm3, %v8235_v53, %v12635_v15  ;;  %v19068_v60 = vsel %vm2381_vm8, %v8269_v32, %v12720_v41  ;;  %v12796_v51 = vunpack.i.h.bf16 %v20608_v14  ;;  %v13450_v3 = vunpack.i.l.bf16 %v18942_v61  ;;  %v20609_v61 = vld [vmem:[#allocation49_spill] sm:$0xff]  ;;  %v5460_v63 = vld [vmem:[#allocation8 + $0x120] sm:$0xff] }
 0xa39   : > { %11057 = vmatprep.mubr.msk.bf16.mxu0 %vm682_vm3, %v20601_v43  ;;  %v8268_v43 = vsel %vm682_vm3, %v8236_v18, %v12636_v1  ;;  %v8299_v52 = vsel %vm2381_vm8, %v8267_v37, %v12715_v39  ;;  %v13470_v1 = vunpack.i.l.bf16 %v18940_v7  ;;  %v19073_v48 = vsel %vm2381_vm8, %v8270_v10, %v12721_v45  ;;  %v5717_v18 = vld [vmem:[#allocation8 + $0x152] sm:$0xff] }
 0xa3a   : > { %v8300_v0 = vsel %vm2381_vm8, %v8268_v43, %v12716_v49  ;;  %v6772_v57 = vsel %vm3658_vm9, %v6740_v19, %v13471_v44  ;;  %v13456_v7 = vunpack.i.h.bf16 %v18952_v12  ;;  %v13455_v53 = vunpack.i.l.bf16 %v18952_v12 }
 0xa3b   : > { %v19040_v20 = vpop.permute.xlu1 %13558  ;;  %v6771_v11 = vsel %vm3658_vm9, %v6739_v23, %v13470_v1  ;;  %v12795_v36 = vunpack.i.l.bf16 %v20608_v14  ;;  %v12801_v27 = vunpack.i.h.bf16 %v20609_v61  ;;  %v6870_v25 = vpack.c.bf16 %v5718_v62, %v5717_v18 }
 0xa3c   : > { %v19034_v24 = vpop.permute.xlu0 %13543  ;;  %v6646_v43 = vsel %vm682_vm3, %v5461_v59, %v13451_v26  ;;  %v13555_v19 = vunpack.i.l.bf16 %v19019_v22  ;;  %v13560_v18 = vunpack.i.l.bf16 %v19040_v20 }
 0xa3d   : > { %v6678_v23 = vsel %vm711_vm4, %v6646_v43, %v13456_v7  ;;  %v13546_v44 = vunpack.i.h.bf16 %v19034_v24  ;;  %v13545_v1 = vunpack.i.l.bf16 %v19034_v24  ;;  %v13556_v7 = vunpack.i.h.bf16 %v19019_v22 }
 0xa3e   : > { %v19130_v59 = vsel %vm711_vm4, %v19073_v48, %v12801_v27 }
 0xa3f   : > { %v13579_v2 = vpop.permute.xlu1 %13578  ;;  %v6648_v43 = vsel %vm682_vm3, %v18703_v40, %v13556_v7  ;;  %v14424_v7 = vld [vmem:[#allocation8 + $0x158] sm:$0xff] }
 0xa40   : > { %v19054_v54 = vpop.permute.xlu0 %13548  ;;  %v13581_v50 = vunpack.i.h.bf16 %v13579_v2  ;;  %v13580_v55 = vunpack.i.l.bf16 %v13579_v2  ;;  %v6645_v2 = vsel %vm682_vm3, %v5460_v63, %v13450_v3 }
 0xa41   : > { %v13550_v14 = vunpack.i.l.bf16 %v19054_v54 }
 0xa42   : > { %v6803_v46 = vsel %vm3663_vm10, %v6771_v11, %v13580_v55  ;;  %v6804_v42 = vsel %vm3663_vm10, %v6772_v57, %v13581_v50  ;;  %v12800_v50 = vunpack.i.l.bf16 %v20609_v61  ;;  %v6677_v55 = vsel %vm711_vm4, %v6645_v2, %v13455_v53 }
 0xa43   : > { %v13584_v6 = vpop.permute.xlu1 %13583  ;;  %v8331_v57 = vsel %vm711_vm4, %v8299_v52, %v12795_v36  ;;  %v13531_v2 = vunpack.i.h.bf16 %v18988_v56 }
 0xa44   : > { %v13564_v15 = vpop.permute.xlu0 %13563  ;;  %v13586_v39 = vunpack.i.h.bf16 %v13584_v6  ;;  %v13585_v47 = vunpack.i.l.bf16 %v13584_v6 }
 0xa45   : > { %v13566_v37 = vunpack.i.h.bf16 %v13564_v15  ;;  %v13565_v45 = vunpack.i.l.bf16 %v13564_v15  ;;  %v13551_v15 = vunpack.i.h.bf16 %v19054_v54  ;;  %v8332_v54 = vsel %vm711_vm4, %v8300_v0, %v12796_v51 }
 0xa46   : > { %v6835_v38 = vsel %vm3668_vm11, %v6803_v46, %v13585_v47  ;;  %v6836_v41 = vsel %vm3668_vm11, %v6804_v42, %v13586_v39  ;;  %v20610_v42 = vld [vmem:[#allocation58_spill] sm:$0xff]  ;;  %v6647_v0 = vsel %vm682_vm3, %v18701_v31, %v13555_v19  ;;  %v20612_v19 = vpack.c.bf16 %v18500_v16, %v18498_v34 }
 0xa47   : > { %v19088_v8 = vpop.permute.xlu1 %13588  ;;  %v6867_v12 = vpack.c.bf16 %v6836_v41, %v6835_v38  ;;  %v6710_v3 = vsel %vm3269_vm14, %v6678_v23, %v13566_v37  ;;  %v6709_v6 = vsel %vm3269_vm14, %v6677_v55, %v13565_v45  ;;  %v12875_v61 = vunpack.i.l.bf16 %v20610_v42 }
 0xa48   : > { %v13569_v49 = vpop.permute.xlu0 %13568  ;;  %v13530_v41 = vunpack.i.l.bf16 %v18988_v56  ;;  %v6679_v37 = vsel %vm711_vm4, %v6647_v0, %v13560_v18  ;;  %v13096_v55 = vunpack.i.h.bf16 %v18502_v28  ;;  %v13106_v56 = vunpack.i.h.bf16 %v18514_v4 }
 0xa49   : > { %v13571_v32 = vunpack.i.h.bf16 %v13569_v49  ;;  %v13570_v10 = vunpack.i.l.bf16 %v13569_v49  ;;  %8950 = vmatmul.mubr.bf16.gmra.mrb[100].mxu0 %v6867_v12  ;;  %v13561_v49 = vunpack.i.h.bf16 %v19040_v20  ;;  %v8333_v20 = vsel %vm711_vm4, %v19068_v60, %v12800_v50 }
 0xa4a   : > { %11058 = vmatprep.mubr.msk.bf16.mxu0 %vm682_vm3, %v6870_v25  ;;  %v12876_v12 = vunpack.i.h.bf16 %v20610_v42  ;;  %v20611_v25 = vld [vmem:[#allocation61_spill] sm:$0xff]  ;;  %v13095_v60 = vunpack.i.l.bf16 %v18502_v28  ;;  %v8363_v50 = vsel %vm3260_vm13, %v8331_v57, %v12875_v61  ;;  %v6711_v23 = vsel %vm3269_vm14, %v6679_v37, %v13530_v41 }
 0xa4b   : > { %v19103_v11 = vpop.permute.xlu1 %13593  ;;  %v6741_v24 = vsel %vm3287_vm0, %v6709_v6, %v13570_v10  ;;  %v6742_v62 = vsel %vm3287_vm0, %v6710_v3, %v13571_v32  ;;  %v12881_v31 = vunpack.i.h.bf16 %v20611_v25  ;;  %v12880_v32 = vunpack.i.l.bf16 %v20611_v25 }
 0xa4c   : > { %v13574_v26 = vpop.permute.xlu0 %13573  ;;  %v13535_v10 = vunpack.i.l.bf16 %v18997_v13  ;;  %v6680_v48 = vsel %vm711_vm4, %v6648_v43, %v13561_v49  ;;  %v13540_v28 = vunpack.i.l.bf16 %v19009_v9  ;;  %v13525_v3 = vunpack.i.l.bf16 %v19015_v33 }
 0xa4d   : > { %v13576_v39 = vunpack.i.h.bf16 %v13574_v26  ;;  %v13575_v47 = vunpack.i.l.bf16 %v13574_v26  ;;  %v13526_v26 = vunpack.i.h.bf16 %v19015_v33  ;;  %v6712_v6 = vsel %vm3269_vm14, %v6680_v48, %v13531_v2 }
 0xa4e   : > { %v8364_v34 = vsel %vm3260_vm13, %v8332_v54, %v12876_v12  ;;  %v19162_v16 = vsel %vm3260_vm13, %v8333_v20, %v12880_v32  ;;  %v13100_v57 = vunpack.i.l.bf16 %v18512_v35  ;;  %v13541_v33 = vunpack.i.h.bf16 %v19009_v9 }
 0xa4f   : > { %v6773_v53 = vsel %vm3658_vm9, %v6741_v24, %v13575_v47  ;;  %v6774_v46 = vsel %vm3658_vm9, %v6742_v62, %v13576_v39  ;;  %v19122_v22 = vpop.permute.xlu1 %13598  ;;  %v6743_v39 = vsel %vm3287_vm0, %v6711_v23, %v13535_v10  ;;  %v13101_v47 = vunpack.i.h.bf16 %v18512_v35  ;;  %v14423_v62 = vld [vmem:[#allocation8 + $0x150] sm:$0xff] }
 0xa50   : > { %v19115_v38 = vpop.permute.xlu0 %13603  ;;  %v6805_v52 = vsel %vm3663_vm10, %v6773_v53, %v13545_v1  ;;  %v6806_v36 = vsel %vm3663_vm10, %v6774_v46, %v13546_v44  ;;  %v13105_v44 = vunpack.i.l.bf16 %v18514_v4  ;;  %v13536_v1 = vunpack.i.h.bf16 %v18997_v13 }
 0xa51   : > { %v6837_v51 = vsel %vm3668_vm11, %v6805_v52, %v13550_v14  ;;  %v6838_v63 = vsel %vm3668_vm11, %v6806_v36, %v13551_v15  ;;  %v13521_v15 = vunpack.i.h.bf16 %v19005_v5  ;;  %v13520_v14 = vunpack.i.l.bf16 %v19005_v5 }
 0xa52   : > { %v6869_v45 = vpack.c.bf16 %v6838_v63, %v6837_v51  ;;  %v8395_v4 = vsel %vm3269_vm14, %v8363_v50, %v13095_v60  ;;  %v8396_v5 = vsel %vm3269_vm14, %v8364_v34, %v13096_v55  ;;  %v6744_v46 = vsel %vm3287_vm0, %v6712_v6, %v13536_v1 }
 0xa53   : > { %v13614_v40 = vpop.permute.xlu1 %13613  ;;  %v8427_v24 = vsel %vm3278_vm15, %v8395_v4, %v13105_v44  ;;  %v6649_v54 = vsel %vm682_vm3, %v14423_v62, %v13520_v14  ;;  %v6650_v53 = vsel %vm682_vm3, %v14424_v7, %v13521_v15  ;;  %v8428_v42 = vsel %vm3278_vm15, %v8396_v5, %v13106_v56 }
 0xa54   : > { %8958 = vmatmul.mubr.bf16.gmra.mrb[104].mxu0 %v6869_v45  ;;  %v19142_v27 = vpop.permute.xlu0 %13608  ;;  %v6681_v61 = vsel %vm711_vm4, %v6649_v54, %v13525_v3  ;;  %v6682_v49 = vsel %vm711_vm4, %v6650_v53, %v13526_v26  ;;  %v6775_v52 = vsel %vm3658_vm9, %v6743_v39, %v13540_v28  ;;  %v13616_v9 = vunpack.i.h.bf16 %v13614_v40 }
 0xa55   : > { %11059 = vmatprep.mubr.msk.bf16.mxu0 %vm682_vm3, %v20612_v19  ;;  %v13615_v36 = vunpack.i.l.bf16 %v13614_v40  ;;  %v13591_v63 = vunpack.i.h.bf16 %v19088_v8  ;;  %v6776_v12 = vsel %vm3658_vm9, %v6744_v46, %v13541_v33  ;;  %v13590_v2 = vunpack.i.l.bf16 %v19088_v8 }
 0xa56   : > { %v13596_v43 = vunpack.i.h.bf16 %v19103_v11  ;;  %v13606_v10 = vunpack.i.h.bf16 %v19115_v38  ;;  %v13605_v48 = vunpack.i.l.bf16 %v19115_v38  ;;  %v6652_v23 = vsel %vm682_vm3, %v18782_v58, %v13616_v9 }
 0xa57   : > { %v13619_v18 = vpop.permute.xlu1 %13618  ;;  %v6651_v56 = vsel %vm682_vm3, %v18780_v30, %v13615_v36  ;;  %v13611_v39 = vunpack.i.h.bf16 %v19142_v27  ;;  %v13610_v62 = vunpack.i.l.bf16 %v19142_v27  ;;  %v8366_v27 = vsel %vm3260_vm13, %v19130_v59, %v12881_v31 }
 0xa58   : > { %v13624_v13 = vpop.permute.xlu0 %13623  ;;  %v13621_v20 = vunpack.i.h.bf16 %v13619_v18  ;;  %v13620_v37 = vunpack.i.l.bf16 %v13619_v18  ;;  %v8397_v25 = vsel %vm3269_vm14, %v19162_v16, %v13100_v57  ;;  %v8398_v59 = vsel %vm3269_vm14, %v8366_v27, %v13101_v47 }
 0xa59   : > { %v13626_v41 = vunpack.i.h.bf16 %v13624_v13  ;;  %v13625_v0 = vunpack.i.l.bf16 %v13624_v13  ;;  %v13595_v13 = vunpack.i.l.bf16 %v19103_v11 }
 0xa5a   : > { %v6683_v44 = vsel %vm711_vm4, %v6651_v56, %v13620_v37  ;;  %v6684_v1 = vsel %vm711_vm4, %v6652_v23, %v13621_v20  ;;  %v20613_v20 = vpack.c.bf16 %v18496_v29, %v18494_v17  ;;  %v5723_v37 = vld [vmem:[#allocation8 + $0x19a] sm:$0xff] }
 0xa5b   : > { %v13639_v45 = vpop.permute.xlu1 %13638  ;;  %v6714_v40 = vsel %vm3269_vm14, %v6682_v49, %v13626_v41  ;;  %v6713_v8 = vsel %vm3269_vm14, %v6681_v61, %v13625_v0  ;;  %v6715_v61 = vsel %vm3269_vm14, %v6683_v44, %v13590_v2  ;;  %v6716_v49 = vsel %vm3269_vm14, %v6684_v1, %v13591_v63 }
 0xa5c   : > { %v13629_v51 = vpop.permute.xlu0 %13628  ;;  %v13641_v50 = vunpack.i.h.bf16 %v13639_v45  ;;  %v13640_v55 = vunpack.i.l.bf16 %v13639_v45  ;;  %v13600_v63 = vunpack.i.l.bf16 %v19122_v22  ;;  %v6748_v45 = vsel %vm3287_vm0, %v6716_v49, %v13596_v43  ;;  %v20617_v49 = vld [vmem:[#allocation23_spill] sm:$0xff] }
 0xa5d   : > { %v13631_v32 = vunpack.i.h.bf16 %v13629_v51  ;;  %v13630_v60 = vunpack.i.l.bf16 %v13629_v51  ;;  %v13601_v51 = vunpack.i.h.bf16 %v19122_v22  ;;  %v6747_v22 = vsel %vm3287_vm0, %v6715_v61, %v13595_v13 }
 0xa5e   : > { %v6807_v34 = vsel %vm3663_vm10, %v6775_v52, %v13640_v55  ;;  %v6808_v4 = vsel %vm3663_vm10, %v6776_v12, %v13641_v50 }
 0xa5f   : > { %v13644_v38 = vpop.permute.xlu1 %13643  ;;  %v6745_v28 = vsel %vm3287_vm0, %v6713_v8, %v13630_v60  ;;  %v6746_v26 = vsel %vm3287_vm0, %v6714_v40, %v13631_v32  ;;  %v6779_v60 = vsel %vm3658_vm9, %v6747_v22, %v13600_v63  ;;  %v6780_v43 = vsel %vm3658_vm9, %v6748_v45, %v13601_v51  ;;  %v20615_v8 = vld [vmem:[#allocation17_spill] sm:$0xff] }
 0xa60   : > { %v13634_v19 = vpop.permute.xlu0 %13633  ;;  %v13646_v30 = vunpack.i.h.bf16 %v13644_v38  ;;  %v13645_v3 = vunpack.i.l.bf16 %v13644_v38  ;;  %v12480_v44 = vunpack.i.l.bf16 %v20615_v8  ;;  %v20620_v45 = vld [vmem:[#allocation29_spill] sm:$0xff] }
 0xa61   : > { %v13636_v15 = vunpack.i.h.bf16 %v13634_v19  ;;  %v13635_v14 = vunpack.i.l.bf16 %v13634_v19  ;;  %v12481_v19 = vunpack.i.h.bf16 %v20615_v8  ;;  %v20621_v8 = vld [vmem:[#allocation24_spill] sm:$0xff] }
 0xa62   : > { %v6839_v33 = vsel %vm3668_vm11, %v6807_v34, %v13645_v3  ;;  %v6840_v18 = vsel %vm3668_vm11, %v6808_v4, %v13646_v30 }
 0xa63   : > { %v6777_v58 = vsel %vm3658_vm9, %v6745_v28, %v13635_v14  ;;  %v6778_v6 = vsel %vm3658_vm9, %v6746_v26, %v13636_v15  ;;  %v13649_v53 = vpop.permute.xlu1 %13648  ;;  %v6871_v46 = vpack.c.bf16 %v6840_v18, %v6839_v33  ;;  %v19250_v28 = vld [vmem:[%s20286_s14] ss:$0 sm:$0xff] }
 0xa64   : > { %v13654_v5 = vpop.permute.xlu0 %13653  ;;  %v6809_v52 = vsel %vm3663_vm10, %v6777_v58, %v13605_v48  ;;  %v6810_v11 = vsel %vm3663_vm10, %v6778_v6, %v13606_v10  ;;  %v13651_v41 = vunpack.i.h.bf16 %v13649_v53  ;;  %v13650_v0 = vunpack.i.l.bf16 %v13649_v53  ;;  %v20614_v10 = vld [vmem:[#allocation10_spill] sm:$0xff]  ;;  %v20616_v6 = vld [vmem:[#allocation25_spill] sm:$0xff] }
 0xa65   : > { %v13656_v54 = vunpack.i.h.bf16 %v13654_v5  ;;  %v13655_v7 = vunpack.i.l.bf16 %v13654_v5  ;;  %8966 = vmatmul.mubr.bf16.gmra.mrb[108].mxu0 %v6871_v46  ;;  %v6841_v12 = vsel %vm3668_vm11, %v6809_v52, %v13610_v62  ;;  %v6842_v2 = vsel %vm3668_vm11, %v6810_v11, %v13611_v39 }
 0xa66   : > { %11060 = vmatprep.mubr.msk.bf16.mxu0 %vm682_vm3, %v20613_v20  ;;  %v8430_v32 = vsel %vm3278_vm15, %v8398_v59, %v13651_v41  ;;  %v8429_v16 = vsel %vm3278_vm15, %v8397_v25, %v13650_v0  ;;  %v12476_v48 = vunpack.i.h.bf16 %v20614_v10  ;;  %v12475_v50 = vunpack.i.l.bf16 %v20614_v10  ;;  %v20618_v41 = vld [vmem:[#allocation22_spill] sm:$0xff] }
 0xa67   : > { %v8460_v9 = vsel %vm3287_vm0, %v8428_v42, %v13656_v54  ;;  %v8459_v36 = vsel %vm3287_vm0, %v8427_v24, %v13655_v7  ;;  %v5724_v24 = vld [vmem:[#allocation8 + $0x1a2] sm:$0xff]  ;;  %v13659_v31 = vpop.permute.xlu1 %13658  ;;  %v6873_v56 = vpack.c.bf16 %v6842_v2, %v6841_v12 }
 0xa68   : > { %v8477_v42 = vpack.c.bf16 %v8460_v9, %v8459_v36  ;;  %v13661_v17 = vunpack.i.h.bf16 %v13659_v31  ;;  %v13660_v29 = vunpack.i.l.bf16 %v13659_v31  ;;  %v6876_v35 = vpack.c.bf16 %v5724_v24, %v5723_v37  ;;  %v20619_v24 = vld [vmem:[#allocation27_spill] sm:$0xff] }
 0xa69   : > { %v6811_v23 = vsel %vm3663_vm10, %v6779_v60, %v12475_v50  ;;  %v6812_v40 = vsel %vm3663_vm10, %v6780_v43, %v12476_v48 }
 0xa6a   : > { %11362 = vmatprep.mubr.msk.bf16.mxu1 %vm3343_vm1, %v8477_v42  ;;  %v8461_v47 = vsel %vm3287_vm0, %v8429_v16, %v13660_v29  ;;  %v8462_v57 = vsel %vm3287_vm0, %v8430_v32, %v13661_v17  ;;  %v6843_v1 = vsel %vm3668_vm11, %v6811_v23, %v12480_v44  ;;  %v6844_v15 = vsel %vm3668_vm11, %v6812_v40, %v12481_v19 }
 0xa6b   : > { %v8478_v55 = vpack.c.bf16 %v8462_v57, %v8461_v47  ;;  %v6875_v14 = vpack.c.bf16 %v6844_v15, %v6843_v1 }
 0xa6d   : > { %11363 = vmatmul.mubr.msk.bf16.gmra.mrb[96].mxu1 %vm3343_vm1, %v8478_v55  ;;  %8974 = vmatmul.mubr.bf16.gmra.mrb[112].mxu0 %v6873_v56 }
 0xa6e   : > { %11061 = vmatprep.mubr.msk.bf16.mxu0 %vm682_vm3, %v6876_v35 }
 0xa75   : > { %8982 = vmatmul.mubr.bf16.gmra.mrb[116].mxu0 %v6875_v14  ;;  %v20622_v14 = vld [vmem:[#allocation26_spill] sm:$0xff] }
 0xa7f   : > { %v8863_v38 = vpop.f32.mrb[56].mxu0 }
 0xa80   : > { %v8864_v26 = vadd.f32 %v8863_v38, %v18402_v21  ;;  %v8865_v30 = vpop.f32.mrb[57].mxu0 }
 0xa81   : > { %v8866_v3 = vpop.f32.mrb[58].mxu0 }
 0xa82   : > { %v8997_v58 = vadd.f32 %v19250_v28, %v8864_v26  ;;  %v8867_v34 = vadd.f32 %v8866_v3, %v20616_v6  ;;  %v8868_v4 = vpop.f32.mrb[59].mxu0 }
 0xa83   : > { %v20623_v4 = vld [vmem:[#allocation32_spill] sm:$0xff] }
 0xa84   : > { %v9029_v13 = vmax.f32 %v8997_v58, 0.0  ;;  %v8998_v39 = vadd.f32 %v19250_v28, %v8867_v34 }
 0xa86   : > { %9062 = vst.msk [vmem:[#allocation9 + $0x19] sm:$0xff] %vm606_vm2, %v9029_v13  ;;  %v9030_v5 = vmax.f32 %v8998_v39, 0.0 }
 0xa88   : > { %9063 = vst.msk [vmem:[#allocation9 + $0x21] sm:$0xff] %vm606_vm2, %v9030_v5 }
 0xa8d   : > { %v9190_v33 = vld [vmem:[#allocation9 + $0x18] sm:$0xff] }
 0xa8e   : > { %v9128_v62 = vld [vmem:[#allocation9 + $0x19] sm:$0xff] }
 0xa8f   : > { %v9191_v18 = vld [vmem:[#allocation9 + $0x20] sm:$0xff] }
 0xa90   : > { %v9129_v54 = vld [vmem:[#allocation9 + $0x21] sm:$0xff]  ;;  %v13687_v21 = vpack.i.bf16 %v9191_v18, %v9190_v33  ;;  %v8871_v53 = vpop.f32.mrb[60].mxu0 }
 0xa91   : > { %v13677_v7 = vpack.i.bf16 %v9129_v54, %v9128_v62  ;;  %v9160_v46 = vld [vmem:[#allocation9 + $0x1a] sm:$0xff]  ;;  %v9161_v61 = vld [vmem:[#allocation9 + $0x22] sm:$0xff]  ;;  %v8872_v52 = vadd.f32 %v20617_v49, %v8871_v53  ;;  %v8873_v11 = vpop.f32.mrb[61].mxu0  ;;  %v20624_v54 = vld [vmem:[#allocation34_spill] sm:$0xff] }
 0xa92   : > { %13688 = vrot.lane.b32.xlu0 %v13687_v21, %s20421_s0  ;;  %v8874_v9 = vpop.f32.mrb[62].mxu0  ;;  %v13682_v51 = vpack.i.bf16 %v9161_v61, %v9160_v46 }
 0xa93   : > { %13678 = vrot.lane.b32.xlu1 %v13677_v7, %s20409_s20  ;;  %v8999_v36 = vadd.f32 %v19250_v28, %v8872_v52  ;;  %v8875_v0 = vadd.f32 %v20618_v41, %v8874_v9  ;;  %v8876_v27 = vpop.f32.mrb[63].mxu0 }
 0xa95   : > { %v9031_v63 = vmax.f32 %v8999_v36, 0.0  ;;  %v9000_v20 = vadd.f32 %v19250_v28, %v8875_v0 }
 0xa97   : > { %13683 = vrot.lane.b32.xlu1 %v13682_v51, %s20568_s18  ;;  %9064 = vst.msk [vmem:[#allocation9 + $0x31] sm:$0xff] %vm606_vm2, %v9031_v63  ;;  %v9032_v42 = vmax.f32 %v9000_v20, 0.0  ;;  %v20625_v20 = vld [vmem:[#allocation28_spill] sm:$0xff] }
 0xa99   : > { %9065 = vst.msk [vmem:[#allocation9 + $0x39] sm:$0xff] %vm606_vm2, %v9032_v42 }
 0xa9b   : > { %13693 = vrot.lane.b32.xlu1 %v13677_v7, %s20564_s29  ;;  %v8879_v37 = vpop.f32.mrb[64].mxu0 }
 0xa9c   : > { %v8880_v25 = vadd.f32 %v8879_v37, %v20619_v24  ;;  %v8881_v59 = vpop.f32.mrb[65].mxu0 }
 0xa9d   : > { %v8882_v31 = vpop.f32.mrb[66].mxu0 }
 0xa9e   : > { %v9001_v22 = vadd.f32 %v19250_v28, %v8880_v25  ;;  %v8883_v17 = vadd.f32 %v8882_v31, %v20620_v45  ;;  %v8884_v29 = vpop.f32.mrb[67].mxu0  ;;  %v9130_v12 = vld [vmem:[#allocation9 + $0x31] sm:$0xff] }
 0xa9f   : > { %13698 = vrot.lane.b32.xlu1 %v13682_v51, %s20439_s19  ;;  %v19273_v35 = vld [vmem:[#allocation9 + $0x30] sm:$0xff]  ;;  %v20626_v31 = vld [vmem:[#allocation35_spill] sm:$0xff] }
 0xaa0   : > { %v9033_v2 = vmax.f32 %v9001_v22, 0.0  ;;  %v9002_v32 = vadd.f32 %v19250_v28, %v8883_v17  ;;  %v9131_v16 = vld [vmem:[#allocation9 + $0x39] sm:$0xff] }
 0xaa1   : > { %v19275_v47 = vld [vmem:[#allocation9 + $0x38] sm:$0xff]  ;;  %v13702_v57 = vpack.i.bf16 %v9131_v16, %v9130_v12 }
 0xaa2   : > { %v13712_v60 = vpack.i.bf16 %v19275_v47, %v19273_v35  ;;  %9066 = vst.msk [vmem:[#allocation9 + $0x49] sm:$0xff] %vm606_vm2, %v9033_v2  ;;  %v9034_v43 = vmax.f32 %v9002_v32, 0.0  ;;  %v9162_v10 = vld [vmem:[#allocation9 + $0x32] sm:$0xff]  ;;  %v9163_v48 = vld [vmem:[#allocation9 + $0x3a] sm:$0xff] }
 0xaa3   : > { %13703 = vrot.lane.b32.xlu0 %v13702_v57, %s20409_s20  ;;  %v13707_v50 = vpack.i.bf16 %v9163_v48, %v9162_v10 }
 0xaa4   : > { %13713 = vrot.lane.b32.xlu1 %v13712_v60, %s20421_s0  ;;  %9067 = vst.msk [vmem:[#allocation9 + $0x51] sm:$0xff] %vm606_vm2, %v9034_v43  ;;  %v20627_v43 = vld [vmem:[#allocation31_spill] sm:$0xff] }
 0xaa7   : > { %13708 = vrot.lane.b32.xlu0 %v13707_v50, %s20568_s18 }
 0xaa8   : > { %13718 = vrot.lane.b32.xlu1 %v13712_v60, %s20442_s26 }
 0xaa9   : > { %v9194_v55 = vld [vmem:[#allocation9 + $0x48] sm:$0xff] }
 0xaaa   : > { %v9132_v5 = vld [vmem:[#allocation9 + $0x49] sm:$0xff] }
 0xaab   : > { %v9195_v56 = vld [vmem:[#allocation9 + $0x50] sm:$0xff] }
 0xaac   : > { %13723 = vrot.lane.b32.xlu1 %v13702_v57, %s20443_s30  ;;  %v8887_v23 = vpop.f32.mrb[68].mxu0  ;;  %v13752_v40 = vpack.i.bf16 %v9195_v56, %v9194_v55  ;;  %v9133_v6 = vld [vmem:[#allocation9 + $0x51] sm:$0xff] }
 0xaad   : > { %v8888_v19 = vadd.f32 %v20621_v8, %v8887_v23  ;;  %v8889_v44 = vpop.f32.mrb[69].mxu0  ;;  %v13742_v18 = vpack.i.bf16 %v9133_v6, %v9132_v5  ;;  %v9164_v53 = vld [vmem:[#allocation9 + $0x4a] sm:$0xff]  ;;  %v9165_v46 = vld [vmem:[#allocation9 + $0x52] sm:$0xff] }
 0xaae   : > { %13753 = vrot.lane.b32.xlu0 %v13752_v40, %s20421_s0  ;;  %v8890_v1 = vpop.f32.mrb[70].mxu0  ;;  %v13747_v36 = vpack.i.bf16 %v9165_v46, %v9164_v53 }
 0xaaf   : > { %v9003_v15 = vadd.f32 %v19250_v28, %v8888_v19  ;;  %v8891_v38 = vadd.f32 %v20622_v14, %v8890_v1  ;;  %v8892_v26 = vpop.f32.mrb[71].mxu0  ;;  %v20628_v19 = vld [vmem:[#allocation39_spill] sm:$0xff] }
 0xab0   : > { %13728 = vrot.lane.b32.xlu1 %v13707_v50, %s20563_s23 }
 0xab1   : > { %v9035_v30 = vmax.f32 %v9003_v15, 0.0  ;;  %v9004_v3 = vadd.f32 %v19250_v28, %v8891_v38 }
 0xab3   : > { %9068 = vst.msk [vmem:[#allocation9 + $0x61] sm:$0xff] %vm606_vm2, %v9035_v30  ;;  %v9036_v58 = vmax.f32 %v9004_v3, 0.0 }
 0xab4   : > { %13733 = vrot.lane.b32.xlu1 %v13702_v57, %s20564_s29 }
 0xab5   : > { %9069 = vst.msk [vmem:[#allocation9 + $0x69] sm:$0xff] %vm606_vm2, %v9036_v58 }
 0xab7   : > { %v8895_v34 = vpop.f32.mrb[72].mxu0 }
 0xab8   : > { %13738 = vrot.lane.b32.xlu1 %v13707_v50, %s20439_s19  ;;  %v8896_v13 = vadd.f32 %v8895_v34, %v20623_v4  ;;  %v8897_v39 = vpop.f32.mrb[73].mxu0 }
 0xab9   : > { %v8898_v33 = vpop.f32.mrb[74].mxu0 }
 0xaba   : > { %v9005_v62 = vadd.f32 %v19250_v28, %v8896_v13  ;;  %v8899_v21 = vadd.f32 %v8898_v33, %v20624_v54  ;;  %v8900_v7 = vpop.f32.mrb[75].mxu0  ;;  %v9134_v52 = vld [vmem:[#allocation9 + $0x61] sm:$0xff] }
 0xabb   : > { %v19328_v55 = vld [vmem:[#allocation9 + $0x60] sm:$0xff]  ;;  %v20629_v33 = vld [vmem:[#allocation37_spill] sm:$0xff] }
 0xabc   : > { %13743 = vrot.lane.b32.xlu1 %v13742_v18, %s20409_s20  ;;  %v9037_v61 = vmax.f32 %v9005_v62, 0.0  ;;  %v9006_v49 = vadd.f32 %v19250_v28, %v8899_v21  ;;  %v9135_v11 = vld [vmem:[#allocation9 + $0x69] sm:$0xff]  ;;  %v20630_v7 = vld [vmem:[#allocation36_spill] sm:$0xff] }
 0xabd   : > { %v19301_v9 = vpack.i.bf16 %v9135_v11, %v9134_v52  ;;  %v9166_v0 = vld [vmem:[#allocation9 + $0x62] sm:$0xff]  ;;  %v9167_v27 = vld [vmem:[#allocation9 + $0x6a] sm:$0xff] }
 0xabe   : > { %9070 = vst.msk [vmem:[#allocation9 + $0x79] sm:$0xff] %vm606_vm2, %v9037_v61  ;;  %v9038_v41 = vmax.f32 %v9006_v49, 0.0  ;;  %v13787_v51 = vpack.i.bf16 %v9167_v27, %v9166_v0  ;;  %v19323_v57 = vld [vmem:[#allocation9 + $0x68] sm:$0xff] }
 0xabf   : > { %13783 = vrot.lane.b32.xlu0 %v19301_v9, %s20409_s20  ;;  %v20631_v0 = vld [vmem:[#allocation41_spill] sm:$0xff] }
 0xac0   : > { %13748 = vrot.lane.b32.xlu1 %v13747_v36, %s20568_s18  ;;  %9071 = vst.msk [vmem:[#allocation9 + $0x81] sm:$0xff] %vm606_vm2, %v9038_v41 }
 0xac3   : > { %13788 = vrot.lane.b32.xlu0 %v13787_v51, %s20568_s18 }
 0xac4   : > { %13758 = vrot.lane.b32.xlu1 %v13752_v40, %s20442_s26  ;;  %v13792_v40 = vpack.i.bf16 %v19323_v57, %v19328_v55 }
 0xac5   : > { %v9198_v17 = vld [vmem:[#allocation9 + $0x78] sm:$0xff] }
 0xac6   : > { %v9325_v50 = vld [vmem:[#allocation9 + $0x79] sm:$0xff] }
 0xac7   : > { %13813 = vrot.lane.b32.xlu0 %v19301_v9, %s20564_s29  ;;  %v9199_v25 = vld [vmem:[#allocation9 + $0x80] sm:$0xff] }
 0xac8   : > { %13763 = vrot.lane.b32.xlu1 %v13742_v18, %s20443_s30  ;;  %v8903_v63 = vpop.f32.mrb[76].mxu0  ;;  %v13832_v2 = vpack.i.bf16 %v9199_v25, %v9198_v17  ;;  %v9326_v16 = vld [vmem:[#allocation9 + $0x81] sm:$0xff] }
 0xac9   : > { %v8904_v42 = vadd.f32 %v20625_v20, %v8903_v63  ;;  %v8905_v37 = vpop.f32.mrb[77].mxu0  ;;  %v13842_v23 = vpack.i.bf16 %v9326_v16, %v9325_v50  ;;  %v9357_v15 = vld [vmem:[#allocation9 + $0x7a] sm:$0xff]  ;;  %v9358_v14 = vld [vmem:[#allocation9 + $0x82] sm:$0xff]  ;;  %v19382_v50 = vpop.permute.xlu1 %13673 }
 0xaca   : > { %v8906_v24 = vpop.f32.mrb[78].mxu0  ;;  %v13847_v30 = vpack.i.bf16 %v9358_v14, %v9357_v15  ;;  %20633 = vst [vmem:[#allocation70_spill] sm:$0xff] %v19382_v50 }
 0xacb   : > { %v9007_v59 = vadd.f32 %v19250_v28, %v8904_v42  ;;  %v8907_v22 = vadd.f32 %v20626_v31, %v8906_v24  ;;  %v8908_v45 = vpop.f32.mrb[79].mxu0  ;;  %13818 = vrot.lane.b32.xlu0 %v13787_v51, %s20439_s19  ;;  %v20632_v42 = vld [vmem:[#allocation43_spill] sm:$0xff] }
 0xacc   : > { %13768 = vrot.lane.b32.xlu1 %v13747_v36, %s20563_s23 }
 0xacd   : > { %v9039_v29 = vmax.f32 %v9007_v59, 0.0  ;;  %v9008_v12 = vadd.f32 %v19250_v28, %v8907_v22 }
 0xacf   : > { %9072 = vst.msk [vmem:[#allocation9 + $0x91] sm:$0xff] %vm606_vm2, %v9039_v29  ;;  %v9040_v32 = vmax.f32 %v9008_v12, 0.0  ;;  %13833 = vrot.lane.b32.xlu0 %v13832_v2, %s20421_s0 }
 0xad0   : > { %13773 = vrot.lane.b32.xlu1 %v13742_v18, %s20564_s29 }
 0xad1   : > { %9073 = vst.msk [vmem:[#allocation9 + $0x99] sm:$0xff] %vm606_vm2, %v9040_v32 }
 0xad3   : > { %v8911_v60 = vpop.f32.mrb[80].mxu0  ;;  %13838 = vrot.lane.b32.xlu0 %v13832_v2, %s20442_s26 }
 0xad4   : > { %13778 = vrot.lane.b32.xlu1 %v13747_v36, %s20439_s19  ;;  %v8912_v10 = vadd.f32 %v8911_v60, %v20627_v43  ;;  %v8913_v48 = vpop.f32.mrb[81].mxu0 }
 0xad5   : > { %v8914_v56 = vpop.f32.mrb[82].mxu0 }
 0xad6   : > { %v9009_v8 = vadd.f32 %v19250_v28, %v8912_v10  ;;  %v8915_v44 = vadd.f32 %v8914_v56, %v20628_v19  ;;  %v8916_v1 = vpop.f32.mrb[83].mxu0  ;;  %v9138_v6 = vld [vmem:[#allocation9 + $0x91] sm:$0xff] }
 0xad7   : > { %13843 = vrot.lane.b32.xlu0 %v13842_v23, %s20443_s30  ;;  %v19370_v17 = vld [vmem:[#allocation9 + $0x90] sm:$0xff] }
 0xad8   : > { %13793 = vrot.lane.b32.xlu1 %v13792_v40, %s20421_s0  ;;  %v9041_v38 = vmax.f32 %v9009_v8, 0.0  ;;  %v9010_v26 = vadd.f32 %v19250_v28, %v8915_v44  ;;  %v9139_v58 = vld [vmem:[#allocation9 + $0x99] sm:$0xff]  ;;  %v20634_v8 = vld [vmem:[#allocation38_spill] sm:$0xff] }
 0xad9   : > { %v13862_v34 = vpack.i.bf16 %v9139_v58, %v9138_v6  ;;  %v9170_v4 = vld [vmem:[#allocation9 + $0x92] sm:$0xff]  ;;  %v9171_v13 = vld [vmem:[#allocation9 + $0x9a] sm:$0xff] }
 0xada   : > { %9074 = vst.msk [vmem:[#allocation9 + $0xa9] sm:$0xff] %vm606_vm2, %v9041_v38  ;;  %v9042_v3 = vmax.f32 %v9010_v26, 0.0  ;;  %v19344_v39 = vpack.i.bf16 %v9171_v13, %v9170_v4  ;;  %v19365_v59 = vld [vmem:[#allocation9 + $0x98] sm:$0xff]  ;;  %v20635_v38 = vld [vmem:[#allocation40_spill] sm:$0xff] }
 0xadb   : > { %13848 = vrot.lane.b32.xlu0 %v13847_v30, %s20563_s23  ;;  %v13872_v12 = vpack.i.bf16 %v19365_v59, %v19370_v17 }
 0xadc   : > { %13798 = vrot.lane.b32.xlu1 %v13792_v40, %s20442_s26  ;;  %9075 = vst.msk [vmem:[#allocation9 + $0xb1] sm:$0xff] %vm606_vm2, %v9042_v3 }
 0xadf   : > { %13863 = vrot.lane.b32.xlu0 %v13862_v34, %s20409_s20 }
 0xae0   : > { %13803 = vrot.lane.b32.xlu1 %v19301_v9, %s20443_s30 }
 0xae1   : > { %v9202_v9 = vld [vmem:[#allocation9 + $0xa8] sm:$0xff] }
 0xae2   : > { %v9329_v45 = vld [vmem:[#allocation9 + $0xa9] sm:$0xff] }
 0xae3   : > { %13868 = vrot.lane.b32.xlu0 %v19344_v39, %s20568_s18  ;;  %v9203_v52 = vld [vmem:[#allocation9 + $0xb0] sm:$0xff] }
 0xae4   : > { %13808 = vrot.lane.b32.xlu1 %v13787_v51, %s20563_s23  ;;  %v8919_v5 = vpop.f32.mrb[84].mxu0  ;;  %v13912_v36 = vpack.i.bf16 %v9203_v52, %v9202_v9  ;;  %v9330_v25 = vld [vmem:[#allocation9 + $0xb1] sm:$0xff] }
 0xae5   : > { %v8920_v18 = vadd.f32 %v20629_v33, %v8919_v5  ;;  %v8921_v62 = vpop.f32.mrb[85].mxu0  ;;  %v13922_v29 = vpack.i.bf16 %v9330_v25, %v9329_v45  ;;  %v9361_v32 = vld [vmem:[#allocation9 + $0xaa] sm:$0xff]  ;;  %v9362_v16 = vld [vmem:[#allocation9 + $0xb2] sm:$0xff] }
 0xae6   : > { %v8922_v54 = vpop.f32.mrb[86].mxu0  ;;  %v13927_v60 = vpack.i.bf16 %v9362_v16, %v9361_v32 }
 0xae7   : > { %v9011_v21 = vadd.f32 %v19250_v28, %v8920_v18  ;;  %v8923_v53 = vadd.f32 %v20630_v7, %v8922_v54  ;;  %v8924_v46 = vpop.f32.mrb[87].mxu0  ;;  %13893 = vrot.lane.b32.xlu0 %v13862_v34, %s20564_s29 }
 0xae8   : > { %13823 = vrot.lane.b32.xlu1 %v13842_v23, %s20409_s20 }
 0xae9   : > { %v9043_v61 = vmax.f32 %v9011_v21, 0.0  ;;  %v9012_v49 = vadd.f32 %v19250_v28, %v8923_v53  ;;  %v20637_v53 = vld [vmem:[#allocation48_spill] sm:$0xff] }
 0xaeb   : > { %9076 = vst.msk [vmem:[#allocation9 + $0xc1] sm:$0xff] %vm606_vm2, %v9043_v61  ;;  %v9044_v11 = vmax.f32 %v9012_v49, 0.0  ;;  %13898 = vrot.lane.b32.xlu0 %v19344_v39, %s20439_s19 }
 0xaec   : > { %13828 = vrot.lane.b32.xlu1 %v13847_v30, %s20568_s18 }
 0xaed   : > { %9077 = vst.msk [vmem:[#allocation9 + $0xc9] sm:$0xff] %vm606_vm2, %v9044_v11 }
 0xaef   : > { %v8927_v41 = vpop.f32.mrb[88].mxu0  ;;  %13913 = vrot.lane.b32.xlu0 %v13912_v36, %s20421_s0 }
 0xaf0   : > { %13853 = vrot.lane.b32.xlu1 %v13842_v23, %s20564_s29  ;;  %v8928_v27 = vadd.f32 %v8927_v41, %v20631_v0  ;;  %v8929_v51 = vpop.f32.mrb[89].mxu0 }
 0xaf1   : > { %v8930_v63 = vpop.f32.mrb[90].mxu0  ;;  %v19420_v51 = vpop.permute.xlu0 %13663 }
 0xaf2   : > { %v9013_v20 = vadd.f32 %v19250_v28, %v8928_v27  ;;  %v8931_v37 = vadd.f32 %v8930_v63, %v20632_v42  ;;  %v8932_v24 = vpop.f32.mrb[91].mxu0  ;;  %v9142_v10 = vld [vmem:[#allocation9 + $0xc1] sm:$0xff] }
 0xaf3   : > { %13918 = vrot.lane.b32.xlu0 %v13912_v36, %s20442_s26 }
 0xaf4   : > { %13858 = vrot.lane.b32.xlu1 %v13847_v30, %s20439_s19  ;;  %v9045_v31 = vmax.f32 %v9013_v20, 0.0  ;;  %v9014_v22 = vadd.f32 %v19250_v28, %v8931_v37  ;;  %v9143_v43 = vld [vmem:[#allocation9 + $0xc9] sm:$0xff]  ;;  %v19427_v37 = vld [vmem:[#allocation9 + $0xc0] sm:$0xff] }
 0xaf5   : > { %v19380_v48 = vpack.i.bf16 %v9143_v43, %v9142_v10  ;;  %v9174_v56 = vld [vmem:[#allocation9 + $0xc2] sm:$0xff]  ;;  %v9175_v23 = vld [vmem:[#allocation9 + $0xca] sm:$0xff] }
 0xaf6   : > { %9078 = vst.msk [vmem:[#allocation9 + $0xd9] sm:$0xff] %vm606_vm2, %v9045_v31  ;;  %v9046_v2 = vmax.f32 %v9014_v22, 0.0  ;;  %v19388_v1 = vpack.i.bf16 %v9175_v23, %v9174_v56  ;;  %v19422_v42 = vld [vmem:[#allocation9 + $0xc8] sm:$0xff]  ;;  %v19435_v22 = vpop.permute.xlu0 %13668  ;;  %v20638_v43 = vld [vmem:[#allocation42_spill] sm:$0xff] }
 0xaf7   : > { %13923 = vrot.lane.b32.xlu0 %v13922_v29, %s20443_s30  ;;  %v13952_v31 = vpack.i.bf16 %v19422_v42, %v19427_v37 }
 0xaf8   : > { %13873 = vrot.lane.b32.xlu1 %v13872_v12, %s20421_s0  ;;  %9079 = vst.msk [vmem:[#allocation9 + $0xe1] sm:$0xff] %vm606_vm2, %v9046_v2 }
 0xafb   : > { %13928 = vrot.lane.b32.xlu0 %v13927_v60, %s20563_s23 }
 0xafc   : > { %13878 = vrot.lane.b32.xlu1 %v13872_v12, %s20442_s26 }
 0xafd   : > { %v9206_v21 = vld [vmem:[#allocation9 + $0xd8] sm:$0xff] }
 0xafe   : > { %v9238_v36 = vld [vmem:[#allocation9 + $0xd9] sm:$0xff] }
 0xaff   : > { %13943 = vrot.lane.b32.xlu0 %v19380_v48, %s20409_s20  ;;  %v9207_v5 = vld [vmem:[#allocation9 + $0xe0] sm:$0xff] }
 0xb00   : > { %13883 = vrot.lane.b32.xlu1 %v13862_v34, %s20443_s30  ;;  %v8935_v40 = vpop.f32.mrb[92].mxu0  ;;  %v13992_v49 = vpack.i.bf16 %v9207_v5, %v9206_v21  ;;  %v9239_v52 = vld [vmem:[#allocation9 + $0xe1] sm:$0xff] }
 0xb01   : > { %v8936_v19 = vadd.f32 %v20634_v8, %v8935_v40  ;;  %v8937_v44 = vpop.f32.mrb[93].mxu0  ;;  %v13997_v27 = vpack.i.bf16 %v9239_v52, %v9238_v36  ;;  %v9270_v63 = vld [vmem:[#allocation9 + $0xda] sm:$0xff]  ;;  %v9271_v20 = vld [vmem:[#allocation9 + $0xe2] sm:$0xff] }
 0xb02   : > { %v8938_v15 = vpop.f32.mrb[94].mxu0  ;;  %v14002_v25 = vpack.i.bf16 %v9271_v20, %v9270_v63  ;;  %v20639_v44 = vld [vmem:[#allocation44_spill] sm:$0xff] }
 0xb03   : > { %v9015_v14 = vadd.f32 %v19250_v28, %v8936_v19  ;;  %v8939_v26 = vadd.f32 %v20635_v38, %v8938_v15  ;;  %v8940_v30 = vpop.f32.mrb[95].mxu0  ;;  %13948 = vrot.lane.b32.xlu0 %v19388_v1, %s20568_s18 }
 0xb04   : > { %13888 = vrot.lane.b32.xlu1 %v19344_v39, %s20563_s23  ;;  %v20636_v39 = vld [vmem:[#allocation45_spill] sm:$0xff] }
 0xb05   : > { %v19396_v3 = vpop.permute.xlu1 %13678  ;;  %v9047_v58 = vmax.f32 %v9015_v14, 0.0  ;;  %v9016_v6 = vadd.f32 %v19250_v28, %v8939_v26 }
 0xb07   : > { %9080 = vst.msk [vmem:[#allocation9 + $0xf1] sm:$0xff] %vm606_vm2, %v9047_v58  ;;  %v9048_v34 = vmax.f32 %v9016_v6, 0.0  ;;  %13973 = vrot.lane.b32.xlu0 %v19380_v48, %s20564_s29 }
 0xb08   : > { %13903 = vrot.lane.b32.xlu1 %v13922_v29, %s20409_s20 }
 0xb09   : > { %v19403_v4 = vpop.permute.xlu1 %13683  ;;  %9081 = vst.msk [vmem:[#allocation9 + $0xf9] sm:$0xff] %vm606_vm2, %v9048_v34 }
 0xb0b   : > { %v8943_v13 = vpop.f32.mrb[96].mxu0  ;;  %13978 = vrot.lane.b32.xlu0 %v19388_v1, %s20439_s19 }
 0xb0c   : > { %v8944_v33 = vadd.f32 %v8943_v13, %v20636_v39  ;;  %v8945_v18 = vpop.f32.mrb[97].mxu0  ;;  %13908 = vrot.lane.b32.xlu1 %v13927_v60, %s20568_s18 }
 0xb0d   : > { %v19410_v62 = vpop.permute.xlu1 %13693  ;;  %v8946_v54 = vpop.f32.mrb[98].mxu0  ;;  %v20640_v18 = vld [vmem:[#allocation50_spill] sm:$0xff] }
 0xb0e   : > { %v9017_v7 = vadd.f32 %v19250_v28, %v8944_v33  ;;  %v8947_v46 = vadd.f32 %v8946_v54, %v20637_v53  ;;  %v8948_v61 = vpop.f32.mrb[99].mxu0  ;;  %v9146_v12 = vld [vmem:[#allocation9 + $0xf1] sm:$0xff] }
 0xb0f   : > { %13993 = vrot.lane.b32.xlu0 %v13992_v49, %s20421_s0  ;;  %v9303_v13 = vld [vmem:[#allocation9 + $0xf0] sm:$0xff] }
 0xb10   : > { %v9049_v11 = vmax.f32 %v9017_v7, 0.0  ;;  %v9018_v9 = vadd.f32 %v19250_v28, %v8947_v46  ;;  %13933 = vrot.lane.b32.xlu1 %v13922_v29, %s20564_s29  ;;  %v9147_v29 = vld [vmem:[#allocation9 + $0xf9] sm:$0xff] }
 0xb11   : > { %v19418_v0 = vpop.permute.xlu1 %13698  ;;  %v14012_v16 = vpack.i.bf16 %v9147_v29, %v9146_v12  ;;  %v9178_v23 = vld [vmem:[#allocation9 + $0xf2] sm:$0xff]  ;;  %v9179_v40 = vld [vmem:[#allocation9 + $0xfa] sm:$0xff] }
 0xb12   : > { %9082 = vst.msk [vmem:[#allocation9 + $0x109] sm:$0xff] %vm606_vm2, %v9049_v11  ;;  %v9050_v41 = vmax.f32 %v9018_v9, 0.0  ;;  %v14017_v26 = vpack.i.bf16 %v9179_v40, %v9178_v23  ;;  %v9304_v34 = vld [vmem:[#allocation9 + $0xf8] sm:$0xff]  ;;  %v20641_v46 = vld [vmem:[#allocation12_spill] sm:$0xff] }
 0xb13   : > { %13998 = vrot.lane.b32.xlu0 %v13997_v27, %s20564_s29  ;;  %v14027_v39 = vpack.i.bf16 %v9304_v34, %v9303_v13 }
 0xb14   : > { %9083 = vst.msk [vmem:[#allocation9 + $0x111] sm:$0xff] %vm606_vm2, %v9050_v41  ;;  %13938 = vrot.lane.b32.xlu1 %v13927_v60, %s20439_s19  ;;  %v19443_v60 = vpop.permute.xlu0 %13688 }
 0xb16   : > { %v19429_v24 = vpop.permute.xlu1 %13713 }
 0xb17   : > { %14003 = vrot.lane.b32.xlu0 %v14002_v25, %s20439_s19 }
 0xb18   : > { %13953 = vrot.lane.b32.xlu1 %v13952_v31, %s20421_s0  ;;  %v19453_v30 = vpop.permute.xlu0 %13703 }
 0xb19   : > { %v9148_v20 = vld [vmem:[#allocation9 + $0x109] sm:$0xff] }
 0xb1a   : > { %v19437_v45 = vpop.permute.xlu1 %13718 }
 0xb1b   : > { %14008 = vrot.lane.b32.xlu0 %v13992_v49, %s20442_s26  ;;  %v9149_v63 = vld [vmem:[#allocation9 + $0x111] sm:$0xff] }
 0xb1c   : > { %13958 = vrot.lane.b32.xlu1 %v13952_v31, %s20442_s26  ;;  %v8951_v2 = vpop.f32.mrb[100].mxu0  ;;  %v19466_v7 = vpop.permute.xlu0 %13708  ;;  %v9180_v12 = vld [vmem:[#allocation9 + $0x10a] sm:$0xff] }
 0xb1d   : > { %v8952_v10 = vadd.f32 %v20638_v43, %v8951_v2  ;;  %v8953_v56 = vpop.f32.mrb[101].mxu0  ;;  %v9181_v2 = vld [vmem:[#allocation9 + $0x112] sm:$0xff] }
 0xb1e   : > { %v19441_v32 = vpop.permute.xlu1 %13723  ;;  %v8954_v8 = vpop.f32.mrb[102].mxu0  ;;  %v19496_v56 = vpack.i.bf16 %v9181_v2, %v9180_v12  ;;  %v9211_v23 = vld [vmem:[#allocation9 + $0x110] sm:$0xff] }
 0xb1f   : > { %14013 = vrot.lane.b32.xlu0 %v14012_v16, %s20409_s20  ;;  %v9019_v19 = vadd.f32 %v19250_v28, %v8952_v10  ;;  %v8955_v15 = vadd.f32 %v20639_v44, %v8954_v8  ;;  %v8956_v14 = vpop.f32.mrb[103].mxu0  ;;  %v9210_v8 = vld [vmem:[#allocation9 + $0x108] sm:$0xff] }
 0xb20   : > { %13963 = vrot.lane.b32.xlu1 %v19380_v48, %s20443_s30  ;;  %v19475_v36 = vpop.permute.xlu0 %13753 }
 0xb21   : > { %v9051_v58 = vmax.f32 %v9019_v19, 0.0  ;;  %v9020_v6 = vadd.f32 %v19250_v28, %v8955_v15  ;;  %v14062_v15 = vpack.i.bf16 %v9211_v23, %v9210_v8  ;;  %v13710_v8 = vunpack.i.l.bf16 %v19466_v7 }
 0xb22   : > { %v19451_v38 = vpop.permute.xlu1 %13728 }
 0xb23   : > { %14018 = vrot.lane.b32.xlu0 %v14017_v26, %s20568_s18  ;;  %9084 = vst.msk [vmem:[#allocation9 + $0x121] sm:$0xff] %vm606_vm2, %v9051_v58  ;;  %v9052_v48 = vmax.f32 %v9020_v6, 0.0  ;;  %v20642_v58 = vld [vmem:[#allocation51_spill] sm:$0xff] }
 0xb24   : > { %13968 = vrot.lane.b32.xlu1 %v19388_v1, %s20563_s23 }
 0xb25   : > { %9085 = vst.msk [vmem:[#allocation9 + $0x129] sm:$0xff] %vm606_vm2, %v9052_v48 }
 0xb26   : > { %v19460_v5 = vpop.permute.xlu1 %13733 }
 0xb27   : > { %v8959_v33 = vpop.f32.mrb[104].mxu0  ;;  %14028 = vrot.lane.b32.xlu0 %v14027_v39, %s20442_s26 }
 0xb28   : > { %v8960_v54 = vadd.f32 %v8959_v33, %v20640_v18  ;;  %v8961_v21 = vpop.f32.mrb[105].mxu0  ;;  %13983 = vrot.lane.b32.xlu1 %v13997_v27, %s20409_s20  ;;  %v20643_v33 = vld [vmem:[#allocation60_spill] sm:$0xff] }
 0xb29   : > { %v8962_v1 = vpop.f32.mrb[106].mxu0 }
 0xb2a   : > { %v9021_v53 = vadd.f32 %v19250_v28, %v8960_v54  ;;  %v8963_v61 = vadd.f32 %v8962_v1, %v20641_v46  ;;  %v8964_v49 = vpop.f32.mrb[107].mxu0  ;;  %v19470_v52 = vpop.permute.xlu1 %13738  ;;  %v9212_v19 = vld [vmem:[#allocation9 + $0x120] sm:$0xff] }
 0xb2b   : > { %14033 = vrot.lane.b32.xlu0 %v14012_v16, %s20443_s30  ;;  %v9244_v21 = vld [vmem:[#allocation9 + $0x121] sm:$0xff] }
 0xb2c   : > { %v9053_v11 = vmax.f32 %v9021_v53, 0.0  ;;  %v9022_v9 = vadd.f32 %v19250_v28, %v8963_v61  ;;  %13988 = vrot.lane.b32.xlu1 %v14002_v25, %s20568_s18  ;;  %v19487_v25 = vpack.i.bf16 %v9149_v63, %v9148_v20  ;;  %v9213_v40 = vld [vmem:[#allocation9 + $0x128] sm:$0xff]  ;;  %v13706_v63 = vunpack.i.h.bf16 %v19453_v30 }
 0xb2d   : > { %v19503_v14 = vpack.i.bf16 %v9213_v40, %v9212_v19  ;;  %v9245_v13 = vld [vmem:[#allocation9 + $0x129] sm:$0xff]  ;;  %v13705_v20 = vunpack.i.l.bf16 %v19453_v30  ;;  %v13711_v40 = vunpack.i.h.bf16 %v19466_v7 }
 0xb2e   : > { %9086 = vst.msk [vmem:[#allocation9 + $0x139] sm:$0xff] %vm606_vm2, %v9053_v11  ;;  %v9054_v41 = vmax.f32 %v9022_v9, 0.0  ;;  %v19478_v27 = vpop.permute.xlu1 %13743  ;;  %v19515_v53 = vpack.i.bf16 %v9245_v13, %v9244_v21  ;;  %v9276_v11 = vld [vmem:[#allocation9 + $0x122] sm:$0xff]  ;;  %v9277_v9 = vld [vmem:[#allocation9 + $0x12a] sm:$0xff] }
 0xb2f   : > { %14038 = vrot.lane.b32.xlu0 %v14017_v26, %s20563_s23  ;;  %v19526_v23 = vpack.i.bf16 %v9277_v9, %v9276_v11 }
 0xb30   : > { %9087 = vst.msk [vmem:[#allocation9 + $0x141] sm:$0xff] %vm606_vm2, %v9054_v41  ;;  %14023 = vrot.lane.b32.xlu1 %v14027_v39, %s20421_s0 }
 0xb31   : > { %v19483_v31 = vpop.permute.xlu0 %13783 }
 0xb32   : > { %v19485_v29 = vpop.permute.xlu1 %13748 }
 0xb33   : > { %14043 = vrot.lane.b32.xlu0 %v14012_v16, %s20564_s29 }
 0xb34   : > { %14053 = vrot.lane.b32.xlu1 %v19487_v25, %s20409_s20 }
 0xb35   : > { %v19492_v43 = vpop.permute.xlu0 %13788 }
 0xb36   : > { %v19494_v10 = vpop.permute.xlu1 %13758 }
 0xb37   : > { %14048 = vrot.lane.b32.xlu0 %v14017_v26, %s20439_s19  ;;  %v9185_v50 = vld [vmem:[#allocation9 + $0x142] sm:$0xff] }
 0xb38   : > { %14058 = vrot.lane.b32.xlu1 %v19496_v56, %s20568_s18  ;;  %v8967_v44 = vpop.f32.mrb[108].mxu0 }
 0xb39   : > { %v19501_v16 = vpop.permute.xlu0 %13813  ;;  %v8968_v6 = vadd.f32 %v20642_v58, %v8967_v44  ;;  %v8969_v48 = vpop.f32.mrb[109].mxu0  ;;  %v13756_v58 = vunpack.i.h.bf16 %v19475_v36 }
 0xb3a   : > { %v19506_v34 = vpop.permute.xlu1 %13763  ;;  %v8970_v39 = vpop.f32.mrb[110].mxu0 }
 0xb3b   : > { %14063 = vrot.lane.b32.xlu0 %v14062_v15, %s20421_s0  ;;  %v9023_v26 = vadd.f32 %v19250_v28, %v8968_v6  ;;  %v8971_v18 = vadd.f32 %v20643_v33, %v8970_v39  ;;  %v8972_v54 = vpop.f32.mrb[111].mxu0  ;;  %v13755_v6 = vunpack.i.l.bf16 %v19475_v36  ;;  %v10411_v36 = vsel %vm606_vm2, %v19273_v35, %v13705_v20 }
 0xb3c   : > { %14118 = vrot.lane.b32.xlu1 %v19503_v14, %s20421_s0  ;;  %v10412_v54 = vsel %vm606_vm2, %v19275_v47, %v13706_v63  ;;  %v10443_v11 = vsel %vm682_vm3, %v10411_v36, %v13710_v8 }
 0xb3d   : > { %v19513_v1 = vpop.permute.xlu0 %13818  ;;  %v9055_v46 = vmax.f32 %v9023_v26, 0.0  ;;  %v9024_v61 = vadd.f32 %v19250_v28, %v8971_v18  ;;  %v9152_v18 = vld [vmem:[#allocation9 + $0x139] sm:$0xff]  ;;  %v10444_v9 = vsel %vm682_vm3, %v10412_v54, %v13711_v40  ;;  %v10475_v47 = vsel %vm2381_vm8, %v10443_v11, %v13755_v6 }
 0xb3e   : > { %v19518_v49 = vpop.permute.xlu1 %13768  ;;  %v10476_v35 = vsel %vm2381_vm8, %v10444_v9, %v13756_v58  ;;  %v9309_v9 = vld [vmem:[#allocation9 + $0x138] sm:$0xff] }
 0xb3f   : > { %14068 = vrot.lane.b32.xlu0 %v14062_v15, %s20442_s26  ;;  %9088 = vst.msk [vmem:[#allocation9 + $0x151] sm:$0xff] %vm606_vm2, %v9055_v46  ;;  %v9056_v41 = vmax.f32 %v9024_v61, 0.0  ;;  %v9153_v15 = vld [vmem:[#allocation9 + $0x141] sm:$0xff] }
 0xb40   : > { %14123 = vrot.lane.b32.xlu1 %v19515_v53, %s20564_s29  ;;  %v11364_v12 = vpop.f32.mrb[96].mxu1  ;;  %v8975_v2 = vpop.f32.mrb[112].mxu0  ;;  %v19543_v61 = vpack.i.bf16 %v9153_v15, %v9152_v18 }
 0xb41   : > { %9089 = vst.msk [vmem:[#allocation9 + $0x159] sm:$0xff] %vm606_vm2, %v9056_v41  ;;  %v19531_v19 = vpop.permute.xlu0 %13833  ;;  %v8712_v48 = vpop.f32.mrb[97].mxu1 }
 0xb42   : > { %v13774_v44 = vpop.permute.xlu1 %13773  ;;  %v8977_v30 = vpop.f32.mrb[113].mxu0  ;;  %v8976_v39 = vadd.f32 %v8975_v2, %v8712_v48 }
 0xb43   : > { %14073 = vrot.lane.b32.xlu0 %v19487_v25, %s20443_s30  ;;  %v13776_v13 = vunpack.i.h.bf16 %v13774_v44  ;;  %v13775_v7 = vunpack.i.l.bf16 %v13774_v44  ;;  %v11365_v26 = vpop.f32.mrb[98].mxu1  ;;  %v8978_v33 = vpop.f32.mrb[114].mxu0  ;;  %v9184_v30 = vld [vmem:[#allocation9 + $0x13a] sm:$0xff] }
 0xb44   : > { %14128 = vrot.lane.b32.xlu1 %v19526_v23, %s20439_s19  ;;  %v8715_v21 = vpop.f32.mrb[99].mxu1  ;;  %v8980_v46 = vpop.f32.mrb[115].mxu0  ;;  %v9025_v41 = vadd.f32 %v19250_v28, %v8976_v39  ;;  %v19561_v18 = vpack.i.bf16 %v9185_v50, %v9184_v30 }
 0xb45   : > { %v8979_v2 = vadd.f32 %v8978_v33, %v8715_v21  ;;  %v19548_v44 = vpop.permute.xlu0 %13838  ;;  %v10508_v40 = vsel %vm711_vm4, %v10476_v35, %v13776_v13  ;;  %v10507_v8 = vsel %vm711_vm4, %v10475_v47, %v13775_v7  ;;  %v9310_v13 = vld [vmem:[#allocation9 + $0x140] sm:$0xff] }
 0xb46   : > { %v13779_v48 = vpop.permute.xlu1 %13778  ;;  %v9057_v15 = vmax.f32 %v9025_v41, 0.0 }
 0xb47   : > { %v13781_v63 = vunpack.i.h.bf16 %v13779_v48  ;;  %v13780_v20 = vunpack.i.l.bf16 %v13779_v48  ;;  %14078 = vrot.lane.b32.xlu0 %v19496_v56, %s20563_s23  ;;  %v9026_v39 = vadd.f32 %v19250_v28, %v8979_v2  ;;  %v19574_v2 = vpack.i.bf16 %v9310_v13, %v9309_v9 }
 0xb48   : > { %14133 = vrot.lane.b32.xlu1 %v19543_v61, %s20409_s20  ;;  %v8983_v58 = vpop.f32.mrb[116].mxu0  ;;  %9090 = vst.msk [vmem:[#allocation9 + $0x169] sm:$0xff] %vm606_vm2, %v9057_v15 }
 0xb49   : > { %v10539_v33 = vsel %vm3260_vm13, %v10507_v8, %v13780_v20  ;;  %v10540_v6 = vsel %vm3260_vm13, %v10508_v40, %v13781_v63  ;;  %v9058_v54 = vmax.f32 %v9026_v39, 0.0  ;;  %v8984_v36 = vadd.f32 %v11364_v12, %v8983_v58  ;;  %v19564_v21 = vpop.permute.xlu0 %13843  ;;  %v8985_v7 = vpop.f32.mrb[117].mxu0 }
 0xb4a   : > { %20644 = vst [vmem:[#allocation11_spill] sm:$0xff] %v19564_v21  ;;  %v19566_v46 = vpop.permute.xlu1 %13793  ;;  %v8986_v11 = vpop.f32.mrb[118].mxu0  ;;  %v9216_v7 = vld [vmem:[#allocation9 + $0x150] sm:$0xff] }
 0xb4b   : > { %14083 = vrot.lane.b32.xlu0 %v19487_v25, %s20564_s29  ;;  %9091 = vst.msk [vmem:[#allocation9 + $0x171] sm:$0xff] %vm606_vm2, %v9058_v54  ;;  %v9027_v50 = vadd.f32 %v19250_v28, %v8984_v36  ;;  %v8987_v41 = vadd.f32 %v11365_v26, %v8986_v11  ;;  %v8988_v12 = vpop.f32.mrb[119].mxu0  ;;  %v9217_v54 = vld [vmem:[#allocation9 + $0x158] sm:$0xff] }
 0xb4c   : > { %14138 = vrot.lane.b32.xlu1 %v19561_v18, %s20568_s18  ;;  %v19607_v9 = vpack.i.bf16 %v9217_v54, %v9216_v7 }
 0xb4d   : > { %v9059_v48 = vmax.f32 %v9027_v50, 0.0  ;;  %v19576_v30 = vpop.permute.xlu0 %13848  ;;  %v9028_v35 = vadd.f32 %v19250_v28, %v8987_v41 }
 0xb4e   : > { %20645 = vst [vmem:[#allocation63_spill] sm:$0xff] %v19576_v30  ;;  %v13799_v47 = vpop.permute.xlu1 %13798 }
 0xb4f   : > { %14088 = vrot.lane.b32.xlu0 %v19496_v56, %s20439_s19  ;;  %9092 = vst.msk [vmem:[#allocation9 + $0x181] sm:$0xff] %vm606_vm2, %v9059_v48  ;;  %v13801_v25 = vunpack.i.h.bf16 %v13799_v47  ;;  %v13800_v63 = vunpack.i.l.bf16 %v13799_v47  ;;  %v9060_v26 = vmax.f32 %v9028_v35, 0.0  ;;  %v9249_v48 = vld [vmem:[#allocation9 + $0x159] sm:$0xff] }
 0xb50   : > { %14143 = vrot.lane.b32.xlu1 %v19574_v2, %s20442_s26 }
 0xb51   : > { %v10571_v20 = vsel %vm3269_vm14, %v10539_v33, %v13800_v63  ;;  %v10572_v40 = vsel %vm3269_vm14, %v10540_v6, %v13801_v25  ;;  %v19586_v8 = vpop.permute.xlu0 %13863  ;;  %9093 = vst.msk [vmem:[#allocation9 + $0x189] sm:$0xff] %vm606_vm2, %v9060_v26  ;;  %v9248_v63 = vld [vmem:[#allocation9 + $0x151] sm:$0xff] }
 0xb52   : > { %v13804_v15 = vpop.permute.xlu1 %13803  ;;  %v19617_v26 = vpack.i.bf16 %v9249_v48, %v9248_v63  ;;  %v13791_v63 = vunpack.i.h.bf16 %v19492_v43 }
 0xb53   : > { %v13806_v28 = vunpack.i.h.bf16 %v13804_v15  ;;  %v13805_v39 = vunpack.i.l.bf16 %v13804_v15  ;;  %14093 = vrot.lane.b32.xlu0 %v19515_v53, %s20409_s20  ;;  %v9280_v15 = vld [vmem:[#allocation9 + $0x152] sm:$0xff] }
 0xb54   : > { %14148 = vrot.lane.b32.xlu1 %v19543_v61, %s20443_s30 }
 0xb55   : > { %v10603_v56 = vsel %vm3278_vm15, %v10571_v20, %v13805_v39  ;;  %v10604_v58 = vsel %vm3278_vm15, %v10572_v40, %v13806_v28  ;;  %v19595_v33 = vpop.permute.xlu0 %13868  ;;  %v9281_v28 = vld [vmem:[#allocation9 + $0x15a] sm:$0xff] }
 0xb56   : > { %v13809_v6 = vpop.permute.xlu1 %13808  ;;  %v9104_v39 = vld [vmem:[#allocation9 + $0x78] sm:$0xff]  ;;  %v19631_v48 = vpack.i.bf16 %v9281_v28, %v9280_v15  ;;  %v9156_v28 = vld [vmem:[#allocation9 + $0x169] sm:$0xff] }
 0xb57   : > { %v13811_v36 = vunpack.i.h.bf16 %v13809_v6  ;;  %v13810_v13 = vunpack.i.l.bf16 %v13809_v6  ;;  %14098 = vrot.lane.b32.xlu0 %v19526_v23, %s20568_s18 }
 0xb58   : > { %14153 = vrot.lane.b32.xlu1 %v19561_v18, %s20563_s23 }
 0xb59   : > { %v19602_v50 = vsel %vm3287_vm0, %v10603_v56, %v13810_v13  ;;  %v19605_v11 = vsel %vm3287_vm0, %v10604_v58, %v13811_v36  ;;  %v19609_v41 = vpop.permute.xlu0 %13893  ;;  %v9105_v56 = vld [vmem:[#allocation9 + $0x80] sm:$0xff]  ;;  %v13785_v13 = vunpack.i.l.bf16 %v19483_v31 }
 0xb5a   : > { %20646 = vst [vmem:[#allocation62_spill] sm:$0xff] %v19602_v50  ;;  %20647 = vst [vmem:[#allocation14_spill] sm:$0xff] %v19605_v11  ;;  %v13824_v12 = vpop.permute.xlu1 %13823  ;;  %v9157_v50 = vld [vmem:[#allocation9 + $0x171] sm:$0xff] }
 0xb5b   : > { %14103 = vrot.lane.b32.xlu0 %v19503_v14, %s20442_s26  ;;  %v13826_v35 = vunpack.i.h.bf16 %v13824_v12  ;;  %v13825_v25 = vunpack.i.l.bf16 %v13824_v12  ;;  %v13786_v14 = vunpack.i.h.bf16 %v19483_v31 }
 0xb5c   : > { %14198 = vrot.lane.b32.xlu1 %v19607_v9, %s20421_s0 }
 0xb5d   : > { %v19619_v20 = vpop.permute.xlu0 %13898  ;;  %v10418_v54 = vsel %vm606_vm2, %v9105_v56, %v13826_v35  ;;  %v10417_v36 = vsel %vm606_vm2, %v9104_v39, %v13825_v25  ;;  %v13836_v35 = vunpack.i.h.bf16 %v19531_v19  ;;  %v13835_v25 = vunpack.i.l.bf16 %v19531_v19 }
 0xb5e   : > { %v13829_v40 = vpop.permute.xlu1 %13828  ;;  %v10415_v39 = vsel %vm606_vm2, %v19328_v55, %v13785_v13  ;;  %v19647_v56 = vpack.i.bf16 %v9157_v50, %v9156_v28  ;;  %v9314_v50 = vld [vmem:[#allocation9 + $0x170] sm:$0xff] }
 0xb5f   : > { %v13831_v58 = vunpack.i.h.bf16 %v13829_v40  ;;  %v13830_v6 = vunpack.i.l.bf16 %v13829_v40  ;;  %14108 = vrot.lane.b32.xlu0 %v19515_v53, %s20443_s30  ;;  %v13790_v53 = vunpack.i.l.bf16 %v19492_v43  ;;  %v10416_v43 = vsel %vm606_vm2, %v19323_v57, %v13786_v14 }
 0xb60   : > { %14203 = vrot.lane.b32.xlu1 %v19617_v26, %s20564_s29  ;;  %v10448_v19 = vsel %vm682_vm3, %v10416_v43, %v13791_v63 }
 0xb61   : > { %v10449_v7 = vsel %vm682_vm3, %v10417_v36, %v13830_v6  ;;  %v10450_v12 = vsel %vm682_vm3, %v10418_v54, %v13831_v58  ;;  %v19635_v40 = vpop.permute.xlu0 %13913  ;;  %v10447_v58 = vsel %vm682_vm3, %v10415_v39, %v13790_v53  ;;  %v9188_v54 = vld [vmem:[#allocation9 + $0x16a] sm:$0xff]  ;;  %v9189_v36 = vld [vmem:[#allocation9 + $0x172] sm:$0xff] }
 0xb62   : > { %v13854_v47 = vpop.permute.xlu1 %13853  ;;  %v10479_v11 = vsel %vm2381_vm8, %v10447_v58, %v13835_v25  ;;  %v19661_v63 = vpack.i.bf16 %v9189_v36, %v9188_v54  ;;  %v9313_v25 = vld [vmem:[#allocation9 + $0x168] sm:$0xff] }
 0xb63   : > { %14113 = vrot.lane.b32.xlu0 %v19526_v23, %s20563_s23  ;;  %v13856_v31 = vunpack.i.h.bf16 %v13854_v47  ;;  %v13855_v15 = vunpack.i.l.bf16 %v13854_v47  ;;  %v10480_v47 = vsel %vm2381_vm8, %v10448_v19, %v13836_v35 }
 0xb64   : > { %14208 = vrot.lane.b32.xlu1 %v19631_v48, %s20439_s19 }
 0xb65   : > { %v13919_v6 = vpop.permute.xlu0 %13918  ;;  %v10512_v57 = vsel %vm711_vm4, %v10480_v47, %v13856_v31  ;;  %v10511_v55 = vsel %vm711_vm4, %v10479_v11, %v13855_v15  ;;  %v13896_v11 = vunpack.i.h.bf16 %v19609_v41  ;;  %v13900_v31 = vunpack.i.l.bf16 %v19619_v20 }
 0xb66   : > { %v13859_v23 = vpop.permute.xlu1 %13858  ;;  %v13921_v15 = vunpack.i.h.bf16 %v13919_v6  ;;  %v13920_v39 = vunpack.i.l.bf16 %v13919_v6 }
 0xb67   : > { %v13861_v30 = vunpack.i.h.bf16 %v13859_v23  ;;  %v13860_v21 = vunpack.i.l.bf16 %v13859_v23  ;;  %14158 = vrot.lane.b32.xlu0 %v19574_v2, %s20421_s0  ;;  %v19667_v2 = vpack.i.bf16 %v9314_v50, %v9313_v25 }
 0xb68   : > { %14213 = vrot.lane.b32.xlu1 %v19647_v56, %s20409_s20 }
 0xb69   : > { %v10543_v14 = vsel %vm3260_vm13, %v10511_v55, %v13860_v21  ;;  %v10544_v13 = vsel %vm3260_vm13, %v10512_v57, %v13861_v30  ;;  %v13924_v53 = vpop.permute.xlu0 %13923  ;;  %v13895_v21 = vunpack.i.l.bf16 %v19609_v41  ;;  %v13901_v30 = vunpack.i.h.bf16 %v19619_v20 }
 0xb6a   : > { %v13874_v35 = vpop.permute.xlu1 %13873  ;;  %v13925_v23 = vunpack.i.l.bf16 %v13924_v53 }
 0xb6b   : > { %v13876_v28 = vunpack.i.h.bf16 %v13874_v35  ;;  %v13875_v43 = vunpack.i.l.bf16 %v13874_v35  ;;  %14163 = vrot.lane.b32.xlu0 %v19543_v61, %s20564_s29  ;;  %v13926_v61 = vunpack.i.h.bf16 %v13924_v53 }
 0xb6c   : > { %14218 = vrot.lane.b32.xlu1 %v19661_v63, %s20568_s18 }
 0xb6d   : > { %v10481_v58 = vsel %vm2381_vm8, %v10449_v7, %v13875_v43  ;;  %v10482_v19 = vsel %vm2381_vm8, %v10450_v12, %v13876_v28  ;;  %v13929_v47 = vpop.permute.xlu0 %13928 }
 0xb6e   : > { %v10513_v54 = vsel %vm711_vm4, %v10481_v58, %v13895_v21  ;;  %v10514_v36 = vsel %vm711_vm4, %v10482_v19, %v13896_v11  ;;  %v13879_v57 = vpop.permute.xlu1 %13878  ;;  %v13931_v50 = vunpack.i.h.bf16 %v13929_v47  ;;  %v13930_v20 = vunpack.i.l.bf16 %v13929_v47  ;;  %v9350_v58 = vld [vmem:[#allocation9 + $0x1a1] sm:$0xff] }
 0xb6f   : > { %v10545_v41 = vsel %vm3260_vm13, %v10513_v54, %v13900_v31  ;;  %v10546_v55 = vsel %vm3260_vm13, %v10514_v36, %v13901_v30  ;;  %14168 = vrot.lane.b32.xlu0 %v19561_v18, %s20439_s19  ;;  %v13881_v6 = vunpack.i.h.bf16 %v13879_v57  ;;  %v13880_v53 = vunpack.i.l.bf16 %v13879_v57  ;;  %v9284_v19 = vld [vmem:[#allocation9 + $0x182] sm:$0xff] }
 0xb70   : > { %14223 = vrot.lane.b32.xlu1 %v19667_v2, %s20442_s26  ;;  %v10577_v7 = vsel %vm3269_vm14, %v10545_v41, %v13920_v39  ;;  %v10578_v12 = vsel %vm3269_vm14, %v10546_v55, %v13921_v15  ;;  %v9349_v39 = vld [vmem:[#allocation9 + $0x199] sm:$0xff] }
 0xb71   : > { %v10609_v35 = vsel %vm3278_vm15, %v10577_v7, %v13925_v23  ;;  %v10610_v25 = vsel %vm3278_vm15, %v10578_v12, %v13926_v61  ;;  %v10575_v18 = vsel %vm3269_vm14, %v10543_v14, %v13880_v53  ;;  %v10576_v11 = vsel %vm3269_vm14, %v10544_v13, %v13881_v6  ;;  %v19695_v21 = vpop.permute.xlu0 %13943  ;;  %v9220_v53 = vld [vmem:[#allocation9 + $0x180] sm:$0xff] }
 0xb72   : > { %v19688_v28 = vsel %vm3287_vm0, %v10609_v35, %v13930_v20  ;;  %v19691_v43 = vsel %vm3287_vm0, %v10610_v25, %v13931_v50  ;;  %v13884_v30 = vpop.permute.xlu1 %13883  ;;  %v14272_v47 = vpack.i.bf16 %v9350_v58, %v9349_v39  ;;  %v9221_v20 = vld [vmem:[#allocation9 + $0x188] sm:$0xff]  ;;  %v13866_v25 = vunpack.i.h.bf16 %v19586_v8 }
 0xb73   : > { %v13886_v31 = vunpack.i.h.bf16 %v13884_v30  ;;  %v13885_v15 = vunpack.i.l.bf16 %v13884_v30  ;;  %14173 = vrot.lane.b32.xlu0 %v19617_v26, %s20409_s20  ;;  %v19724_v35 = vpack.i.bf16 %v9221_v20, %v9220_v53  ;;  %v13870_v39 = vunpack.i.l.bf16 %v19595_v33  ;;  %v9108_v58 = vld [vmem:[#allocation9 + $0xa8] sm:$0xff] }
 0xb74   : > { %14228 = vrot.lane.b32.xlu1 %v19647_v56, %s20443_s30 }
 0xb75   : > { %v10607_v14 = vsel %vm3278_vm15, %v10575_v18, %v13885_v15  ;;  %v10608_v13 = vsel %vm3278_vm15, %v10576_v11, %v13886_v31  ;;  %v19705_v61 = vpop.permute.xlu0 %13948  ;;  %v13865_v18 = vunpack.i.l.bf16 %v19586_v8  ;;  %v9253_v31 = vld [vmem:[#allocation9 + $0x189] sm:$0xff]  ;;  %v13871_v15 = vunpack.i.h.bf16 %v19595_v33 }
 0xb76   : > { %v13889_v23 = vpop.permute.xlu1 %13888  ;;  %v13916_v8 = vunpack.i.h.bf16 %v19635_v40 }
 0xb77   : > { %v13891_v54 = vunpack.i.h.bf16 %v13889_v23  ;;  %v13890_v36 = vunpack.i.l.bf16 %v13889_v23  ;;  %14178 = vrot.lane.b32.xlu0 %v19631_v48, %s20568_s18  ;;  %v13915_v23 = vunpack.i.l.bf16 %v19635_v40  ;;  %v10419_v53 = vsel %vm606_vm2, %v19370_v17, %v13865_v18  ;;  %v9382_v18 = vld [vmem:[#allocation9 + $0x1a2] sm:$0xff] }
 0xb78   : > { %14233 = vrot.lane.b32.xlu1 %v19661_v63, %s20563_s23 }
 0xb79   : > { %v19712_v57 = vsel %vm3287_vm0, %v10607_v14, %v13890_v36  ;;  %v19715_v41 = vsel %vm3287_vm0, %v10608_v13, %v13891_v54  ;;  %v19717_v55 = vpop.permute.xlu0 %13973  ;;  %v9109_v14 = vld [vmem:[#allocation9 + $0xb0] sm:$0xff] }
 0xb7a   : > { %v13904_v50 = vpop.permute.xlu1 %13903  ;;  %v10667_v7 = vpack.c.bf16 %v19715_v41, %v19712_v57  ;;  %v20653_v57 = vpack.c.bf16 %v19691_v43, %v19688_v28 }
 0xb7b   : > { %14183 = vrot.lane.b32.xlu0 %v19607_v9, %s20442_s26  ;;  %v13906_v12 = vunpack.i.h.bf16 %v13904_v50  ;;  %v13905_v6 = vunpack.i.l.bf16 %v13904_v50 }
 0xb7c   : > { %14273 = vrot.lane.b32.xlu1 %v14272_v47, %s20443_s30  ;;  %v9252_v47 = vld [vmem:[#allocation9 + $0x181] sm:$0xff]  ;;  %v10705_v41 = vsel %vm3343_vm1, %v20653_v57, 0 }
 0xb7d   : > { %v19728_v11 = vpop.permute.xlu0 %13978  ;;  %v10422_v54 = vsel %vm606_vm2, %v9109_v14, %v13906_v12  ;;  %v10421_v36 = vsel %vm606_vm2, %v9108_v58, %v13905_v6  ;;  %v19742_v20 = vpack.i.bf16 %v9253_v31, %v9252_v47  ;;  %v9285_v12 = vld [vmem:[#allocation9 + $0x18a] sm:$0xff]  ;;  %v10451_v6 = vsel %vm682_vm3, %v10419_v53, %v13870_v39 }
 0xb7e   : > { %v13909_v30 = vpop.permute.xlu1 %13908 }
 0xb7f   : > { %v13911_v9 = vunpack.i.h.bf16 %v13909_v30  ;;  %v13910_v13 = vunpack.i.l.bf16 %v13909_v30  ;;  %14188 = vrot.lane.b32.xlu0 %v19617_v26, %s20443_s30  ;;  %v10420_v26 = vsel %vm606_vm2, %v19365_v59, %v13866_v25  ;;  %v10483_v59 = vsel %vm2381_vm8, %v10451_v6, %v13915_v23  ;;  %v9381_v25 = vld [vmem:[#allocation9 + $0x19a] sm:$0xff] }
 0xb80   : > { %14283 = vrot.lane.b32.xlu1 %v19724_v35, %s20421_s0  ;;  %v10452_v58 = vsel %vm682_vm3, %v10420_v26, %v13871_v15  ;;  %v13976_v6 = vunpack.i.h.bf16 %v19717_v55 }
 0xb81   : > { %v10453_v33 = vsel %vm682_vm3, %v10421_v36, %v13910_v13  ;;  %v10454_v50 = vsel %vm682_vm3, %v10422_v54, %v13911_v9  ;;  %v19748_v30 = vpop.permute.xlu0 %13993  ;;  %v10484_v17 = vsel %vm2381_vm8, %v10452_v58, %v13916_v8  ;;  %v19760_v9 = vpack.i.bf16 %v9285_v12, %v9284_v19 }
 0xb82   : > { %v13934_v40 = vpop.permute.xlu1 %13933  ;;  %v14297_v8 = vpack.i.bf16 %v9382_v18, %v9381_v25  ;;  %v13665_v12 = vunpack.i.l.bf16 %v19420_v51  ;;  %v13975_v58 = vunpack.i.l.bf16 %v19717_v55  ;;  %v13670_v18 = vunpack.i.l.bf16 %v19435_v22 }
 0xb83   : > { %v13936_v14 = vunpack.i.h.bf16 %v13934_v40  ;;  %v13935_v13 = vunpack.i.l.bf16 %v13934_v40  ;;  %14193 = vrot.lane.b32.xlu0 %v19631_v48, %s20563_s23 }
 0xb84   : > { %14288 = vrot.lane.b32.xlu1 %v19742_v20, %s20564_s29 }
 0xb85   : > { %v10516_v31 = vsel %vm711_vm4, %v10484_v17, %v13936_v14  ;;  %v10515_v39 = vsel %vm711_vm4, %v10483_v59, %v13935_v13  ;;  %v19762_v15 = vpop.permute.xlu0 %13998  ;;  %v9094_v14 = vld [vmem:[#allocation9] sm:$0xff]  ;;  %v13981_v13 = vunpack.i.h.bf16 %v19728_v11  ;;  %v13980_v59 = vunpack.i.l.bf16 %v19728_v11 }
 0xb86   : > { %v13939_v54 = vpop.permute.xlu1 %13938  ;;  %v10407_v11 = vsel %vm606_vm2, %v9094_v14, %v13665_v12 }
 0xb87   : > { %v13941_v36 = vunpack.i.h.bf16 %v13939_v54  ;;  %v13940_v48 = vunpack.i.l.bf16 %v13939_v54  ;;  %14238 = vrot.lane.b32.xlu0 %v19667_v2, %s20421_s0  ;;  %v13666_v2 = vunpack.i.h.bf16 %v19420_v51 }
 0xb88   : > { %14293 = vrot.lane.b32.xlu1 %v19760_v9, %s20439_s19 }
 0xb89   : > { %v10547_v23 = vsel %vm3260_vm13, %v10515_v39, %v13940_v48  ;;  %v10548_v47 = vsel %vm3260_vm13, %v10516_v31, %v13941_v36  ;;  %v19770_v26 = vpop.permute.xlu0 %14003 }
 0xb8a   : > { %v13954_v19 = vpop.permute.xlu1 %13953 }
 0xb8b   : > { %v13956_v53 = vunpack.i.h.bf16 %v13954_v19  ;;  %v13955_v40 = vunpack.i.l.bf16 %v13954_v19  ;;  %14243 = vrot.lane.b32.xlu0 %v19647_v56, %s20564_s29  ;;  %v9095_v56 = vld [vmem:[#allocation9 + $0x8] sm:$0xff] }
 0xb8c   : > { %14298 = vrot.lane.b32.xlu1 %v14297_v8, %s20563_s23 }
 0xb8d   : > { %v10485_v17 = vsel %vm2381_vm8, %v10453_v33, %v13955_v40  ;;  %v10486_v25 = vsel %vm2381_vm8, %v10454_v50, %v13956_v53  ;;  %v14009_v39 = vpop.permute.xlu0 %14008  ;;  %v13671_v33 = vunpack.i.h.bf16 %v19435_v22  ;;  %v10408_v53 = vsel %vm606_vm2, %v9095_v56, %v13666_v2  ;;  %v9334_v2 = vld [vmem:[#allocation9 + $0xe1] sm:$0xff] }
 0xb8e   : > { %v10517_v31 = vsel %vm711_vm4, %v10485_v17, %v13975_v58  ;;  %v10518_v51 = vsel %vm711_vm4, %v10486_v25, %v13976_v6  ;;  %v13959_v54 = vpop.permute.xlu1 %13958  ;;  %v14011_v36 = vunpack.i.h.bf16 %v14009_v39  ;;  %v14010_v55 = vunpack.i.l.bf16 %v14009_v39  ;;  %v19807_v25 = vld [vmem:[#allocation9 + $0xda] sm:$0xff]  ;;  %v19809_v56 = vld [vmem:[#allocation9 + $0xe2] sm:$0xff] }
 0xb8f   : > { %v10549_v48 = vsel %vm3260_vm13, %v10517_v31, %v13980_v59  ;;  %v10550_v8 = vsel %vm3260_vm13, %v10518_v51, %v13981_v13  ;;  %14248 = vrot.lane.b32.xlu0 %v19661_v63, %s20439_s19  ;;  %v13961_v50 = vunpack.i.h.bf16 %v13959_v54  ;;  %v13960_v19 = vunpack.i.l.bf16 %v13959_v54 }
 0xb90   : > { %v19794_v40 = vsel %vm3269_vm14, %v10549_v48, %v14010_v55  ;;  %v19797_v6 = vsel %vm3269_vm14, %v10550_v8, %v14011_v36  ;;  %v13690_v58 = vunpack.i.l.bf16 %v19443_v60  ;;  %v10439_v22 = vsel %vm682_vm3, %v10407_v11, %v13670_v18 }
 0xb91   : > { %v10579_v13 = vsel %vm3269_vm14, %v10547_v23, %v13960_v19  ;;  %v10580_v63 = vsel %vm3269_vm14, %v10548_v47, %v13961_v50  ;;  %v19802_v59 = vpop.permute.xlu0 %14013  ;;  %v10440_v31 = vsel %vm682_vm3, %v10408_v53, %v13671_v33  ;;  %v13691_v23 = vunpack.i.h.bf16 %v19443_v60 }
 0xb92   : > { %v13964_v12 = vpop.permute.xlu1 %13963  ;;  %v13695_v47 = vunpack.i.l.bf16 %v19410_v62  ;;  %v13696_v51 = vunpack.i.h.bf16 %v19410_v62  ;;  %v13700_v18 = vunpack.i.l.bf16 %v19418_v0  ;;  %v10471_v36 = vsel %vm2381_vm8, %v10439_v22, %v13690_v58 }
 0xb93   : > { %v13966_v14 = vunpack.i.h.bf16 %v13964_v12  ;;  %v13965_v17 = vunpack.i.l.bf16 %v13964_v12  ;;  %14253 = vrot.lane.b32.xlu0 %v19724_v35, %s20442_s26  ;;  %v9333_v35 = vld [vmem:[#allocation9 + $0xd9] sm:$0xff]  ;;  %v13701_v55 = vunpack.i.h.bf16 %v19418_v0  ;;  %v14277_v60 = vpack.i.bf16 %v19809_v56, %v19807_v25 }
 0xb94   : > { %v14267_v11 = vpack.i.bf16 %v9334_v2, %v9333_v35  ;;  %v13721_v62 = vunpack.i.h.bf16 %v19437_v45  ;;  %v13720_v33 = vunpack.i.l.bf16 %v19437_v45  ;;  %v10472_v53 = vsel %vm2381_vm8, %v10440_v31, %v13691_v23 }
 0xb95   : > { %v10611_v39 = vsel %vm3278_vm15, %v10579_v13, %v13965_v17  ;;  %v10612_v54 = vsel %vm3278_vm15, %v10580_v63, %v13966_v14  ;;  %v19820_v48 = vpop.permute.xlu0 %14018  ;;  %v10503_v0 = vsel %vm711_vm4, %v10471_v36, %v13695_v47  ;;  %v13726_v58 = vunpack.i.h.bf16 %v19441_v32 }
 0xb96   : > { %v13969_v8 = vpop.permute.xlu1 %13968  ;;  %v13725_v13 = vunpack.i.l.bf16 %v19441_v32  ;;  %v10504_v63 = vsel %vm711_vm4, %v10472_v53, %v13696_v51  ;;  %v10535_v12 = vsel %vm3260_vm13, %v10503_v0, %v13700_v18  ;;  %v13946_v14 = vunpack.i.h.bf16 %v19695_v21 }
 0xb97   : > { %v13971_v50 = vunpack.i.h.bf16 %v13969_v8  ;;  %v13970_v19 = vunpack.i.l.bf16 %v13969_v8  ;;  %14258 = vrot.lane.b32.xlu0 %v19742_v20, %s20443_s30  ;;  %v10536_v20 = vsel %vm3260_vm13, %v10504_v63, %v13701_v55  ;;  %v13945_v17 = vunpack.i.l.bf16 %v19695_v21 }
 0xb98   : > { %v10567_v56 = vsel %vm3269_vm14, %v10535_v12, %v13720_v33  ;;  %v10568_v31 = vsel %vm3269_vm14, %v10536_v20, %v13721_v62  ;;  %v13951_v23 = vunpack.i.h.bf16 %v19705_v61  ;;  %v13950_v47 = vunpack.i.l.bf16 %v19705_v61  ;;  %v19864_v61 = vld [vmem:[%s20287_s15] sm:$0x3] }
 0xb99   : > { %v19835_v22 = vsel %vm3287_vm0, %v10611_v39, %v13970_v19  ;;  %v19838_v45 = vsel %vm3287_vm0, %v10612_v54, %v13971_v50  ;;  %v14029_v2 = vpop.permute.xlu0 %14028  ;;  %v10599_v51 = vsel %vm3278_vm15, %v10567_v56, %v13725_v13  ;;  %v10600_v21 = vsel %vm3278_vm15, %v10568_v31, %v13726_v58  ;;  %11204 = vmatprep.mubr.msk.bf16.mxu1 %vm3343_vm1, %v19864_v61 }
 0xb9a   : > { %v19843_v25 = vpop.permute.xlu1 %13983  ;;  %v10669_v32 = vpack.c.bf16 %v19838_v45, %v19835_v22  ;;  %v13996_v18 = vunpack.i.h.bf16 %v19748_v30  ;;  %v13995_v39 = vunpack.i.l.bf16 %v19748_v30  ;;  %v13731_v54 = vunpack.i.h.bf16 %v19451_v38 }
 0xb9b   : > { %14263 = vrot.lane.b32.xlu0 %v19760_v9, %s20563_s23  ;;  %v13730_v35 = vunpack.i.l.bf16 %v19451_v38  ;;  %v14001_v36 = vunpack.i.h.bf16 %v19762_v15  ;;  %v14000_v55 = vunpack.i.l.bf16 %v19762_v15  ;;  %v10424_v9 = vsel %vm606_vm2, %v19422_v42, %v13946_v14 }
 0xb9c   : > { %v10423_v8 = vsel %vm606_vm2, %v19427_v37, %v13945_v17  ;;  %v14006_v30 = vunpack.i.h.bf16 %v19770_v26  ;;  %v14005_v62 = vunpack.i.l.bf16 %v19770_v26  ;;  %v10456_v50 = vsel %vm682_vm3, %v10424_v9, %v13951_v23 }
 0xb9d   : > { %v14034_v38 = vpop.permute.xlu0 %14033  ;;  %v10455_v15 = vsel %vm682_vm3, %v10423_v8, %v13950_v47  ;;  %v14031_v19 = vunpack.i.h.bf16 %v14029_v2  ;;  %v14030_v53 = vunpack.i.l.bf16 %v14029_v2  ;;  %v10488_v37 = vsel %vm2381_vm8, %v10456_v50, %v13996_v18  ;;  %v10680_v18 = vld [vmem:[%s20288_s16] sm:$0x7] }
 0xb9e   : > { %v19872_v33 = vpop.permute.xlu1 %13988  ;;  %v10487_v42 = vsel %vm2381_vm8, %v10455_v15, %v13995_v39  ;;  %v14036_v0 = vunpack.i.h.bf16 %v14034_v38  ;;  %v14035_v26 = vunpack.i.l.bf16 %v14034_v38  ;;  %v10520_v13 = vsel %vm711_vm4, %v10488_v37, %v14001_v36  ;;  %v14425_v37 = vld [vmem:[#allocation9 + $0x20] sm:$0xff] }
 0xb9f   : > { %14268 = vrot.lane.b32.xlu0 %v14267_v11, %s20443_s30  ;;  %v10519_v58 = vsel %vm711_vm4, %v10487_v42, %v14000_v55  ;;  %v10631_v63 = vsel %vm3287_vm0, %v10599_v51, %v13730_v35  ;;  %v10632_v12 = vsel %vm3287_vm0, %v10600_v21, %v13731_v54  ;;  %v10552_v14 = vsel %vm3260_vm13, %v10520_v13, %v14006_v30  ;;  %s11067_s30 = sshll.u32 %s20656_s25, 3 }
 0xba0   : > { %v10551_v20 = vsel %vm3260_vm13, %v10519_v58, %v14005_v62  ;;  %v10584_v56 = vsel %vm3269_vm14, %v10552_v14, %v14031_v19  ;;  %v10663_v21 = vpack.c.bf16 %v10632_v12, %v10631_v63  ;;  %v13681_v9 = vunpack.i.h.bf16 %v19396_v3  ;;  %s548_s22 = scalar_lea.vmem %s20289_s17, %s11067_s30 }
 0xba1   : > { %v14039_v17 = vpop.permute.xlu0 %14038  ;;  %v10583_v2 = vsel %vm3269_vm14, %v10551_v20, %v14030_v53  ;;  %v10616_v51 = vsel %vm3278_vm15, %v10584_v56, %v14036_v0  ;;  %v13680_v8 = vunpack.i.l.bf16 %v19396_v3  ;;  %v13686_v38 = vunpack.i.h.bf16 %v19403_v4  ;;  %v14426_v3 = vld [vmem:[#allocation9 + $0x18] sm:$0xff] }
 0xba2   : > { %v19887_v11 = vpop.permute.xlu1 %14023  ;;  %v14041_v31 = vunpack.i.h.bf16 %v14039_v17  ;;  %v14040_v23 = vunpack.i.l.bf16 %v14039_v17  ;;  %v10615_v47 = vsel %vm3278_vm15, %v10583_v2, %v14035_v26  ;;  %v13685_v15 = vunpack.i.l.bf16 %v19403_v4 }
 0xba3   : > { %14278 = vrot.lane.b32.xlu0 %v14277_v60, %s20563_s23  ;;  %v10690_v60 = vsel %vm3343_vm1, %v10663_v21, 0  ;;  %v13716_v50 = vunpack.i.h.bf16 %v19429_v24  ;;  %v13715_v19 = vunpack.i.l.bf16 %v19429_v24  ;;  %v13736_v53 = vunpack.i.h.bf16 %v19460_v5 }
 0xba4   : > { %v10647_v39 = vsel %vm3287_vm0, %v10615_v47, %v14040_v23  ;;  %v10648_v54 = vsel %vm3287_vm0, %v10616_v51, %v14041_v31  ;;  %v13735_v42 = vunpack.i.l.bf16 %v19460_v5  ;;  %v10410_v0 = vsel %vm606_vm2, %v14425_v37, %v13681_v9 }
 0xba5   : > { %v10671_v35 = vpack.c.bf16 %v10648_v54, %v10647_v39  ;;  %v19899_v36 = vpop.permute.xlu0 %14043  ;;  %v10409_v26 = vsel %vm606_vm2, %v14426_v3, %v13680_v8  ;;  %v13741_v58 = vunpack.i.h.bf16 %v19470_v52  ;;  %v13740_v13 = vunpack.i.l.bf16 %v19470_v52 }
 0xba6   : > { %v19901_v55 = vpop.permute.xlu1 %14053  ;;  %v10441_v24 = vsel %vm682_vm3, %v10409_v26, %v13685_v15  ;;  %v10442_v12 = vsel %vm682_vm3, %v10410_v0, %v13686_v38  ;;  %v13761_v5 = vunpack.i.h.bf16 %v19494_v10  ;;  %v13760_v20 = vunpack.i.l.bf16 %v19494_v10 }
 0xba7   : > { %10683 = vperm.xlu0 %14302, %v10680_v18   ;;  %11369 = vmatprep.subr.msk.bf16.mxu1 %vm3343_vm1, %v10671_v35  ;;  %v10473_v14 = vsel %vm2381_vm8, %v10441_v24, %v13715_v19  ;;  %v10474_v17 = vsel %vm2381_vm8, %v10442_v12, %v13716_v50  ;;  %v13766_v2 = vunpack.i.h.bf16 %v19506_v34  ;;  %v13765_v52 = vunpack.i.l.bf16 %v19506_v34  ;;  %v9112_v50 = vld [vmem:[#allocation9 + $0xd8] sm:$0xff]  ;;  %v9113_v19 = vld [vmem:[#allocation9 + $0xe0] sm:$0xff] }
 0xba8   : > { %11189 = vmatpush3.bf16.xpose.msra.mxu1 %v10690_v60  ;;  %v10505_v56 = vsel %vm711_vm4, %v10473_v14, %v13735_v42  ;;  %v10506_v31 = vsel %vm711_vm4, %v10474_v17, %v13736_v53  ;;  %v13986_v51 = vunpack.i.h.bf16 %v19843_v25  ;;  %v13985_v10 = vunpack.i.l.bf16 %v19843_v25 }
 0xba9   : > { %v19907_v30 = vpop.permute.xlu0 %14048  ;;  %v10537_v23 = vsel %vm3260_vm13, %v10505_v56, %v13740_v13  ;;  %v10538_v47 = vsel %vm3260_vm13, %v10506_v31, %v13741_v58  ;;  %v13991_v34 = vunpack.i.h.bf16 %v19872_v33  ;;  %v13990_v35 = vunpack.i.l.bf16 %v19872_v33 }
 0xbaa   : > { %v19909_v62 = vpop.permute.xlu1 %14058  ;;  %v10569_v39 = vsel %vm3269_vm14, %v10537_v23, %v13760_v20  ;;  %v10570_v54 = vsel %vm3269_vm14, %v10538_v47, %v13761_v5  ;;  %v14026_v8 = vunpack.i.h.bf16 %v19887_v11  ;;  %v14025_v38 = vunpack.i.l.bf16 %v19887_v11 }
 0xbab   : > { %v10601_v60 = vsel %vm3278_vm15, %v10569_v39, %v13765_v52  ;;  %v10602_v9 = vsel %vm3278_vm15, %v10570_v54, %v13766_v2  ;;  %v13771_v25 = vunpack.i.h.bf16 %v19518_v49  ;;  %v13770_v15 = vunpack.i.l.bf16 %v19518_v49 }
 0xbac   : > { %v14046_v53 = vunpack.i.h.bf16 %v19899_v36  ;;  %v14045_v42 = vunpack.i.l.bf16 %v19899_v36  ;;  %v10426_v33 = vsel %vm606_vm2, %v9113_v19, %v13986_v51  ;;  %v10425_v37 = vsel %vm606_vm2, %v9112_v50, %v13985_v10 }
 0xbad   : > { %v19921_v63 = vpop.permute.xlu0 %14063  ;;  %v14051_v0 = vunpack.i.h.bf16 %v19907_v30  ;;  %v14050_v3 = vunpack.i.l.bf16 %v19907_v30  ;;  %v10457_v58 = vsel %vm682_vm3, %v10425_v37, %v13990_v35  ;;  %v10458_v49 = vsel %vm682_vm3, %v10426_v33, %v13991_v34  ;;  %v14428_v37 = vld [vmem:[#allocation9 + $0x48] sm:$0xff] }
 0xbae   : > { %v19923_v4 = vpop.permute.xlu1 %14118  ;;  %v10489_v12 = vsel %vm2381_vm8, %v10457_v58, %v14025_v38  ;;  %v10490_v36 = vsel %vm2381_vm8, %v10458_v49, %v14026_v8  ;;  %v10633_v14 = vsel %vm3287_vm0, %v10601_v60, %v13770_v15  ;;  %v10634_v17 = vsel %vm3287_vm0, %v10602_v9, %v13771_v25 }
 0xbaf   : > { %v10521_v30 = vsel %vm711_vm4, %v10489_v12, %v14045_v42  ;;  %v10522_v2 = vsel %vm711_vm4, %v10490_v36, %v14046_v53  ;;  %v13746_v52 = vunpack.i.h.bf16 %v19478_v27  ;;  %v13745_v54 = vunpack.i.l.bf16 %v19478_v27  ;;  %v14427_v42 = vld [vmem:[#allocation9 + $0x50] sm:$0xff] }
 0xbb0   : > { %v10553_v56 = vsel %vm3260_vm13, %v10521_v30, %v14050_v3  ;;  %v10554_v31 = vsel %vm3260_vm13, %v10522_v2, %v14051_v0  ;;  %v10664_v60 = vpack.c.bf16 %v10634_v17, %v10633_v14  ;;  %v13751_v9 = vunpack.i.h.bf16 %v19485_v29 }
 0xbb1   : > { %v14069_v21 = vpop.permute.xlu0 %14068  ;;  %v13750_v8 = vunpack.i.l.bf16 %v19485_v29  ;;  %v13796_v15 = vunpack.i.h.bf16 %v19566_v46  ;;  %v13795_v50 = vunpack.i.l.bf16 %v19566_v46  ;;  %v10414_v33 = vsel %vm606_vm2, %v14427_v42, %v13746_v52 }
 0xbb2   : > { %v19939_v18 = vpop.permute.xlu1 %14123  ;;  %v14071_v13 = vunpack.i.h.bf16 %v14069_v21  ;;  %v14070_v24 = vunpack.i.l.bf16 %v14069_v21  ;;  %v10413_v0 = vsel %vm606_vm2, %v14428_v37, %v13745_v54  ;;  %v10693_v29 = vsel %vm3343_vm1, %v10664_v60, 0 }
 0xbb3   : > { %v10445_v3 = vsel %vm682_vm3, %v10413_v0, %v13750_v8  ;;  %v13815_v12 = vunpack.i.l.bf16 %v19501_v16  ;;  %v13820_v14 = vunpack.i.l.bf16 %v19513_v1  ;;  %v13841_v2 = vunpack.i.h.bf16 %v19548_v44 }
 0xbb4   : > { %v10585_v51 = vsel %vm3269_vm14, %v10553_v56, %v14070_v24  ;;  %v10586_v10 = vsel %vm3269_vm14, %v10554_v31, %v14071_v13  ;;  %v10477_v46 = vsel %vm2381_vm8, %v10445_v3, %v13795_v50  ;;  %v13816_v24 = vunpack.i.h.bf16 %v19501_v16  ;;  %v20648_v56 = vld [vmem:[#allocation11_spill] sm:$0xff]  ;;  %v9114_v50 = vld [vmem:[#allocation9 + $0xf0] sm:$0xff] }
 0xbb5   : > { %v14074_v26 = vpop.permute.xlu0 %14073  ;;  %v10509_v36 = vsel %vm711_vm4, %v10477_v46, %v13815_v12  ;;  %v13840_v52 = vunpack.i.l.bf16 %v19548_v44  ;;  %v13846_v31 = vunpack.i.h.bf16 %v20648_v56  ;;  %v13845_v16 = vunpack.i.l.bf16 %v20648_v56  ;;  %v14429_v46 = vld [vmem:[#allocation9 + $0x110] sm:$0xff] }
 0xbb6   : > { %v19957_v11 = vpop.permute.xlu1 %14128  ;;  %v14076_v5 = vunpack.i.h.bf16 %v14074_v26  ;;  %v14075_v20 = vunpack.i.l.bf16 %v14074_v26  ;;  %v10446_v26 = vsel %vm682_vm3, %v10414_v33, %v13751_v9  ;;  %v14015_v54 = vunpack.i.l.bf16 %v19802_v59 }
 0xbb7   : > { %v10478_v58 = vsel %vm2381_vm8, %v10446_v26, %v13796_v15  ;;  %v14020_v44 = vunpack.i.l.bf16 %v19820_v48  ;;  %v14055_v60 = vunpack.i.l.bf16 %v19901_v55  ;;  %v14121_v42 = vunpack.i.h.bf16 %v19923_v4 }
 0xbb8   : > { %v10617_v34 = vsel %vm3278_vm15, %v10585_v51, %v14075_v20  ;;  %v10618_v35 = vsel %vm3278_vm15, %v10586_v10, %v14076_v5  ;;  %v10510_v5 = vsel %vm711_vm4, %v10478_v58, %v13816_v24  ;;  %v13821_v20 = vunpack.i.h.bf16 %v19513_v1  ;;  %v20649_v10 = vld [vmem:[#allocation63_spill] sm:$0xff] }
 0xbb9   : > { %v14079_v23 = vpop.permute.xlu0 %14078  ;;  %v13850_v1 = vunpack.i.l.bf16 %v20649_v10  ;;  %v14120_v33 = vunpack.i.l.bf16 %v19923_v4  ;;  %v14126_v0 = vunpack.i.h.bf16 %v19939_v18 }
 0xbba   : > { %v19970_v47 = vpop.permute.xlu1 %14133  ;;  %v14081_v21 = vunpack.i.h.bf16 %v14079_v23  ;;  %v14080_v39 = vunpack.i.l.bf16 %v14079_v23  ;;  %v10541_v23 = vsel %vm3260_vm13, %v10509_v36, %v13820_v14  ;;  %v10542_v51 = vsel %vm3260_vm13, %v10510_v5, %v13821_v20 }
 0xbbb   : > { %v20030_v15 = vsel %vm3269_vm14, %v10541_v23, %v13840_v52  ;;  %v14131_v20 = vunpack.i.h.bf16 %v19957_v11 }
 0xbbc   : > { %v10649_v38 = vsel %vm3287_vm0, %v10617_v34, %v14080_v39  ;;  %v10650_v25 = vsel %vm3287_vm0, %v10618_v35, %v14081_v21  ;;  %v13851_v21 = vunpack.i.h.bf16 %v20649_v10  ;;  %v14016_v39 = vunpack.i.h.bf16 %v19802_v59 }
 0xbbd   : > { %v10672_v19 = vpack.c.bf16 %v10650_v25, %v10649_v38  ;;  %v19983_v53 = vpop.permute.xlu0 %14083  ;;  %v14021_v34 = vunpack.i.h.bf16 %v19820_v48  ;;  %v14056_v35 = vunpack.i.h.bf16 %v19901_v55  ;;  %v14061_v38 = vunpack.i.h.bf16 %v19909_v62  ;;  %v9115_v48 = vld [vmem:[#allocation9 + $0xf8] sm:$0xff] }
 0xbbe   : > { %v19985_v27 = vpop.permute.xlu1 %14138  ;;  %v14060_v25 = vunpack.i.l.bf16 %v19909_v62  ;;  %v20033_v59 = vsel %vm3269_vm14, %v10542_v51, %v13841_v2  ;;  %v14065_v55 = vunpack.i.l.bf16 %v19921_v63  ;;  %v10428_v37 = vsel %vm606_vm2, %v9115_v48, %v14016_v39 }
 0xbbf   : > { %11370 = vmatprep.subr.msk.bf16.mxu1 %vm3343_vm1, %v10672_v19  ;;  %v14066_v19 = vunpack.i.h.bf16 %v19921_v63  ;;  %v10427_v62 = vsel %vm606_vm2, %v9114_v50, %v14015_v54  ;;  %v10460_v26 = vsel %vm682_vm3, %v10428_v37, %v14021_v34  ;;  %v10430_v58 = vsel %vm606_vm2, %v14429_v46, %v14056_v35  ;;  %v14430_v63 = vld [vmem:[#allocation9 + $0x108] sm:$0xff] }
 0xbc0   : > { %11191 = vmatpush3.bf16.xpose.msra.mxu1 %v10693_v29  ;;  %v14125_v29 = vunpack.i.l.bf16 %v19939_v18  ;;  %v10459_v3 = vsel %vm682_vm3, %v10427_v62, %v14020_v44  ;;  %v10429_v24 = vsel %vm606_vm2, %v14430_v63, %v14055_v60  ;;  %v10462_v5 = vsel %vm682_vm3, %v10430_v58, %v14061_v38 }
 0xbc1   : > { %v19995_v49 = vpop.permute.xlu0 %14088  ;;  %v10461_v36 = vsel %vm682_vm3, %v10429_v24, %v14060_v25  ;;  %v14130_v18 = vunpack.i.l.bf16 %v19957_v11  ;;  %v10491_v14 = vsel %vm2381_vm8, %v10459_v3, %v14065_v55  ;;  %v10492_v2 = vsel %vm2381_vm8, %v10460_v26, %v14066_v19 }
 0xbc2   : > { %v19997_v13 = vpop.permute.xlu1 %14143  ;;  %v10493_v52 = vsel %vm2381_vm8, %v10461_v36, %v14120_v33  ;;  %v10494_v23 = vsel %vm2381_vm8, %v10462_v5, %v14121_v42  ;;  %v14086_v54 = vunpack.i.h.bf16 %v19983_v53  ;;  %v14085_v34 = vunpack.i.l.bf16 %v19983_v53 }
 0xbc3   : > { %v10525_v51 = vsel %vm711_vm4, %v10493_v52, %v14125_v29  ;;  %v10526_v39 = vsel %vm711_vm4, %v10494_v23, %v14126_v0  ;;  %v14091_v44 = vunpack.i.h.bf16 %v19995_v49  ;;  %v14090_v11 = vunpack.i.l.bf16 %v19995_v49 }
 0xbc4   : > { %v14146_v35 = vunpack.i.h.bf16 %v19997_v13  ;;  %v14145_v60 = vunpack.i.l.bf16 %v19997_v13  ;;  %v10557_v50 = vsel %vm3260_vm13, %v10525_v51, %v14130_v18  ;;  %v10558_v48 = vsel %vm3260_vm13, %v10526_v39, %v14131_v20 }
 0xbc5   : > { %v20005_v17 = vpop.permute.xlu0 %14093  ;;  %v10523_v49 = vsel %vm711_vm4, %v10491_v14, %v14085_v34  ;;  %v10524_v62 = vsel %vm711_vm4, %v10492_v2, %v14086_v54  ;;  %v10605_v34 = vsel %vm3278_vm15, %v20030_v15, %v13845_v16  ;;  %v14136_v10 = vunpack.i.h.bf16 %v19970_v47 }
 0xbc6   : > { %v20007_v30 = vpop.permute.xlu1 %14148  ;;  %v10555_v29 = vsel %vm3260_vm13, %v10523_v49, %v14090_v11  ;;  %v10556_v3 = vsel %vm3260_vm13, %v10524_v62, %v14091_v44  ;;  %v10589_v26 = vsel %vm3269_vm14, %v10557_v50, %v14145_v60  ;;  %v10590_v46 = vsel %vm3269_vm14, %v10558_v48, %v14146_v35  ;;  %v20650_v35 = vld [vmem:[#allocation14_spill] sm:$0xff] }
 0xbc7   : > { %v14151_v42 = vunpack.i.h.bf16 %v20007_v30  ;;  %v14150_v53 = vunpack.i.l.bf16 %v20007_v30  ;;  %v10606_v44 = vsel %vm3278_vm15, %v20033_v59, %v13846_v31  ;;  %v20651_v60 = vld [vmem:[#allocation62_spill] sm:$0xff]  ;;  %v10637_v48 = vsel %vm3287_vm0, %v10605_v34, %v13850_v1 }
 0xbc8   : > { %v10638_v56 = vsel %vm3287_vm0, %v10606_v44, %v13851_v21  ;;  %v14135_v21 = vunpack.i.l.bf16 %v19970_v47  ;;  %v14095_v49 = vunpack.i.l.bf16 %v20005_v17 }
 0xbc9   : > { %v20023_v9 = vpop.permute.xlu0 %14098  ;;  %v10621_v5 = vsel %vm3278_vm15, %v10589_v26, %v14150_v53  ;;  %v10666_v15 = vpack.c.bf16 %v10638_v56, %v10637_v48  ;;  %v14141_v53 = vunpack.i.h.bf16 %v19985_v27 }
 0xbca   : > { %v20025_v8 = vpop.permute.xlu1 %14153  ;;  %v14100_v47 = vunpack.i.l.bf16 %v20023_v9 }
 0xbcb   : > { %v14156_v13 = vunpack.i.h.bf16 %v20025_v8  ;;  %v14155_v0 = vunpack.i.l.bf16 %v20025_v8  ;;  %v10622_v8 = vsel %vm3278_vm15, %v10590_v46, %v14151_v42  ;;  %v14431_v46 = vld [vmem:[#allocation9 + $0x140] sm:$0xff] }
 0xbcd   : > { %v14104_v12 = vpop.permute.xlu0 %14103  ;;  %v10653_v14 = vsel %vm3287_vm0, %v10621_v5, %v14155_v0  ;;  %v10654_v2 = vsel %vm3287_vm0, %v10622_v8, %v14156_v13 }
 0xbce   : > { %v20047_v4 = vpop.permute.xlu1 %14198  ;;  %v14106_v19 = vunpack.i.h.bf16 %v14104_v12  ;;  %v14105_v55 = vunpack.i.l.bf16 %v14104_v12  ;;  %v10674_v11 = vpack.c.bf16 %v10654_v2, %v10653_v14 }
 0xbcf   : > { %v14201_v0 = vunpack.i.h.bf16 %v20047_v4 }
 0xbd0   : > { %v10587_v63 = vsel %vm3269_vm14, %v10555_v29, %v14105_v55  ;;  %v10588_v24 = vsel %vm3269_vm14, %v10556_v3, %v14106_v19  ;;  %v10699_v55 = vsel %vm3343_vm1, %v10666_v15, 0  ;;  %v14200_v29 = vunpack.i.l.bf16 %v20047_v4 }
 0xbd1   : > { %v14109_v38 = vpop.permute.xlu0 %14108  ;;  %v14101_v3 = vunpack.i.h.bf16 %v20023_v9 }
 0xbd2   : > { %v20065_v25 = vpop.permute.xlu1 %14203  ;;  %v14111_v33 = vunpack.i.h.bf16 %v14109_v38  ;;  %v14110_v37 = vunpack.i.l.bf16 %v14109_v38  ;;  %v20652_v38 = vpack.c.bf16 %v20650_v35, %v20651_v60 }
 0xbd3   : > { %v14206_v26 = vunpack.i.h.bf16 %v20065_v25 }
 0xbd4   : > { %v10619_v20 = vsel %vm3278_vm15, %v10587_v63, %v14110_v37  ;;  %v10620_v18 = vsel %vm3278_vm15, %v10588_v24, %v14111_v33  ;;  %v10696_v50 = vsel %vm3343_vm1, %v20652_v38, 0  ;;  %v14140_v33 = vunpack.i.l.bf16 %v19985_v27  ;;  %v9118_v24 = vld [vmem:[#allocation9 + $0x120] sm:$0xff] }
 0xbd5   : > { %v14114_v58 = vpop.permute.xlu0 %14113  ;;  %v14096_v37 = vunpack.i.h.bf16 %v20005_v17  ;;  %v14205_v27 = vunpack.i.l.bf16 %v20065_v25  ;;  %v14432_v17 = vld [vmem:[#allocation9 + $0x138] sm:$0xff]  ;;  %v10431_v25 = vsel %vm606_vm2, %v9118_v24, %v14095_v49 }
 0xbd6   : > { %v20079_v30 = vpop.permute.xlu1 %14208  ;;  %v14116_v12 = vunpack.i.h.bf16 %v14114_v58  ;;  %v14115_v36 = vunpack.i.l.bf16 %v14114_v58  ;;  %v10434_v58 = vsel %vm606_vm2, %v14431_v46, %v14136_v10  ;;  %v10433_v63 = vsel %vm606_vm2, %v14432_v17, %v14135_v21 }
 0xbd7   : > { %v14210_v4 = vunpack.i.l.bf16 %v20079_v30  ;;  %v10465_v5 = vsel %vm682_vm3, %v10433_v63, %v14140_v33  ;;  %v10466_v9 = vsel %vm682_vm3, %v10434_v58, %v14141_v53 }
 0xbd8   : > { %v10651_v52 = vsel %vm3287_vm0, %v10619_v20, %v14115_v36  ;;  %v10652_v23 = vsel %vm3287_vm0, %v10620_v18, %v14116_v12  ;;  %v9119_v12 = vld [vmem:[#allocation9 + $0x128] sm:$0xff]  ;;  %v14211_v36 = vunpack.i.h.bf16 %v20079_v30  ;;  %v10498_v18 = vsel %vm2381_vm8, %v10466_v9, %v14201_v0 }
 0xbd9   : > { %v10673_v51 = vpack.c.bf16 %v10652_v23, %v10651_v52  ;;  %v20091_v39 = vpop.permute.xlu0 %14158  ;;  %v10432_v8 = vsel %vm606_vm2, %v9119_v12, %v14096_v37  ;;  %v10497_v14 = vsel %vm2381_vm8, %v10465_v5, %v14200_v29  ;;  %v10463_v30 = vsel %vm682_vm3, %v10431_v25, %v14100_v47 }
 0xbda   : > { %v20093_v54 = vpop.permute.xlu1 %14213  ;;  %v14161_v2 = vunpack.i.h.bf16 %v20091_v39  ;;  %v14160_v52 = vunpack.i.l.bf16 %v20091_v39  ;;  %v10529_v34 = vsel %vm711_vm4, %v10497_v14, %v14205_v27  ;;  %v10530_v44 = vsel %vm711_vm4, %v10498_v18, %v14206_v26 }
 0xbdb   : > { %11371 = vmatprep.subr.msk.bf16.mxu1 %vm3343_vm1, %v10673_v51  ;;  %v10464_v51 = vsel %vm682_vm3, %v10432_v8, %v14101_v3  ;;  %v10562_v35 = vsel %vm3260_vm13, %v10530_v44, %v14211_v36 }
 0xbdc   : > { %11193 = vmatpush3.bf16.xpose.msra.mxu1 %v10696_v50  ;;  %v10496_v10 = vsel %vm2381_vm8, %v10464_v51, %v14161_v2  ;;  %v14216_v51 = vunpack.i.h.bf16 %v20093_v54 }
 0xbdd   : > { %v20114_v16 = vpop.permute.xlu0 %14163  ;;  %11372 = vmatprep.subr.msk.bf16.mxu1 %vm3343_vm1, %v10674_v11  ;;  %v10561_v11 = vsel %vm3260_vm13, %v10529_v34, %v14210_v4  ;;  %v14215_v34 = vunpack.i.l.bf16 %v20093_v54  ;;  %v14433_v54 = vld [vmem:[#allocation9 + $0x170] sm:$0xff] }
 0xbde   : > { %v20117_v31 = vpop.permute.xlu1 %14218  ;;  %v14166_v60 = vunpack.i.h.bf16 %v20114_v16  ;;  %v14165_v38 = vunpack.i.l.bf16 %v20114_v16 }
 0xbdf   : > { %v14221_v44 = vunpack.i.h.bf16 %v20117_v31 }
 0xbe1   : > { %v20119_v59 = vpop.permute.xlu0 %14168 }
 0xbe2   : > { %v20121_v19 = vpop.permute.xlu1 %14223  ;;  %v14171_v39 = vunpack.i.h.bf16 %v20119_v59  ;;  %v14170_v50 = vunpack.i.l.bf16 %v20119_v59  ;;  %v10528_v59 = vsel %vm711_vm4, %v10496_v10, %v14166_v60 }
 0xbe3   : > { %v14226_v48 = vunpack.i.h.bf16 %v20121_v19  ;;  %v14225_v56 = vunpack.i.l.bf16 %v20121_v19 }
 0xbe4   : > { %11195 = vmatpush3.bf16.xpose.msra.mxu1 %v10699_v55  ;;  %v10495_v55 = vsel %vm2381_vm8, %v10463_v30, %v14160_v52  ;;  %v10560_v26 = vsel %vm3260_vm13, %v10528_v59, %v14171_v39  ;;  %v10702_v52 = vsel %vm3343_vm1, %v10667_v7, 0 }
 0xbe5   : > { %v20126_v1 = vpop.permute.xlu0 %14173  ;;  %v10527_v0 = vsel %vm711_vm4, %v10495_v55, %v14165_v38  ;;  %v10593_v27 = vsel %vm3269_vm14, %v10561_v11, %v14225_v56  ;;  %v10594_v46 = vsel %vm3269_vm14, %v10562_v35, %v14226_v48  ;;  %v14220_v11 = vunpack.i.l.bf16 %v20117_v31  ;;  %v14434_v55 = vld [vmem:[#allocation9 + $0x168] sm:$0xff] }
 0xbe6   : > { %v20124_v42 = vpop.permute.xlu1 %14228  ;;  %v10559_v47 = vsel %vm3260_vm13, %v10527_v0, %v14170_v50  ;;  %v14176_v7 = vunpack.i.h.bf16 %v20126_v1  ;;  %v14175_v50 = vunpack.i.l.bf16 %v20126_v1  ;;  %v10437_v31 = vsel %vm606_vm2, %v14434_v55, %v14215_v34  ;;  %v20654_v1 = vld [vmem:[#allocation70_spill] sm:$0xff]  ;;  %v9123_v0 = vld [vmem:[#allocation9 + $0x158] sm:$0xff] }
 0xbe7   : > { %v14231_v33 = vunpack.i.h.bf16 %v20124_v42  ;;  %v14230_v37 = vunpack.i.l.bf16 %v20124_v42 }
 0xbe9   : > { %v20136_v13 = vpop.permute.xlu0 %14178  ;;  %v10625_v12 = vsel %vm3278_vm15, %v10593_v27, %v14230_v37  ;;  %v13676_v37 = vunpack.i.h.bf16 %v20654_v1 }
 0xbea   : > { %v20134_v62 = vpop.permute.xlu1 %14233  ;;  %v14181_v43 = vunpack.i.h.bf16 %v20136_v13 }
 0xbeb   : > { %v14236_v29 = vunpack.i.h.bf16 %v20134_v62  ;;  %v14235_v19 = vunpack.i.l.bf16 %v20134_v62  ;;  %v10626_v62 = vsel %vm3278_vm15, %v10594_v46, %v14231_v33  ;;  %v14180_v33 = vunpack.i.l.bf16 %v20136_v13 }
 0xbed   : > { %v14184_v20 = vpop.permute.xlu0 %14183  ;;  %v10657_v5 = vsel %vm3287_vm0, %v10625_v12, %v14235_v19  ;;  %v10658_v9 = vsel %vm3287_vm0, %v10626_v62, %v14236_v29 }
 0xbee   : > { %v20156_v23 = vpop.permute.xlu1 %14273  ;;  %v14186_v21 = vunpack.i.h.bf16 %v14184_v20  ;;  %v14185_v53 = vunpack.i.l.bf16 %v14184_v20  ;;  %v10676_v2 = vpack.c.bf16 %v10658_v9, %v10657_v5 }
 0xbef   : > { %v14276_v62 = vunpack.i.h.bf16 %v20156_v23 }
 0xbf0   : > { %v10592_v58 = vsel %vm3269_vm14, %v10560_v26, %v14186_v21  ;;  %v10591_v17 = vsel %vm3269_vm14, %v10559_v47, %v14185_v53  ;;  %v10469_v53 = vsel %vm682_vm3, %v10437_v31, %v14220_v11  ;;  %v10436_v47 = vsel %vm606_vm2, %v9123_v0, %v14176_v7 }
 0xbf1   : > { %v14189_v15 = vpop.permute.xlu0 %14188 }
 0xbf2   : > { %v14191_v16 = vunpack.i.h.bf16 %v14189_v15  ;;  %v14190_v49 = vunpack.i.l.bf16 %v14189_v15  ;;  %v14284_v3 = vpop.permute.xlu1 %14283  ;;  %v10438_v15 = vsel %vm606_vm2, %v14433_v54, %v14216_v51 }
 0xbf3   : > { %v14286_v60 = vunpack.i.h.bf16 %v14284_v3  ;;  %v14285_v38 = vunpack.i.l.bf16 %v14284_v3  ;;  %v10470_v28 = vsel %vm682_vm3, %v10438_v15, %v14221_v44 }
 0xbf4   : > { %v10623_v36 = vsel %vm3278_vm15, %v10591_v17, %v14190_v49  ;;  %v10624_v4 = vsel %vm3278_vm15, %v10592_v58, %v14191_v16  ;;  %v13675_v16 = vunpack.i.l.bf16 %v20654_v1  ;;  %v9122_v49 = vld [vmem:[#allocation9 + $0x150] sm:$0xff]  ;;  %v10708_v1 = vsel %vm3343_vm1, %v10669_v32, 0 }
 0xbf5   : > { %v14194_v42 = vpop.permute.xlu0 %14193  ;;  %v10502_v59 = vsel %vm2381_vm8, %v10470_v28, %v14286_v60  ;;  %v10501_v29 = vsel %vm2381_vm8, %v10469_v53, %v14285_v38  ;;  %v10435_v3 = vsel %vm606_vm2, %v9122_v49, %v14175_v50 }
 0xbf6   : > { %v14196_v63 = vunpack.i.h.bf16 %v14194_v42  ;;  %v14195_v24 = vunpack.i.l.bf16 %v14194_v42  ;;  %v14289_v14 = vpop.permute.xlu1 %14288  ;;  %v10467_v17 = vsel %vm682_vm3, %v10435_v3, %v14180_v33 }
 0xbf7   : > { %v14291_v48 = vunpack.i.h.bf16 %v14289_v14  ;;  %v14290_v56 = vunpack.i.l.bf16 %v14289_v14 }
 0xbf8   : > { %v10655_v8 = vsel %vm3287_vm0, %v10623_v36, %v14195_v24  ;;  %v10656_v25 = vsel %vm3287_vm0, %v10624_v4, %v14196_v63  ;;  %v10468_v63 = vsel %vm682_vm3, %v10436_v47, %v14181_v43  ;;  %v14275_v36 = vunpack.i.l.bf16 %v20156_v23 }
 0xbf9   : > { %v10675_v20 = vpack.c.bf16 %v10656_v25, %v10655_v8  ;;  %v20192_v18 = vpop.permute.xlu0 %14238  ;;  %v10533_v26 = vsel %vm711_vm4, %v10501_v29, %v14290_v56  ;;  %v10534_v13 = vsel %vm711_vm4, %v10502_v59, %v14291_v48 }
 0xbfa   : > { %v14294_v35 = vpop.permute.xlu1 %14293  ;;  %v14241_v27 = vunpack.i.h.bf16 %v20192_v18  ;;  %v14240_v46 = vunpack.i.l.bf16 %v20192_v18 }
 0xbfb   : > { %11373 = vmatprep.subr.msk.bf16.mxu1 %vm3343_vm1, %v10675_v20  ;;  %v14296_v10 = vunpack.i.h.bf16 %v14294_v35  ;;  %v14295_v21 = vunpack.i.l.bf16 %v14294_v35 }
 0xbfc   : > { %11197 = vmatpush3.bf16.xpose.msra.mxu1 %v10702_v52  ;;  %v10500_v52 = vsel %vm2381_vm8, %v10468_v63, %v14241_v27 }
 0xbfd   : > { %v14244_v30 = vpop.permute.xlu0 %14243  ;;  %11374 = vmatprep.subr.msk.bf16.mxu1 %vm3343_vm1, %v10676_v2  ;;  %v10565_v42 = vsel %vm3260_vm13, %v10533_v26, %v14295_v21  ;;  %v10566_v58 = vsel %vm3260_vm13, %v10534_v13, %v14296_v10  ;;  %v10499_v2 = vsel %vm2381_vm8, %v10467_v17, %v14240_v46 }
 0xbfe   : > { %v14246_v24 = vunpack.i.h.bf16 %v14244_v30  ;;  %v14245_v12 = vunpack.i.l.bf16 %v14244_v30  ;;  %v14299_v4 = vpop.permute.xlu1 %14298  ;;  %v10597_v25 = vsel %vm3269_vm14, %v10565_v42, %v13675_v16  ;;  %v10598_v20 = vsel %vm3269_vm14, %v10566_v58, %v13676_v37 }
 0xbff   : > { %v14301_v44 = vunpack.i.h.bf16 %v14299_v4  ;;  %v14300_v11 = vunpack.i.l.bf16 %v14299_v4  ;;  %v10629_v35 = vsel %vm3278_vm15, %v10597_v25, %v14275_v36  ;;  %v10630_v60 = vsel %vm3278_vm15, %v10598_v20, %v14276_v62 }
 0xc00   : > { %v10531_v34 = vsel %vm711_vm4, %v10499_v2, %v14245_v12  ;;  %v10532_v23 = vsel %vm711_vm4, %v10500_v52, %v14246_v24 }
 0xc01   : > { %v14249_v39 = vpop.permute.xlu0 %14248  ;;  %v10661_v15 = vsel %vm3287_vm0, %v10629_v35, %v14300_v11  ;;  %v10662_v55 = vsel %vm3287_vm0, %v10630_v60, %v14301_v44 }
 0xc02   : > { %v14251_v5 = vunpack.i.h.bf16 %v14249_v39  ;;  %v14250_v9 = vunpack.i.l.bf16 %v14249_v39  ;;  %v10678_v28 = vpack.c.bf16 %v10662_v55, %v10661_v15 }
 0xc04   : > { %11199 = vmatpush3.bf16.xpose.msra.mxu1 %v10705_v41  ;;  %v10563_v38 = vsel %vm3260_vm13, %v10531_v34, %v14250_v9  ;;  %v10564_v39 = vsel %vm3260_vm13, %v10532_v23, %v14251_v5 }
 0xc05   : > { %v14254_v19 = vpop.permute.xlu0 %14253 }
 0xc06   : > { %v14256_v18 = vunpack.i.h.bf16 %v14254_v19  ;;  %v14255_v14 = vunpack.i.l.bf16 %v14254_v19 }
 0xc08   : > { %v10596_v41 = vsel %vm3269_vm14, %v10564_v39, %v14256_v18  ;;  %v10595_v7 = vsel %vm3269_vm14, %v10563_v38, %v14255_v14 }
 0xc09   : > { %v14259_v8 = vpop.permute.xlu0 %14258 }
 0xc0a   : > { %v14261_v51 = vunpack.i.h.bf16 %v14259_v8  ;;  %v14260_v30 = vunpack.i.l.bf16 %v14259_v8 }
 0xc0c   : > { %v10627_v56 = vsel %vm3278_vm15, %v10595_v7, %v14260_v30  ;;  %v10628_v54 = vsel %vm3278_vm15, %v10596_v41, %v14261_v51 }
 0xc0d   : > { %v14264_v57 = vpop.permute.xlu0 %14263 }
 0xc0e   : > { %v14266_v50 = vunpack.i.h.bf16 %v14264_v57  ;;  %v14265_v48 = vunpack.i.l.bf16 %v14264_v57 }
 0xc10   : > { %v10659_v31 = vsel %vm3287_vm0, %v10627_v56, %v14265_v48  ;;  %v10660_v10 = vsel %vm3287_vm0, %v10628_v54, %v14266_v50 }
 0xc11   : > { %v10677_v21 = vpack.c.bf16 %v10660_v10, %v10659_v31  ;;  %v14269_v53 = vpop.permute.xlu0 %14268 }
 0xc12   : > { %v14271_v43 = vunpack.i.h.bf16 %v14269_v53  ;;  %v14270_v33 = vunpack.i.l.bf16 %v14269_v53 }
 0xc13   : > { %11375 = vmatprep.subr.msk.bf16.mxu1 %vm3343_vm1, %v10677_v21 }
 0xc14   : > { %11201 = vmatpush3.bf16.xpose.msra.mxu1 %v10708_v1  ;;  %v10614_v0 = vsel %vm3278_vm15, %v19797_v6, %v14271_v43  ;;  %v10613_v59 = vsel %vm3278_vm15, %v19794_v40, %v14270_v33 }
 0xc15   : > { %v14279_v37 = vpop.permute.xlu0 %14278  ;;  %11376 = vmatprep.subr.msk.bf16.mxu1 %vm3343_vm1, %v10678_v28 }
 0xc16   : > { %v14281_v16 = vunpack.i.h.bf16 %v14279_v37  ;;  %v14280_v49 = vunpack.i.l.bf16 %v14279_v37 }
 0xc18   : > { %v10645_v29 = vsel %vm3287_vm0, %v10613_v59, %v14280_v49  ;;  %v10646_v19 = vsel %vm3287_vm0, %v10614_v0, %v14281_v16 }
 0xc19   : > { %v10670_v22 = vpack.c.bf16 %v10646_v19, %v10645_v29 }
 0xc1b   : > { %v10711_v45 = vsel %vm3343_vm1, %v10670_v22, 0 }
 0xc1c   : > { %11203 = vmatpush3.bf16.xpose.msra.mxu1 %v10711_v45 }
 0xc23   : > { %11205 = vmatmul.mubr.msk.bf16.vlgmr.msra.gmra.mrb[100].mxu1 %vm3343_vm1, %v19864_v61 }
 0xc26   : > { %v10684_v32 = vpop.permute.xlu0 %10683 }
 0xcf6   : > { %v10771_v3 = vpop.f32.mrb[100].mxu1 }
 0xcf7   : > { %v10773_v47 = vpop.f32.mrb[101].mxu1  ;;  %v10772_v26 = vadd.f32 %v10771_v3, %v10684_v32 }
 0xcf8   : > { %v10775_v6 = vpop.f32.mrb[102].mxu1  ;;  %v10774_v13 = vadd.f32 %v10773_v47, %v10684_v32 }
 0xcf9   : > { %v10776_v40 = vpop.f32.mrb[103].mxu1 }
 0xcfa   : > { %v10780_v27 = vcombine.low %v10772_v26, %v10774_v13 }
 0xcfc   : > { %10782 = vst [vmem:[%s548_s22] sm:$0x77] %v10780_v27 }
 0xcfd PF: > { %s27_s24 = sadd.s32 1, %s14441_s24  }
 0xcfe   : > { %p24_p4 = scmp.ge.s32.totalorder %s27_s24, 4  }
 0xd00   :  { %26 = sbr.rel (!%p24_p4) target bundleno = 6 (0x6), region = 182 }

</bundles_post_ra>
